<compile_context>
chip_gen: v6e
topology: v6e:2x2x1
jax: 0.10.0
libtpu: 0.0.40
codegen_flags: <defaults>
</compile_context>

<pallas_src>
import jax
import jax.numpy as jnp
from jax.experimental import pallas as pl
from jax.experimental.pallas import tpu as pltpu

_EPS = 1e-12  # F.normalize default eps


def _round_up(x, m):
    return ((x + m - 1) // m) * m


# ----------------------------- kernel helpers ------------------------------

def _matmul(x_f32, w_ref):
    # bf16 MXU operands, f32 accumulation; elementwise math stays f32.
    return jnp.dot(x_f32.astype(jnp.bfloat16), w_ref[...],
                   preferred_element_type=jnp.float32)


def _linear(x, w_ref, b_ref):
    # PyTorch nn.Linear: y = x @ W^T + b ; weights stored (in, out).
    return _matmul(x, w_ref) + b_ref[...]


def _linear_relu(x, w_ref, b_ref):
    return jnp.maximum(_linear(x, w_ref, b_ref), 0.0)


def _l2_inv_norm(sumsq):
    # x / max(||x||_2, eps)  ==  x * rsqrt(max(||x||^2, eps^2))
    return jax.lax.rsqrt(jnp.maximum(sumsq, _EPS * _EPS))


# ------------------------------- the kernel --------------------------------

def model_transformer_kernel(
    # activations (one batch tile each)
    x1_ref, x2_ref, cell_ref,
    # reduction1: Linear(F1,256)->ReLU->[Dropout]->Linear(256,output_dim)
    r1w1, r1b1, r1w2, r1b2,
    # reduction2: Linear(F2,256)->ReLU->[Dropout]->Linear(256,output_dim)
    r2w1, r2b1, r2w2, r2b2,
    # self.reduction: Linear(cell,1024)->ReLU->Linear(1024,512)->ReLU->Linear(512,output_dim)
    cw1, cb1, cw2, cb2, cw3, cb3,
    # self.pre: pw1 pre-split into 3 x (output_dim,1024) row blocks
    pw1a, pw1b, pw1c, pb1, pw2, pb2, pw3, pb3,
    # output (lane-padded to a multiple of 128)
    out_ref,
):
    # ---- x1 branch (dropout = identity in eval mode) ----
    h1 = _linear_relu(x1_ref[...], r1w1, r1b1)
    x1_red = _linear(h1, r1w2, r1b2)                        # (TB, output_dim)

    # ---- x2 branch ----
    h2 = _linear_relu(x2_ref[...], r2w1, r2b1)
    x2_red = _linear(h2, r2w2, r2b2)                        # (TB, output_dim)

    # ---- cell branch: L2-normalize then 3-layer MLP ----
    cell = cell_ref[...]
    cell_vec = cell * _l2_inv_norm(
        jnp.sum(cell * cell, axis=1, keepdims=True))
    c = _linear_relu(cell_vec, cw1, cb1)
    c = _linear_relu(c, cw2, cb2)
    c = _linear(c, cw3, cb3)                                # (TB, output_dim)

    # ---- concat-free joint L2 normalize + first `pre` layer ----
    sumsq = (jnp.sum(x1_red * x1_red, axis=1, keepdims=True)
             + jnp.sum(x2_red * x2_red, axis=1, keepdims=True)
             + jnp.sum(c * c, axis=1, keepdims=True))
    inv = _l2_inv_norm(sumsq)
    p = jnp.maximum(
        _matmul(x1_red * inv, pw1a)
        + _matmul(x2_red * inv, pw1b)
        + _matmul(c * inv, pw1c)
        + pb1[...],
        0.0)                                                # (TB, 1024)

    # ---- rest of prediction head ----
    p = _linear_relu(p, pw2, pb2)                           # (TB, 512)
    out_ref[...] = _linear(p, pw3, pb3)                     # (TB, n_out_padded)


# ------------------------------ python wrapper ------------------------------

def model_transformer_forward(x1_enc, x2_enc, cell, params):
    """x1_enc/x2_enc: (B, S, D) transformer-encoder outputs; cell: (B, cell_dim)."""
    B = x1_enc.shape[0]
    x1_flat = x1_enc.reshape(B, -1).astype(jnp.float32)   # torch.reshape(x1,(B,S*D))
    x2_flat = x2_enc.reshape(B, -1).astype(jnp.float32)
    cell = cell.astype(jnp.float32)

    (r1w1, r1b1, r1w2, r1b2,
     r2w1, r2b1, r2w2, r2b2,
     cw1, cb1, cw2, cb2, cw3, cb3,
     pw1, pb1, pw2, pb2, pw3, pb3) = params

    output_dim = r1w2.shape[-1]
    n_output = pw3.shape[-1]

    # ---- zero-padding for alignment (mathematically identity) ----
    cell_dim = cell.shape[1]
    cell_dim_p = _round_up(cell_dim, 128)          # 954 -> 1024
    cell = jnp.pad(cell, ((0, 0), (0, cell_dim_p - cell_dim)))
    cw1 = jnp.pad(cw1, ((0, cell_dim_p - cell_dim), (0, 0)))

    n_out_p = _round_up(n_output, 128)             # lane-dense output stores
    pw3 = jnp.pad(pw3, ((0, 0), (0, n_out_p - n_output)))
    pb3 = jnp.pad(pb3, ((0, 0), (0, n_out_p - n_output)))

    # split pw1 into three (output_dim, 1024) blocks -> removes in-kernel concat
    pw1a = pw1[:output_dim]
    pw1b = pw1[output_dim:2 * output_dim]
    pw1c = pw1[2 * output_dim:]

    # ---- batch tiling ----
    TB = 128 if B >= 128 else _round_up(max(B, 1), 8)
    B_p = _round_up(B, TB)
    pad_b = B_p - B
    x1_p = jnp.pad(x1_flat, ((0, pad_b), (0, 0)))
    x2_p = jnp.pad(x2_flat, ((0, pad_b), (0, 0)))
    cell_p = jnp.pad(cell, ((0, pad_b), (0, 0)))

    # bf16 weight matrices (MXU operands); f32 biases
    def w16(w):
        return w.astype(jnp.bfloat16)

    param_list = [
        w16(r1w1), r1b1, w16(r1w2), r1b2,
        w16(r2w1), r2b1, w16(r2w2), r2b2,
        w16(cw1), cb1, w16(cw2), cb2, w16(cw3), cb3,
        w16(pw1a), w16(pw1b), w16(pw1c), pb1, w16(pw2), pb2, w16(pw3), pb3,
    ]

    # activations: tiled over batch; weights: full-array, resident across grid
    def act_spec(feat):
        return pl.BlockSpec((TB, feat), lambda i: (i, 0))

    def resident_spec(arr):
        return pl.BlockSpec(arr.shape, lambda i: (0, 0))

    in_specs = ([act_spec(x1_p.shape[1]),
                 act_spec(x2_p.shape[1]),
                 act_spec(cell_dim_p)]
                + [resident_spec(w) for w in param_list])
    out_specs = pl.BlockSpec((TB, n_out_p), lambda i: (i, 0))

    out = pl.pallas_call(
        model_transformer_kernel,
        out_shape=jax.ShapeDtypeStruct((B_p, n_out_p), jnp.float32),
        grid=(B_p // TB,),
        in_specs=in_specs,
        out_specs=out_specs,
        compiler_params=pltpu.CompilerParams(
            dimension_semantics=("parallel",),   # megacore sharding on v7x
            vmem_limit_bytes=32 << 20,           # actual footprint ~15 MiB
        ),
    )(x1_p, x2_p, cell_p, *param_list)

    return out[:B, :n_output]


# --------------------------- deterministic params ---------------------------

def _init_linear(key, fan_in, fan_out):
    # PyTorch default nn.Linear init: U(-1/sqrt(fan_in), 1/sqrt(fan_in)).
    kw, kb = jax.random.split(key)
    bound = 1.0 / jnp.sqrt(jnp.float32(fan_in))
    w = jax.random.uniform(kw, (fan_in, fan_out), jnp.float32, -bound, bound)
    b = jax.random.uniform(kb, (1, fan_out), jnp.float32, -bound, bound)
    return w, b


def make_params(key, num_feat1, num_feat2, cell_dim, output_dim, n_output):
    keys = jax.random.split(key, 10)
    params = []
    # reduction1
    params += _init_linear(keys[0], num_feat1, 256)
    params += _init_linear(keys[1], 256, output_dim)
    # reduction2
    params += _init_linear(keys[2], num_feat2, 256)
    params += _init_linear(keys[3], 256, output_dim)
    # self.reduction (cell branch)
    params += _init_linear(keys[4], cell_dim, 1024)
    params += _init_linear(keys[5], 1024, 512)
    params += _init_linear(keys[6], 512, output_dim)
    # self.pre
    params += _init_linear(keys[7], output_dim * 3, 1024)
    params += _init_linear(keys[8], 1024, 512)
    params += _init_linear(keys[9], 512, n_output)
    return params


# ----------------------------------- main -----------------------------------

if __name__ == "__main__":
    key = jax.random.PRNGKey(0)
    k1, k2, k3, kp = jax.random.split(key, 4)

    # Small shapes consistent with the module:
    B, S, D = 2, 8, 32           # batch, padded smiles length, encoder d_model
    cell_dim = 954               # module default
    output_dim = 128             # module default
    n_output = 1                 # module default

    # Transformer-encoder outputs (stand-ins for self.tranformer1(src, tgt)).
    x1_enc = jax.random.normal(k1, (B, S, D), jnp.float32)
    x2_enc = jax.random.normal(k2, (B, S, D), jnp.float32)
    cell = jax.random.normal(k3, (B, cell_dim), jnp.float32)

    params = make_params(kp, S * D, S * D, cell_dim, output_dim, n_output)

    out = model_transformer_forward(x1_enc, x2_enc, cell, params)
    jax.block_until_ready(out)
    assert out.shape == (B, n_output)
    print("KERNEL_OK")
</pallas_src>

<mosaic_0001>
module attributes {stable_mosaic.version = 11 : i64} {
  func.func @model_transformer_kernel(%arg0: i32, %arg1: memref<8x256xf32, #tpu.memory_space<vmem>>, %arg2: memref<8x256xf32, #tpu.memory_space<vmem>>, %arg3: memref<8x1024xf32, #tpu.memory_space<vmem>>, %arg4: memref<256x256xbf16, #tpu.memory_space<vmem>>, %arg5: memref<1x256xf32, #tpu.memory_space<vmem>>, %arg6: memref<256x128xbf16, #tpu.memory_space<vmem>>, %arg7: memref<1x128xf32, #tpu.memory_space<vmem>>, %arg8: memref<256x256xbf16, #tpu.memory_space<vmem>>, %arg9: memref<1x256xf32, #tpu.memory_space<vmem>>, %arg10: memref<256x128xbf16, #tpu.memory_space<vmem>>, %arg11: memref<1x128xf32, #tpu.memory_space<vmem>>, %arg12: memref<1024x1024xbf16, #tpu.memory_space<vmem>>, %arg13: memref<1x1024xf32, #tpu.memory_space<vmem>>, %arg14: memref<1024x512xbf16, #tpu.memory_space<vmem>>, %arg15: memref<1x512xf32, #tpu.memory_space<vmem>>, %arg16: memref<512x128xbf16, #tpu.memory_space<vmem>>, %arg17: memref<1x128xf32, #tpu.memory_space<vmem>>, %arg18: memref<128x1024xbf16, #tpu.memory_space<vmem>>, %arg19: memref<128x1024xbf16, #tpu.memory_space<vmem>>, %arg20: memref<128x1024xbf16, #tpu.memory_space<vmem>>, %arg21: memref<1x1024xf32, #tpu.memory_space<vmem>>, %arg22: memref<1024x512xbf16, #tpu.memory_space<vmem>>, %arg23: memref<1x512xf32, #tpu.memory_space<vmem>>, %arg24: memref<512x128xbf16, #tpu.memory_space<vmem>>, %arg25: memref<1x128xf32, #tpu.memory_space<vmem>>, %arg26: memref<8x128xf32, #tpu.memory_space<vmem>>) attributes {dimension_semantics = [#tpu.dimension_semantics<parallel>], iteration_bounds = array<i64: 1>, scalar_prefetch = 0 : i64, scratch_operands = 0 : i64, tpu.core_type = #tpu.core_type<tc>, window_params = [{transform_indices = @transform_0, window_bounds = array<i64: 8, 256>}, {transform_indices = @transform_1, window_bounds = array<i64: 8, 256>}, {transform_indices = @transform_2, window_bounds = array<i64: 8, 1024>}, {pipeline_mode = #tpu.pipeline_mode<synchronous>, transform_indices = @transform_3, window_bounds = array<i64: 256, 256>}, {pipeline_mode = #tpu.pipeline_mode<synchronous>, transform_indices = @transform_4, window_bounds = array<i64: 1, 256>}, {pipeline_mode = #tpu.pipeline_mode<synchronous>, transform_indices = @transform_5, window_bounds = array<i64: 256, 128>}, {pipeline_mode = #tpu.pipeline_mode<synchronous>, transform_indices = @transform_6, window_bounds = array<i64: 1, 128>}, {pipeline_mode = #tpu.pipeline_mode<synchronous>, transform_indices = @transform_7, window_bounds = array<i64: 256, 256>}, {pipeline_mode = #tpu.pipeline_mode<synchronous>, transform_indices = @transform_8, window_bounds = array<i64: 1, 256>}, {pipeline_mode = #tpu.pipeline_mode<synchronous>, transform_indices = @transform_9, window_bounds = array<i64: 256, 128>}, {pipeline_mode = #tpu.pipeline_mode<synchronous>, transform_indices = @transform_10, window_bounds = array<i64: 1, 128>}, {pipeline_mode = #tpu.pipeline_mode<synchronous>, transform_indices = @transform_11, window_bounds = array<i64: 1024, 1024>}, {pipeline_mode = #tpu.pipeline_mode<synchronous>, transform_indices = @transform_12, window_bounds = array<i64: 1, 1024>}, {pipeline_mode = #tpu.pipeline_mode<synchronous>, transform_indices = @transform_13, window_bounds = array<i64: 1024, 512>}, {pipeline_mode = #tpu.pipeline_mode<synchronous>, transform_indices = @transform_14, window_bounds = array<i64: 1, 512>}, {pipeline_mode = #tpu.pipeline_mode<synchronous>, transform_indices = @transform_15, window_bounds = array<i64: 512, 128>}, {pipeline_mode = #tpu.pipeline_mode<synchronous>, transform_indices = @transform_16, window_bounds = array<i64: 1, 128>}, {pipeline_mode = #tpu.pipeline_mode<synchronous>, transform_indices = @transform_17, window_bounds = array<i64: 128, 1024>}, {pipeline_mode = #tpu.pipeline_mode<synchronous>, transform_indices = @transform_18, window_bounds = array<i64: 128, 1024>}, {pipeline_mode = #tpu.pipeline_mode<synchronous>, transform_indices = @transform_19, window_bounds = array<i64: 128, 1024>}, {pipeline_mode = #tpu.pipeline_mode<synchronous>, transform_indices = @transform_20, window_bounds = array<i64: 1, 1024>}, {pipeline_mode = #tpu.pipeline_mode<synchronous>, transform_indices = @transform_21, window_bounds = array<i64: 1024, 512>}, {pipeline_mode = #tpu.pipeline_mode<synchronous>, transform_indices = @transform_22, window_bounds = array<i64: 1, 512>}, {pipeline_mode = #tpu.pipeline_mode<synchronous>, transform_indices = @transform_23, window_bounds = array<i64: 512, 128>}, {pipeline_mode = #tpu.pipeline_mode<synchronous>, transform_indices = @transform_24, window_bounds = array<i64: 1, 128>}, {transform_indices = @transform_25, window_bounds = array<i64: 8, 128>}]} {
    %c0 = arith.constant 0 : index
    %c0_0 = arith.constant 0 : index
    %0 = vector.load %arg1[%c0, %c0_0] : memref<8x256xf32, #tpu.memory_space<vmem>>, vector<8x256xf32>
    %1 = arith.truncf %0 : vector<8x256xf32> to vector<8x256xbf16>
    %c0_1 = arith.constant 0 : index
    %c0_2 = arith.constant 0 : index
    %2 = vector.load %arg4[%c0_1, %c0_2] : memref<256x256xbf16, #tpu.memory_space<vmem>>, vector<256x256xbf16>
    %cst = arith.constant dense<0.000000e+00> : vector<8x256xf32>
    %3 = tpu.matmul %1, %2, %cst {dimension_numbers = #tpu.dot_dimension_numbers<[1], [0], [0], [1], [0, 0, 1, 1], [], []>} : vector<8x256xbf16>, vector<256x256xbf16>, vector<8x256xf32> -> vector<8x256xf32>
    %c0_3 = arith.constant 0 : index
    %c0_4 = arith.constant 0 : index
    %4 = vector.load %arg5[%c0_3, %c0_4] : memref<1x256xf32, #tpu.memory_space<vmem>>, vector<1x256xf32>
    %5 = vector.broadcast %4 : vector<1x256xf32> to vector<8x256xf32>
    %6 = arith.addf %3, %5 : vector<8x256xf32>
    %cst_5 = arith.constant 0.000000e+00 : f32
    %7 = vector.broadcast %cst_5 : f32 to vector<8x256xf32>
    %8 = arith.maximumf %6, %7 : vector<8x256xf32>
    %9 = arith.truncf %8 : vector<8x256xf32> to vector<8x256xbf16>
    %c0_6 = arith.constant 0 : index
    %c0_7 = arith.constant 0 : index
    %10 = vector.load %arg6[%c0_6, %c0_7] : memref<256x128xbf16, #tpu.memory_space<vmem>>, vector<256x128xbf16>
    %cst_8 = arith.constant dense<0.000000e+00> : vector<8x128xf32>
    %11 = tpu.matmul %9, %10, %cst_8 {dimension_numbers = #tpu.dot_dimension_numbers<[1], [0], [0], [1], [0, 0, 1, 1], [], []>} : vector<8x256xbf16>, vector<256x128xbf16>, vector<8x128xf32> -> vector<8x128xf32>
    %c0_9 = arith.constant 0 : index
    %c0_10 = arith.constant 0 : index
    %12 = vector.load %arg7[%c0_9, %c0_10] : memref<1x128xf32, #tpu.memory_space<vmem>>, vector<1x128xf32>
    %13 = vector.broadcast %12 : vector<1x128xf32> to vector<8x128xf32>
    %14 = arith.addf %11, %13 : vector<8x128xf32>
    %c0_11 = arith.constant 0 : index
    %c0_12 = arith.constant 0 : index
    %15 = vector.load %arg2[%c0_11, %c0_12] : memref<8x256xf32, #tpu.memory_space<vmem>>, vector<8x256xf32>
    %16 = arith.truncf %15 : vector<8x256xf32> to vector<8x256xbf16>
    %c0_13 = arith.constant 0 : index
    %c0_14 = arith.constant 0 : index
    %17 = vector.load %arg8[%c0_13, %c0_14] : memref<256x256xbf16, #tpu.memory_space<vmem>>, vector<256x256xbf16>
    %cst_15 = arith.constant dense<0.000000e+00> : vector<8x256xf32>
    %18 = tpu.matmul %16, %17, %cst_15 {dimension_numbers = #tpu.dot_dimension_numbers<[1], [0], [0], [1], [0, 0, 1, 1], [], []>} : vector<8x256xbf16>, vector<256x256xbf16>, vector<8x256xf32> -> vector<8x256xf32>
    %c0_16 = arith.constant 0 : index
    %c0_17 = arith.constant 0 : index
    %19 = vector.load %arg9[%c0_16, %c0_17] : memref<1x256xf32, #tpu.memory_space<vmem>>, vector<1x256xf32>
    %20 = vector.broadcast %19 : vector<1x256xf32> to vector<8x256xf32>
    %21 = arith.addf %18, %20 : vector<8x256xf32>
    %cst_18 = arith.constant 0.000000e+00 : f32
    %22 = vector.broadcast %cst_18 : f32 to vector<8x256xf32>
    %23 = arith.maximumf %21, %22 : vector<8x256xf32>
    %24 = arith.truncf %23 : vector<8x256xf32> to vector<8x256xbf16>
    %c0_19 = arith.constant 0 : index
    %c0_20 = arith.constant 0 : index
    %25 = vector.load %arg10[%c0_19, %c0_20] : memref<256x128xbf16, #tpu.memory_space<vmem>>, vector<256x128xbf16>
    %cst_21 = arith.constant dense<0.000000e+00> : vector<8x128xf32>
    %26 = tpu.matmul %24, %25, %cst_21 {dimension_numbers = #tpu.dot_dimension_numbers<[1], [0], [0], [1], [0, 0, 1, 1], [], []>} : vector<8x256xbf16>, vector<256x128xbf16>, vector<8x128xf32> -> vector<8x128xf32>
    %c0_22 = arith.constant 0 : index
    %c0_23 = arith.constant 0 : index
    %27 = vector.load %arg11[%c0_22, %c0_23] : memref<1x128xf32, #tpu.memory_space<vmem>>, vector<1x128xf32>
    %28 = vector.broadcast %27 : vector<1x128xf32> to vector<8x128xf32>
    %29 = arith.addf %26, %28 : vector<8x128xf32>
    %c0_24 = arith.constant 0 : index
    %c0_25 = arith.constant 0 : index
    %30 = vector.load %arg3[%c0_24, %c0_25] : memref<8x1024xf32, #tpu.memory_space<vmem>>, vector<8x1024xf32>
    %31 = arith.mulf %30, %30 : vector<8x1024xf32>
    %cst_26 = arith.constant dense<0.000000e+00> : vector<8xf32>
    %32 = vector.multi_reduction <add>, %31, %cst_26 [1] : vector<8x1024xf32> to vector<8xf32>
    %33 = vector.shape_cast %32 : vector<8xf32> to vector<8x1xf32>
    %cst_27 = arith.constant 1.000000e-24 : f32
    %34 = vector.broadcast %cst_27 : f32 to vector<8x1xf32>
    %35 = arith.maximumf %33, %34 : vector<8x1xf32>
    %36 = math.rsqrt %35 : vector<8x1xf32>
    %37 = vector.broadcast %36 : vector<8x1xf32> to vector<8x1024xf32>
    %38 = arith.mulf %30, %37 : vector<8x1024xf32>
    %39 = arith.truncf %38 : vector<8x1024xf32> to vector<8x1024xbf16>
    %c0_28 = arith.constant 0 : index
    %c0_29 = arith.constant 0 : index
    %40 = vector.load %arg12[%c0_28, %c0_29] : memref<1024x1024xbf16, #tpu.memory_space<vmem>>, vector<1024x1024xbf16>
    %cst_30 = arith.constant dense<0.000000e+00> : vector<8x1024xf32>
    %41 = tpu.matmul %39, %40, %cst_30 {dimension_numbers = #tpu.dot_dimension_numbers<[1], [0], [0], [1], [0, 0, 1, 1], [], []>} : vector<8x1024xbf16>, vector<1024x1024xbf16>, vector<8x1024xf32> -> vector<8x1024xf32>
    %c0_31 = arith.constant 0 : index
    %c0_32 = arith.constant 0 : index
    %42 = vector.load %arg13[%c0_31, %c0_32] : memref<1x1024xf32, #tpu.memory_space<vmem>>, vector<1x1024xf32>
    %43 = vector.broadcast %42 : vector<1x1024xf32> to vector<8x1024xf32>
    %44 = arith.addf %41, %43 : vector<8x1024xf32>
    %cst_33 = arith.constant 0.000000e+00 : f32
    %45 = vector.broadcast %cst_33 : f32 to vector<8x1024xf32>
    %46 = arith.maximumf %44, %45 : vector<8x1024xf32>
    %47 = arith.truncf %46 : vector<8x1024xf32> to vector<8x1024xbf16>
    %c0_34 = arith.constant 0 : index
    %c0_35 = arith.constant 0 : index
    %48 = vector.load %arg14[%c0_34, %c0_35] : memref<1024x512xbf16, #tpu.memory_space<vmem>>, vector<1024x512xbf16>
    %cst_36 = arith.constant dense<0.000000e+00> : vector<8x512xf32>
    %49 = tpu.matmul %47, %48, %cst_36 {dimension_numbers = #tpu.dot_dimension_numbers<[1], [0], [0], [1], [0, 0, 1, 1], [], []>} : vector<8x1024xbf16>, vector<1024x512xbf16>, vector<8x512xf32> -> vector<8x512xf32>
    %c0_37 = arith.constant 0 : index
    %c0_38 = arith.constant 0 : index
    %50 = vector.load %arg15[%c0_37, %c0_38] : memref<1x512xf32, #tpu.memory_space<vmem>>, vector<1x512xf32>
    %51 = vector.broadcast %50 : vector<1x512xf32> to vector<8x512xf32>
    %52 = arith.addf %49, %51 : vector<8x512xf32>
    %cst_39 = arith.constant 0.000000e+00 : f32
    %53 = vector.broadcast %cst_39 : f32 to vector<8x512xf32>
    %54 = arith.maximumf %52, %53 : vector<8x512xf32>
    %55 = arith.truncf %54 : vector<8x512xf32> to vector<8x512xbf16>
    %c0_40 = arith.constant 0 : index
    %c0_41 = arith.constant 0 : index
    %56 = vector.load %arg16[%c0_40, %c0_41] : memref<512x128xbf16, #tpu.memory_space<vmem>>, vector<512x128xbf16>
    %cst_42 = arith.constant dense<0.000000e+00> : vector<8x128xf32>
    %57 = tpu.matmul %55, %56, %cst_42 {dimension_numbers = #tpu.dot_dimension_numbers<[1], [0], [0], [1], [0, 0, 1, 1], [], []>} : vector<8x512xbf16>, vector<512x128xbf16>, vector<8x128xf32> -> vector<8x128xf32>
    %c0_43 = arith.constant 0 : index
    %c0_44 = arith.constant 0 : index
    %58 = vector.load %arg17[%c0_43, %c0_44] : memref<1x128xf32, #tpu.memory_space<vmem>>, vector<1x128xf32>
    %59 = vector.broadcast %58 : vector<1x128xf32> to vector<8x128xf32>
    %60 = arith.addf %57, %59 : vector<8x128xf32>
    %61 = arith.mulf %14, %14 : vector<8x128xf32>
    %cst_45 = arith.constant dense<0.000000e+00> : vector<8xf32>
    %62 = vector.multi_reduction <add>, %61, %cst_45 [1] : vector<8x128xf32> to vector<8xf32>
    %63 = vector.shape_cast %62 : vector<8xf32> to vector<8x1xf32>
    %64 = arith.mulf %29, %29 : vector<8x128xf32>
    %cst_46 = arith.constant dense<0.000000e+00> : vector<8xf32>
    %65 = vector.multi_reduction <add>, %64, %cst_46 [1] : vector<8x128xf32> to vector<8xf32>
    %66 = vector.shape_cast %65 : vector<8xf32> to vector<8x1xf32>
    %67 = arith.addf %63, %66 : vector<8x1xf32>
    %68 = arith.mulf %60, %60 : vector<8x128xf32>
    %cst_47 = arith.constant dense<0.000000e+00> : vector<8xf32>
    %69 = vector.multi_reduction <add>, %68, %cst_47 [1] : vector<8x128xf32> to vector<8xf32>
    %70 = vector.shape_cast %69 : vector<8xf32> to vector<8x1xf32>
    %71 = arith.addf %67, %70 : vector<8x1xf32>
    %cst_48 = arith.constant 1.000000e-24 : f32
    %72 = vector.broadcast %cst_48 : f32 to vector<8x1xf32>
    %73 = arith.maximumf %71, %72 : vector<8x1xf32>
    %74 = math.rsqrt %73 : vector<8x1xf32>
    %75 = vector.broadcast %74 : vector<8x1xf32> to vector<8x128xf32>
    %76 = arith.mulf %14, %75 : vector<8x128xf32>
    %77 = arith.truncf %76 : vector<8x128xf32> to vector<8x128xbf16>
    %c0_49 = arith.constant 0 : index
    %c0_50 = arith.constant 0 : index
    %78 = vector.load %arg18[%c0_49, %c0_50] : memref<128x1024xbf16, #tpu.memory_space<vmem>>, vector<128x1024xbf16>
    %cst_51 = arith.constant dense<0.000000e+00> : vector<8x1024xf32>
    %79 = tpu.matmul %77, %78, %cst_51 {dimension_numbers = #tpu.dot_dimension_numbers<[1], [0], [0], [1], [0, 0, 1, 1], [], []>} : vector<8x128xbf16>, vector<128x1024xbf16>, vector<8x1024xf32> -> vector<8x1024xf32>
    %80 = vector.broadcast %74 : vector<8x1xf32> to vector<8x128xf32>
    %81 = arith.mulf %29, %80 : vector<8x128xf32>
    %82 = arith.truncf %81 : vector<8x128xf32> to vector<8x128xbf16>
    %c0_52 = arith.constant 0 : index
    %c0_53 = arith.constant 0 : index
    %83 = vector.load %arg19[%c0_52, %c0_53] : memref<128x1024xbf16, #tpu.memory_space<vmem>>, vector<128x1024xbf16>
    %cst_54 = arith.constant dense<0.000000e+00> : vector<8x1024xf32>
    %84 = tpu.matmul %82, %83, %cst_54 {dimension_numbers = #tpu.dot_dimension_numbers<[1], [0], [0], [1], [0, 0, 1, 1], [], []>} : vector<8x128xbf16>, vector<128x1024xbf16>, vector<8x1024xf32> -> vector<8x1024xf32>
    %85 = arith.addf %79, %84 : vector<8x1024xf32>
    %86 = vector.broadcast %74 : vector<8x1xf32> to vector<8x128xf32>
    %87 = arith.mulf %60, %86 : vector<8x128xf32>
    %88 = arith.truncf %87 : vector<8x128xf32> to vector<8x128xbf16>
    %c0_55 = arith.constant 0 : index
    %c0_56 = arith.constant 0 : index
    %89 = vector.load %arg20[%c0_55, %c0_56] : memref<128x1024xbf16, #tpu.memory_space<vmem>>, vector<128x1024xbf16>
    %cst_57 = arith.constant dense<0.000000e+00> : vector<8x1024xf32>
    %90 = tpu.matmul %88, %89, %cst_57 {dimension_numbers = #tpu.dot_dimension_numbers<[1], [0], [0], [1], [0, 0, 1, 1], [], []>} : vector<8x128xbf16>, vector<128x1024xbf16>, vector<8x1024xf32> -> vector<8x1024xf32>
    %91 = arith.addf %85, %90 : vector<8x1024xf32>
    %c0_58 = arith.constant 0 : index
    %c0_59 = arith.constant 0 : index
    %92 = vector.load %arg21[%c0_58, %c0_59] : memref<1x1024xf32, #tpu.memory_space<vmem>>, vector<1x1024xf32>
    %93 = vector.broadcast %92 : vector<1x1024xf32> to vector<8x1024xf32>
    %94 = arith.addf %91, %93 : vector<8x1024xf32>
    %cst_60 = arith.constant 0.000000e+00 : f32
    %95 = vector.broadcast %cst_60 : f32 to vector<8x1024xf32>
    %96 = arith.maximumf %94, %95 : vector<8x1024xf32>
    %97 = arith.truncf %96 : vector<8x1024xf32> to vector<8x1024xbf16>
    %c0_61 = arith.constant 0 : index
    %c0_62 = arith.constant 0 : index
    %98 = vector.load %arg22[%c0_61, %c0_62] : memref<1024x512xbf16, #tpu.memory_space<vmem>>, vector<1024x512xbf16>
    %cst_63 = arith.constant dense<0.000000e+00> : vector<8x512xf32>
    %99 = tpu.matmul %97, %98, %cst_63 {dimension_numbers = #tpu.dot_dimension_numbers<[1], [0], [0], [1], [0, 0, 1, 1], [], []>} : vector<8x1024xbf16>, vector<1024x512xbf16>, vector<8x512xf32> -> vector<8x512xf32>
    %c0_64 = arith.constant 0 : index
    %c0_65 = arith.constant 0 : index
    %100 = vector.load %arg23[%c0_64, %c0_65] : memref<1x512xf32, #tpu.memory_space<vmem>>, vector<1x512xf32>
    %101 = vector.broadcast %100 : vector<1x512xf32> to vector<8x512xf32>
    %102 = arith.addf %99, %101 : vector<8x512xf32>
    %cst_66 = arith.constant 0.000000e+00 : f32
    %103 = vector.broadcast %cst_66 : f32 to vector<8x512xf32>
    %104 = arith.maximumf %102, %103 : vector<8x512xf32>
    %105 = arith.truncf %104 : vector<8x512xf32> to vector<8x512xbf16>
    %c0_67 = arith.constant 0 : index
    %c0_68 = arith.constant 0 : index
    %106 = vector.load %arg24[%c0_67, %c0_68] : memref<512x128xbf16, #tpu.memory_space<vmem>>, vector<512x128xbf16>
    %cst_69 = arith.constant dense<0.000000e+00> : vector<8x128xf32>
    %107 = tpu.matmul %105, %106, %cst_69 {dimension_numbers = #tpu.dot_dimension_numbers<[1], [0], [0], [1], [0, 0, 1, 1], [], []>} : vector<8x512xbf16>, vector<512x128xbf16>, vector<8x128xf32> -> vector<8x128xf32>
    %c0_70 = arith.constant 0 : index
    %c0_71 = arith.constant 0 : index
    %108 = vector.load %arg25[%c0_70, %c0_71] : memref<1x128xf32, #tpu.memory_space<vmem>>, vector<1x128xf32>
    %109 = vector.broadcast %108 : vector<1x128xf32> to vector<8x128xf32>
    %110 = arith.addf %107, %109 : vector<8x128xf32>
    %c0_72 = arith.constant 0 : index
    %c0_73 = arith.constant 0 : index
    %111 = vector.load %arg26[%c0_72, %c0_73] : memref<8x128xf32, #tpu.memory_space<vmem>>, vector<8x128xf32>
    tpu.vector_store %arg26[%c0_72, %c0_73], %110 {strides = array<i32>} : memref<8x128xf32, #tpu.memory_space<vmem>>, vector<8x128xf32>,
    return
  }
  func.func @transform_0(%arg0: i32) -> (i32, i32) {
    %c0_i32 = arith.constant 0 : i32
    %c0_i32_0 = arith.constant 0 : i32
    return %arg0, %c0_i32 : i32, i32
  }
  func.func @transform_1(%arg0: i32) -> (i32, i32) {
    %c0_i32 = arith.constant 0 : i32
    %c0_i32_0 = arith.constant 0 : i32
    return %arg0, %c0_i32 : i32, i32
  }
  func.func @transform_2(%arg0: i32) -> (i32, i32) {
    %c0_i32 = arith.constant 0 : i32
    %c0_i32_0 = arith.constant 0 : i32
    return %arg0, %c0_i32 : i32, i32
  }
  func.func @transform_3(%arg0: i32) -> (i32, i32) {
    %c0_i32 = arith.constant 0 : i32
    %c0_i32_0 = arith.constant 0 : i32
    %c0_i32_1 = arith.constant 0 : i32
    return %c0_i32, %c0_i32_0 : i32, i32
  }
  func.func @transform_4(%arg0: i32) -> (i32, i32) {
    %c0_i32 = arith.constant 0 : i32
    %c0_i32_0 = arith.constant 0 : i32
    %c0_i32_1 = arith.constant 0 : i32
    return %c0_i32, %c0_i32_0 : i32, i32
  }
  func.func @transform_5(%arg0: i32) -> (i32, i32) {
    %c0_i32 = arith.constant 0 : i32
    %c0_i32_0 = arith.constant 0 : i32
    %c0_i32_1 = arith.constant 0 : i32
    return %c0_i32, %c0_i32_0 : i32, i32
  }
  func.func @transform_6(%arg0: i32) -> (i32, i32) {
    %c0_i32 = arith.constant 0 : i32
    %c0_i32_0 = arith.constant 0 : i32
    %c0_i32_1 = arith.constant 0 : i32
    return %c0_i32, %c0_i32_0 : i32, i32
  }
  func.func @transform_7(%arg0: i32) -> (i32, i32) {
    %c0_i32 = arith.constant 0 : i32
    %c0_i32_0 = arith.constant 0 : i32
    %c0_i32_1 = arith.constant 0 : i32
    return %c0_i32, %c0_i32_0 : i32, i32
  }
  func.func @transform_8(%arg0: i32) -> (i32, i32) {
    %c0_i32 = arith.constant 0 : i32
    %c0_i32_0 = arith.constant 0 : i32
    %c0_i32_1 = arith.constant 0 : i32
    return %c0_i32, %c0_i32_0 : i32, i32
  }
  func.func @transform_9(%arg0: i32) -> (i32, i32) {
    %c0_i32 = arith.constant 0 : i32
    %c0_i32_0 = arith.constant 0 : i32
    %c0_i32_1 = arith.constant 0 : i32
    return %c0_i32, %c0_i32_0 : i32, i32
  }
  func.func @transform_10(%arg0: i32) -> (i32, i32) {
    %c0_i32 = arith.constant 0 : i32
    %c0_i32_0 = arith.constant 0 : i32
    %c0_i32_1 = arith.constant 0 : i32
    return %c0_i32, %c0_i32_0 : i32, i32
  }
  func.func @transform_11(%arg0: i32) -> (i32, i32) {
    %c0_i32 = arith.constant 0 : i32
    %c0_i32_0 = arith.constant 0 : i32
    %c0_i32_1 = arith.constant 0 : i32
    return %c0_i32, %c0_i32_0 : i32, i32
  }
  func.func @transform_12(%arg0: i32) -> (i32, i32) {
    %c0_i32 = arith.constant 0 : i32
    %c0_i32_0 = arith.constant 0 : i32
    %c0_i32_1 = arith.constant 0 : i32
    return %c0_i32, %c0_i32_0 : i32, i32
  }
  func.func @transform_13(%arg0: i32) -> (i32, i32) {
    %c0_i32 = arith.constant 0 : i32
    %c0_i32_0 = arith.constant 0 : i32
    %c0_i32_1 = arith.constant 0 : i32
    return %c0_i32, %c0_i32_0 : i32, i32
  }
  func.func @transform_14(%arg0: i32) -> (i32, i32) {
    %c0_i32 = arith.constant 0 : i32
    %c0_i32_0 = arith.constant 0 : i32
    %c0_i32_1 = arith.constant 0 : i32
    return %c0_i32, %c0_i32_0 : i32, i32
  }
  func.func @transform_15(%arg0: i32) -> (i32, i32) {
    %c0_i32 = arith.constant 0 : i32
    %c0_i32_0 = arith.constant 0 : i32
    %c0_i32_1 = arith.constant 0 : i32
    return %c0_i32, %c0_i32_0 : i32, i32
  }
  func.func @transform_16(%arg0: i32) -> (i32, i32) {
    %c0_i32 = arith.constant 0 : i32
    %c0_i32_0 = arith.constant 0 : i32
    %c0_i32_1 = arith.constant 0 : i32
    return %c0_i32, %c0_i32_0 : i32, i32
  }
  func.func @transform_17(%arg0: i32) -> (i32, i32) {
    %c0_i32 = arith.constant 0 : i32
    %c0_i32_0 = arith.constant 0 : i32
    %c0_i32_1 = arith.constant 0 : i32
    return %c0_i32, %c0_i32_0 : i32, i32
  }
  func.func @transform_18(%arg0: i32) -> (i32, i32) {
    %c0_i32 = arith.constant 0 : i32
    %c0_i32_0 = arith.constant 0 : i32
    %c0_i32_1 = arith.constant 0 : i32
    return %c0_i32, %c0_i32_0 : i32, i32
  }
  func.func @transform_19(%arg0: i32) -> (i32, i32) {
    %c0_i32 = arith.constant 0 : i32
    %c0_i32_0 = arith.constant 0 : i32
    %c0_i32_1 = arith.constant 0 : i32
    return %c0_i32, %c0_i32_0 : i32, i32
  }
  func.func @transform_20(%arg0: i32) -> (i32, i32) {
    %c0_i32 = arith.constant 0 : i32
    %c0_i32_0 = arith.constant 0 : i32
    %c0_i32_1 = arith.constant 0 : i32
    return %c0_i32, %c0_i32_0 : i32, i32
  }
  func.func @transform_21(%arg0: i32) -> (i32, i32) {
    %c0_i32 = arith.constant 0 : i32
    %c0_i32_0 = arith.constant 0 : i32
    %c0_i32_1 = arith.constant 0 : i32
    return %c0_i32, %c0_i32_0 : i32, i32
  }
  func.func @transform_22(%arg0: i32) -> (i32, i32) {
    %c0_i32 = arith.constant 0 : i32
    %c0_i32_0 = arith.constant 0 : i32
    %c0_i32_1 = arith.constant 0 : i32
    return %c0_i32, %c0_i32_0 : i32, i32
  }
  func.func @transform_23(%arg0: i32) -> (i32, i32) {
    %c0_i32 = arith.constant 0 : i32
    %c0_i32_0 = arith.constant 0 : i32
    %c0_i32_1 = arith.constant 0 : i32
    return %c0_i32, %c0_i32_0 : i32, i32
  }
  func.func @transform_24(%arg0: i32) -> (i32, i32) {
    %c0_i32 = arith.constant 0 : i32
    %c0_i32_0 = arith.constant 0 : i32
    %c0_i32_1 = arith.constant 0 : i32
    return %c0_i32, %c0_i32_0 : i32, i32
  }
  func.func @transform_25(%arg0: i32) -> (i32, i32) {
    %c0_i32 = arith.constant 0 : i32
    %c0_i32_0 = arith.constant 0 : i32
    return %arg0, %c0_i32 : i32, i32
  }
}

</mosaic_0001>

<bundles_post_ra>
// kernel: tpu_custom_call.1
= control target key start
LH: loop header
LB: loop body
LE: loop exit
PB: predicated region body
PF: predicated region fallthrough
CT: control target
= control target key end

     0   :  { %s15059_s0 = inlined_call_operand.hbm [shape: f32[8,256], index: 0, kind: input, shape index: {}]   ;;  %s15060_s1 = inlined_call_operand.hbm [shape: f32[8,256], index: 1, kind: input, shape index: {}]   ;;  %s15061_s2 = inlined_call_operand.hbm [shape: f32[8,1024], index: 2, kind: input, shape index: {}]   ;;  %s15062_s3 = inlined_call_operand.hbm [shape: bf16[256,256], index: 3, kind: input, shape index: {}]   ;;  %s15063_s4 = inlined_call_operand.hbm [shape: f32[1,256], index: 4, kind: input, shape index: {}]   ;;  %s15064_s5 = inlined_call_operand.hbm [shape: bf16[256,128], index: 5, kind: input, shape index: {}]   ;;  %s15065_s6 = inlined_call_operand.hbm [shape: f32[1,128], index: 6, kind: input, shape index: {}]   ;;  %s15066_s7 = inlined_call_operand.hbm [shape: bf16[256,256], index: 7, kind: input, shape index: {}]   ;;  %s15067_s8 = inlined_call_operand.hbm [shape: f32[1,256], index: 8, kind: input, shape index: {}]   ;;  %s15068_s9 = inlined_call_operand.hbm [shape: bf16[256,128], index: 9, kind: input, shape index: {}]   ;;  %s15069_s10 = inlined_call_operand.hbm [shape: f32[1,128], index: 10, kind: input, shape index: {}]   ;;  %s15070_s11 = inlined_call_operand.hbm [shape: bf16[1024,1024], index: 11, kind: input, shape index: {}]   ;;  %s15071_s12 = inlined_call_operand.hbm [shape: f32[1,1024], index: 12, kind: input, shape index: {}]   ;;  %s15072_s13 = inlined_call_operand.hbm [shape: bf16[1024,512], index: 13, kind: input, shape index: {}]   ;;  %s15073_s14 = inlined_call_operand.hbm [shape: f32[1,512], index: 14, kind: input, shape index: {}]   ;;  %s15074_s15 = inlined_call_operand.hbm [shape: bf16[512,128], index: 15, kind: input, shape index: {}]   ;;  %s15075_s16 = inlined_call_operand.hbm [shape: f32[1,128], index: 16, kind: input, shape index: {}]   ;;  %s15076_s17 = inlined_call_operand.hbm [shape: bf16[128,1024], index: 17, kind: input, shape index: {}]   ;;  %s15077_s18 = inlined_call_operand.hbm [shape: bf16[128,1024], index: 18, kind: input, shape index: {}]   ;;  %s15078_s19 = inlined_call_operand.hbm [shape: bf16[128,1024], index: 19, kind: input, shape index: {}]   ;;  %s15079_s20 = inlined_call_operand.hbm [shape: f32[1,1024], index: 20, kind: input, shape index: {}]   ;;  %s15080_s21 = inlined_call_operand.hbm [shape: bf16[1024,512], index: 21, kind: input, shape index: {}]   ;;  %s15081_s22 = inlined_call_operand.hbm [shape: f32[1,512], index: 22, kind: input, shape index: {}]   ;;  %s15082_s23 = inlined_call_operand.hbm [shape: bf16[512,128], index: 23, kind: input, shape index: {}]   ;;  %s15083_s24 = inlined_call_operand.hbm [shape: f32[1,128], index: 24, kind: input, shape index: {}]   ;;  %s15084_s25 = inlined_call_operand.hbm [shape: f32[8,128], index: 25, kind: output, shape index: {}]  }
   0x1   :  { %15085 = sst [smem:[#allocation56_spill]] %s15059_s0 }
   0x2   :  { %15086 = sst [smem:[#allocation57_spill]] %s15060_s1 }
   0x3   :  { %15087 = sst [smem:[#allocation58_spill]] %s15061_s2 }
   0x4   :  { %15088 = sst [smem:[#allocation59_spill]] %s15062_s3 }
   0x5   :  { %15089 = sst [smem:[#allocation60_spill]] %s15063_s4 }
   0x6   :  { %15090 = sst [smem:[#allocation61_spill]] %s15064_s5 }
   0x7   :  { %15091 = sst [smem:[#allocation62_spill]] %s15065_s6 }
   0x8   :  { %15092 = sst [smem:[#allocation63_spill]] %s15066_s7 }
   0x9   :  { %15093 = sst [smem:[#allocation64_spill]] %s15067_s8 }
   0xa   :  { %15094 = sst [smem:[#allocation65_spill]] %s15068_s9 }
   0xb   :  { %15095 = sst [smem:[#allocation66_spill]] %s15084_s25 }
   0xc   :  { %30 = vsyncpa [#allocation3], 0 }
   0xd   :  { %31 = vsyncpa [#allocation6], 0 }
   0xe   :  { %32 = vsyncpa [#allocation9], 0 }
   0xf   :  { %33 = vsyncpa [#allocation12], 0 }
  0x10   :  { %34 = vsyncpa [#allocation15], 0 }
  0x11   :  { %35 = vsyncpa [#allocation18], 0 }
  0x12   :  { %36 = vsyncpa [#allocation21], 0 }
  0x13   :  { %37 = vsyncpa [#allocation24], 0 }
  0x14   :  { %38 = vsyncpa [#allocation27], 0 }
  0x15   :  { %39 = vsyncpa [#allocation30], 0 }
  0x16   :  { %40 = vsyncpa [#allocation33], 0 }
  0x17   :  { %41 = vsyncpa [#allocation36], 0 }
  0x18   :  { %42 = vsyncpa [#allocation39], 0 }
  0x19   :  { %43 = vsyncpa [#allocation4], 0  ;;  %s14386_s29 = smov [#allocation5]   ;;  %s14387_s6 = smov [#allocation8]  }
  0x1a   :  { %s60_s2 = sshll.u32 %s14386_s29, 4  ;;  %s79_s30 = sshll.u32 %s14387_s6, 4  ;;  %s61_s2 = int_to_ptr.vmem [resolvable:$true] %s60_s2  ;;  %s80_s30 = int_to_ptr.vmem [resolvable:$true] %s79_s30 }
  0x1b   :  { %s13846_s7 = scalar_lea.vmem %s61_s2, 256  ;;  %p13851_p1 = scmp.lt.s32.totalorder %s61_s2, %s61_s2 }
  0x1c   :  { %p13847_p0 = scmp.ne.s32.totalorder %s61_s2, %s13846_s7  ;;  %p13852_p2 = scmp.lt.s32.totalorder %s13846_s7, %s13846_s7 }
  0x1e   :  { %p13853_p3 = por %p13852_p2, %p13851_p1 }
  0x20   :  { %p13854_p4 = pnand %p13853_p3, %p13847_p0 }
  0x22   :  { %13857 = shalt.err (!%p13854_p4)
}
  0x23   :  { %s15096_s1 = sld [smem:[#allocation57_spill]]  ;;  %s13866_s8 = scalar_lea.vmem %s80_s30, 4096 }
  0x24   :  { %p13867_p5 = scmp.ne.s32.totalorder %s80_s30, %s13866_s8  ;;  %p13871_p6 = scmp.lt.s32.totalorder %s80_s30, %s80_s30 }
  0x25   :  { %p13872_p7 = scmp.lt.s32.totalorder %s13866_s8, %s13866_s8 }
  0x27   :  { %p13873_p8 = por %p13872_p7, %p13871_p6 }
  0x29   :  { %63 = dma.hbm_to_vmem [thread:$0]  %s15096_s1, 256, %s61_s2, [#allocation6]  }
  0x2a   :  { %p13874_p9 = pnand %p13873_p8, %p13867_p5 }
  0x2c   :  { %13877 = shalt.err (!%p13874_p9)
}
  0x2d   :  { %s14388_s27 = smov 128   ;;  %s14389_s4 = smov 8  }
  0x2e   :  { %s15097_s5 = sld [smem:[#allocation59_spill]]  ;;  %s14390_s0 = smov [#allocation11]  }
  0x2f   :  { %s101_s29 = sshll.u32 %s14390_s0, 4  ;;  %s102_s29 = int_to_ptr.vmem [resolvable:$true] %s101_s29 }
  0x30   :  { %s13886_s2 = scalar_lea.vmem %s102_s29, 2048  ;;  %p13891_p11 = scmp.lt.s32.totalorder %s102_s29, %s102_s29 }
  0x31   :  { %p13887_p10 = scmp.ne.s32.totalorder %s102_s29, %s13886_s2  ;;  %p13892_p12 = scmp.lt.s32.totalorder %s13886_s2, %s13886_s2 }
  0x33   :  { %p13893_p13 = por %p13892_p12, %p13891_p11 }
  0x34   :  { %85 = dma.hbm_to_vmem [thread:$0]  %s15097_s5, 4096, %s80_s30, [#allocation9], %s14388_s27, %s14388_s27, %s14389_s4  }
  0x35   :  { %p13894_p0 = pnand %p13893_p13, %p13887_p10 }
  0x37   :  { %13897 = shalt.err (!%p13894_p0)
}
  0x38   :  { %s14391_s6 = smov 64   ;;  %s14392_s7 = smov 4  }
  0x39   :  { %s15098_s1 = sld [smem:[#allocation61_spill]]  ;;  %s14393_s30 = smov [#allocation14]  }
  0x3a   :  { %s123_s8 = sshll.u32 %s14393_s30, 4  ;;  %s14394_s28 = smov [#allocation17]   ;;  %s124_s8 = int_to_ptr.vmem [resolvable:$true] %s123_s8 }
  0x3b   :  { %s145_s9 = sshll.u32 %s14394_s28, 4  ;;  %s13906_s5 = scalar_lea.vmem %s124_s8, 4096  ;;  %s146_s9 = int_to_ptr.vmem [resolvable:$true] %s145_s9 }
  0x3c   :  { %p13907_p1 = scmp.ne.s32.totalorder %s124_s8, %s13906_s5  ;;  %p13911_p2 = scmp.lt.s32.totalorder %s124_s8, %s124_s8 }
  0x3d   :  { %p13912_p3 = scmp.lt.s32.totalorder %s13906_s5, %s13906_s5 }
  0x3f   :  { %107 = dma.hbm_to_vmem [thread:$0]  %s15098_s1, 2048, %s102_s29, [#allocation12], %s14391_s6, %s14391_s6, %s14392_s7  }
  0x40   :  { %p13913_p4 = por %p13912_p3, %p13911_p2 }
  0x42   :  { %p13914_p5 = pnand %p13913_p4, %p13907_p1 }
  0x44   :  { %13917 = shalt.err (!%p13914_p5)
}
  0x45   :  { %s15099_s25 = sld [smem:[#allocation63_spill]]  ;;  %s13926_s29 = scalar_lea.vmem %s146_s9, 2048 }
  0x46   :  { %p13927_p6 = scmp.ne.s32.totalorder %s146_s9, %s13926_s29  ;;  %p13931_p7 = scmp.lt.s32.totalorder %s146_s9, %s146_s9 }
  0x47   :  { %p13932_p8 = scmp.lt.s32.totalorder %s13926_s29, %s13926_s29 }
  0x49   :  { %p13933_p9 = por %p13932_p8, %p13931_p7 }
  0x4b   :  { %129 = dma.hbm_to_vmem [thread:$0]  %s15099_s25, 4096, %s124_s8, [#allocation15], %s14388_s27, %s14388_s27, %s14389_s4  }
  0x4c   :  { %p13934_p10 = pnand %p13933_p9, %p13927_p6 }
  0x4e   :  { %13937 = shalt.err (!%p13934_p10)
}
  0x4f   :  { %s15100_s1 = sld [smem:[#allocation65_spill]]  ;;  %s14395_s30 = smov [#allocation20]  }
  0x50   :  { %s167_s28 = sshll.u32 %s14395_s30, 4  ;;  %s168_s28 = int_to_ptr.vmem [resolvable:$true] %s167_s28 }
  0x51   :  { %s13946_s5 = scalar_lea.vmem %s168_s28, 65536  ;;  %p13951_p12 = scmp.lt.s32.totalorder %s168_s28, %s168_s28 }
  0x52   :  { %p13947_p11 = scmp.ne.s32.totalorder %s168_s28, %s13946_s5  ;;  %p13952_p13 = scmp.lt.s32.totalorder %s13946_s5, %s13946_s5 }
  0x54   :  { %p13953_p0 = por %p13952_p13, %p13951_p12 }
  0x55   :  { %151 = dma.hbm_to_vmem [thread:$0]  %s15100_s1, 2048, %s146_s9, [#allocation18], %s14391_s6, %s14391_s6, %s14392_s7  }
  0x56   :  { %p13954_p1 = pnand %p13953_p0, %p13947_p11 }
  0x58   :  { %13957 = shalt.err (!%p13954_p1)
}
  0x59   :  { %s14396_s25 = smov 512   ;;  %s14397_s27 = smov 32  }
  0x5a   :  { %173 = dma.hbm_to_vmem [thread:$0]  %s15070_s11, 65536, %s168_s28, [#allocation21], %s14396_s25, %s14396_s25, %s14397_s27  }
  0x5b   :  { %s14398_s9 = smov [#allocation23]  }
  0x5c   :  { %s189_s0 = sshll.u32 %s14398_s9, 4  ;;  %s190_s0 = int_to_ptr.vmem [resolvable:$true] %s189_s0 }
  0x5d   :  { %s13966_s2 = scalar_lea.vmem %s190_s0, 32768  ;;  %p13971_p3 = scmp.lt.s32.totalorder %s190_s0, %s190_s0 }
  0x5e   :  { %p13967_p2 = scmp.ne.s32.totalorder %s190_s0, %s13966_s2  ;;  %p13972_p4 = scmp.lt.s32.totalorder %s13966_s2, %s13966_s2 }
  0x60   :  { %p13973_p5 = por %p13972_p4, %p13971_p3 }
  0x62   :  { %p13974_p6 = pnand %p13973_p5, %p13967_p2 }
  0x64   :  { %13977 = shalt.err (!%p13974_p6)
}
  0x65   :  { %s14399_s29 = smov 256   ;;  %s14400_s3 = smov 16  }
  0x66   :  { %195 = dma.hbm_to_vmem [thread:$0]  %s15072_s13, 32768, %s190_s0, [#allocation24], %s14399_s29, %s14399_s29, %s14400_s3  }
  0x67   :  { %s14401_s11 = smov [#allocation26]   ;;  %s14402_s28 = smov [#allocation29]  }
  0x68   :  { %s211_s30 = sshll.u32 %s14401_s11, 4  ;;  %s233_s5 = sshll.u32 %s14402_s28, 4  ;;  %s212_s30 = int_to_ptr.vmem [resolvable:$true] %s211_s30  ;;  %s234_s5 = int_to_ptr.vmem [resolvable:$true] %s233_s5 }
  0x69   :  { %s13986_s4 = scalar_lea.vmem %s212_s30, 4096  ;;  %p13991_p8 = scmp.lt.s32.totalorder %s212_s30, %s212_s30 }
  0x6a   :  { %p13987_p7 = scmp.ne.s32.totalorder %s212_s30, %s13986_s4  ;;  %p13992_p9 = scmp.lt.s32.totalorder %s13986_s4, %s13986_s4 }
  0x6c   :  { %p13993_p10 = por %p13992_p9, %p13991_p8 }
  0x6e   :  { %p13994_p11 = pnand %p13993_p10, %p13987_p7 }
  0x70   :  { %13997 = shalt.err (!%p13994_p11)
}
  0x71   :  { %217 = dma.hbm_to_vmem [thread:$0]  %s15074_s15, 4096, %s212_s30, [#allocation27], %s14391_s6, %s14391_s6, %s14392_s7  }
  0x72   :  { %s14006_s13 = scalar_lea.vmem %s234_s5, 8192  ;;  %p14011_p13 = scmp.lt.s32.totalorder %s234_s5, %s234_s5 }
  0x73   :  { %p14007_p12 = scmp.ne.s32.totalorder %s234_s5, %s14006_s13  ;;  %p14012_p0 = scmp.lt.s32.totalorder %s14006_s13, %s14006_s13 }
  0x75   :  { %p14013_p1 = por %p14012_p0, %p14011_p13 }
  0x77   :  { %p14014_p2 = pnand %p14013_p1, %p14007_p12 }
  0x79   :  { %14017 = shalt.err (!%p14014_p2)
}
  0x7a   :  { %239 = dma.hbm_to_vmem [thread:$0]  %s15076_s17, 8192, %s234_s5, [#allocation30], %s14396_s25, %s14396_s25, %s14397_s27  }
  0x7b   :  { %s14403_s26 = smov [#allocation32]   ;;  %s14404_s11 = smov [#allocation35]  }
  0x7c   :  { %s257_s1 = sshll.u32 %s14403_s26, 4  ;;  %s279_s15 = sshll.u32 %s14404_s11, 4  ;;  %s258_s1 = int_to_ptr.vmem [resolvable:$true] %s257_s1  ;;  %s280_s15 = int_to_ptr.vmem [resolvable:$true] %s279_s15 }
  0x7d   :  { %s14026_s30 = scalar_lea.vmem %s258_s1, 8192  ;;  %p14031_p4 = scmp.lt.s32.totalorder %s258_s1, %s258_s1 }
  0x7e   :  { %p14027_p3 = scmp.ne.s32.totalorder %s258_s1, %s14026_s30  ;;  %p14032_p5 = scmp.lt.s32.totalorder %s14026_s30, %s14026_s30 }
  0x80   :  { %p14033_p6 = por %p14032_p5, %p14031_p4 }
  0x82   :  { %p14034_p7 = pnand %p14033_p6, %p14027_p3 }
  0x84   :  { %14037 = shalt.err (!%p14034_p7)
}
  0x85   :  { %263 = dma.hbm_to_vmem [thread:$0]  %s15078_s19, 8192, %s258_s1, [#allocation33], %s14396_s25, %s14396_s25, %s14397_s27  }
  0x86   :  { %s14046_s17 = scalar_lea.vmem %s280_s15, 32768  ;;  %p14051_p9 = scmp.lt.s32.totalorder %s280_s15, %s280_s15 }
  0x87   :  { %p14047_p8 = scmp.ne.s32.totalorder %s280_s15, %s14046_s17  ;;  %p14052_p10 = scmp.lt.s32.totalorder %s14046_s17, %s14046_s17 }
  0x89   :  { %p14053_p11 = por %p14052_p10, %p14051_p9 }
  0x8b   :  { %p14054_p12 = pnand %p14053_p11, %p14047_p8 }
  0x8d   :  { %14057 = shalt.err (!%p14054_p12)
}
  0x8e   :  { %285 = dma.hbm_to_vmem [thread:$0]  %s15080_s21, 32768, %s280_s15, [#allocation36], %s14399_s29, %s14399_s29, %s14400_s3  }
  0x8f   :  { %s14405_s9 = smov [#allocation38]   ;;  %s14406_s0 = smov [#allocation2]  }
  0x90   :  { %s301_s13 = sshll.u32 %s14405_s9, 4  ;;  %s50_s19 = sshll.u32 %s14406_s0, 4  ;;  %s302_s13 = int_to_ptr.vmem [resolvable:$true] %s301_s13  ;;  %s51_s19 = int_to_ptr.vmem [resolvable:$true] %s50_s19 }
  0x91   :  { %s14066_s2 = scalar_lea.vmem %s302_s13, 4096  ;;  %p14071_p0 = scmp.lt.s32.totalorder %s302_s13, %s302_s13 }
  0x92   :  { %p14067_p13 = scmp.ne.s32.totalorder %s302_s13, %s14066_s2  ;;  %p14072_p1 = scmp.lt.s32.totalorder %s14066_s2, %s14066_s2 }
  0x94   :  { %p14073_p2 = por %p14072_p1, %p14071_p0 }
  0x96   :  { %p14074_p3 = pnand %p14073_p2, %p14067_p13 }
  0x98   :  { %14077 = shalt.err (!%p14074_p3)
}
  0x99   :  { %307 = dma.hbm_to_vmem [thread:$0]  %s15082_s23, 4096, %s302_s13, [#allocation39], %s14391_s6, %s14391_s6, %s14392_s7  }
  0x9a   :  { %s14086_s21 = scalar_lea.vmem %s51_s19, 256  ;;  %p14091_p5 = scmp.lt.s32.totalorder %s51_s19, %s51_s19 }
  0x9b   :  { %p14087_p4 = scmp.ne.s32.totalorder %s51_s19, %s14086_s21  ;;  %p14092_p6 = scmp.lt.s32.totalorder %s14086_s21, %s14086_s21 }
  0x9d   :  { %p14093_p7 = por %p14092_p6, %p14091_p5 }
  0x9f   :  { %p14094_p8 = pnand %p14093_p7, %p14087_p4 }
  0xa1   :  { %14097 = shalt.err (!%p14094_p8)
}
  0xa2   :  { %s15101_s11 = sld [smem:[#allocation56_spill]]  ;;  %s14407_s15 = smov [#allocation7]  }
  0xa3   :  { %s70_s30 = sshll.u32 %s14407_s15, 4  ;;  %s14408_s28 = smov [#allocation10]   ;;  %s71_s30 = int_to_ptr.vmem [resolvable:$true] %s70_s30 }
  0xa4   :  { %s92_s4 = sshll.u32 %s14408_s28, 4  ;;  %s14106_s17 = scalar_lea.vmem %s71_s30, 1024  ;;  %s93_s4 = int_to_ptr.vmem [resolvable:$true] %s92_s4 }
  0xa5   :  { %p14107_p9 = scmp.ne.s32.totalorder %s71_s30, %s14106_s17  ;;  %p14111_p10 = scmp.lt.s32.totalorder %s71_s30, %s71_s30 }
  0xa6   :  { %p14112_p11 = scmp.lt.s32.totalorder %s14106_s17, %s14106_s17 }
  0xa8   :  { %53 = dma.hbm_to_vmem [thread:$0]  %s15101_s11, 256, %s51_s19, [#allocation3]  }
  0xa9   :  { %p14113_p12 = por %p14112_p11, %p14111_p10 }
  0xab   :  { %p14114_p13 = pnand %p14113_p12, %p14107_p9 }
  0xad   :  { %14117 = shalt.err (!%p14114_p13)
}
  0xae   :  { %s15102_s7 = sld [smem:[#allocation58_spill]]  ;;  %s14126_s5 = scalar_lea.vmem %s93_s4, 32 }
  0xaf   :  { %p14127_p0 = scmp.ne.s32.totalorder %s93_s4, %s14126_s5  ;;  %p14131_p1 = scmp.lt.s32.totalorder %s93_s4, %s93_s4 }
  0xb0   :  { %p14132_p2 = scmp.lt.s32.totalorder %s14126_s5, %s14126_s5 }
  0xb2   :  { %p14133_p3 = por %p14132_p2, %p14131_p1 }
  0xb4   :  { %73 = dma.hbm_to_vmem [thread:$0]  %s15102_s7, 1024, %s71_s30, [#allocation6]  }
  0xb5   :  { %p14134_p4 = pnand %p14133_p3, %p14127_p0 }
  0xb7   :  { %14137 = shalt.err (!%p14134_p4)
}
  0xb8   :  { %s15103_s13 = sld [smem:[#allocation60_spill]]  ;;  %s14409_s0 = smov [#allocation13]  }
  0xb9   :  { %s114_s19 = sshll.u32 %s14409_s0, 4  ;;  %s14410_s2 = smov [#allocation16]   ;;  %s115_s19 = int_to_ptr.vmem [resolvable:$true] %s114_s19 }
  0xba   :  { %s136_s26 = sshll.u32 %s14410_s2, 4  ;;  %s14146_s1 = scalar_lea.vmem %s115_s19, 16  ;;  %s137_s26 = int_to_ptr.vmem [resolvable:$true] %s136_s26 }
  0xbb   :  { %p14147_p5 = scmp.ne.s32.totalorder %s115_s19, %s14146_s1  ;;  %s14150_s21 = scalar_lea.vmem %s115_s19, 32 }
  0xbc   :  { %p14151_p6 = scmp.lt.s32.totalorder %s115_s19, %s115_s19  ;;  %p14152_p7 = scmp.lt.s32.totalorder %s14150_s21, %s14146_s1 }
  0xbe   :  { %95 = dma.hbm_to_vmem [thread:$0]  %s15103_s13, 32, %s93_s4, [#allocation9]  }
  0xbf   :  { %p14153_p8 = por %p14152_p7, %p14151_p6 }
  0xc1   :  { %p14154_p9 = pnand %p14153_p8, %p14147_p5 }
  0xc3   :  { %14157 = shalt.err (!%p14154_p9)
}
  0xc4   :  { %s15104_s11 = sld [smem:[#allocation62_spill]]  ;;  %s14166_s15 = scalar_lea.vmem %s137_s26, 32 }
  0xc5   :  { %p14167_p10 = scmp.ne.s32.totalorder %s137_s26, %s14166_s15  ;;  %p14171_p11 = scmp.lt.s32.totalorder %s137_s26, %s137_s26 }
  0xc6   :  { %p14172_p12 = scmp.lt.s32.totalorder %s14166_s15, %s14166_s15 }
  0xc8   :  { %p14173_p13 = por %p14172_p12, %p14171_p11 }
  0xca   :  { %117 = dma.hbm_to_vmem [thread:$0]  %s15104_s11, 16, %s115_s19, [#allocation12]  }
  0xcb   :  { %p14174_p0 = pnand %p14173_p13, %p14167_p10 }
  0xcd   :  { %14177 = shalt.err (!%p14174_p0)
}
  0xce   :  { %s15105_s4 = sld [smem:[#allocation64_spill]]  ;;  %s14411_s17 = smov [#allocation19]  }
  0xcf   :  { %s158_s23 = sshll.u32 %s14411_s17, 4  ;;  %s14412_s6 = smov [#allocation22]   ;;  %s159_s23 = int_to_ptr.vmem [resolvable:$true] %s158_s23 }
  0xd0   :  { %s180_s7 = sshll.u32 %s14412_s6, 4  ;;  %s14186_s5 = scalar_lea.vmem %s159_s23, 16  ;;  %s181_s7 = int_to_ptr.vmem [resolvable:$true] %s180_s7 }
  0xd1   :  { %p14187_p1 = scmp.ne.s32.totalorder %s159_s23, %s14186_s5  ;;  %s14190_s8 = scalar_lea.vmem %s159_s23, 32 }
  0xd2   :  { %p14191_p2 = scmp.lt.s32.totalorder %s159_s23, %s159_s23  ;;  %p14192_p3 = scmp.lt.s32.totalorder %s14190_s8, %s14186_s5 }
  0xd4   :  { %139 = dma.hbm_to_vmem [thread:$0]  %s15105_s4, 32, %s137_s26, [#allocation15]  }
  0xd5   :  { %p14193_p4 = por %p14192_p3, %p14191_p2 }
  0xd7   :  { %p14194_p5 = pnand %p14193_p4, %p14187_p1 }
  0xd9   :  { %14197 = shalt.err (!%p14194_p5)
}
  0xda   :  { %161 = dma.hbm_to_vmem [thread:$0]  %s15069_s10, 16, %s159_s23, [#allocation18]  }
  0xdb   :  { %s14206_s0 = scalar_lea.vmem %s181_s7, 128  ;;  %p14211_p7 = scmp.lt.s32.totalorder %s181_s7, %s181_s7 }
  0xdc   :  { %p14207_p6 = scmp.ne.s32.totalorder %s181_s7, %s14206_s0  ;;  %p14212_p8 = scmp.lt.s32.totalorder %s14206_s0, %s14206_s0 }
  0xde   :  { %p14213_p9 = por %p14212_p8, %p14211_p7 }
  0xe0   :  { %p14214_p10 = pnand %p14213_p9, %p14207_p6 }
  0xe2   :  { %14217 = shalt.err (!%p14214_p10)
}
  0xe3   :  { %183 = dma.hbm_to_vmem [thread:$0]  %s15071_s12, 128, %s181_s7, [#allocation21]  }
  0xe4   :  { %s14413_s26 = smov [#allocation25]   ;;  %s14414_s21 = smov [#allocation28]  }
  0xe5   :  { %s202_s1 = sshll.u32 %s14413_s26, 4  ;;  %s224_s29 = sshll.u32 %s14414_s21, 4  ;;  %s203_s1 = int_to_ptr.vmem [resolvable:$true] %s202_s1  ;;  %s225_s29 = int_to_ptr.vmem [resolvable:$true] %s224_s29 }
  0xe6   :  { %s14226_s3 = scalar_lea.vmem %s203_s1, 64  ;;  %p14231_p12 = scmp.lt.s32.totalorder %s203_s1, %s203_s1 }
  0xe7   :  { %p14227_p11 = scmp.ne.s32.totalorder %s203_s1, %s14226_s3  ;;  %p14232_p13 = scmp.lt.s32.totalorder %s14226_s3, %s14226_s3 }
  0xe9   :  { %p14233_p0 = por %p14232_p13, %p14231_p12 }
  0xeb   :  { %p14234_p1 = pnand %p14233_p0, %p14227_p11 }
  0xed   :  { %14237 = shalt.err (!%p14234_p1)
}
  0xee   :  { %205 = dma.hbm_to_vmem [thread:$0]  %s15073_s14, 64, %s203_s1, [#allocation24]  }
  0xef   :  { %s14246_s15 = scalar_lea.vmem %s225_s29, 16  ;;  %s14250_s12 = scalar_lea.vmem %s225_s29, 32 }
  0xf0   :  { %p14247_p2 = scmp.ne.s32.totalorder %s225_s29, %s14246_s15  ;;  %p14251_p3 = scmp.lt.s32.totalorder %s225_s29, %s225_s29 }
  0xf1   :  { %p14252_p4 = scmp.lt.s32.totalorder %s14250_s12, %s14246_s15 }
  0xf3   :  { %p14253_p5 = por %p14252_p4, %p14251_p3 }
  0xf5   :  { %p14254_p6 = pnand %p14253_p5, %p14247_p2 }
  0xf7   :  { %14257 = shalt.err (!%p14254_p6)
}
  0xf8   :  { %227 = dma.hbm_to_vmem [thread:$0]  %s15075_s16, 16, %s225_s29, [#allocation27]  }
  0xf9   :  { %s14415_s4 = smov [#allocation31]   ;;  %s14416_s23 = smov [#allocation34]  }
  0xfa   :  { %s245_s17 = sshll.u32 %s14415_s4, 4  ;;  %s270_s6 = sshll.u32 %s14416_s23, 4  ;;  %s246_s17 = int_to_ptr.vmem [resolvable:$true] %s245_s17  ;;  %s271_s6 = int_to_ptr.vmem [resolvable:$true] %s270_s6 }
  0xfb   :  { %s14266_s7 = scalar_lea.vmem %s246_s17, 8192  ;;  %p14271_p8 = scmp.lt.s32.totalorder %s246_s17, %s246_s17 }
  0xfc   :  { %p14267_p7 = scmp.ne.s32.totalorder %s246_s17, %s14266_s7  ;;  %p14272_p9 = scmp.lt.s32.totalorder %s14266_s7, %s14266_s7 }
  0xfe   :  { %p14273_p10 = por %p14272_p9, %p14271_p8 }
 0x100   :  { %p14274_p11 = pnand %p14273_p10, %p14267_p7 }
 0x102   :  { %14277 = shalt.err (!%p14274_p11)
}
 0x103   :  { %251 = dma.hbm_to_vmem [thread:$0]  %s15077_s18, 8192, %s246_s17, [#allocation30], %s14396_s25, %s14396_s25, %s14397_s27  }
 0x104   :  { %s14286_s16 = scalar_lea.vmem %s271_s6, 128  ;;  %p14291_p13 = scmp.lt.s32.totalorder %s271_s6, %s271_s6 }
 0x105   :  { %p14287_p12 = scmp.ne.s32.totalorder %s271_s6, %s14286_s16  ;;  %p14292_p0 = scmp.lt.s32.totalorder %s14286_s16, %s14286_s16 }
 0x107   :  { %p14293_p1 = por %p14292_p0, %p14291_p13 }
 0x109   :  { %p14294_p2 = pnand %p14293_p1, %p14287_p12 }
 0x10b   :  { %14297 = shalt.err (!%p14294_p2)
}
 0x10c   :  { %273 = dma.hbm_to_vmem [thread:$0]  %s15079_s20, 128, %s271_s6, [#allocation33]  }
 0x10d   :  { %s14417_s13 = smov [#allocation37]   ;;  %s14418_s19 = smov [#allocation40]  }
 0x10e   :  { %s292_s0 = sshll.u32 %s14417_s13, 4  ;;  %s314_s2 = sshll.u32 %s14418_s19, 4  ;;  %s293_s0 = int_to_ptr.vmem [resolvable:$true] %s292_s0  ;;  %s315_s2 = int_to_ptr.vmem [resolvable:$true] %s314_s2 }
 0x10f   :  { %s14306_s26 = scalar_lea.vmem %s293_s0, 64  ;;  %p14311_p4 = scmp.lt.s32.totalorder %s293_s0, %s293_s0 }
 0x110   :  { %p14307_p3 = scmp.ne.s32.totalorder %s293_s0, %s14306_s26  ;;  %p14312_p5 = scmp.lt.s32.totalorder %s14306_s26, %s14306_s26 }
 0x112   :  { %p14313_p6 = por %p14312_p5, %p14311_p4 }
 0x114   :  { %p14314_p7 = pnand %p14313_p6, %p14307_p3 }
 0x116   :  { %14317 = shalt.err (!%p14314_p7)
}
 0x117   :  { %295 = dma.hbm_to_vmem [thread:$0]  %s15081_s22, 64, %s293_s0, [#allocation36]  }
 0x118   :  { %s14326_s27 = scalar_lea.vmem %s315_s2, 16  ;;  %s14330_s20 = scalar_lea.vmem %s315_s2, 32 }
 0x119   :  { %p14327_p8 = scmp.ne.s32.totalorder %s315_s2, %s14326_s27  ;;  %p14331_p9 = scmp.lt.s32.totalorder %s315_s2, %s315_s2 }
 0x11a   :  { %p14332_p10 = scmp.lt.s32.totalorder %s14330_s20, %s14326_s27 }
 0x11c   :  { %p14333_p11 = por %p14332_p10, %p14331_p9 }
 0x11e   :  { %p14334_p12 = pnand %p14333_p11, %p14327_p8 }
 0x120   :  { %14337 = shalt.err (!%p14334_p12)
}
 0x121   :  { %317 = dma.hbm_to_vmem [thread:$0]  %s15083_s24, 16, %s315_s2, [#allocation39]  }
 0x122   :  { %14358 = dma.done.wait [#allocation3], 256  }
 0x123   :  { %14359 = vsyncadd [#allocation3], 4294967040 }
 0x124   :  { %14360 = dma.done.wait [#allocation6], 1280  }
 0x125   :  { %14361 = vsyncadd [#allocation6], 4294966016 }
 0x126   :  { %14362 = dma.done.wait [#allocation9], 4128  }
 0x127   :  { %14363 = vsyncadd [#allocation9], 4294963168 }
 0x128   :  { %14364 = dma.done.wait [#allocation12], 2064  }
 0x129   :  { %14365 = vsyncadd [#allocation12], 4294965232 }
 0x12a   :  { %14366 = dma.done.wait [#allocation15], 4128  }
 0x12b   :  { %14367 = vsyncadd [#allocation15], 4294963168 }
 0x12c   :  { %14368 = dma.done.wait [#allocation18], 2064  }
 0x12d   :  { %14369 = vsyncadd [#allocation18], 4294965232 }
 0x12e   :  { %14370 = dma.done.wait [#allocation21], 65664  }
 0x12f   :  { %14371 = vsyncadd [#allocation21], 4294901632 }
 0x130   :  { %14372 = dma.done.wait [#allocation24], 32832  }
 0x131   :  { %14373 = vsyncadd [#allocation24], 4294934464 }
 0x132   :  { %14374 = dma.done.wait [#allocation27], 4112  }
 0x133   :  { %14375 = vsyncadd [#allocation27], 4294963184 }
 0x134   :  { %14376 = dma.done.wait [#allocation30], 16384  }
 0x135   :  { %14377 = vsyncadd [#allocation30], 4294950912 }
 0x136   :  { %14378 = dma.done.wait [#allocation33], 8320  }
 0x137   :  { %14379 = vsyncadd [#allocation33], 4294958976 }
 0x138   :  { %14380 = dma.done.wait [#allocation36], 32832  }
 0x139   :  { %14381 = vsyncadd [#allocation36], 4294934464 }
 0x13a   :  { %14382 = dma.done.wait [#allocation39], 4112  }
 0x13b   :  { %14383 = vsyncadd [#allocation39], 4294963184  ;;  %v12865_v0 = vld [vmem:[#allocation8 + $0x74] ss:$8 sps:$4 sm:$0xff]   ;;  %v12867_v1 = vld [vmem:[#allocation8 + $0x70] ss:$8 sps:$4 sm:$0xff]  }
 0x13c   :  { %602 = vmatprep.subr.bf16.mxu0 %v12865_v0  ;;  %v12868_v2 = vld [vmem:[#allocation8 + $0x64] ss:$8 sps:$4 sm:$0xff]   ;;  %v12870_v3 = vld [vmem:[#allocation8 + $0x60] ss:$8 sps:$4 sm:$0xff]   ;;  %v12871_v4 = vld [vmem:[#allocation8 + $0x54] ss:$8 sps:$4 sm:$0xff]  }
 0x13d   :  { %603 = vmatpush1.bf16.msra.mxu0 %v12867_v1  ;;  %v12873_v5 = vld [vmem:[#allocation8 + $0x50] ss:$8 sps:$4 sm:$0xff]   ;;  %v12874_v6 = vld [vmem:[#allocation8 + $0x44] ss:$8 sps:$4 sm:$0xff]   ;;  %v12876_v7 = vld [vmem:[#allocation8 + $0x40] ss:$8 sps:$4 sm:$0xff]  }
 0x13e   :  { %604 = vmatprep.subr.bf16.mxu0 %v12868_v2  ;;  %v12877_v8 = vld [vmem:[#allocation8 + $0x34] ss:$8 sps:$4 sm:$0xff]   ;;  %v12879_v9 = vld [vmem:[#allocation8 + $0x30] ss:$8 sps:$4 sm:$0xff]   ;;  %v12880_v10 = vld [vmem:[#allocation8 + $0x24] ss:$8 sps:$4 sm:$0xff]  }
 0x13f   :  { %v12882_v11 = vld [vmem:[#allocation8 + $0x20] ss:$8 sps:$4 sm:$0xff]   ;;  %v12883_v12 = vld [vmem:[#allocation8 + $0x14] ss:$8 sps:$4 sm:$0xff]   ;;  %v12885_v13 = vld [vmem:[#allocation8 + $0x10] ss:$8 sps:$4 sm:$0xff]  }
 0x140   :  { %v395_v14 = vld [vmem:[#allocation2 + $0x8] sm:$0xff]  ;;  %v12913_v17 = vld [vmem:[#allocation11 + $0x78] sm:$0xff]   ;;  %v1252_v21 = vld [vmem:[#allocation7 + $0x10] sm:$0xff]  ;;  %s14420_s22 = smov [#allocation41]  }
 0x141   :  { %605 = vmatpush1.bf16.msra.mxu0 %v12870_v3  ;;  %v12886_v15 = vld [vmem:[#allocation8 + $0x4] ss:$8 sps:$4 sm:$0xff]   ;;  %v397_v16 = vpack.c.bf16 %v395_v14, %v395_v14  ;;  %v12914_v18 = vld [vmem:[#allocation11 + $0x38] sm:$0xff]   ;;  %12698 = vmatprep.subr.bf16.mxu1 %v12913_v17  ;;  %v1260_v26 = vmul.f32 %v1252_v21, %v1252_v21  ;;  %v12915_v32 = vld [vmem:[#allocation11 + $0x70] sm:$0xff]   ;;  %s11297_s24 = sshll.u32 %s14420_s22, 4  ;;  %s11298_s24 = int_to_ptr.vmem [resolvable:$true] %s11297_s24 }
 0x142   :  { %606 = vmatprep.subr.bf16.mxu0 %v12871_v4  ;;  %v1250_v19 = vld [vmem:[#allocation7] sm:$0xff]  ;;  %v1251_v20 = vld [vmem:[#allocation7 + $0x8] sm:$0xff]  ;;  %v1253_v23 = vld [vmem:[#allocation7 + $0x18] sm:$0xff]  ;;  %12699 = vmatpush3.bf16.msra.mxu1 %v12914_v18  ;;  %s14338_s29 = scalar_lea.vmem %s11298_s24, 128  ;;  %p14343_p0 = scmp.lt.s32.totalorder %s11298_s24, %s11298_s24 }
 0x143   :  { %634 = vmatprep.mubr.bf16.mxu0 %v397_v16  ;;  %v12888_v22 = vld [vmem:[#allocation8] ss:$8 sps:$4 sm:$0xff]   ;;  %v1258_v24 = vmul.f32 %v1250_v19, %v1250_v19  ;;  %v1259_v25 = vmul.f32 %v1251_v20, %v1251_v20  ;;  %v12889_v27 = vld [vmem:[#allocation8 + $0xf4] ss:$8 sps:$4 sm:$0xff]   ;;  %v1261_v30 = vmul.f32 %v1253_v23, %v1253_v23  ;;  %v12891_v35 = vld [vmem:[#allocation8 + $0xf0] ss:$8 sps:$4 sm:$0xff]   ;;  %12700 = vmatprep.subr.bf16.mxu1 %v12915_v32  ;;  %p14339_p13 = scmp.ne.s32.totalorder %s11298_s24, %s14338_s29  ;;  %p14344_p1 = scmp.lt.s32.totalorder %s14338_s29, %s14338_s29 }
 0x144   :  { %v1254_v28 = vld [vmem:[#allocation7 + $0x20] sm:$0xff]  ;;  %v1255_v29 = vld [vmem:[#allocation7 + $0x28] sm:$0xff]  ;;  %v1256_v33 = vld [vmem:[#allocation7 + $0x30] sm:$0xff] }
 0x145   :  { %607 = vmatpush1.bf16.msra.mxu0 %v12873_v5  ;;  %v1266_v31 = vadd.f32 %v1259_v25, %v1258_v24  ;;  %v12916_v34 = vld [vmem:[#allocation11 + $0x30] sm:$0xff]   ;;  %v1262_v36 = vmul.f32 %v1254_v28, %v1254_v28  ;;  %v12917_v38 = vld [vmem:[#allocation11 + $0x68] sm:$0xff]   ;;  %v1263_v41 = vmul.f32 %v1255_v29, %v1255_v29  ;;  %v12919_v43 = vld [vmem:[#allocation11 + $0x60] sm:$0xff]   ;;  %v1264_v46 = vmul.f32 %v1256_v33, %v1256_v33  ;;  %p14345_p2 = por %p14344_p1, %p14343_p0 }
 0x146   :  { %608 = vmatprep.subr.bf16.mxu0 %v12874_v6  ;;  %v12892_v39 = vld [vmem:[#allocation8 + $0xe4] ss:$8 sps:$4 sm:$0xff]   ;;  %12701 = vmatpush3.bf16.msra.mxu1 %v12916_v34  ;;  %v1257_v44 = vld [vmem:[#allocation7 + $0x38] sm:$0xff]  ;;  %v12894_v45 = vld [vmem:[#allocation8 + $0xe0] ss:$8 sps:$4 sm:$0xff]  }
 0x147   :  { %v1267_v37 = vadd.f32 %v1266_v31, %v1260_v26  ;;  %v12918_v40 = vld [vmem:[#allocation11 + $0x28] sm:$0xff]   ;;  %12702 = vmatprep.subr.bf16.mxu1 %v12917_v38  ;;  %v12920_v48 = vld [vmem:[#allocation11 + $0x20] sm:$0xff]   ;;  %v1265_v49 = vmul.f32 %v1257_v44, %v1257_v44  ;;  %v12921_v51 = vld [vmem:[#allocation11 + $0x58] sm:$0xff]   ;;  %p14346_p3 = pnand %p14345_p2, %p14339_p13 }
 0x148   :  { %v12895_v52 = vld [vmem:[#allocation8 + $0xd4] ss:$8 sps:$4 sm:$0xff]   ;;  %v12897_v54 = vld [vmem:[#allocation8 + $0xd0] ss:$8 sps:$4 sm:$0xff]   ;;  %v12898_v57 = vld [vmem:[#allocation8 + $0xc4] ss:$8 sps:$4 sm:$0xff]  }
 0x149   :  { %609 = vmatpush1.bf16.msra.mxu0 %v12876_v7  ;;  %v1268_v42 = vadd.f32 %v1267_v37, %v1261_v30  ;;  %v12922_v53 = vld [vmem:[#allocation11 + $0x18] sm:$0xff]   ;;  %v12923_v56 = vld [vmem:[#allocation11 + $0x50] sm:$0xff]   ;;  %v12904_v63 = vld [vmem:[#allocation8 + $0xa4] ss:$8 sps:$4 sm:$0xff]  }
 0x14a   :  { %610 = vmatprep.subr.bf16.mxu0 %v12877_v8  ;;  %12703 = vmatpush3.bf16.msra.mxu1 %v12918_v40  ;;  %v12924_v59 = vld [vmem:[#allocation11 + $0x10] sm:$0xff]   ;;  %v12900_v60 = vld [vmem:[#allocation8 + $0xc0] ss:$8 sps:$4 sm:$0xff]   ;;  %v12910_v3 = vld [vmem:[#allocation8 + $0x84] ss:$8 sps:$4 sm:$0xff]  }
 0x14b   :  { %v1269_v47 = vadd.f32 %v1268_v42, %v1262_v36  ;;  %12704 = vmatprep.subr.bf16.mxu1 %v12919_v43  ;;  %v12901_v61 = vld [vmem:[#allocation8 + $0xb4] ss:$8 sps:$4 sm:$0xff]   ;;  %v12903_v62 = vld [vmem:[#allocation8 + $0xb0] ss:$8 sps:$4 sm:$0xff]   ;;  %v12906_v0 = vld [vmem:[#allocation8 + $0xa0] ss:$8 sps:$4 sm:$0xff]  }
 0x14c   :  { %v12907_v1 = vld [vmem:[#allocation8 + $0x94] ss:$8 sps:$4 sm:$0xff]   ;;  %v12909_v2 = vld [vmem:[#allocation8 + $0x90] ss:$8 sps:$4 sm:$0xff]   ;;  %v12912_v4 = vld [vmem:[#allocation8 + $0x80] ss:$8 sps:$4 sm:$0xff]  }
 0x14d   :  { %611 = vmatpush1.bf16.msra.mxu0 %v12879_v9  ;;  %v1270_v50 = vadd.f32 %v1269_v47, %v1263_v41  ;;  %v394_v5 = vld [vmem:[#allocation2] sm:$0xff]  ;;  %v12925_v7 = vld [vmem:[#allocation11 + $0x48] sm:$0xff]   ;;  %v823_v23 = vld [vmem:[#allocation5 + $0x8] sm:$0xff] }
 0x14e   :  { %612 = vmatprep.subr.bf16.mxu0 %v12880_v10  ;;  %12705 = vmatpush3.bf16.msra.mxu1 %v12920_v48  ;;  %v396_v6 = vpack.c.bf16 %v394_v5, %v394_v5  ;;  %v12926_v8 = vld [vmem:[#allocation11 + $0x8] sm:$0xff]   ;;  %v12927_v9 = vld [vmem:[#allocation11 + $0x40] sm:$0xff]   ;;  %v430_v14 = vld [vmem:[#allocation10] sm:$0x3]  ;;  %v825_v31 = vpack.c.bf16 %v823_v23, %v823_v23 }
 0x14f   :  { %v1271_v55 = vadd.f32 %v1270_v50, %v1264_v46  ;;  %12706 = vmatprep.subr.bf16.mxu1 %v12921_v51  ;;  %v12928_v10 = vld [vmem:[#allocation11] sm:$0xff]   ;;  %v12929_v29 = vld [vmem:[#allocation14 + $0x70] ss:$8 sps:$4 sm:$0xff]  }
 0x150   :  { %v12934_v30 = vld [vmem:[#allocation14 + $0x64] ss:$8 sps:$4 sm:$0xff]   ;;  %v12932_v33 = vld [vmem:[#allocation14 + $0x60] ss:$8 sps:$4 sm:$0xff]   ;;  %v12937_v34 = vld [vmem:[#allocation14 + $0x54] ss:$8 sps:$4 sm:$0xff]  }
 0x151   :  { %613 = vmatpush1.bf16.msra.mxu0 %v12882_v11  ;;  %v1272_v58 = vadd.f32 %v1271_v55, %v1265_v49  ;;  %v12931_v11 = vld [vmem:[#allocation14 + $0x74] ss:$8 sps:$4 sm:$0xff]   ;;  %v12940_v36 = vld [vmem:[#allocation14 + $0x44] ss:$8 sps:$4 sm:$0xff]   ;;  %v12938_v37 = vld [vmem:[#allocation14 + $0x40] ss:$8 sps:$4 sm:$0xff]  }
 0x152   :  { %614 = vmatprep.subr.bf16.mxu0 %v12883_v12  ;;  %12707 = vmatpush3.bf16.msra.mxu1 %v12922_v53  ;;  %v432_v12 = vlaneseq  ;;  %v12943_v38 = vld [vmem:[#allocation14 + $0x34] ss:$8 sps:$4 sm:$0xff]   ;;  %v12946_v40 = vld [vmem:[#allocation14 + $0x24] ss:$8 sps:$4 sm:$0xff]   ;;  %v12944_v41 = vld [vmem:[#allocation14 + $0x20] ss:$8 sps:$4 sm:$0xff]  }
 0x153   :  { %1273 = vadd.xlane.f32.xlu0 %v1272_v58  ;;  %12708 = vmatprep.subr.bf16.mxu1 %v12923_v56  ;;  %v12949_v42 = vld [vmem:[#allocation14 + $0x14] ss:$8 sps:$4 sm:$0xff]   ;;  %v12947_v43 = vld [vmem:[#allocation14 + $0x10] ss:$8 sps:$4 sm:$0xff]   ;;  %v12952_v44 = vld [vmem:[#allocation14 + $0x4] ss:$8 sps:$4 sm:$0xff]  }
 0x154   :  { %v12955_v46 = vld [vmem:[#allocation14 + $0xf4] ss:$8 sps:$4 sm:$0xff]   ;;  %v12953_v47 = vld [vmem:[#allocation14 + $0xf0] ss:$8 sps:$4 sm:$0xff]   ;;  %v12958_v48 = vld [vmem:[#allocation14 + $0xe4] ss:$8 sps:$4 sm:$0xff]  }
 0x155   :  { %615 = vmatpush1.bf16.msra.mxu0 %v12885_v13  ;;  %v14662_v13 = vshrl.u32 %v432_v12, 7  ;;  %v12956_v49 = vld [vmem:[#allocation14 + $0xe0] ss:$8 sps:$4 sm:$0xff]   ;;  %v12961_v50 = vld [vmem:[#allocation14 + $0xd4] ss:$8 sps:$4 sm:$0xff]  }
 0x156   :  { %616 = vmatprep.subr.bf16.mxu0 %v12886_v15  ;;  %12709 = vmatpush3.bf16.msra.mxu1 %v12924_v59  ;;  %v12962_v55 = vld [vmem:[#allocation14 + $0xc0] ss:$8 sps:$4 sm:$0xff]   ;;  %v12967_v56 = vld [vmem:[#allocation14 + $0xb4] ss:$8 sps:$4 sm:$0xff]   ;;  %v12970_v58 = vld [vmem:[#allocation14 + $0xa4] ss:$8 sps:$4 sm:$0xff]  }
 0x157   :  { %12710 = vmatprep.subr.bf16.mxu1 %v12925_v7  ;;  %v14665_v15 = vsub.s32 0, %v14662_v13  ;;  %v14668_v16 = vsub.s32 1, %v14662_v13  ;;  %v12968_v59 = vld [vmem:[#allocation14 + $0xa0] ss:$8 sps:$4 sm:$0xff]  }
 0x158   :  { %v1469_v7 = vld [vmem:[#allocation20 + $0x580] sm:$0xff] }
 0x159   :  { %617 = vmatpush1.bf16.msra.mxu0 %v12888_v22  ;;  %v435_v17 = vrot.slane %v430_v14, %v14665_v15  ;;  %v439_v18 = vrot.slane %v430_v14, %v14668_v16  ;;  %v1461_v14 = vld [vmem:[#allocation20 + $0x540] sm:$0xff] }
 0x15a   :  { %618 = vmatprep.subr.bf16.mxu0 %v12889_v27  ;;  %12711 = vmatpush3.bf16.msra.mxu1 %v12926_v8  ;;  %v1473_v8 = vld [vmem:[#allocation20 + $0x5a0] sm:$0xff] }
 0x15b   :  { %12712 = vmatprep.subr.bf16.mxu1 %v12927_v9  ;;  %v11593_v12 = vcombine.high %v1469_v7, %v1473_v8 }
 0x15d   :  { %619 = vmatpush2.bf16.msra.mxu0 %v12891_v35  ;;  %v12935_v35 = vld [vmem:[#allocation14 + $0x50] ss:$8 sps:$4 sm:$0xff]  }
 0x15e   :  { %620 = vmatprep.subr.bf16.mxu0 %v12892_v39  ;;  %12713 = vmatpush3.bf16.msra.mxu1 %v12928_v10  ;;  %v12941_v39 = vld [vmem:[#allocation14 + $0x30] ss:$8 sps:$4 sm:$0xff]  }
 0x15f   :  { %1030 = vmatprep.subr.bf16.mxu1 %v12931_v11 }
 0x161   :  { %621 = vmatpush2.bf16.msra.mxu0 %v12894_v45  ;;  %v12950_v45 = vld [vmem:[#allocation14] ss:$8 sps:$4 sm:$0xff]  }
 0x162   :  { %622 = vmatprep.subr.bf16.mxu0 %v12895_v52  ;;  %v12959_v52 = vld [vmem:[#allocation14 + $0xd0] ss:$8 sps:$4 sm:$0xff]  }
 0x165   :  { %623 = vmatpush2.bf16.msra.mxu0 %v12897_v54  ;;  %v12964_v54 = vld [vmem:[#allocation14 + $0xc4] ss:$8 sps:$4 sm:$0xff]  }
 0x166   :  { %624 = vmatprep.subr.bf16.mxu0 %v12898_v57  ;;  %v12965_v57 = vld [vmem:[#allocation14 + $0xb0] ss:$8 sps:$4 sm:$0xff]  }
 0x169   :  { %625 = vmatpush2.bf16.msra.mxu0 %v12900_v60  ;;  %v12973_v60 = vld [vmem:[#allocation14 + $0x94] ss:$8 sps:$4 sm:$0xff]  }
 0x16a   :  { %626 = vmatprep.subr.bf16.mxu0 %v12901_v61  ;;  %v12971_v61 = vld [vmem:[#allocation14 + $0x90] ss:$8 sps:$4 sm:$0xff]  }
 0x16d   :  { %627 = vmatpush2.bf16.msra.mxu0 %v12903_v62 }
 0x16e   :  { %628 = vmatprep.subr.bf16.mxu0 %v12904_v63  ;;  %v12976_v63 = vld [vmem:[#allocation14 + $0x84] ss:$8 sps:$4 sm:$0xff]  }
 0x171   :  { %629 = vmatpush2.bf16.msra.mxu0 %v12906_v0  ;;  %v1477_v0 = vld [vmem:[#allocation20 + $0x5c0] sm:$0xff] }
 0x172   :  { %630 = vmatprep.subr.bf16.mxu0 %v12907_v1  ;;  %v1481_v1 = vld [vmem:[#allocation20 + $0x5e0] sm:$0xff] }
 0x173   :  { %v11600_v10 = vcombine.low %v1477_v0, %v1481_v1 }
 0x175   :  { %631 = vmatpush2.bf16.msra.mxu0 %v12909_v2  ;;  %v12974_v2 = vld [vmem:[#allocation14 + $0x80] ss:$8 sps:$4 sm:$0xff]  }
 0x176   :  { %632 = vmatprep.subr.bf16.mxu0 %v12910_v3  ;;  %v822_v3 = vld [vmem:[#allocation5] sm:$0xff] }
 0x177   :  { %v824_v9 = vpack.c.bf16 %v822_v3, %v822_v3 }
 0x179   :  { %633 = vmatpush2.bf16.msra.mxu0 %v12912_v4  ;;  %v13829_v4 = vld [vmem:[#allocation7 + $0x18] sm:$0xff] }
 0x17c   :  { %635 = vmatmul.mubr.bf16.vlgmr.msra.gmra.mxu0 %v396_v6  ;;  %v11601_v6 = vcombine.high %v1477_v0, %v1481_v1  ;;  %v1501_v0 = vld [vmem:[#allocation20 + $0x680] sm:$0xff] }
 0x17d   :  { %v1505_v1 = vld [vmem:[#allocation20 + $0x6a0] sm:$0xff] }
 0x1dc   :  { %v1274_v51 = vpop.xlane.xlu0 %1273 }
 0x1dd   :  { %v1275_v53 = vmax.f32 %v1274_v51, 1e-24 }
 0x1df   :  { %13825 = vrsqrt.f32 %v1275_v53  ;;  %v1521_v53 = vld [vmem:[#allocation20 + $0x720] sm:$0xff] }
 0x1ec   :  { %v14672_v62 = vpop.eup %13825 }
 0x1ed   :  { %v1280_v5 = vmul.f32 %v13829_v4, %v14672_v62  ;;  %v11625_v4 = vcombine.high %v1501_v0, %v1505_v1 }
 0x1ef   :  { %v14675_v11 = vpack.c.bf16 %v1280_v5, %v1280_v5  ;;  %v12981_v5 = vld [vmem:[#allocation17 + $0x68] sm:$0xff]  }
 0x23c   :  { %v636_v19 = vpop.f32.mrf.mxu0 }
 0x23d   :  { %v637_v20 = vadd.f32 %v636_v19, %v435_v17  ;;  %v1465_v17 = vld [vmem:[#allocation20 + $0x560] sm:$0xff] }
 0x23e   :  { %v638_v21 = vpop.f32.mrf.mxu0  ;;  %v11585_v19 = vcombine.high %v1461_v14, %v1465_v17 }
 0x23f   :  { %v639_v22 = vadd.f32 %v638_v21, %v439_v18  ;;  %v643_v24 = vmax.f32 %v637_v20, 0.0  ;;  %v11592_v18 = vcombine.low %v1469_v7, %v1473_v8  ;;  %v1453_v20 = vld [vmem:[#allocation20 + $0x500] sm:$0xff] }
 0x240   :  { %v640_v25 = vpop.f32.mrf.mxu0  ;;  %v1457_v21 = vld [vmem:[#allocation20 + $0x520] sm:$0xff] }
 0x241   :  { %v644_v26 = vmax.f32 %v639_v22, 0.0  ;;  %v645_v32 = vpack.c.bf16 %v643_v24, %v643_v24  ;;  %v11584_v22 = vcombine.low %v1461_v14, %v1465_v17  ;;  %v11577_v23 = vcombine.high %v1453_v20, %v1457_v21  ;;  %v1445_v24 = vld [vmem:[#allocation20 + $0x4c0] sm:$0xff] }
 0x242   :  { %v641_v27 = vpop.f32.mrf.mxu0  ;;  %v1449_v25 = vld [vmem:[#allocation20 + $0x4e0] sm:$0xff] }
 0x243   :  { %v646_v28 = vpack.c.bf16 %v644_v26, %v644_v26  ;;  %v11576_v26 = vcombine.low %v1453_v20, %v1457_v21  ;;  %v11569_v27 = vcombine.high %v1445_v24, %v1449_v25  ;;  %v1497_v7 = vld [vmem:[#allocation20 + $0x660] sm:$0xff]  ;;  %v12985_v21 = vld [vmem:[#allocation17 + $0x58] sm:$0xff]  }
 0x244   :  { %v12982_v8 = vld [vmem:[#allocation17 + $0x28] sm:$0xff]  }
 0x245   :  { %814 = vmatprep.mubr.bf16.mxu1 %v646_v28  ;;  %v1437_v28 = vld [vmem:[#allocation20 + $0x480] sm:$0xff] }
 0x246   :  { %815 = vmatmul.mubr.bf16.vlgmr.msra.gmra.mxu1 %v645_v32  ;;  %v1429_v32 = vld [vmem:[#allocation20 + $0x440] sm:$0xff] }
 0x247   :  { %1031 = vmatpush1.bf16.msra.mxu1 %v12929_v29  ;;  %1062 = vmatprep.mubr.bf16.mxu1 %v825_v31  ;;  %v1441_v29 = vld [vmem:[#allocation20 + $0x4a0] sm:$0xff] }
 0x248   :  { %1032 = vmatprep.subr.bf16.mxu1 %v12934_v30  ;;  %v11568_v30 = vcombine.low %v1445_v24, %v1449_v25  ;;  %v11561_v31 = vcombine.high %v1437_v28, %v1441_v29  ;;  %v1485_v14 = vld [vmem:[#allocation20 + $0x600] sm:$0xff]  ;;  %v13830_v24 = vld [vmem:[#allocation7 + $0x10] sm:$0xff] }
 0x249   :  { %v1489_v17 = vld [vmem:[#allocation20 + $0x620] sm:$0xff]  ;;  %v1279_v25 = vmul.f32 %v13830_v24, %v14672_v62 }
 0x24a   :  { %v11609_v20 = vcombine.high %v1485_v14, %v1489_v17  ;;  %v1773_v24 = vld [vmem:[#allocation20 + $0xf00] sm:$0xff] }
 0x24b   :  { %1033 = vmatpush1.bf16.msra.mxu1 %v12932_v33  ;;  %v1433_v33 = vld [vmem:[#allocation20 + $0x460] sm:$0xff] }
 0x24c   :  { %1034 = vmatprep.subr.bf16.mxu1 %v12937_v34  ;;  %v11560_v34 = vcombine.low %v1437_v28, %v1441_v29  ;;  %v13831_v28 = vld [vmem:[#allocation7 + $0x38] sm:$0xff] }
 0x24d   :  { %v1284_v29 = vmul.f32 %v13831_v28, %v14672_v62  ;;  %v1765_v28 = vld [vmem:[#allocation20 + $0xec0] sm:$0xff] }
 0x24f   :  { %1035 = vmatpush1.bf16.msra.mxu1 %v12935_v35  ;;  %v11553_v35 = vcombine.high %v1429_v32, %v1433_v33 }
 0x250   :  { %1036 = vmatprep.subr.bf16.mxu1 %v12940_v36  ;;  %v1421_v36 = vld [vmem:[#allocation20 + $0x400] sm:$0xff] }
 0x253   :  { %1037 = vmatpush1.bf16.msra.mxu1 %v12938_v37  ;;  %v1425_v37 = vld [vmem:[#allocation20 + $0x420] sm:$0xff] }
 0x254   :  { %1038 = vmatprep.subr.bf16.mxu1 %v12943_v38  ;;  %v11552_v38 = vcombine.low %v1429_v32, %v1433_v33  ;;  %v1725_v32 = vld [vmem:[#allocation20 + $0xd80] sm:$0xff] }
 0x255   :  { %v1729_v33 = vld [vmem:[#allocation20 + $0xda0] sm:$0xff] }
 0x257   :  { %1039 = vmatpush1.bf16.msra.mxu1 %v12941_v39  ;;  %v11545_v39 = vcombine.high %v1421_v36, %v1425_v37 }
 0x258   :  { %1040 = vmatprep.subr.bf16.mxu1 %v12946_v40  ;;  %v1541_v40 = vld [vmem:[#allocation20 + $0x7c0] sm:$0xff] }
 0x25b   :  { %1041 = vmatpush1.bf16.msra.mxu1 %v12944_v41  ;;  %v1545_v41 = vld [vmem:[#allocation20 + $0x7e0] sm:$0xff] }
 0x25c   :  { %1042 = vmatprep.subr.bf16.mxu1 %v12949_v42  ;;  %v11544_v42 = vcombine.low %v1421_v36, %v1425_v37  ;;  %v14682_v37 = vpack.c.bf16 %v1284_v29, %v1284_v29  ;;  %v1769_v29 = vld [vmem:[#allocation20 + $0xee0] sm:$0xff] }
 0x25f   :  { %1043 = vmatpush1.bf16.msra.mxu1 %v12947_v43  ;;  %v11665_v43 = vcombine.high %v1541_v40, %v1545_v41 }
 0x260   :  { %1044 = vmatprep.subr.bf16.mxu1 %v12952_v44  ;;  %v1533_v44 = vld [vmem:[#allocation20 + $0x780] sm:$0xff] }
 0x263   :  { %1045 = vmatpush1.bf16.msra.mxu1 %v12950_v45  ;;  %v1537_v45 = vld [vmem:[#allocation20 + $0x7a0] sm:$0xff] }
 0x264   :  { %1046 = vmatprep.subr.bf16.mxu1 %v12955_v46  ;;  %v11664_v46 = vcombine.low %v1541_v40, %v1545_v41  ;;  %v1721_v40 = vld [vmem:[#allocation20 + $0xd60] sm:$0xff] }
 0x265   :  { %v12989_v41 = vld [vmem:[#allocation17 + $0x48] sm:$0xff]  }
 0x267   :  { %1047 = vmatpush2.bf16.msra.mxu1 %v12953_v47  ;;  %v11657_v47 = vcombine.high %v1533_v44, %v1537_v45 }
 0x268   :  { %1048 = vmatprep.subr.bf16.mxu1 %v12958_v48  ;;  %v1525_v48 = vld [vmem:[#allocation20 + $0x740] sm:$0xff] }
 0x26b   :  { %1049 = vmatpush2.bf16.msra.mxu1 %v12956_v49  ;;  %v1529_v49 = vld [vmem:[#allocation20 + $0x760] sm:$0xff] }
 0x26c   :  { %1050 = vmatprep.subr.bf16.mxu1 %v12961_v50  ;;  %v11656_v50 = vcombine.low %v1533_v44, %v1537_v45  ;;  %v11649_v51 = vcombine.high %v1525_v48, %v1529_v49  ;;  %v1709_v45 = vld [vmem:[#allocation20 + $0xd00] sm:$0xff] }
 0x26f   :  { %1051 = vmatpush2.bf16.msra.mxu1 %v12959_v52  ;;  %v1517_v52 = vld [vmem:[#allocation20 + $0x700] sm:$0xff] }
 0x270   :  { %1052 = vmatprep.subr.bf16.mxu1 %v12964_v54  ;;  %v11648_v54 = vcombine.low %v1525_v48, %v1529_v49  ;;  %v12992_v48 = vld [vmem:[#allocation17] sm:$0xff]  }
 0x273   :  { %1053 = vmatpush2.bf16.msra.mxu1 %v12962_v55  ;;  %v11641_v55 = vcombine.high %v1517_v52, %v1521_v53 }
 0x274   :  { %1054 = vmatprep.subr.bf16.mxu1 %v12967_v56  ;;  %v12977_v56 = vld [vmem:[#allocation17 + $0x78] sm:$0xff]  }
 0x275   :  { %12720 = vmatprep.subr.bf16.mxu0 %v12977_v56 }
 0x277   :  { %1055 = vmatpush2.bf16.msra.mxu1 %v12965_v57  ;;  %v1509_v57 = vld [vmem:[#allocation20 + $0x6c0] sm:$0xff] }
 0x278   :  { %1056 = vmatprep.subr.bf16.mxu1 %v12970_v58  ;;  %v1513_v58 = vld [vmem:[#allocation20 + $0x6e0] sm:$0xff] }
 0x279   :  { %v11632_v3 = vcombine.low %v1509_v57, %v1513_v58 }
 0x27b   :  { %1057 = vmatpush2.bf16.msra.mxu1 %v12968_v59  ;;  %v12978_v59 = vld [vmem:[#allocation17 + $0x38] sm:$0xff]  }
 0x27c   :  { %1058 = vmatprep.subr.bf16.mxu1 %v12973_v60  ;;  %v11640_v60 = vcombine.low %v1517_v52, %v1521_v53  ;;  %12721 = vmatpush3.bf16.msra.mxu0 %v12978_v59  ;;  %v14688_v52 = vld [vmem:[#allocation20 + $0x1e0] sm:$0xff] }
 0x27d   :  { %v1701_v53 = vld [vmem:[#allocation20 + $0xcc0] sm:$0xff] }
 0x27e   :  { %v1693_v59 = vld [vmem:[#allocation20 + $0xc80] sm:$0xff] }
 0x27f   :  { %1059 = vmatpush2.bf16.msra.mxu1 %v12971_v61  ;;  %v11633_v61 = vcombine.high %v1509_v57, %v1513_v58 }
 0x280   :  { %1060 = vmatprep.subr.bf16.mxu1 %v12976_v63  ;;  %v12979_v63 = vld [vmem:[#allocation17 + $0x70] sm:$0xff]  }
 0x281   :  { %12722 = vmatprep.subr.bf16.mxu0 %v12979_v63 }
 0x283   :  { %1061 = vmatpush2.bf16.msra.mxu1 %v12974_v2  ;;  %v12980_v2 = vld [vmem:[#allocation17 + $0x30] sm:$0xff]  }
 0x284   :  { %4448 = vmatprep.subr.bf16.mxu1 %v11601_v6  ;;  %12723 = vmatpush3.bf16.msra.mxu0 %v12980_v2  ;;  %v1493_v6 = vld [vmem:[#allocation20 + $0x640] sm:$0xff] }
 0x285   :  { %12724 = vmatprep.subr.bf16.mxu0 %v12981_v5  ;;  %v1681_v5 = vld [vmem:[#allocation20 + $0xc20] sm:$0xff] }
 0x286   :  { %1063 = vmatmul.mubr.bf16.vlgmr.msra.gmra.mxu1 %v824_v9  ;;  %v11624_v9 = vcombine.low %v1501_v0, %v1505_v1  ;;  %v1685_v0 = vld [vmem:[#allocation20 + $0xc40] sm:$0xff] }
 0x287   :  { %4449 = vmatpush1.bf16.msra.mxu1 %v11600_v10  ;;  %4480 = vmatprep.mubr.bf16.mxu1 %v14675_v11  ;;  %v11617_v10 = vcombine.high %v1493_v6, %v1497_v7  ;;  %v1689_v1 = vld [vmem:[#allocation20 + $0xc60] sm:$0xff] }
 0x288   :  { %4450 = vmatprep.subr.bf16.mxu1 %v11593_v12  ;;  %12725 = vmatpush3.bf16.msra.mxu0 %v12982_v8  ;;  %v12983_v12 = vld [vmem:[#allocation17 + $0x60] sm:$0xff]  }
 0x289   :  { %12726 = vmatprep.subr.bf16.mxu0 %v12983_v12  ;;  %v1797_v8 = vld [vmem:[#allocation20 + $0xfc0] sm:$0xff] }
 0x28b   :  { %4451 = vmatpush1.bf16.msra.mxu1 %v11592_v18  ;;  %v12984_v18 = vld [vmem:[#allocation17 + $0x20] sm:$0xff]  }
 0x28c   :  { %4452 = vmatprep.subr.bf16.mxu1 %v11585_v19  ;;  %v11616_v19 = vcombine.low %v1493_v6, %v1497_v7  ;;  %12727 = vmatpush3.bf16.msra.mxu0 %v12984_v18  ;;  %v11808_v6 = vcombine.low %v1685_v0, %v1689_v1 }
 0x28d   :  { %12728 = vmatprep.subr.bf16.mxu0 %v12985_v21  ;;  %v1785_v21 = vld [vmem:[#allocation20 + $0xf60] sm:$0xff] }
 0x28f   :  { %4453 = vmatpush1.bf16.msra.mxu1 %v11584_v22  ;;  %v1733_v22 = vld [vmem:[#allocation20 + $0xdc0] sm:$0xff] }
 0x290   :  { %4454 = vmatprep.subr.bf16.mxu1 %v11577_v23  ;;  %v1737_v23 = vld [vmem:[#allocation20 + $0xde0] sm:$0xff] }
 0x291   :  { %v11856_v36 = vcombine.low %v1733_v22, %v1737_v23 }
 0x293   :  { %4455 = vmatpush1.bf16.msra.mxu1 %v11576_v26  ;;  %v12986_v26 = vld [vmem:[#allocation17 + $0x18] sm:$0xff]  }
 0x294   :  { %4456 = vmatprep.subr.bf16.mxu1 %v11569_v27  ;;  %v11608_v27 = vcombine.low %v1485_v14, %v1489_v17  ;;  %12729 = vmatpush3.bf16.msra.mxu0 %v12986_v26  ;;  %v1789_v14 = vld [vmem:[#allocation20 + $0xf80] sm:$0xff] }
 0x295   :  { %v1793_v17 = vld [vmem:[#allocation20 + $0xfa0] sm:$0xff] }
 0x297   :  { %4457 = vmatpush1.bf16.msra.mxu1 %v11568_v30  ;;  %v11857_v30 = vcombine.high %v1733_v22, %v1737_v23  ;;  %v11912_v22 = vcombine.low %v1789_v14, %v1793_v17 }
 0x298   :  { %4458 = vmatprep.subr.bf16.mxu1 %v11561_v31  ;;  %v12987_v31 = vld [vmem:[#allocation17 + $0x50] sm:$0xff]  }
 0x299   :  { %12730 = vmatprep.subr.bf16.mxu0 %v12987_v31  ;;  %v11889_v31 = vcombine.high %v1765_v28, %v1769_v29 }
 0x29b   :  { %4459 = vmatpush1.bf16.msra.mxu1 %v11560_v34  ;;  %v14680_v34 = vpack.c.bf16 %v1279_v25, %v1279_v25  ;;  %v1777_v25 = vld [vmem:[#allocation20 + $0xf20] sm:$0xff] }
 0x29c   :  { %4460 = vmatprep.subr.bf16.mxu1 %v11553_v35  ;;  %v12988_v35 = vld [vmem:[#allocation17 + $0x10] sm:$0xff]  }
 0x29d   :  { %12731 = vmatpush3.bf16.msra.mxu0 %v12988_v35  ;;  %v11888_v35 = vcombine.low %v1765_v28, %v1769_v29  ;;  %v1422_v29 = vld [vmem:[#allocation20 + $0x408] sm:$0xff] }
 0x29e   :  { %12732 = vmatprep.subr.bf16.mxu0 %v12989_v41 }
 0x29f   :  { %4461 = vmatpush1.bf16.msra.mxu1 %v11552_v38  ;;  %v11849_v38 = vcombine.high %v1725_v32, %v1729_v33 }
 0x2a0   :  { %4462 = vmatprep.subr.bf16.mxu1 %v11545_v39  ;;  %v1717_v39 = vld [vmem:[#allocation20 + $0xd40] sm:$0xff] }
 0x2a1   :  { %v11841_v44 = vcombine.high %v1717_v39, %v1721_v40  ;;  %v11840_v49 = vcombine.low %v1717_v39, %v1721_v40  ;;  %v1753_v39 = vld [vmem:[#allocation20 + $0xe60] sm:$0xff] }
 0x2a3   :  { %4463 = vmatpush1.bf16.msra.mxu1 %v11544_v42  ;;  %v12990_v42 = vld [vmem:[#allocation17 + $0x8] sm:$0xff]  }
 0x2a4   :  { %4464 = vmatprep.subr.bf16.mxu1 %v11665_v43  ;;  %v11848_v43 = vcombine.low %v1725_v32, %v1729_v33  ;;  %12733 = vmatpush3.bf16.msra.mxu0 %v12990_v42  ;;  %v1757_v32 = vld [vmem:[#allocation20 + $0xe80] sm:$0xff] }
 0x2a5   :  { %v1761_v33 = vld [vmem:[#allocation20 + $0xea0] sm:$0xff] }
 0x2a6   :  { %v11880_v40 = vcombine.low %v1757_v32, %v1761_v33  ;;  %v1741_v42 = vld [vmem:[#allocation20 + $0xe00] sm:$0xff] }
 0x2a7   :  { %4465 = vmatpush2.bf16.msra.mxu1 %v11664_v46  ;;  %v1713_v46 = vld [vmem:[#allocation20 + $0xd20] sm:$0xff] }
 0x2a8   :  { %4466 = vmatprep.subr.bf16.mxu1 %v11657_v47  ;;  %v12991_v47 = vld [vmem:[#allocation17 + $0x40] sm:$0xff]   ;;  %v11832_v57 = vcombine.low %v1709_v45, %v1713_v46 }
 0x2a9   :  { %12734 = vmatprep.subr.bf16.mxu0 %v12991_v47  ;;  %v1482_v47 = vld [vmem:[#allocation20 + $0x5e8] sm:$0xff] }
 0x2aa   :  { %12735 = vmatpush3.bf16.msra.mxu0 %v12992_v48  ;;  %v13832_v48 = vld [vmem:[#allocation7 + $0x30] sm:$0xff] }
 0x2ab   :  { %4467 = vmatpush2.bf16.msra.mxu1 %v11656_v50  ;;  %v11833_v50 = vcombine.high %v1709_v45, %v1713_v46  ;;  %v1478_v46 = vld [vmem:[#allocation20 + $0x5c8] sm:$0xff] }
 0x2ac   :  { %4468 = vmatprep.subr.bf16.mxu1 %v11649_v51  ;;  %v14686_v51 = vld [vmem:[#allocation20 + $0x1c0] sm:$0xff] }
 0x2ad   :  { %v11472_v56 = vcombine.low %v14686_v51, %v14688_v52 }
 0x2af   :  { %4469 = vmatpush2.bf16.msra.mxu1 %v11648_v54  ;;  %v1705_v54 = vld [vmem:[#allocation20 + $0xce0] sm:$0xff] }
 0x2b0   :  { %4470 = vmatprep.subr.bf16.mxu1 %v11641_v55  ;;  %v11473_v55 = vcombine.high %v14686_v51, %v14688_v52  ;;  %v11825_v58 = vcombine.high %v1701_v53, %v1705_v54 }
 0x2b2   :  { %4407 = vmatprep.subr.bf16.mxu0 %v11473_v55  ;;  %v1474_v55 = vld [vmem:[#allocation20 + $0x5a8] sm:$0xff] }
 0x2b3   :  { %4471 = vmatpush2.bf16.msra.mxu1 %v11640_v60  ;;  %v1697_v60 = vld [vmem:[#allocation20 + $0xca0] sm:$0xff] }
 0x2b4   :  { %4472 = vmatprep.subr.bf16.mxu1 %v11633_v61  ;;  %v11824_v61 = vcombine.low %v1701_v53, %v1705_v54  ;;  %v11817_v63 = vcombine.high %v1693_v59, %v1697_v60  ;;  %v11816_v2 = vcombine.low %v1693_v59, %v1697_v60  ;;  %v11603_v53 = vcombine.high %v1478_v46, %v1482_v47  ;;  %v1470_v54 = vld [vmem:[#allocation20 + $0x588] sm:$0xff] }
 0x2b5   :  { %v11595_v59 = vcombine.high %v1470_v54, %v1474_v55  ;;  %v1462_v60 = vld [vmem:[#allocation20 + $0x548] sm:$0xff] }
 0x2b7   :  { %4473 = vmatpush2.bf16.msra.mxu1 %v11632_v3  ;;  %v11809_v3 = vcombine.high %v1685_v0, %v1689_v1  ;;  %v11594_v0 = vcombine.low %v1470_v54, %v1474_v55  ;;  %v11350_v1 = vld [vmem:[#allocation13] ss:$0 sm:$0xff]  ;;  %v1514_v54 = vld [vmem:[#allocation20 + $0x6e8] sm:$0xff] }
 0x2b8   :  { %4474 = vmatprep.subr.bf16.mxu1 %v11625_v4  ;;  %v1677_v4 = vld [vmem:[#allocation20 + $0xc00] sm:$0xff] }
 0x2b9   :  { %v11801_v7 = vcombine.high %v1677_v4, %v1681_v5 }
 0x2bb   :  { %4475 = vmatpush2.bf16.msra.mxu1 %v11624_v9  ;;  %v1801_v9 = vld [vmem:[#allocation20 + $0xfe0] sm:$0xff] }
 0x2bc   :  { %4476 = vmatprep.subr.bf16.mxu1 %v11617_v10  ;;  %v11800_v10 = vcombine.low %v1677_v4, %v1681_v5  ;;  %v11921_v12 = vcombine.high %v1797_v8, %v1801_v9  ;;  %v11920_v18 = vcombine.low %v1797_v8, %v1801_v9  ;;  %v1454_v5 = vld [vmem:[#allocation20 + $0x508] sm:$0xff] }
 0x2bf   :  { %4477 = vmatpush2.bf16.msra.mxu1 %v11616_v19  ;;  %v11913_v19 = vcombine.high %v1789_v14, %v1793_v17  ;;  %v1446_v17 = vld [vmem:[#allocation20 + $0x4c8] sm:$0xff] }
 0x2c0   :  { %4478 = vmatprep.subr.bf16.mxu1 %v11609_v20  ;;  %v1781_v20 = vld [vmem:[#allocation20 + $0xf40] sm:$0xff] }
 0x2c1   :  { %v11905_v23 = vcombine.high %v1781_v20, %v1785_v21  ;;  %v11904_v26 = vcombine.low %v1781_v20, %v1785_v21  ;;  %v1438_v21 = vld [vmem:[#allocation20 + $0x488] sm:$0xff] }
 0x2c3   :  { %4479 = vmatpush2.bf16.msra.mxu1 %v11608_v27  ;;  %v11897_v27 = vcombine.high %v1773_v24, %v1777_v25 }
 0x2c4   :  { %4530 = vmatprep.subr.bf16.mxu1 %v11857_v30  ;;  %v11896_v30 = vcombine.low %v1773_v24, %v1777_v25  ;;  %v1430_v25 = vld [vmem:[#allocation20 + $0x448] sm:$0xff] }
 0x2c6   :  { %4481 = vmatmul.mubr.bf16.vlgmr.msra.gmra.mxu1 %v14680_v34 }
 0x2c7   :  { %4531 = vmatpush1.bf16.msra.mxu1 %v11856_v36  ;;  %4562 = vmatprep.mubr.bf16.mxu1 %v14682_v37  ;;  %v11881_v36 = vcombine.high %v1757_v32, %v1761_v33  ;;  %v1542_v33 = vld [vmem:[#allocation20 + $0x7c8] sm:$0xff] }
 0x2c8   :  { %4532 = vmatprep.subr.bf16.mxu1 %v11849_v38  ;;  %v1749_v38 = vld [vmem:[#allocation20 + $0xe40] sm:$0xff] }
 0x2c9   :  { %v11873_v41 = vcombine.high %v1749_v38, %v1753_v39 }
 0x2cb   :  { %4533 = vmatpush1.bf16.msra.mxu1 %v11848_v43  ;;  %v1745_v43 = vld [vmem:[#allocation20 + $0xe20] sm:$0xff] }
 0x2cc   :  { %4534 = vmatprep.subr.bf16.mxu1 %v11841_v44  ;;  %v11872_v44 = vcombine.low %v1749_v38, %v1753_v39  ;;  %v11865_v45 = vcombine.high %v1741_v42, %v1745_v43  ;;  %v1534_v39 = vld [vmem:[#allocation20 + $0x788] sm:$0xff] }
 0x2cf   :  { %4535 = vmatpush1.bf16.msra.mxu1 %v11840_v49  ;;  %v1283_v49 = vmul.f32 %v13832_v48, %v14672_v62  ;;  %v1522_v48 = vld [vmem:[#allocation20 + $0x728] sm:$0xff] }
 0x2d0   :  { %4536 = vmatprep.subr.bf16.mxu1 %v11833_v50  ;;  %v11864_v50 = vcombine.low %v1741_v42, %v1745_v43  ;;  %v1526_v43 = vld [vmem:[#allocation20 + $0x748] sm:$0xff] }
 0x2d3   :  { %4537 = vmatpush1.bf16.msra.mxu1 %v11832_v57  ;;  %v14695_v57 = vpack.c.bf16 %v1283_v49, %v1283_v49 }
 0x2d4   :  { %4538 = vmatprep.subr.bf16.mxu1 %v11825_v58  ;;  %v11602_v58 = vcombine.low %v1478_v46, %v1482_v47  ;;  %v1518_v47 = vld [vmem:[#allocation20 + $0x708] sm:$0xff] }
 0x2d5   :  { %v11642_v55 = vcombine.low %v1518_v47, %v1522_v48 }
 0x2d7   :  { %4539 = vmatpush1.bf16.msra.mxu1 %v11824_v61  ;;  %v1466_v61 = vld [vmem:[#allocation20 + $0x568] sm:$0xff] }
 0x2d8   :  { %4540 = vmatprep.subr.bf16.mxu1 %v11817_v63  ;;  %v11586_v9 = vcombine.low %v1462_v60, %v1466_v61 }
 0x2db   :  { %4541 = vmatpush1.bf16.msra.mxu1 %v11816_v2 }
 0x2dc   :  { %4542 = vmatprep.subr.bf16.mxu1 %v11809_v3  ;;  %v11587_v3 = vcombine.high %v1462_v60, %v1466_v61  ;;  %v1506_v60 = vld [vmem:[#allocation20 + $0x6a8] sm:$0xff] }
 0x2df   :  { %4543 = vmatpush1.bf16.msra.mxu1 %v11808_v6  ;;  %v1458_v6 = vld [vmem:[#allocation20 + $0x528] sm:$0xff] }
 0x2e0   :  { %4544 = vmatprep.subr.bf16.mxu1 %v11801_v7 }
 0x2e3   :  { %4545 = vmatpush1.bf16.msra.mxu1 %v11800_v10 }
 0x2e4   :  { %4546 = vmatprep.subr.bf16.mxu1 %v11921_v12  ;;  %v11579_v12 = vcombine.high %v1454_v5, %v1458_v6 }
 0x2e7   :  { %4547 = vmatpush2.bf16.msra.mxu1 %v11920_v18  ;;  %v1450_v18 = vld [vmem:[#allocation20 + $0x4e8] sm:$0xff] }
 0x2e8   :  { %4548 = vmatprep.subr.bf16.mxu1 %v11913_v19  ;;  %v11578_v19 = vcombine.low %v1454_v5, %v1458_v6  ;;  %v11571_v20 = vcombine.high %v1446_v17, %v1450_v18  ;;  %v1490_v5 = vld [vmem:[#allocation20 + $0x628] sm:$0xff] }
 0x2eb   :  { %4549 = vmatpush2.bf16.msra.mxu1 %v11912_v22  ;;  %v1442_v22 = vld [vmem:[#allocation20 + $0x4a8] sm:$0xff] }
 0x2ec   :  { %4550 = vmatprep.subr.bf16.mxu1 %v11905_v23  ;;  %v11570_v23 = vcombine.low %v1446_v17, %v1450_v18  ;;  %v11563_v24 = vcombine.high %v1438_v21, %v1442_v22  ;;  %v1726_v18 = vld [vmem:[#allocation20 + $0xd88] sm:$0xff] }
 0x2ef   :  { %4551 = vmatpush2.bf16.msra.mxu1 %v11904_v26  ;;  %v1434_v26 = vld [vmem:[#allocation20 + $0x468] sm:$0xff] }
 0x2f0   :  { %4552 = vmatprep.subr.bf16.mxu1 %v11897_v27  ;;  %v11562_v27 = vcombine.low %v1438_v21, %v1442_v22  ;;  %v11555_v28 = vcombine.high %v1430_v25, %v1434_v26 }
 0x2f3   :  { %4553 = vmatpush2.bf16.msra.mxu1 %v11896_v30  ;;  %v1426_v30 = vld [vmem:[#allocation20 + $0x428] sm:$0xff] }
 0x2f4   :  { %4554 = vmatprep.subr.bf16.mxu1 %v11889_v31  ;;  %v11554_v31 = vcombine.low %v1430_v25, %v1434_v26  ;;  %v11547_v32 = vcombine.high %v1422_v29, %v1426_v30  ;;  %v1722_v25 = vld [vmem:[#allocation20 + $0xd68] sm:$0xff] }
 0x2f7   :  { %4555 = vmatpush2.bf16.msra.mxu1 %v11888_v35  ;;  %v1546_v35 = vld [vmem:[#allocation20 + $0x7e8] sm:$0xff] }
 0x2f8   :  { %4556 = vmatprep.subr.bf16.mxu1 %v11881_v36  ;;  %v11546_v36 = vcombine.low %v1422_v29, %v1426_v30  ;;  %v11667_v38 = vcombine.high %v1542_v33, %v1546_v35 }
 0x2fb   :  { %4557 = vmatpush2.bf16.msra.mxu1 %v11880_v40  ;;  %v1538_v40 = vld [vmem:[#allocation20 + $0x7a8] sm:$0xff] }
 0x2fc   :  { %4558 = vmatprep.subr.bf16.mxu1 %v11873_v41  ;;  %v11666_v41 = vcombine.low %v1542_v33, %v1546_v35  ;;  %v11659_v42 = vcombine.high %v1534_v39, %v1538_v40  ;;  %v1714_v33 = vld [vmem:[#allocation20 + $0xd28] sm:$0xff]  ;;  %v13833_v35 = vld [vmem:[#allocation7 + $0x8] sm:$0xff] }
 0x2ff   :  { %4559 = vmatpush2.bf16.msra.mxu1 %v11872_v44  ;;  %v1530_v44 = vld [vmem:[#allocation20 + $0x768] sm:$0xff] }
 0x300   :  { %4560 = vmatprep.subr.bf16.mxu1 %v11865_v45  ;;  %v11658_v45 = vcombine.low %v1534_v39, %v1538_v40  ;;  %v11651_v46 = vcombine.high %v1526_v43, %v1530_v44  ;;  %v11650_v49 = vcombine.low %v1526_v43, %v1530_v44  ;;  %v1345_v43 = vld [vmem:[#allocation20 + $0x1a0] sm:$0xff] }
 0x303   :  { %4561 = vmatpush2.bf16.msra.mxu1 %v11864_v50  ;;  %v11643_v50 = vcombine.high %v1518_v47, %v1522_v48  ;;  %v1702_v47 = vld [vmem:[#allocation20 + $0xcc8] sm:$0xff] }
 0x304   :  { %4612 = vmatprep.subr.bf16.mxu1 %v11603_v53  ;;  %v1510_v53 = vld [vmem:[#allocation20 + $0x6c8] sm:$0xff] }
 0x305   :  { %v11634_v61 = vcombine.low %v1510_v53, %v1514_v54  ;;  %v1706_v48 = vld [vmem:[#allocation20 + $0xce8] sm:$0xff] }
 0x306   :  { %v12714_v63 = vpop.f32.mrf.mxu1  ;;  %4563 = vmatmul.mubr.bf16.vlgmr.msra.gmra.mxu1 %v14695_v57 }
 0x307   :  { %4613 = vmatpush1.bf16.msra.mxu1 %v11602_v58  ;;  %4644 = vmatprep.mubr.bf16.mxu1 %v14675_v11  ;;  %v11635_v58 = vcombine.high %v1510_v53, %v1514_v54 }
 0x308   :  { %v12715_v2 = vpop.f32.mrf.mxu1  ;;  %4614 = vmatprep.subr.bf16.mxu1 %v11595_v59  ;;  %v1502_v59 = vld [vmem:[#allocation20 + $0x688] sm:$0xff] }
 0x309   :  { %v12716_v4 = vadd.f32 %v12715_v2, %v12714_v63  ;;  %v11627_v63 = vcombine.high %v1502_v59, %v1506_v60  ;;  %v11626_v2 = vcombine.low %v1502_v59, %v1506_v60  ;;  %v11827_v59 = vcombine.high %v1702_v47, %v1706_v48 }
 0x30a   :  { %v12717_v7 = vpop.f32.mrf.mxu1 }
 0x30b   :  { %v14699_v8 = vadd.f32 %v12716_v4, %v11350_v1  ;;  %4615 = vmatpush1.bf16.msra.mxu1 %v11594_v0  ;;  %v1494_v0 = vld [vmem:[#allocation20 + $0x648] sm:$0xff] }
 0x30c   :  { %v12718_v10 = vpop.f32.mrf.mxu1  ;;  %4616 = vmatprep.subr.bf16.mxu1 %v11587_v3  ;;  %v1498_v1 = vld [vmem:[#allocation20 + $0x668] sm:$0xff] }
 0x30d   :  { %v7316_v14 = vmul.f32 %v14699_v8, %v14699_v8  ;;  %v11619_v3 = vcombine.high %v1494_v0, %v1498_v1  ;;  %v1486_v4 = vld [vmem:[#allocation20 + $0x608] sm:$0xff]  ;;  %v11618_v6 = vcombine.low %v1494_v0, %v1498_v1  ;;  %v11826_v1 = vcombine.low %v1702_v47, %v1706_v48  ;;  %v1417_v47 = vld [vmem:[#allocation20 + $0x3e0] sm:$0xff] }
 0x30e   :  { %v11611_v7 = vcombine.high %v1486_v4, %v1490_v5  ;;  %v1738_v10 = vld [vmem:[#allocation20 + $0xde8] sm:$0xff] }
 0x30f   :  { %4617 = vmatpush1.bf16.msra.mxu1 %v11586_v9  ;;  %7317 = vadd.xlane.f32.xlu0 %v7316_v14  ;;  %v1734_v9 = vld [vmem:[#allocation20 + $0xdc8] sm:$0xff]  ;;  %v858_v14 = vld [vmem:[#allocation16] sm:$0x3] }
 0x310   :  { %4618 = vmatprep.subr.bf16.mxu1 %v11579_v12  ;;  %v11610_v12 = vcombine.low %v1486_v4, %v1490_v5  ;;  %v11859_v17 = vcombine.high %v1734_v9, %v1738_v10  ;;  %v11858_v21 = vcombine.low %v1734_v9, %v1738_v10  ;;  %v1321_v9 = vld [vmem:[#allocation20 + $0xe0] sm:$0xff] }
 0x313   :  { %4619 = vmatpush1.bf16.msra.mxu1 %v11578_v19  ;;  %v1730_v19 = vld [vmem:[#allocation20 + $0xda8] sm:$0xff] }
 0x314   :  { %4620 = vmatprep.subr.bf16.mxu1 %v11571_v20  ;;  %v863_v20 = vrot.slane %v858_v14, %v14665_v15  ;;  %v11851_v22 = vcombine.high %v1726_v18, %v1730_v19 }
 0x317   :  { %4621 = vmatpush1.bf16.msra.mxu1 %v11570_v23  ;;  %v867_v23 = vrot.slane %v858_v14, %v14668_v16  ;;  %v1678_v14 = vld [vmem:[#allocation20 + $0xc08] sm:$0xff] }
 0x318   :  { %4622 = vmatprep.subr.bf16.mxu1 %v11563_v24  ;;  %v1718_v24 = vld [vmem:[#allocation20 + $0xd48] sm:$0xff] }
 0x319   :  { %v11843_v30 = vcombine.high %v1718_v24, %v1722_v25 }
 0x31b   :  { %4623 = vmatpush1.bf16.msra.mxu1 %v11562_v27 }
 0x31c   :  { %4624 = vmatprep.subr.bf16.mxu1 %v11555_v28  ;;  %v11850_v28 = vcombine.low %v1726_v18, %v1730_v19 }
 0x31f   :  { %4625 = vmatpush1.bf16.msra.mxu1 %v11554_v31 }
 0x320   :  { %4626 = vmatprep.subr.bf16.mxu1 %v11547_v32  ;;  %v1710_v32 = vld [vmem:[#allocation20 + $0xd08] sm:$0xff] }
 0x321   :  { %v11834_v54 = vcombine.low %v1710_v32, %v1714_v33 }
 0x323   :  { %4627 = vmatpush1.bf16.msra.mxu1 %v11546_v36  ;;  %v1278_v36 = vmul.f32 %v13833_v35, %v14672_v62 }
 0x324   :  { %4628 = vmatprep.subr.bf16.mxu1 %v11667_v38 }
 0x327   :  { %4629 = vmatpush2.bf16.msra.mxu1 %v11666_v41  ;;  %v11842_v41 = vcombine.low %v1718_v24, %v1722_v25  ;;  %v1798_v24 = vld [vmem:[#allocation20 + $0xfc8] sm:$0xff] }
 0x328   :  { %4630 = vmatprep.subr.bf16.mxu1 %v11659_v42  ;;  %v1341_v42 = vld [vmem:[#allocation20 + $0x180] sm:$0xff]  ;;  %v1802_v25 = vld [vmem:[#allocation20 + $0xfe8] sm:$0xff] }
 0x329   :  { %v11465_v53 = vcombine.high %v1341_v42, %v1345_v43  ;;  %v11464_v60 = vcombine.low %v1341_v42, %v1345_v43  ;;  %v1782_v42 = vld [vmem:[#allocation20 + $0xf48] sm:$0xff] }
 0x32a   :  { %v1786_v43 = vld [vmem:[#allocation20 + $0xf68] sm:$0xff] }
 0x32b   :  { %4631 = vmatpush2.bf16.msra.mxu1 %v11658_v45  ;;  %v11835_v45 = vcombine.high %v1710_v32, %v1714_v33  ;;  %v1790_v32 = vld [vmem:[#allocation20 + $0xf88] sm:$0xff]  ;;  %v11907_v48 = vcombine.high %v1782_v42, %v1786_v43 }
 0x32c   :  { %4632 = vmatprep.subr.bf16.mxu1 %v11651_v46  ;;  %v1794_v33 = vld [vmem:[#allocation20 + $0xfa8] sm:$0xff] }
 0x32f   :  { %4633 = vmatpush2.bf16.msra.mxu1 %v11650_v49  ;;  %v14708_v49 = vpack.c.bf16 %v1278_v36, %v1278_v36  ;;  %v11922_v36 = vcombine.low %v1798_v24, %v1802_v25 }
 0x330   :  { %4634 = vmatprep.subr.bf16.mxu1 %v11643_v50 }
 0x333   :  { %4635 = vmatpush2.bf16.msra.mxu1 %v11642_v55  ;;  %v1333_v55 = vld [vmem:[#allocation20 + $0x140] sm:$0xff] }
 0x334   :  { %4636 = vmatprep.subr.bf16.mxu1 %v11635_v58  ;;  %v1337_v58 = vld [vmem:[#allocation20 + $0x160] sm:$0xff] }
 0x335   :  { %v11457_v0 = vcombine.high %v1333_v55, %v1337_v58  ;;  %v11456_v5 = vcombine.low %v1333_v55, %v1337_v58  ;;  %v11906_v58 = vcombine.low %v1782_v42, %v1786_v43 }
 0x337   :  { %4637 = vmatpush2.bf16.msra.mxu1 %v11634_v61  ;;  %v1694_v61 = vld [vmem:[#allocation20 + $0xc88] sm:$0xff] }
 0x338   :  { %4638 = vmatprep.subr.bf16.mxu1 %v11627_v63  ;;  %v1698_v63 = vld [vmem:[#allocation20 + $0xca8] sm:$0xff] }
 0x339   :  { %v11819_v4 = vcombine.high %v1694_v61, %v1698_v63  ;;  %v11818_v52 = vcombine.low %v1694_v61, %v1698_v63 }
 0x33b   :  { %4639 = vmatpush2.bf16.msra.mxu1 %v11626_v2  ;;  %v1325_v2 = vld [vmem:[#allocation20 + $0x100] sm:$0xff] }
 0x33c   :  { %4640 = vmatprep.subr.bf16.mxu1 %v11619_v3  ;;  %v1329_v3 = vld [vmem:[#allocation20 + $0x120] sm:$0xff] }
 0x33d   :  { %v11449_v51 = vcombine.high %v1325_v2, %v1329_v3 }
 0x33f   :  { %4641 = vmatpush2.bf16.msra.mxu1 %v11618_v6  ;;  %v1686_v6 = vld [vmem:[#allocation20 + $0xc48] sm:$0xff] }
 0x340   :  { %4642 = vmatprep.subr.bf16.mxu1 %v11611_v7  ;;  %v1690_v7 = vld [vmem:[#allocation20 + $0xc68] sm:$0xff] }
 0x341   :  { %v11811_v10 = vcombine.high %v1686_v6, %v1690_v7  ;;  %v11810_v19 = vcombine.low %v1686_v6, %v1690_v7 }
 0x343   :  { %4643 = vmatpush2.bf16.msra.mxu1 %v11610_v12  ;;  %v11448_v12 = vcombine.low %v1325_v2, %v1329_v3 }
 0x344   :  { %4694 = vmatprep.subr.bf16.mxu1 %v11859_v17  ;;  %v1682_v17 = vld [vmem:[#allocation20 + $0xc28] sm:$0xff] }
 0x346   :  { %v1064_v26 = vpop.f32.mrf.mxu1  ;;  %4645 = vmatmul.mubr.bf16.vlgmr.msra.gmra.mxu1 %v14680_v34 }
 0x347   :  { %v1065_v27 = vadd.f32 %v1064_v26, %v863_v20  ;;  %4695 = vmatpush1.bf16.msra.mxu1 %v11858_v21  ;;  %4726 = vmatprep.mubr.bf16.mxu1 %v14682_v37  ;;  %v1309_v20 = vld [vmem:[#allocation20 + $0x80] sm:$0xff] }
 0x348   :  { %v1066_v29 = vpop.f32.mrf.mxu1  ;;  %4696 = vmatprep.subr.bf16.mxu1 %v11851_v22  ;;  %v1313_v21 = vld [vmem:[#allocation20 + $0xa0] sm:$0xff]  ;;  %v11803_v22 = vcombine.high %v1678_v14, %v1682_v17 }
 0x349   :  { %v1067_v31 = vadd.f32 %v1066_v29, %v867_v23  ;;  %v1071_v38 = vmax.f32 %v1065_v27, 0.0  ;;  %v11433_v26 = vcombine.high %v1309_v20, %v1313_v21  ;;  %v11802_v27 = vcombine.low %v1678_v14, %v1682_v17  ;;  %v1305_v29 = vld [vmem:[#allocation20 + $0x60] sm:$0xff] }
 0x34a   :  { %v1068_v39 = vpop.f32.mrf.mxu1 }
 0x34b   :  { %v1072_v40 = vmax.f32 %v1067_v31, 0.0  ;;  %4697 = vmatpush1.bf16.msra.mxu1 %v11850_v28  ;;  %v1073_v50 = vpack.c.bf16 %v1071_v38, %v1071_v38  ;;  %v1301_v28 = vld [vmem:[#allocation20 + $0x40] sm:$0xff]  ;;  %v11432_v31 = vcombine.low %v1309_v20, %v1313_v21 }
 0x34c   :  { %v1069_v44 = vpop.f32.mrf.mxu1  ;;  %4698 = vmatprep.subr.bf16.mxu1 %v11843_v30  ;;  %v11923_v30 = vcombine.high %v1798_v24, %v1802_v25  ;;  %v11425_v35 = vcombine.high %v1301_v28, %v1305_v29  ;;  %v1293_v38 = vld [vmem:[#allocation20] sm:$0xff] }
 0x34d   :  { %v1074_v46 = vpack.c.bf16 %v1072_v40, %v1072_v40  ;;  %v1297_v39 = vld [vmem:[#allocation20 + $0x20] sm:$0xff]  ;;  %v11915_v40 = vcombine.high %v1790_v32, %v1794_v33 }
 0x34e   :  { %v11417_v44 = vcombine.high %v1293_v38, %v1297_v39 }
 0x34f   :  { %1242 = vmatprep.mubr.bf16.mxu0 %v1074_v46  ;;  %4699 = vmatpush1.bf16.msra.mxu1 %v11842_v41  ;;  %v11424_v41 = vcombine.low %v1301_v28, %v1305_v29  ;;  %v1413_v46 = vld [vmem:[#allocation20 + $0x3c0] sm:$0xff] }
 0x350   :  { %1243 = vmatmul.mubr.bf16.vlgmr.msra.gmra.mxu0 %v1073_v50  ;;  %4700 = vmatprep.subr.bf16.mxu1 %v11835_v45  ;;  %v11914_v45 = vcombine.low %v1790_v32, %v1794_v33  ;;  %v11416_v50 = vcombine.low %v1293_v38, %v1297_v39  ;;  %v11537_v55 = vcombine.high %v1413_v46, %v1417_v47 }
 0x351   :  { %4408 = vmatpush1.bf16.msra.mxu0 %v11472_v56  ;;  %4439 = vmatprep.mubr.bf16.mxu0 %v14708_v49  ;;  %v1317_v56 = vld [vmem:[#allocation20 + $0xc0] sm:$0xff]  ;;  %v11536_v63 = vcombine.low %v1413_v46, %v1417_v47 }
 0x352   :  { %4409 = vmatprep.subr.bf16.mxu0 %v11465_v53  ;;  %v11441_v18 = vcombine.high %v1317_v56, %v1321_v9  ;;  %v11440_v23 = vcombine.low %v1317_v56, %v1321_v9  ;;  %v1774_v53 = vld [vmem:[#allocation20 + $0xf08] sm:$0xff] }
 0x353   :  { %4701 = vmatpush1.bf16.msra.mxu1 %v11834_v54  ;;  %v1778_v54 = vld [vmem:[#allocation20 + $0xf28] sm:$0xff] }
 0x354   :  { %4702 = vmatprep.subr.bf16.mxu1 %v11827_v59  ;;  %v1405_v59 = vld [vmem:[#allocation20 + $0x380] sm:$0xff]  ;;  %v11899_v61 = vcombine.high %v1774_v53, %v1778_v54  ;;  %v11898_v3 = vcombine.low %v1774_v53, %v1778_v54 }
 0x355   :  { %4410 = vmatpush1.bf16.msra.mxu0 %v11464_v60  ;;  %v1409_v60 = vld [vmem:[#allocation20 + $0x3a0] sm:$0xff] }
 0x356   :  { %4411 = vmatprep.subr.bf16.mxu0 %v11457_v0  ;;  %v1766_v0 = vld [vmem:[#allocation20 + $0xec8] sm:$0xff]  ;;  %v11529_v2 = vcombine.high %v1405_v59, %v1409_v60  ;;  %v11528_v7 = vcombine.low %v1405_v59, %v1409_v60 }
 0x357   :  { %4703 = vmatpush1.bf16.msra.mxu1 %v11826_v1  ;;  %v1770_v1 = vld [vmem:[#allocation20 + $0xee8] sm:$0xff] }
 0x358   :  { %4704 = vmatprep.subr.bf16.mxu1 %v11819_v4  ;;  %v1397_v4 = vld [vmem:[#allocation20 + $0x340] sm:$0xff]  ;;  %v11891_v6 = vcombine.high %v1766_v0, %v1770_v1  ;;  %v11890_v9 = vcombine.low %v1766_v0, %v1770_v1  ;;  %v13834_v1 = vld [vmem:[#allocation7] sm:$0xff] }
 0x359   :  { %4412 = vmatpush1.bf16.msra.mxu0 %v11456_v5  ;;  %v1401_v5 = vld [vmem:[#allocation20 + $0x360] sm:$0xff] }
 0x35a   :  { %4413 = vmatprep.subr.bf16.mxu0 %v11449_v51  ;;  %v1758_v51 = vld [vmem:[#allocation20 + $0xe88] sm:$0xff]  ;;  %v11521_v56 = vcombine.high %v1397_v4, %v1401_v5  ;;  %v11520_v17 = vcombine.low %v1397_v4, %v1401_v5  ;;  %v13835_v4 = vld [vmem:[#allocation7 + $0x28] sm:$0xff] }
 0x35b   :  { %4705 = vmatpush1.bf16.msra.mxu1 %v11818_v52  ;;  %v1762_v52 = vld [vmem:[#allocation20 + $0xea8] sm:$0xff]  ;;  %v1282_v5 = vmul.f32 %v13835_v4, %v14672_v62 }
 0x35c   :  { %4706 = vmatprep.subr.bf16.mxu1 %v11811_v10  ;;  %v1389_v10 = vld [vmem:[#allocation20 + $0x300] sm:$0xff]  ;;  %v11883_v14 = vcombine.high %v1758_v51, %v1762_v52  ;;  %v11882_v21 = vcombine.low %v1758_v51, %v1762_v52 }
 0x35d   :  { %4414 = vmatpush1.bf16.msra.mxu0 %v11448_v12  ;;  %v1393_v12 = vld [vmem:[#allocation20 + $0x320] sm:$0xff] }
 0x35e   :  { %4415 = vmatprep.subr.bf16.mxu0 %v11441_v18  ;;  %v1750_v18 = vld [vmem:[#allocation20 + $0xe48] sm:$0xff]  ;;  %v11513_v20 = vcombine.high %v1389_v10, %v1393_v12  ;;  %v11512_v25 = vcombine.low %v1389_v10, %v1393_v12 }
 0x35f   :  { %4707 = vmatpush1.bf16.msra.mxu1 %v11810_v19  ;;  %v1754_v19 = vld [vmem:[#allocation20 + $0xe68] sm:$0xff] }
 0x360   :  { %4708 = vmatprep.subr.bf16.mxu1 %v11803_v22  ;;  %v1381_v22 = vld [vmem:[#allocation20 + $0x2c0] sm:$0xff]  ;;  %v11875_v24 = vcombine.high %v1750_v18, %v1754_v19  ;;  %v11874_v29 = vcombine.low %v1750_v18, %v1754_v19  ;;  %v1447_v18 = vld [vmem:[#allocation20 + $0x4d0] sm:$0xff] }
 0x361   :  { %4416 = vmatpush1.bf16.msra.mxu0 %v11440_v23  ;;  %v1385_v23 = vld [vmem:[#allocation20 + $0x2e0] sm:$0xff]  ;;  %v1451_v19 = vld [vmem:[#allocation20 + $0x4f0] sm:$0xff] }
 0x362   :  { %4417 = vmatprep.subr.bf16.mxu0 %v11433_v26  ;;  %v1742_v26 = vld [vmem:[#allocation20 + $0xe08] sm:$0xff]  ;;  %v11505_v28 = vcombine.high %v1381_v22, %v1385_v23  ;;  %v11504_v33 = vcombine.low %v1381_v22, %v1385_v23  ;;  %v1589_v22 = vld [vmem:[#allocation20 + $0x940] sm:$0xff] }
 0x363   :  { %4709 = vmatpush1.bf16.msra.mxu1 %v11802_v27  ;;  %v1746_v27 = vld [vmem:[#allocation20 + $0xe28] sm:$0xff]  ;;  %v1593_v23 = vld [vmem:[#allocation20 + $0x960] sm:$0xff] }
 0x364   :  { %4710 = vmatprep.subr.bf16.mxu1 %v11923_v30  ;;  %v1373_v30 = vld [vmem:[#allocation20 + $0x280] sm:$0xff]  ;;  %v11867_v32 = vcombine.high %v1742_v26, %v1746_v27  ;;  %v11866_v39 = vcombine.low %v1742_v26, %v1746_v27  ;;  %v1439_v26 = vld [vmem:[#allocation20 + $0x490] sm:$0xff] }
 0x365   :  { %4418 = vmatpush1.bf16.msra.mxu0 %v11432_v31  ;;  %v1377_v31 = vld [vmem:[#allocation20 + $0x2a0] sm:$0xff]  ;;  %v1443_v27 = vld [vmem:[#allocation20 + $0x4b0] sm:$0xff] }
 0x366   :  { %4419 = vmatprep.subr.bf16.mxu0 %v11425_v35  ;;  %v1479_v35 = vld [vmem:[#allocation20 + $0x5d0] sm:$0xff]  ;;  %v11497_v38 = vcombine.high %v1373_v30, %v1377_v31  ;;  %v11496_v43 = vcombine.low %v1373_v30, %v1377_v31  ;;  %v1581_v30 = vld [vmem:[#allocation20 + $0x900] sm:$0xff] }
 0x367   :  { %4711 = vmatpush2.bf16.msra.mxu1 %v11922_v36  ;;  %v1483_v36 = vld [vmem:[#allocation20 + $0x5f0] sm:$0xff]  ;;  %v1585_v31 = vld [vmem:[#allocation20 + $0x920] sm:$0xff] }
 0x368   :  { %4712 = vmatprep.subr.bf16.mxu1 %v11915_v40  ;;  %v1365_v40 = vld [vmem:[#allocation20 + $0x240] sm:$0xff]  ;;  %v11605_v42 = vcombine.high %v1479_v35, %v1483_v36  ;;  %v11604_v47 = vcombine.low %v1479_v35, %v1483_v36  ;;  %v1431_v35 = vld [vmem:[#allocation20 + $0x450] sm:$0xff] }
 0x369   :  { %4420 = vmatpush1.bf16.msra.mxu0 %v11424_v41  ;;  %v1369_v41 = vld [vmem:[#allocation20 + $0x260] sm:$0xff]  ;;  %v1435_v36 = vld [vmem:[#allocation20 + $0x470] sm:$0xff] }
 0x36a   :  { %4421 = vmatprep.subr.bf16.mxu0 %v11417_v44  ;;  %v1471_v44 = vld [vmem:[#allocation20 + $0x590] sm:$0xff]  ;;  %v11489_v46 = vcombine.high %v1365_v40, %v1369_v41  ;;  %v11488_v54 = vcombine.low %v1365_v40, %v1369_v41  ;;  %v1573_v40 = vld [vmem:[#allocation20 + $0x8c0] sm:$0xff] }
 0x36b   :  { %4713 = vmatpush2.bf16.msra.mxu1 %v11914_v45  ;;  %v1475_v45 = vld [vmem:[#allocation20 + $0x5b0] sm:$0xff]  ;;  %v1577_v41 = vld [vmem:[#allocation20 + $0x8e0] sm:$0xff] }
 0x36c   :  { %4714 = vmatprep.subr.bf16.mxu1 %v11907_v48  ;;  %v1357_v48 = vld [vmem:[#allocation20 + $0x200] sm:$0xff]  ;;  %v11597_v53 = vcombine.high %v1471_v44, %v1475_v45  ;;  %v11596_v60 = vcombine.low %v1471_v44, %v1475_v45  ;;  %v1423_v44 = vld [vmem:[#allocation20 + $0x410] sm:$0xff] }
 0x36d   :  { %4422 = vmatpush1.bf16.msra.mxu0 %v11416_v50  ;;  %v1361_v50 = vld [vmem:[#allocation20 + $0x220] sm:$0xff]  ;;  %v1427_v45 = vld [vmem:[#allocation20 + $0x430] sm:$0xff] }
 0x36e   :  { %4423 = vmatprep.subr.bf16.mxu0 %v11537_v55  ;;  %v1463_v55 = vld [vmem:[#allocation20 + $0x550] sm:$0xff]  ;;  %v11481_v59 = vcombine.high %v1357_v48, %v1361_v50 }
 0x36f   :  { %4715 = vmatpush2.bf16.msra.mxu1 %v11906_v58  ;;  %v1467_v58 = vld [vmem:[#allocation20 + $0x570] sm:$0xff] }
 0x370   :  { %4716 = vmatprep.subr.bf16.mxu1 %v11899_v61  ;;  %v1605_v61 = vld [vmem:[#allocation20 + $0x9c0] sm:$0xff]  ;;  %v11589_v0 = vcombine.high %v1463_v55, %v1467_v58  ;;  %v11588_v52 = vcombine.low %v1463_v55, %v1467_v58  ;;  %v1543_v55 = vld [vmem:[#allocation20 + $0x7d0] sm:$0xff] }
 0x371   :  { %4424 = vmatpush2.bf16.msra.mxu0 %v11536_v63  ;;  %v1609_v63 = vld [vmem:[#allocation20 + $0x9e0] sm:$0xff]  ;;  %v1547_v58 = vld [vmem:[#allocation20 + $0x7f0] sm:$0xff] }
 0x372   :  { %4425 = vmatprep.subr.bf16.mxu0 %v11529_v2  ;;  %v1277_v2 = vmul.f32 %v13834_v1, %v14672_v62  ;;  %v11729_v51 = vcombine.high %v1605_v61, %v1609_v63 }
 0x373   :  { %4717 = vmatpush2.bf16.msra.mxu1 %v11898_v3  ;;  %v11480_v3 = vcombine.low %v1357_v48, %v1361_v50  ;;  %v1565_v48 = vld [vmem:[#allocation20 + $0x880] sm:$0xff] }
 0x374   :  { %4718 = vmatprep.subr.bf16.mxu1 %v11891_v6  ;;  %v1455_v6 = vld [vmem:[#allocation20 + $0x510] sm:$0xff]  ;;  %v14718_v10 = vpack.c.bf16 %v1277_v2, %v1277_v2  ;;  %v1569_v50 = vld [vmem:[#allocation20 + $0x8a0] sm:$0xff] }
 0x375   :  { %4426 = vmatpush2.bf16.msra.mxu0 %v11528_v7  ;;  %v1459_v7 = vld [vmem:[#allocation20 + $0x530] sm:$0xff]  ;;  %v11688_v1 = vcombine.low %v1565_v48, %v1569_v50 }
 0x376   :  { %4427 = vmatprep.subr.bf16.mxu0 %v11521_v56  ;;  %v1597_v56 = vld [vmem:[#allocation20 + $0x980] sm:$0xff]  ;;  %v11581_v12 = vcombine.high %v1455_v6, %v1459_v7  ;;  %v1535_v2 = vld [vmem:[#allocation20 + $0x790] sm:$0xff] }
 0x377   :  { %4719 = vmatpush2.bf16.msra.mxu1 %v11890_v9  ;;  %v1601_v9 = vld [vmem:[#allocation20 + $0x9a0] sm:$0xff] }
 0x378   :  { %4720 = vmatprep.subr.bf16.mxu1 %v11883_v14  ;;  %v11728_v14 = vcombine.low %v1605_v61, %v1609_v63  ;;  %v1557_v61 = vld [vmem:[#allocation20 + $0x840] sm:$0xff] }
 0x379   :  { %4428 = vmatpush2.bf16.msra.mxu0 %v11520_v17  ;;  %v14720_v17 = vpack.c.bf16 %v1282_v5, %v1282_v5  ;;  %v1561_v63 = vld [vmem:[#allocation20 + $0x860] sm:$0xff]  ;;  %v11668_v5 = vcombine.low %v1543_v55, %v1547_v58 }
 0x37a   :  { %4429 = vmatprep.subr.bf16.mxu0 %v11513_v20  ;;  %v11721_v20 = vcombine.high %v1597_v56, %v1601_v9  ;;  %v11681_v4 = vcombine.high %v1557_v61, %v1561_v63 }
 0x37b   :  { %4721 = vmatpush2.bf16.msra.mxu1 %v11882_v21  ;;  %v11580_v21 = vcombine.low %v1455_v6, %v1459_v7  ;;  %v1549_v6 = vld [vmem:[#allocation20 + $0x800] sm:$0xff] }
 0x37c   :  { %4722 = vmatprep.subr.bf16.mxu1 %v11875_v24  ;;  %v11573_v24 = vcombine.high %v1447_v18, %v1451_v19  ;;  %v1553_v7 = vld [vmem:[#allocation20 + $0x820] sm:$0xff] }
 0x37d   :  { %4430 = vmatpush2.bf16.msra.mxu0 %v11512_v25  ;;  %v11720_v25 = vcombine.low %v1597_v56, %v1601_v9  ;;  %v1527_v56 = vld [vmem:[#allocation20 + $0x750] sm:$0xff] }
 0x37e   :  { %4431 = vmatprep.subr.bf16.mxu0 %v11505_v28  ;;  %v11713_v28 = vcombine.high %v1589_v22, %v1593_v23  ;;  %v1531_v9 = vld [vmem:[#allocation20 + $0x770] sm:$0xff] }
 0x37f   :  { %4723 = vmatpush2.bf16.msra.mxu1 %v11874_v29  ;;  %v11572_v29 = vcombine.low %v1447_v18, %v1451_v19  ;;  %v1669_v18 = vld [vmem:[#allocation20 + $0xbc0] sm:$0xff] }
 0x380   :  { %4724 = vmatprep.subr.bf16.mxu1 %v11867_v32  ;;  %v11565_v32 = vcombine.high %v1439_v26, %v1443_v27  ;;  %v1673_v19 = vld [vmem:[#allocation20 + $0xbe0] sm:$0xff] }
 0x381   :  { %4432 = vmatpush2.bf16.msra.mxu0 %v11504_v33  ;;  %v11712_v33 = vcombine.low %v1589_v22, %v1593_v23  ;;  %v1519_v22 = vld [vmem:[#allocation20 + $0x710] sm:$0xff] }
 0x382   :  { %4433 = vmatprep.subr.bf16.mxu0 %v11497_v38  ;;  %v11705_v38 = vcombine.high %v1581_v30, %v1585_v31  ;;  %v1523_v23 = vld [vmem:[#allocation20 + $0x730] sm:$0xff] }
 0x383   :  { %4725 = vmatpush2.bf16.msra.mxu1 %v11866_v39  ;;  %v11564_v39 = vcombine.low %v1439_v26, %v1443_v27  ;;  %v1661_v26 = vld [vmem:[#allocation20 + $0xb80] sm:$0xff] }
 0x384   :  { %4776 = vmatprep.subr.bf16.mxu1 %v11605_v42  ;;  %v11557_v42 = vcombine.high %v1431_v35, %v1435_v36  ;;  %v1665_v27 = vld [vmem:[#allocation20 + $0xba0] sm:$0xff] }
 0x385   :  { %4434 = vmatpush2.bf16.msra.mxu0 %v11496_v43  ;;  %v11704_v43 = vcombine.low %v1581_v30, %v1585_v31  ;;  %v1511_v30 = vld [vmem:[#allocation20 + $0x6d0] sm:$0xff] }
 0x386   :  { %4435 = vmatprep.subr.bf16.mxu0 %v11489_v46  ;;  %4727 = vmatmul.mubr.bf16.vlgmr.msra.gmra.mxu1 %v14695_v57  ;;  %v11697_v46 = vcombine.high %v1573_v40, %v1577_v41  ;;  %v1515_v31 = vld [vmem:[#allocation20 + $0x6f0] sm:$0xff] }
 0x387   :  { %4777 = vmatpush1.bf16.msra.mxu1 %v11604_v47  ;;  %4808 = vmatprep.mubr.bf16.mxu1 %v14675_v11  ;;  %v11556_v47 = vcombine.low %v1431_v35, %v1435_v36  ;;  %v1653_v35 = vld [vmem:[#allocation20 + $0xb40] sm:$0xff] }
 0x388   :  { %4778 = vmatprep.subr.bf16.mxu1 %v11597_v53  ;;  %v11549_v53 = vcombine.high %v1423_v44, %v1427_v45  ;;  %v1657_v36 = vld [vmem:[#allocation20 + $0xb60] sm:$0xff] }
 0x389   :  { %4436 = vmatpush2.bf16.msra.mxu0 %v11488_v54  ;;  %v11696_v54 = vcombine.low %v1573_v40, %v1577_v41  ;;  %v1503_v40 = vld [vmem:[#allocation20 + $0x690] sm:$0xff] }
 0x38a   :  { %4437 = vmatprep.subr.bf16.mxu0 %v11481_v59  ;;  %v11689_v59 = vcombine.high %v1565_v48, %v1569_v50  ;;  %v1507_v41 = vld [vmem:[#allocation20 + $0x6b0] sm:$0xff]  ;;  %v11776_v50 = vcombine.low %v1653_v35, %v1657_v36 }
 0x38b   :  { %4779 = vmatpush1.bf16.msra.mxu1 %v11596_v60  ;;  %v11548_v60 = vcombine.low %v1423_v44, %v1427_v45  ;;  %v11636_v44 = vcombine.low %v1511_v30, %v1515_v31  ;;  %v1645_v45 = vld [vmem:[#allocation20 + $0xb00] sm:$0xff]  ;;  %v11629_v48 = vcombine.high %v1503_v40, %v1507_v41 }
 0x38c   :  { %4780 = vmatprep.subr.bf16.mxu1 %v11589_v0  ;;  %v11669_v0 = vcombine.high %v1543_v55, %v1547_v58 }
 0x38d   :  { %4438 = vmatpush2.bf16.msra.mxu0 %v11480_v3  ;;  %v1539_v3 = vld [vmem:[#allocation20 + $0x7b0] sm:$0xff] }
 0x38e   :  { %4489 = vmatprep.subr.bf16.mxu0 %v11729_v51  ;;  %v11661_v51 = vcombine.high %v1535_v2, %v1539_v3 }
 0x38f   :  { %4781 = vmatpush1.bf16.msra.mxu1 %v11588_v52  ;;  %v11680_v52 = vcombine.low %v1557_v61, %v1561_v63  ;;  %v1641_v61 = vld [vmem:[#allocation20 + $0xae0] sm:$0xff] }
 0x390   :  { %4440 = vmatmul.mubr.bf16.vlgmr.msra.gmra.mxu0 %v14718_v10  ;;  %4782 = vmatprep.subr.bf16.mxu1 %v11581_v12  ;;  %v11673_v12 = vcombine.high %v1549_v6, %v1553_v7 }
 0x391   :  { %4490 = vmatpush1.bf16.msra.mxu0 %v11728_v14  ;;  %4521 = vmatprep.mubr.bf16.mxu0 %v14720_v17  ;;  %v11660_v14 = vcombine.low %v1535_v2, %v1539_v3  ;;  %v1487_v2 = vld [vmem:[#allocation20 + $0x610] sm:$0xff] }
 0x392   :  { %4491 = vmatprep.subr.bf16.mxu0 %v11721_v20  ;;  %v11653_v20 = vcombine.high %v1527_v56, %v1531_v9  ;;  %v1491_v3 = vld [vmem:[#allocation20 + $0x630] sm:$0xff] }
 0x393   :  { %4783 = vmatpush1.bf16.msra.mxu1 %v11580_v21  ;;  %v11672_v21 = vcombine.low %v1549_v6, %v1553_v7  ;;  %v1629_v6 = vld [vmem:[#allocation20 + $0xa80] sm:$0xff] }
 0x394   :  { %4784 = vmatprep.subr.bf16.mxu1 %v11573_v24  ;;  %v11793_v24 = vcombine.high %v1669_v18, %v1673_v19  ;;  %v1633_v7 = vld [vmem:[#allocation20 + $0xaa0] sm:$0xff] }
 0x395   :  { %4492 = vmatpush1.bf16.msra.mxu0 %v11720_v25  ;;  %v11652_v25 = vcombine.low %v1527_v56, %v1531_v9  ;;  %v1735_v56 = vld [vmem:[#allocation20 + $0xdd0] sm:$0xff] }
 0x396   :  { %4493 = vmatprep.subr.bf16.mxu0 %v11713_v28  ;;  %v11645_v28 = vcombine.high %v1519_v22, %v1523_v23  ;;  %v1739_v9 = vld [vmem:[#allocation20 + $0xdf0] sm:$0xff] }
 0x397   :  { %4785 = vmatpush1.bf16.msra.mxu1 %v11572_v29  ;;  %v11792_v29 = vcombine.low %v1669_v18, %v1673_v19  ;;  %v1621_v18 = vld [vmem:[#allocation20 + $0xa40] sm:$0xff] }
 0x398   :  { %4786 = vmatprep.subr.bf16.mxu1 %v11565_v32  ;;  %v11785_v32 = vcombine.high %v1661_v26, %v1665_v27  ;;  %v1625_v19 = vld [vmem:[#allocation20 + $0xa60] sm:$0xff] }
 0x399   :  { %4494 = vmatpush1.bf16.msra.mxu0 %v11712_v33  ;;  %v11644_v33 = vcombine.low %v1519_v22, %v1523_v23  ;;  %v1727_v22 = vld [vmem:[#allocation20 + $0xd90] sm:$0xff] }
 0x39a   :  { %4495 = vmatprep.subr.bf16.mxu0 %v11705_v38  ;;  %v11637_v38 = vcombine.high %v1511_v30, %v1515_v31  ;;  %v1731_v23 = vld [vmem:[#allocation20 + $0xdb0] sm:$0xff] }
 0x39b   :  { %4787 = vmatpush1.bf16.msra.mxu1 %v11564_v39  ;;  %v11784_v39 = vcombine.low %v1661_v26, %v1665_v27  ;;  %v1613_v26 = vld [vmem:[#allocation20 + $0xa00] sm:$0xff]  ;;  %v1719_v30 = vld [vmem:[#allocation20 + $0xd50] sm:$0xff] }
 0x39c   :  { %4788 = vmatprep.subr.bf16.mxu1 %v11557_v42  ;;  %v14724_v42 = vpop.f32.mrf.mxu1  ;;  %v1617_v27 = vld [vmem:[#allocation20 + $0xa20] sm:$0xff]  ;;  %v1723_v31 = vld [vmem:[#allocation20 + $0xd70] sm:$0xff] }
 0x39d   :  { %4496 = vmatpush1.bf16.msra.mxu0 %v11704_v43  ;;  %v11777_v43 = vcombine.high %v1653_v35, %v1657_v36  ;;  %v11852_v35 = vcombine.low %v1727_v22, %v1731_v23  ;;  %v1350_v36 = vld [vmem:[#allocation20 + $0x1c8] sm:$0xff] }
 0x39e   :  { %4497 = vmatprep.subr.bf16.mxu0 %v11697_v46  ;;  %v1649_v46 = vld [vmem:[#allocation20 + $0xb20] sm:$0xff] }
 0x39f   :  { %4789 = vmatpush1.bf16.msra.mxu1 %v11556_v47  ;;  %v14726_v47 = vpop.f32.mrf.mxu1  ;;  %v11769_v58 = vcombine.high %v1645_v45, %v1649_v46 }
 0x3a0   :  { %4790 = vmatprep.subr.bf16.mxu1 %v11549_v53  ;;  %v1495_v53 = vld [vmem:[#allocation20 + $0x650] sm:$0xff] }
 0x3a1   :  { %4498 = vmatpush1.bf16.msra.mxu0 %v11696_v54  ;;  %v1499_v54 = vld [vmem:[#allocation20 + $0x670] sm:$0xff]  ;;  %v4486_v55 = vpop.f32.mrf.mxu1 }
 0x3a2   :  { %4499 = vmatprep.subr.bf16.mxu0 %v11689_v59  ;;  %v11628_v59 = vcombine.low %v1503_v40, %v1507_v41  ;;  %v11736_v41 = vcombine.low %v1613_v26, %v1617_v27  ;;  %v1346_v55 = vld [vmem:[#allocation20 + $0x1a8] sm:$0xff] }
 0x3a3   :  { %4791 = vmatpush1.bf16.msra.mxu1 %v11548_v60  ;;  %v1637_v60 = vld [vmem:[#allocation20 + $0xac0] sm:$0xff]  ;;  %v4487_v63 = vpop.f32.mrf.mxu1 }
 0x3a4   :  { %4792 = vmatprep.subr.bf16.mxu1 %v11669_v0  ;;  %v11621_v0 = vcombine.high %v1495_v53, %v1499_v54  ;;  %v1707_v63 = vld [vmem:[#allocation20 + $0xcf0] sm:$0xff] }
 0x3a5   :  { %4500 = vmatpush1.bf16.msra.mxu0 %v11688_v1  ;;  %v11768_v1 = vcombine.low %v1645_v45, %v1649_v46  ;;  %v13836_v45 = vld [vmem:[#allocation7 + $0x20] sm:$0xff] }
 0x3a6   :  { %4501 = vmatprep.subr.bf16.mxu0 %v11681_v4  ;;  %v11761_v4 = vcombine.high %v1637_v60, %v1641_v61  ;;  %v1281_v46 = vmul.f32 %v13836_v45, %v14672_v62  ;;  %v1334_v62 = vld [vmem:[#allocation20 + $0x148] sm:$0xff] }
 0x3a7   :  { %4793 = vmatpush2.bf16.msra.mxu1 %v11668_v5  ;;  %v11620_v5 = vcombine.low %v1495_v53, %v1499_v54  ;;  %v11844_v53 = vcombine.low %v1719_v30, %v1723_v31  ;;  %v1342_v54 = vld [vmem:[#allocation20 + $0x188] sm:$0xff] }
 0x3a8   :  { %4794 = vmatprep.subr.bf16.mxu1 %v11661_v51  ;;  %v11613_v51 = vcombine.high %v1487_v2, %v1491_v3 }
 0x3a9   :  { %4502 = vmatpush1.bf16.msra.mxu0 %v11680_v52  ;;  %v11760_v52 = vcombine.low %v1637_v60, %v1641_v61  ;;  %v1703_v61 = vld [vmem:[#allocation20 + $0xcd0] sm:$0xff] }
 0x3aa   :  { %4503 = vmatprep.subr.bf16.mxu0 %v11673_v12  ;;  %v11753_v12 = vcombine.high %v1629_v6, %v1633_v7 }
 0x3ab   :  { %4795 = vmatpush2.bf16.msra.mxu1 %v11660_v14  ;;  %v11612_v14 = vcombine.low %v1487_v2, %v1491_v3  ;;  %v1338_v3 = vld [vmem:[#allocation20 + $0x168] sm:$0xff] }
 0x3ac   :  { %4796 = vmatprep.subr.bf16.mxu1 %v11653_v20  ;;  %v11861_v20 = vcombine.high %v1735_v56, %v1739_v9 }
 0x3ad   :  { %4504 = vmatpush1.bf16.msra.mxu0 %v11672_v21  ;;  %v11752_v21 = vcombine.low %v1629_v6, %v1633_v7  ;;  %v1695_v6 = vld [vmem:[#allocation20 + $0xc90] sm:$0xff] }
 0x3ae   :  { %4505 = vmatprep.subr.bf16.mxu0 %v11793_v24  ;;  %v11745_v24 = vcombine.high %v1621_v18, %v1625_v19  ;;  %v1699_v7 = vld [vmem:[#allocation20 + $0xcb0] sm:$0xff] }
 0x3af   :  { %4797 = vmatpush2.bf16.msra.mxu1 %v11652_v25  ;;  %v11860_v25 = vcombine.low %v1735_v56, %v1739_v9  ;;  %v1326_v56 = vld [vmem:[#allocation20 + $0x108] sm:$0xff] }
 0x3b0   :  { %4798 = vmatprep.subr.bf16.mxu1 %v11645_v28  ;;  %v11853_v28 = vcombine.high %v1727_v22, %v1731_v23  ;;  %v1330_v9 = vld [vmem:[#allocation20 + $0x128] sm:$0xff] }
 0x3b1   :  { %4506 = vmatpush2.bf16.msra.mxu0 %v11792_v29  ;;  %v11744_v29 = vcombine.low %v1621_v18, %v1625_v19  ;;  %v1687_v18 = vld [vmem:[#allocation20 + $0xc50] sm:$0xff]  ;;  %v1318_v22 = vld [vmem:[#allocation20 + $0xc8] sm:$0xff] }
 0x3b2   :  { %4507 = vmatprep.subr.bf16.mxu0 %v11785_v32  ;;  %v11737_v32 = vcombine.high %v1613_v26, %v1617_v27  ;;  %v1691_v19 = vld [vmem:[#allocation20 + $0xc70] sm:$0xff]  ;;  %v1322_v23 = vld [vmem:[#allocation20 + $0xe8] sm:$0xff] }
 0x3b3   :  { %4799 = vmatpush2.bf16.msra.mxu1 %v11644_v33  ;;  %v1679_v26 = vld [vmem:[#allocation20 + $0xc10] sm:$0xff] }
 0x3b4   :  { %4800 = vmatprep.subr.bf16.mxu1 %v11637_v38  ;;  %v1354_v38 = vld [vmem:[#allocation20 + $0x1e8] sm:$0xff]  ;;  %v1683_v27 = vld [vmem:[#allocation20 + $0xc30] sm:$0xff] }
 0x3b5   :  { %4508 = vmatpush2.bf16.msra.mxu0 %v11784_v39  ;;  %v11845_v39 = vcombine.high %v1719_v30, %v1723_v31  ;;  %v11474_v60 = vcombine.low %v1350_v36, %v1354_v38  ;;  %v1310_v30 = vld [vmem:[#allocation20 + $0x88] sm:$0xff] }
 0x3b6   :  { %4509 = vmatprep.subr.bf16.mxu0 %v11777_v43  ;;  %v1711_v43 = vld [vmem:[#allocation20 + $0xd10] sm:$0xff]  ;;  %v1314_v31 = vld [vmem:[#allocation20 + $0xa8] sm:$0xff] }
 0x3b7   :  { %4801 = vmatpush2.bf16.msra.mxu1 %v11636_v44  ;;  %v1715_v44 = vld [vmem:[#allocation20 + $0xd30] sm:$0xff] }
 0x3b8   :  { %4802 = vmatprep.subr.bf16.mxu1 %v11629_v48  ;;  %v11475_v48 = vcombine.high %v1350_v36, %v1354_v38  ;;  %v11836_v2 = vcombine.low %v1711_v43, %v1715_v44  ;;  %v1799_v36 = vld [vmem:[#allocation20 + $0xfd0] sm:$0xff] }
 0x3b9   :  { %4510 = vmatpush2.bf16.msra.mxu0 %v11776_v50  ;;  %v1803_v38 = vld [vmem:[#allocation20 + $0xff0] sm:$0xff] }
 0x3ba   :  { %4511 = vmatprep.subr.bf16.mxu0 %v11769_v58  ;;  %v11837_v58 = vcombine.high %v1711_v43, %v1715_v44  ;;  %v1302_v43 = vld [vmem:[#allocation20 + $0x48] sm:$0xff]  ;;  %v11925_v45 = vcombine.high %v1799_v36, %v1803_v38 }
 0x3bb   :  { %4803 = vmatpush2.bf16.msra.mxu1 %v11628_v59  ;;  %v1306_v44 = vld [vmem:[#allocation20 + $0x68] sm:$0xff] }
 0x3bc   :  { %4804 = vmatprep.subr.bf16.mxu1 %v11621_v0  ;;  %v14735_v0 = vpack.c.bf16 %v1281_v46, %v1281_v46  ;;  %v11434_v46 = vcombine.low %v1310_v30, %v1314_v31 }
 0x3bd   :  { %4512 = vmatpush2.bf16.msra.mxu0 %v11768_v1  ;;  %v11467_v1 = vcombine.high %v1342_v54, %v1346_v55 }
 0x3be   :  { %4513 = vmatprep.subr.bf16.mxu0 %v11761_v4  ;;  %v11829_v4 = vcombine.high %v1703_v61, %v1707_v63 }
 0x3bf   :  { %4805 = vmatpush2.bf16.msra.mxu1 %v11620_v5  ;;  %v11466_v5 = vcombine.low %v1342_v54, %v1346_v55  ;;  %v11924_v54 = vcombine.low %v1799_v36, %v1803_v38  ;;  %v1294_v55 = vld [vmem:[#allocation20 + $0x8] sm:$0xff]  ;;  %v1751_v36 = vld [vmem:[#allocation20 + $0xe50] sm:$0xff] }
 0x3c0   :  { %4806 = vmatprep.subr.bf16.mxu1 %v11613_v51  ;;  %v11459_v51 = vcombine.high %v1334_v62, %v1338_v3  ;;  %v1755_v38 = vld [vmem:[#allocation20 + $0xe70] sm:$0xff] }
 0x3c1   :  { %4514 = vmatpush2.bf16.msra.mxu0 %v11760_v52  ;;  %v11828_v52 = vcombine.low %v1703_v61, %v1707_v63  ;;  %v1783_v61 = vld [vmem:[#allocation20 + $0xf50] sm:$0xff] }
 0x3c2   :  { %4515 = vmatprep.subr.bf16.mxu0 %v11753_v12  ;;  %v11821_v12 = vcombine.high %v1695_v6, %v1699_v7  ;;  %v1787_v63 = vld [vmem:[#allocation20 + $0xf70] sm:$0xff] }
 0x3c3   :  { %4807 = vmatpush2.bf16.msra.mxu1 %v11612_v14  ;;  %v11458_v14 = vcombine.low %v1334_v62, %v1338_v3  ;;  %v1414_v62 = vld [vmem:[#allocation20 + $0x3c8] sm:$0xff] }
 0x3c4   :  { %4858 = vmatprep.subr.bf16.mxu1 %v11861_v20  ;;  %v11451_v20 = vcombine.high %v1326_v56, %v1330_v9  ;;  %v1418_v3 = vld [vmem:[#allocation20 + $0x3e8] sm:$0xff] }
 0x3c5   :  { %4516 = vmatpush2.bf16.msra.mxu0 %v11752_v21  ;;  %v11820_v21 = vcombine.low %v1695_v6, %v1699_v7  ;;  %v1775_v6 = vld [vmem:[#allocation20 + $0xf10] sm:$0xff] }
 0x3c6   :  { %4809 = vmatmul.mubr.bf16.vlgmr.msra.gmra.mxu1 %v14680_v34  ;;  %4517 = vmatprep.subr.bf16.mxu0 %v11745_v24  ;;  %v14729_v33 = vpop.f32.mrf.mxu1  ;;  %v11813_v24 = vcombine.high %v1687_v18, %v1691_v19  ;;  %v1779_v7 = vld [vmem:[#allocation20 + $0xf30] sm:$0xff] }
 0x3c7   :  { %4859 = vmatpush1.bf16.msra.mxu1 %v11860_v25  ;;  %4890 = vmatprep.mubr.bf16.mxu1 %v14682_v37  ;;  %v11450_v25 = vcombine.low %v1326_v56, %v1330_v9  ;;  %v1406_v56 = vld [vmem:[#allocation20 + $0x388] sm:$0xff] }
 0x3c8   :  { %4860 = vmatprep.subr.bf16.mxu1 %v11853_v28  ;;  %v14732_v40 = vpop.f32.mrf.mxu1  ;;  %v11443_v28 = vcombine.high %v1318_v22, %v1322_v23  ;;  %v1410_v9 = vld [vmem:[#allocation20 + $0x3a8] sm:$0xff] }
 0x3c9   :  { %4518 = vmatpush2.bf16.msra.mxu0 %v11744_v29  ;;  %v11812_v29 = vcombine.low %v1687_v18, %v1691_v19  ;;  %v1767_v18 = vld [vmem:[#allocation20 + $0xed0] sm:$0xff] }
 0x3ca   :  { %4519 = vmatprep.subr.bf16.mxu0 %v11737_v32  ;;  %v4568_v50 = vpop.f32.mrf.mxu1  ;;  %v11805_v32 = vcombine.high %v1679_v26, %v1683_v27  ;;  %v1771_v19 = vld [vmem:[#allocation20 + $0xef0] sm:$0xff] }
 0x3cb   :  { %4861 = vmatpush1.bf16.msra.mxu1 %v11852_v35  ;;  %v11442_v35 = vcombine.low %v1318_v22, %v1322_v23  ;;  %v1795_v50 = vld [vmem:[#allocation20 + $0xfb0] sm:$0xff]  ;;  %v1398_v22 = vld [vmem:[#allocation20 + $0x348] sm:$0xff] }
 0x3cc   :  { %4862 = vmatprep.subr.bf16.mxu1 %v11845_v39  ;;  %v4569_v59 = vpop.f32.mrf.mxu1  ;;  %v11435_v39 = vcombine.high %v1310_v30, %v1314_v31  ;;  %v1402_v23 = vld [vmem:[#allocation20 + $0x368] sm:$0xff] }
 0x3cd   :  { %4520 = vmatpush2.bf16.msra.mxu0 %v11736_v41  ;;  %v11804_v41 = vcombine.low %v1679_v26, %v1683_v27  ;;  %v1759_v26 = vld [vmem:[#allocation20 + $0xe90] sm:$0xff]  ;;  %v1390_v30 = vld [vmem:[#allocation20 + $0x308] sm:$0xff] }
 0x3ce   :  { %4571 = vmatprep.subr.bf16.mxu0 %v11475_v48  ;;  %v1791_v48 = vld [vmem:[#allocation20 + $0xf90] sm:$0xff]  ;;  %v1394_v31 = vld [vmem:[#allocation20 + $0x328] sm:$0xff] }
 0x3cf   :  { %4863 = vmatpush1.bf16.msra.mxu1 %v11844_v53  ;;  %v11427_v53 = vcombine.high %v1302_v43, %v1306_v44  ;;  %v11917_v59 = vcombine.high %v1791_v48, %v1795_v50  ;;  %v1763_v27 = vld [vmem:[#allocation20 + $0xeb0] sm:$0xff] }
 0x3d0   :  { %4522 = vmatmul.mubr.bf16.vlgmr.msra.gmra.mxu0 %v14735_v0  ;;  %4864 = vmatprep.subr.bf16.mxu1 %v11837_v58  ;;  %v1298_v58 = vld [vmem:[#allocation20 + $0x28] sm:$0xff] }
 0x3d1   :  { %4572 = vmatpush1.bf16.msra.mxu0 %v11474_v60  ;;  %4603 = vmatprep.mubr.bf16.mxu0 %v14708_v49  ;;  %v11426_v60 = vcombine.low %v1302_v43, %v1306_v44  ;;  %v1382_v43 = vld [vmem:[#allocation20 + $0x2c8] sm:$0xff] }
 0x3d2   :  { %4573 = vmatprep.subr.bf16.mxu0 %v11467_v1  ;;  %v11419_v1 = vcombine.high %v1294_v55, %v1298_v58  ;;  %v1386_v44 = vld [vmem:[#allocation20 + $0x2e8] sm:$0xff] }
 0x3d3   :  { %4865 = vmatpush1.bf16.msra.mxu1 %v11836_v2  ;;  %v11916_v2 = vcombine.low %v1791_v48, %v1795_v50  ;;  %v1743_v48 = vld [vmem:[#allocation20 + $0xe10] sm:$0xff] }
 0x3d4   :  { %4866 = vmatprep.subr.bf16.mxu1 %v11829_v4  ;;  %v11909_v4 = vcombine.high %v1783_v61, %v1787_v63  ;;  %v1747_v50 = vld [vmem:[#allocation20 + $0xe30] sm:$0xff] }
 0x3d5   :  { %4574 = vmatpush1.bf16.msra.mxu0 %v11466_v5  ;;  %v11418_v5 = vcombine.low %v1294_v55, %v1298_v58  ;;  %v1374_v55 = vld [vmem:[#allocation20 + $0x288] sm:$0xff] }
 0x3d6   :  { %4575 = vmatprep.subr.bf16.mxu0 %v11459_v51  ;;  %v11539_v51 = vcombine.high %v1414_v62, %v1418_v3  ;;  %v1378_v58 = vld [vmem:[#allocation20 + $0x2a8] sm:$0xff] }
 0x3d7   :  { %4867 = vmatpush1.bf16.msra.mxu1 %v11828_v52  ;;  %v11908_v52 = vcombine.low %v1783_v61, %v1787_v63  ;;  %v1480_v61 = vld [vmem:[#allocation20 + $0x5d8] sm:$0xff] }
 0x3d8   :  { %4868 = vmatprep.subr.bf16.mxu1 %v11821_v12  ;;  %v11901_v12 = vcombine.high %v1775_v6, %v1779_v7  ;;  %v1484_v63 = vld [vmem:[#allocation20 + $0x5f8] sm:$0xff] }
 0x3d9   :  { %4576 = vmatpush1.bf16.msra.mxu0 %v11458_v14  ;;  %v11538_v14 = vcombine.low %v1414_v62, %v1418_v3  ;;  %v1366_v62 = vld [vmem:[#allocation20 + $0x248] sm:$0xff] }
 0x3da   :  { %4577 = vmatprep.subr.bf16.mxu0 %v11451_v20  ;;  %v11531_v20 = vcombine.high %v1406_v56, %v1410_v9  ;;  %v1370_v3 = vld [vmem:[#allocation20 + $0x268] sm:$0xff] }
 0x3db   :  { %4869 = vmatpush1.bf16.msra.mxu1 %v11820_v21  ;;  %v11900_v21 = vcombine.low %v1775_v6, %v1779_v7  ;;  %v1472_v6 = vld [vmem:[#allocation20 + $0x598] sm:$0xff] }
 0x3dc   :  { %4870 = vmatprep.subr.bf16.mxu1 %v11813_v24  ;;  %v11893_v24 = vcombine.high %v1767_v18, %v1771_v19  ;;  %v1476_v7 = vld [vmem:[#allocation20 + $0x5b8] sm:$0xff] }
 0x3dd   :  { %4578 = vmatpush1.bf16.msra.mxu0 %v11450_v25  ;;  %v11530_v25 = vcombine.low %v1406_v56, %v1410_v9  ;;  %v1358_v56 = vld [vmem:[#allocation20 + $0x208] sm:$0xff] }
 0x3de   :  { %4579 = vmatprep.subr.bf16.mxu0 %v11443_v28  ;;  %v11523_v28 = vcombine.high %v1398_v22, %v1402_v23  ;;  %v1362_v9 = vld [vmem:[#allocation20 + $0x228] sm:$0xff] }
 0x3df   :  { %4871 = vmatpush1.bf16.msra.mxu1 %v11812_v29  ;;  %v11892_v29 = vcombine.low %v1767_v18, %v1771_v19  ;;  %v1464_v18 = vld [vmem:[#allocation20 + $0x558] sm:$0xff] }
 0x3e0   :  { %4872 = vmatprep.subr.bf16.mxu1 %v11805_v32  ;;  %v11885_v32 = vcombine.high %v1759_v26, %v1763_v27  ;;  %v1468_v19 = vld [vmem:[#allocation20 + $0x578] sm:$0xff] }
 0x3e1   :  { %4580 = vmatpush1.bf16.msra.mxu0 %v11442_v35  ;;  %v11522_v35 = vcombine.low %v1398_v22, %v1402_v23  ;;  %v11598_v22 = vcombine.low %v1472_v6, %v1476_v7  ;;  %v1606_v23 = vld [vmem:[#allocation20 + $0x9c8] sm:$0xff] }
 0x3e2   :  { %4581 = vmatprep.subr.bf16.mxu0 %v11435_v39  ;;  %v11515_v39 = vcombine.high %v1390_v30, %v1394_v31 }
 0x3e3   :  { %4873 = vmatpush1.bf16.msra.mxu1 %v11804_v41  ;;  %v11884_v41 = vcombine.low %v1759_v26, %v1763_v27  ;;  %v11482_v27 = vcombine.low %v1358_v56, %v1362_v9 }
 0x3e4   :  { %4874 = vmatprep.subr.bf16.mxu1 %v11925_v45  ;;  %v11877_v45 = vcombine.high %v1751_v36, %v1755_v38 }
 0x3e5   :  { %4582 = vmatpush1.bf16.msra.mxu0 %v11434_v46  ;;  %v11514_v46 = vcombine.low %v1390_v30, %v1394_v31 }
 0x3e6   :  { %4583 = vmatprep.subr.bf16.mxu0 %v11427_v53  ;;  %v11507_v53 = vcombine.high %v1382_v43, %v1386_v44 }
 0x3e7   :  { %4875 = vmatpush2.bf16.msra.mxu1 %v11924_v54  ;;  %v11876_v54 = vcombine.low %v1751_v36, %v1755_v38  ;;  %v1602_v36 = vld [vmem:[#allocation20 + $0x9a8] sm:$0xff] }
 0x3e8   :  { %4876 = vmatprep.subr.bf16.mxu1 %v11917_v59  ;;  %v11869_v59 = vcombine.high %v1743_v48, %v1747_v50 }
 0x3e9   :  { %4584 = vmatpush1.bf16.msra.mxu0 %v11426_v60  ;;  %v11506_v60 = vcombine.low %v1382_v43, %v1386_v44  ;;  %v1452_v43 = vld [vmem:[#allocation20 + $0x4f8] sm:$0xff] }
 0x3ea   :  { %4585 = vmatprep.subr.bf16.mxu0 %v11419_v1  ;;  %v11499_v1 = vcombine.high %v1374_v55, %v1378_v58 }
 0x3eb   :  { %4877 = vmatpush2.bf16.msra.mxu1 %v11916_v2  ;;  %v11868_v2 = vcombine.low %v1743_v48, %v1747_v50  ;;  %v1594_v48 = vld [vmem:[#allocation20 + $0x968] sm:$0xff] }
 0x3ec   :  { %4878 = vmatprep.subr.bf16.mxu1 %v11909_v4  ;;  %v11607_v4 = vcombine.high %v1480_v61, %v1484_v63 }
 0x3ed   :  { %4586 = vmatpush1.bf16.msra.mxu0 %v11418_v5  ;;  %v11498_v5 = vcombine.low %v1374_v55, %v1378_v58  ;;  %v1440_v55 = vld [vmem:[#allocation20 + $0x498] sm:$0xff] }
 0x3ee   :  { %4587 = vmatprep.subr.bf16.mxu0 %v11539_v51  ;;  %v11491_v51 = vcombine.high %v1366_v62, %v1370_v3  ;;  %v1444_v58 = vld [vmem:[#allocation20 + $0x4b8] sm:$0xff] }
 0x3ef   :  { %4879 = vmatpush2.bf16.msra.mxu1 %v11908_v52  ;;  %v11606_v52 = vcombine.low %v1480_v61, %v1484_v63  ;;  %v11399_v61 = vld [vmem:[#allocation19] ss:$0 sm:$0xff] }
 0x3f0   :  { %4880 = vmatprep.subr.bf16.mxu1 %v11901_v12  ;;  %v11599_v12 = vcombine.high %v1472_v6, %v1476_v7  ;;  %v1432_v7 = vld [vmem:[#allocation20 + $0x458] sm:$0xff] }
 0x3f1   :  { %4588 = vmatpush2.bf16.msra.mxu0 %v11538_v14  ;;  %v11490_v14 = vcombine.low %v1366_v62, %v1370_v3  ;;  %v1586_v62 = vld [vmem:[#allocation20 + $0x928] sm:$0xff] }
 0x3f2   :  { %4589 = vmatprep.subr.bf16.mxu0 %v11531_v20  ;;  %v11483_v20 = vcombine.high %v1358_v56, %v1362_v9 }
 0x3f3   :  { %4881 = vmatpush2.bf16.msra.mxu1 %v11900_v21 }
 0x3f4   :  { %4882 = vmatprep.subr.bf16.mxu1 %v11893_v24  ;;  %v1610_v24 = vld [vmem:[#allocation20 + $0x9e8] sm:$0xff] }
 0x3f5   :  { %4590 = vmatpush2.bf16.msra.mxu0 %v11530_v25  ;;  %v11591_v25 = vcombine.high %v1464_v18, %v1468_v19  ;;  %v11731_v30 = vcombine.high %v1606_v23, %v1610_v24 }
 0x3f6   :  { %4591 = vmatprep.subr.bf16.mxu0 %v11523_v28  ;;  %v1456_v28 = vld [vmem:[#allocation20 + $0x518] sm:$0xff] }
 0x3f7   :  { %4883 = vmatpush2.bf16.msra.mxu1 %v11892_v29  ;;  %v1460_v29 = vld [vmem:[#allocation20 + $0x538] sm:$0xff] }
 0x3f8   :  { %4884 = vmatprep.subr.bf16.mxu1 %v11885_v32  ;;  %v11590_v32 = vcombine.low %v1464_v18, %v1468_v19  ;;  %v1578_v18 = vld [vmem:[#allocation20 + $0x8e8] sm:$0xff] }
 0x3f9   :  { %4592 = vmatpush2.bf16.msra.mxu0 %v11522_v35  ;;  %v1598_v35 = vld [vmem:[#allocation20 + $0x988] sm:$0xff] }
 0x3fa   :  { %4593 = vmatprep.subr.bf16.mxu0 %v11515_v39  ;;  %v11730_v39 = vcombine.low %v1606_v23, %v1610_v24  ;;  %v11723_v44 = vcombine.high %v1598_v35, %v1602_v36  ;;  %v1428_v23 = vld [vmem:[#allocation20 + $0x438] sm:$0xff] }
 0x3fb   :  { %4885 = vmatpush2.bf16.msra.mxu1 %v11884_v41  ;;  %v1448_v41 = vld [vmem:[#allocation20 + $0x4d8] sm:$0xff] }
 0x3fc   :  { %4886 = vmatprep.subr.bf16.mxu1 %v11877_v45  ;;  %v11582_v45 = vcombine.low %v1456_v28, %v1460_v29 }
 0x3fd   :  { %4594 = vmatpush2.bf16.msra.mxu0 %v11514_v46  ;;  %v1590_v46 = vld [vmem:[#allocation20 + $0x948] sm:$0xff] }
 0x3fe   :  { %4595 = vmatprep.subr.bf16.mxu0 %v11507_v53  ;;  %v11575_v53 = vcombine.high %v1448_v41, %v1452_v43 }
 0x3ff   :  { %4887 = vmatpush2.bf16.msra.mxu1 %v11876_v54  ;;  %v11722_v54 = vcombine.low %v1598_v35, %v1602_v36 }
 0x400   :  { %4888 = vmatprep.subr.bf16.mxu1 %v11869_v59 }
 0x401   :  { %4596 = vmatpush2.bf16.msra.mxu0 %v11506_v60  ;;  %v11715_v60 = vcombine.high %v1590_v46, %v1594_v48 }
 0x402   :  { %4597 = vmatprep.subr.bf16.mxu0 %v11499_v1  ;;  %v11574_v1 = vcombine.low %v1448_v41, %v1452_v43  ;;  %v1536_v43 = vld [vmem:[#allocation20 + $0x798] sm:$0xff] }
 0x403   :  { %4889 = vmatpush2.bf16.msra.mxu1 %v11868_v2  ;;  %v1582_v2 = vld [vmem:[#allocation20 + $0x908] sm:$0xff] }
 0x404   :  { %4940 = vmatprep.subr.bf16.mxu1 %v11607_v4  ;;  %v11567_v4 = vcombine.high %v1440_v55, %v1444_v58  ;;  %v11707_v56 = vcombine.high %v1582_v2, %v1586_v62 }
 0x405   :  { %4598 = vmatpush2.bf16.msra.mxu0 %v11498_v5  ;;  %v11714_v5 = vcombine.low %v1590_v46, %v1594_v48  ;;  %v1550_v48 = vld [vmem:[#allocation20 + $0x808] sm:$0xff] }
 0x406   :  { %4891 = vmatmul.mubr.bf16.vlgmr.msra.gmra.mxu1 %v14695_v57  ;;  %4599 = vmatprep.subr.bf16.mxu0 %v11491_v51  ;;  %v14740_v21 = vpop.f32.mrf.mxu1  ;;  %v1436_v51 = vld [vmem:[#allocation20 + $0x478] sm:$0xff] }
 0x407   :  { %4941 = vmatpush1.bf16.msra.mxu1 %v11606_v52  ;;  %4972 = vmatprep.mubr.bf16.mxu1 %v14675_v11  ;;  %v11583_v11 = vcombine.high %v1456_v28, %v1460_v29  ;;  %v11559_v19 = vcombine.high %v1432_v7, %v1436_v51  ;;  %v1570_v28 = vld [vmem:[#allocation20 + $0x8a8] sm:$0xff] }
 0x408   :  { %4942 = vmatprep.subr.bf16.mxu1 %v11599_v12  ;;  %v14743_v26 = vpop.f32.mrf.mxu1  ;;  %v11566_v12 = vcombine.low %v1440_v55, %v1444_v58  ;;  %v1528_v55 = vld [vmem:[#allocation20 + $0x758] sm:$0xff] }
 0x409   :  { %4600 = vmatpush2.bf16.msra.mxu0 %v11490_v14  ;;  %v1574_v14 = vld [vmem:[#allocation20 + $0x8c8] sm:$0xff]  ;;  %v1532_v58 = vld [vmem:[#allocation20 + $0x778] sm:$0xff] }
 0x40a   :  { %4601 = vmatprep.subr.bf16.mxu0 %v11483_v20  ;;  %v4650_v31 = vpop.f32.mrf.mxu1  ;;  %v11706_v20 = vcombine.low %v1582_v2, %v1586_v62  ;;  %v11699_v24 = vcombine.high %v1574_v14, %v1578_v18  ;;  %v1520_v62 = vld [vmem:[#allocation20 + $0x718] sm:$0xff] }
 0x40b   :  { %4943 = vmatpush1.bf16.msra.mxu1 %v11598_v22  ;;  %v1424_v22 = vld [vmem:[#allocation20 + $0x418] sm:$0xff] }
 0x40c   :  { %4944 = vmatprep.subr.bf16.mxu1 %v11591_v25  ;;  %v4651_v38 = vpop.f32.mrf.mxu1  ;;  %v11558_v25 = vcombine.low %v1432_v7, %v1436_v51  ;;  %v11551_v29 = vcombine.high %v1424_v22, %v1428_v23  ;;  %v1544_v31 = vld [vmem:[#allocation20 + $0x7d8] sm:$0xff]  ;;  %v11550_v36 = vcombine.low %v1424_v22, %v1428_v23  ;;  %v1662_v7 = vld [vmem:[#allocation20 + $0xb88] sm:$0xff] }
 0x40d   :  { %4602 = vmatpush2.bf16.msra.mxu0 %v11482_v27  ;;  %v1566_v27 = vld [vmem:[#allocation20 + $0x888] sm:$0xff] }
 0x40e   :  { %4653 = vmatprep.subr.bf16.mxu0 %v11731_v30  ;;  %v11698_v30 = vcombine.low %v1574_v14, %v1578_v18  ;;  %v11691_v35 = vcombine.high %v1566_v27, %v1570_v28  ;;  %v1562_v38 = vld [vmem:[#allocation20 + $0x868] sm:$0xff]  ;;  %v11690_v41 = vcombine.low %v1566_v27, %v1570_v28 }
 0x40f   :  { %4945 = vmatpush1.bf16.msra.mxu1 %v11590_v32  ;;  %v1548_v32 = vld [vmem:[#allocation20 + $0x7f8] sm:$0xff]  ;;  %v1666_v51 = vld [vmem:[#allocation20 + $0xba8] sm:$0xff] }
 0x410   :  { %4604 = vmatmul.mubr.bf16.vlgmr.msra.gmra.mxu0 %v14718_v10  ;;  %v12736_v50 = vpop.f32.mrf.mxu0  ;;  %4946 = vmatprep.subr.bf16.mxu1 %v11583_v11  ;;  %v1558_v11 = vld [vmem:[#allocation20 + $0x848] sm:$0xff]  ;;  %v11670_v46 = vcombine.low %v1544_v31, %v1548_v32  ;;  %v11787_v14 = vcombine.high %v1662_v7, %v1666_v51  ;;  %v11786_v23 = vcombine.low %v1662_v7, %v1666_v51 }
 0x411   :  { %4654 = vmatpush1.bf16.msra.mxu0 %v11730_v39  ;;  %4685 = vmatprep.mubr.bf16.mxu0 %v14720_v17  ;;  %v11671_v39 = vcombine.high %v1544_v31, %v1548_v32 }
 0x412   :  { %v12737_v59 = vpop.f32.mrf.mxu0  ;;  %4655 = vmatprep.subr.bf16.mxu0 %v11723_v44  ;;  %v1540_v44 = vld [vmem:[#allocation20 + $0x7b8] sm:$0xff] }
 0x413   :  { %v12738_v63 = vadd.f32 %v12737_v59, %v12736_v50  ;;  %4947 = vmatpush1.bf16.msra.mxu1 %v11582_v45  ;;  %v11683_v45 = vcombine.high %v1558_v11, %v1562_v38  ;;  %v1554_v50 = vld [vmem:[#allocation20 + $0x828] sm:$0xff] }
 0x414   :  { %v12739_v3 = vpop.f32.mrf.mxu0  ;;  %4948 = vmatprep.subr.bf16.mxu1 %v11575_v53  ;;  %v11663_v53 = vcombine.high %v1536_v43, %v1540_v44  ;;  %v11675_v59 = vcombine.high %v1550_v48, %v1554_v50  ;;  %v11674_v2 = vcombine.low %v1550_v48, %v1554_v50 }
 0x415   :  { %4656 = vmatpush1.bf16.msra.mxu0 %v11722_v54  ;;  %v14747_v6 = vadd.f32 %v12738_v63, %v11399_v61  ;;  %v11682_v54 = vcombine.low %v1558_v11, %v1562_v38  ;;  %v1670_v61 = vld [vmem:[#allocation20 + $0xbc8] sm:$0xff]  ;;  %v1524_v3 = vld [vmem:[#allocation20 + $0x738] sm:$0xff] }
 0x416   :  { %v12740_v52 = vpop.f32.mrf.mxu0  ;;  %4657 = vmatprep.subr.bf16.mxu0 %v11715_v60  ;;  %v11662_v60 = vcombine.low %v1536_v43, %v1540_v44  ;;  %v1674_v63 = vld [vmem:[#allocation20 + $0xbe8] sm:$0xff]  ;;  %v11646_v18 = vcombine.low %v1520_v62, %v1524_v3 }
 0x417   :  { %4949 = vmatpush1.bf16.msra.mxu1 %v11574_v1  ;;  %v7319_v9 = vmul.f32 %v14747_v6, %v14747_v6  ;;  %v11655_v1 = vcombine.high %v1528_v55, %v1532_v58  ;;  %v11647_v52 = vcombine.high %v1520_v62, %v1524_v3 }
 0x418   :  { %4950 = vmatprep.subr.bf16.mxu1 %v11567_v4  ;;  %v11795_v4 = vcombine.high %v1670_v61, %v1674_v63 }
 0x419   :  { %4658 = vmatpush1.bf16.msra.mxu0 %v11714_v5  ;;  %7320 = vadd.xlane.f32.xlu1 %v7319_v9  ;;  %v11654_v5 = vcombine.low %v1528_v55, %v1532_v58  ;;  %v1512_v9 = vld [vmem:[#allocation20 + $0x6d8] sm:$0xff] }
 0x41a   :  { %4659 = vmatprep.subr.bf16.mxu0 %v11707_v56  ;;  %v11794_v56 = vcombine.low %v1670_v61, %v1674_v63 }
 0x41b   :  { %4951 = vmatpush1.bf16.msra.mxu1 %v11566_v12  ;;  %v1516_v12 = vld [vmem:[#allocation20 + $0x6f8] sm:$0xff] }
 0x41c   :  { %4952 = vmatprep.subr.bf16.mxu1 %v11559_v19  ;;  %v1654_v19 = vld [vmem:[#allocation20 + $0xb48] sm:$0xff]  ;;  %v11639_v22 = vcombine.high %v1512_v9, %v1516_v12  ;;  %v11638_v28 = vcombine.low %v1512_v9, %v1516_v12 }
 0x41d   :  { %4660 = vmatpush1.bf16.msra.mxu0 %v11706_v20  ;;  %v1658_v20 = vld [vmem:[#allocation20 + $0xb68] sm:$0xff] }
 0x41e   :  { %4661 = vmatprep.subr.bf16.mxu0 %v11699_v24  ;;  %v1504_v24 = vld [vmem:[#allocation20 + $0x698] sm:$0xff]  ;;  %v11779_v27 = vcombine.high %v1654_v19, %v1658_v20  ;;  %v11778_v32 = vcombine.low %v1654_v19, %v1658_v20 }
 0x41f   :  { %4953 = vmatpush1.bf16.msra.mxu1 %v11558_v25  ;;  %v1508_v25 = vld [vmem:[#allocation20 + $0x6b8] sm:$0xff] }
 0x420   :  { %4954 = vmatprep.subr.bf16.mxu1 %v11551_v29  ;;  %v1646_v29 = vld [vmem:[#allocation20 + $0xb08] sm:$0xff]  ;;  %v11631_v31 = vcombine.high %v1504_v24, %v1508_v25  ;;  %v11630_v38 = vcombine.low %v1504_v24, %v1508_v25  ;;  %v1355_v24 = vld [vmem:[#allocation20 + $0x1f0] sm:$0xff] }
 0x421   :  { %4662 = vmatpush1.bf16.msra.mxu0 %v11698_v30  ;;  %v1650_v30 = vld [vmem:[#allocation20 + $0xb28] sm:$0xff] }
 0x422   :  { %4663 = vmatprep.subr.bf16.mxu0 %v11691_v35  ;;  %v1496_v35 = vld [vmem:[#allocation20 + $0x658] sm:$0xff]  ;;  %v11771_v11 = vcombine.high %v1646_v29, %v1650_v30  ;;  %v11770_v44 = vcombine.low %v1646_v29, %v1650_v30 }
 0x423   :  { %4955 = vmatpush1.bf16.msra.mxu1 %v11550_v36  ;;  %v1500_v36 = vld [vmem:[#allocation20 + $0x678] sm:$0xff] }
 0x424   :  { %4956 = vmatprep.subr.bf16.mxu1 %v11671_v39  ;;  %v1638_v39 = vld [vmem:[#allocation20 + $0xac8] sm:$0xff]  ;;  %v11623_v43 = vcombine.high %v1496_v35, %v1500_v36  ;;  %v11622_v50 = vcombine.low %v1496_v35, %v1500_v36  ;;  %v1712_v29 = vld [vmem:[#allocation20 + $0xd18] sm:$0xff]  ;;  %v1343_v35 = vld [vmem:[#allocation20 + $0x190] sm:$0xff] }
 0x425   :  { %4664 = vmatpush1.bf16.msra.mxu0 %v11690_v41  ;;  %v1642_v41 = vld [vmem:[#allocation20 + $0xae8] sm:$0xff]  ;;  %v1716_v30 = vld [vmem:[#allocation20 + $0xd38] sm:$0xff]  ;;  %v1347_v36 = vld [vmem:[#allocation20 + $0x1b0] sm:$0xff] }
 0x426   :  { %4665 = vmatprep.subr.bf16.mxu0 %v11683_v45  ;;  %v1488_v45 = vld [vmem:[#allocation20 + $0x618] sm:$0xff]  ;;  %v11763_v48 = vcombine.high %v1638_v39, %v1642_v41  ;;  %v11762_v58 = vcombine.low %v1638_v39, %v1642_v41 }
 0x427   :  { %4957 = vmatpush2.bf16.msra.mxu1 %v11670_v46  ;;  %v1492_v46 = vld [vmem:[#allocation20 + $0x638] sm:$0xff] }
 0x428   :  { %4958 = vmatprep.subr.bf16.mxu1 %v11663_v53  ;;  %v1630_v53 = vld [vmem:[#allocation20 + $0xa88] sm:$0xff]  ;;  %v11615_v55 = vcombine.high %v1488_v45, %v1492_v46  ;;  %v11614_v63 = vcombine.low %v1488_v45, %v1492_v46  ;;  %v1704_v39 = vld [vmem:[#allocation20 + $0xcd8] sm:$0xff]  ;;  %v1335_v45 = vld [vmem:[#allocation20 + $0x150] sm:$0xff] }
 0x429   :  { %4666 = vmatpush1.bf16.msra.mxu0 %v11682_v54  ;;  %v1634_v54 = vld [vmem:[#allocation20 + $0xaa8] sm:$0xff]  ;;  %v1708_v41 = vld [vmem:[#allocation20 + $0xcf8] sm:$0xff]  ;;  %v1339_v46 = vld [vmem:[#allocation20 + $0x170] sm:$0xff] }
 0x42a   :  { %4667 = vmatprep.subr.bf16.mxu0 %v11675_v59  ;;  %v1736_v59 = vld [vmem:[#allocation20 + $0xdd8] sm:$0xff]  ;;  %v11755_v61 = vcombine.high %v1630_v53, %v1634_v54  ;;  %v11754_v3 = vcombine.low %v1630_v53, %v1634_v54  ;;  %v11468_v53 = vcombine.low %v1343_v35, %v1347_v36 }
 0x42b   :  { %4959 = vmatpush2.bf16.msra.mxu1 %v11662_v60  ;;  %v1740_v60 = vld [vmem:[#allocation20 + $0xdf8] sm:$0xff] }
 0x42c   :  { %4960 = vmatprep.subr.bf16.mxu1 %v11655_v1  ;;  %v1622_v1 = vld [vmem:[#allocation20 + $0xa48] sm:$0xff]  ;;  %v11863_v62 = vcombine.high %v1736_v59, %v1740_v60  ;;  %v11862_v51 = vcombine.low %v1736_v59, %v1740_v60  ;;  %v1696_v54 = vld [vmem:[#allocation20 + $0xc98] sm:$0xff]  ;;  %v11461_v59 = vcombine.high %v1335_v45, %v1339_v46  ;;  %v11830_v60 = vcombine.low %v1704_v39, %v1708_v41 }
 0x42d   :  { %4668 = vmatpush1.bf16.msra.mxu0 %v11674_v2  ;;  %v1626_v2 = vld [vmem:[#allocation20 + $0xa68] sm:$0xff] }
 0x42e   :  { %4669 = vmatprep.subr.bf16.mxu0 %v11795_v4  ;;  %v1728_v4 = vld [vmem:[#allocation20 + $0xd98] sm:$0xff]  ;;  %v11747_v7 = vcombine.high %v1622_v1, %v1626_v2  ;;  %v11746_v12 = vcombine.low %v1622_v1, %v1626_v2 }
 0x42f   :  { %4961 = vmatpush2.bf16.msra.mxu1 %v11654_v5  ;;  %v1732_v5 = vld [vmem:[#allocation20 + $0xdb8] sm:$0xff] }
 0x430   :  { %4962 = vmatprep.subr.bf16.mxu1 %v11647_v52  ;;  %v1614_v52 = vld [vmem:[#allocation20 + $0xa08] sm:$0xff]  ;;  %v11855_v9 = vcombine.high %v1728_v4, %v1732_v5 }
 0x431   :  { %4670 = vmatpush2.bf16.msra.mxu0 %v11794_v56  ;;  %v1618_v56 = vld [vmem:[#allocation20 + $0xa28] sm:$0xff] }
 0x432   :  { %4671 = vmatprep.subr.bf16.mxu0 %v11787_v14  ;;  %v1720_v14 = vld [vmem:[#allocation20 + $0xd58] sm:$0xff]  ;;  %v11739_v20 = vcombine.high %v1614_v52, %v1618_v56 }
 0x433   :  { %4963 = vmatpush2.bf16.msra.mxu1 %v11646_v18  ;;  %v1724_v18 = vld [vmem:[#allocation20 + $0xd78] sm:$0xff] }
 0x434   :  { %4964 = vmatprep.subr.bf16.mxu1 %v11639_v22  ;;  %v11854_v22 = vcombine.low %v1728_v4, %v1732_v5  ;;  %v1692_v4 = vld [vmem:[#allocation20 + $0xc78] sm:$0xff] }
 0x435   :  { %4672 = vmatpush2.bf16.msra.mxu0 %v11786_v23  ;;  %v1351_v23 = vld [vmem:[#allocation20 + $0x1d0] sm:$0xff] }
 0x436   :  { %4673 = vmatprep.subr.bf16.mxu0 %v11779_v27  ;;  %v11847_v27 = vcombine.high %v1720_v14, %v1724_v18 }
 0x437   :  { %4965 = vmatpush2.bf16.msra.mxu1 %v11638_v28  ;;  %v11738_v28 = vcombine.low %v1614_v52, %v1618_v56  ;;  %v1319_v52 = vld [vmem:[#allocation20 + $0xd0] sm:$0xff] }
 0x438   :  { %4966 = vmatprep.subr.bf16.mxu1 %v11631_v31  ;;  %v11477_v31 = vcombine.high %v1351_v23, %v1355_v24  ;;  %v1323_v56 = vld [vmem:[#allocation20 + $0xf0] sm:$0xff] }
 0x439   :  { %4674 = vmatpush2.bf16.msra.mxu0 %v11778_v32  ;;  %v11846_v32 = vcombine.low %v1720_v14, %v1724_v18  ;;  %v1680_v14 = vld [vmem:[#allocation20 + $0xc18] sm:$0xff] }
 0x43a   :  { %4675 = vmatprep.subr.bf16.mxu0 %v11771_v11  ;;  %v11839_v11 = vcombine.high %v1712_v29, %v1716_v30  ;;  %v1684_v18 = vld [vmem:[#allocation20 + $0xc38] sm:$0xff] }
 0x43b   :  { %4967 = vmatpush2.bf16.msra.mxu1 %v11630_v38  ;;  %v11476_v38 = vcombine.low %v1351_v23, %v1355_v24  ;;  %v1311_v23 = vld [vmem:[#allocation20 + $0x90] sm:$0xff] }
 0x43c   :  { %4968 = vmatprep.subr.bf16.mxu1 %v11623_v43  ;;  %v11469_v43 = vcombine.high %v1343_v35, %v1347_v36  ;;  %v1315_v24 = vld [vmem:[#allocation20 + $0xb0] sm:$0xff] }
 0x43d   :  { %4676 = vmatpush2.bf16.msra.mxu0 %v11770_v44  ;;  %v11838_v44 = vcombine.low %v1712_v29, %v1716_v30  ;;  %v1800_v29 = vld [vmem:[#allocation20 + $0xfd8] sm:$0xff]  ;;  %v1307_v35 = vld [vmem:[#allocation20 + $0x70] sm:$0xff] }
 0x43e   :  { %4677 = vmatprep.subr.bf16.mxu0 %v11763_v48  ;;  %v1804_v30 = vld [vmem:[#allocation20 + $0xff8] sm:$0xff] }
 0x43f   :  { %4969 = vmatpush2.bf16.msra.mxu1 %v11622_v50  ;;  %v11831_v50 = vcombine.high %v1704_v39, %v1708_v41  ;;  %v11927_v36 = vcombine.high %v1800_v29, %v1804_v30  ;;  %v11926_v41 = vcombine.low %v1800_v29, %v1804_v30  ;;  %v1391_v29 = vld [vmem:[#allocation20 + $0x310] sm:$0xff] }
 0x440   :  { %4970 = vmatprep.subr.bf16.mxu1 %v11615_v55  ;;  %v1700_v55 = vld [vmem:[#allocation20 + $0xcb8] sm:$0xff]  ;;  %v1395_v30 = vld [vmem:[#allocation20 + $0x330] sm:$0xff] }
 0x441   :  { %4678 = vmatpush2.bf16.msra.mxu0 %v11762_v58  ;;  %v11823_v2 = vcombine.high %v1696_v54, %v1700_v55 }
 0x442   :  { %4679 = vmatprep.subr.bf16.mxu0 %v11755_v61  ;;  %v1327_v61 = vld [vmem:[#allocation20 + $0x110] sm:$0xff] }
 0x443   :  { %4971 = vmatpush2.bf16.msra.mxu1 %v11614_v63  ;;  %v1331_v63 = vld [vmem:[#allocation20 + $0x130] sm:$0xff] }
 0x444   :  { %5022 = vmatprep.subr.bf16.mxu1 %v11863_v62  ;;  %v11460_v62 = vcombine.low %v1335_v45, %v1339_v46 }
 0x445   :  { %4680 = vmatpush2.bf16.msra.mxu0 %v11754_v3  ;;  %v1688_v3 = vld [vmem:[#allocation20 + $0xc58] sm:$0xff] }
 0x446   :  { %4973 = vmatmul.mubr.bf16.vlgmr.msra.gmra.mxu1 %v14680_v34  ;;  %4681 = vmatprep.subr.bf16.mxu0 %v11747_v7  ;;  %v14752_v19 = vpop.f32.mrf.mxu1  ;;  %v11453_v7 = vcombine.high %v1327_v61, %v1331_v63 }
 0x447   :  { %5023 = vmatpush1.bf16.msra.mxu1 %v11862_v51  ;;  %5054 = vmatprep.mubr.bf16.mxu1 %v14682_v37  ;;  %v11822_v51 = vcombine.low %v1696_v54, %v1700_v55 }
 0x448   :  { %5024 = vmatprep.subr.bf16.mxu1 %v11855_v9  ;;  %v14755_v25 = vpop.f32.mrf.mxu1  ;;  %v11815_v9 = vcombine.high %v1688_v3, %v1692_v4 }
 0x449   :  { %4682 = vmatpush2.bf16.msra.mxu0 %v11746_v12  ;;  %v11452_v12 = vcombine.low %v1327_v61, %v1331_v63 }
 0x44a   :  { %4683 = vmatprep.subr.bf16.mxu0 %v11739_v20  ;;  %v4732_v34 = vpop.f32.mrf.mxu1  ;;  %v11445_v20 = vcombine.high %v1319_v52, %v1323_v56 }
 0x44b   :  { %5025 = vmatpush1.bf16.msra.mxu1 %v11854_v22  ;;  %v11814_v22 = vcombine.low %v1688_v3, %v1692_v4  ;;  %v11437_v34 = vcombine.high %v1311_v23, %v1315_v24  ;;  %v1407_v4 = vld [vmem:[#allocation20 + $0x390] sm:$0xff] }
 0x44c   :  { %5026 = vmatprep.subr.bf16.mxu1 %v11847_v27  ;;  %v4733_v37 = vpop.f32.mrf.mxu1  ;;  %v11807_v27 = vcombine.high %v1680_v14, %v1684_v18 }
 0x44d   :  { %4684 = vmatpush2.bf16.msra.mxu0 %v11738_v28  ;;  %v11444_v28 = vcombine.low %v1319_v52, %v1323_v56  ;;  %v11436_v37 = vcombine.low %v1311_v23, %v1315_v24  ;;  %v1768_v52 = vld [vmem:[#allocation20 + $0xed8] sm:$0xff] }
 0x44e   :  { %4735 = vmatprep.subr.bf16.mxu0 %v11477_v31  ;;  %v11806_v31 = vcombine.low %v1680_v14, %v1684_v18  ;;  %v1772_v56 = vld [vmem:[#allocation20 + $0xef8] sm:$0xff]  ;;  %v1399_v14 = vld [vmem:[#allocation20 + $0x350] sm:$0xff] }
 0x44f   :  { %5027 = vmatpush1.bf16.msra.mxu1 %v11846_v32  ;;  %v1303_v32 = vld [vmem:[#allocation20 + $0x50] sm:$0xff]  ;;  %v1760_v23 = vld [vmem:[#allocation20 + $0xe98] sm:$0xff] }
 0x450   :  { %v14757_v48 = vpop.f32.mrf.mxu0  ;;  %4686 = vmatmul.mubr.bf16.vlgmr.msra.gmra.mxu0 %v14735_v0  ;;  %5028 = vmatprep.subr.bf16.mxu1 %v11839_v11  ;;  %v1792_v11 = vld [vmem:[#allocation20 + $0xf98] sm:$0xff]  ;;  %v11429_v39 = vcombine.high %v1303_v32, %v1307_v35  ;;  %v11428_v46 = vcombine.low %v1303_v32, %v1307_v35  ;;  %v1403_v18 = vld [vmem:[#allocation20 + $0x370] sm:$0xff] }
 0x451   :  { %4736 = vmatpush1.bf16.msra.mxu0 %v11476_v38  ;;  %4767 = vmatprep.mubr.bf16.mxu0 %v14708_v49  ;;  %v1796_v38 = vld [vmem:[#allocation20 + $0xfb8] sm:$0xff] }
 0x452   :  { %v14761_v58 = vpop.f32.mrf.mxu0  ;;  %4737 = vmatprep.subr.bf16.mxu0 %v11469_v43  ;;  %v1295_v43 = vld [vmem:[#allocation20 + $0x10] sm:$0xff]  ;;  %v11919_v45 = vcombine.high %v1792_v11, %v1796_v38  ;;  %v11918_v55 = vcombine.low %v1792_v11, %v1796_v38  ;;  %v1764_v24 = vld [vmem:[#allocation20 + $0xeb8] sm:$0xff] }
 0x453   :  { %5029 = vmatpush1.bf16.msra.mxu1 %v11838_v44  ;;  %v1299_v44 = vld [vmem:[#allocation20 + $0x30] sm:$0xff]  ;;  %v1752_v32 = vld [vmem:[#allocation20 + $0xe58] sm:$0xff] }
 0x454   :  { %v4445_v1 = vpop.f32.mrf.mxu0  ;;  %5030 = vmatprep.subr.bf16.mxu1 %v11831_v50  ;;  %v1784_v50 = vld [vmem:[#allocation20 + $0xf58] sm:$0xff]  ;;  %v11421_v54 = vcombine.high %v1295_v43, %v1299_v44  ;;  %v11420_v63 = vcombine.low %v1295_v43, %v1299_v44  ;;  %v1383_v11 = vld [vmem:[#allocation20 + $0x2d0] sm:$0xff] }
 0x455   :  { %4738 = vmatpush1.bf16.msra.mxu0 %v11468_v53  ;;  %v1788_v53 = vld [vmem:[#allocation20 + $0xf78] sm:$0xff]  ;;  %v1387_v38 = vld [vmem:[#allocation20 + $0x2f0] sm:$0xff] }
 0x456   :  { %v4446_v5 = vpop.f32.mrf.mxu0  ;;  %4739 = vmatprep.subr.bf16.mxu0 %v11461_v59  ;;  %v1415_v59 = vld [vmem:[#allocation20 + $0x3d0] sm:$0xff]  ;;  %v11911_v61 = vcombine.high %v1784_v50, %v1788_v53  ;;  %v1776_v1 = vld [vmem:[#allocation20 + $0xf18] sm:$0xff]  ;;  %v11910_v3 = vcombine.low %v1784_v50, %v1788_v53 }
 0x457   :  { %5031 = vmatpush1.bf16.msra.mxu1 %v11830_v60  ;;  %v1419_v60 = vld [vmem:[#allocation20 + $0x3f0] sm:$0xff]  ;;  %v1756_v35 = vld [vmem:[#allocation20 + $0xe78] sm:$0xff] }
 0x458   :  { %5032 = vmatprep.subr.bf16.mxu1 %v11823_v2  ;;  %v1780_v2 = vld [vmem:[#allocation20 + $0xf38] sm:$0xff]  ;;  %v1411_v5 = vld [vmem:[#allocation20 + $0x3b0] sm:$0xff] }
 0x459   :  { %4740 = vmatpush1.bf16.msra.mxu0 %v11460_v62  ;;  %v11541_v62 = vcombine.high %v1415_v59, %v1419_v60  ;;  %v1744_v43 = vld [vmem:[#allocation20 + $0xe18] sm:$0xff]  ;;  %v1375_v50 = vld [vmem:[#allocation20 + $0x290] sm:$0xff] }
 0x45a   :  { %4741 = vmatprep.subr.bf16.mxu0 %v11453_v7  ;;  %v11903_v7 = vcombine.high %v1776_v1, %v1780_v2  ;;  %v1748_v44 = vld [vmem:[#allocation20 + $0xe38] sm:$0xff]  ;;  %v1379_v53 = vld [vmem:[#allocation20 + $0x2b0] sm:$0xff] }
 0x45b   :  { %5033 = vmatpush1.bf16.msra.mxu1 %v11822_v51  ;;  %v11540_v51 = vcombine.low %v1415_v59, %v1419_v60  ;;  %v11501_v59 = vcombine.high %v1375_v50, %v1379_v53  ;;  %v11870_v60 = vcombine.low %v1744_v43, %v1748_v44 }
 0x45c   :  { %5034 = vmatprep.subr.bf16.mxu1 %v11815_v9  ;;  %v11533_v9 = vcombine.high %v1407_v4, %v1411_v5 }
 0x45d   :  { %4742 = vmatpush1.bf16.msra.mxu0 %v11452_v12  ;;  %v11902_v12 = vcombine.low %v1776_v1, %v1780_v2  ;;  %v12995_v1 = vld [vmem:[#allocation23 + $0x2e4] ss:$16 sps:$4 sm:$0xff]   ;;  %v11500_v2 = vcombine.low %v1375_v50, %v1379_v53 }
 0x45e   :  { %4743 = vmatprep.subr.bf16.mxu0 %v11445_v20  ;;  %v11895_v20 = vcombine.high %v1768_v52, %v1772_v56 }
 0x45f   :  { %5035 = vmatpush1.bf16.msra.mxu1 %v11814_v22  ;;  %v11532_v22 = vcombine.low %v1407_v4, %v1411_v5  ;;  %v1363_v4 = vld [vmem:[#allocation20 + $0x230] sm:$0xff]  ;;  %v12993_v5 = vld [vmem:[#allocation23 + $0x2e0] ss:$16 sps:$4 sm:$0xff]  }
 0x460   :  { %5036 = vmatprep.subr.bf16.mxu1 %v11807_v27  ;;  %v11525_v27 = vcombine.high %v1399_v14, %v1403_v18 }
 0x461   :  { %4744 = vmatpush1.bf16.msra.mxu0 %v11444_v28  ;;  %v11894_v28 = vcombine.low %v1768_v52, %v1772_v56 }
 0x462   :  { %4745 = vmatprep.subr.bf16.mxu0 %v11437_v34  ;;  %v11887_v34 = vcombine.high %v1760_v23, %v1764_v24 }
 0x463   :  { %5037 = vmatpush1.bf16.msra.mxu1 %v11806_v31  ;;  %v11524_v31 = vcombine.low %v1399_v14, %v1403_v18  ;;  %v1607_v14 = vld [vmem:[#allocation20 + $0x9d0] sm:$0xff] }
 0x464   :  { %5038 = vmatprep.subr.bf16.mxu1 %v11927_v36  ;;  %v11517_v36 = vcombine.high %v1391_v29, %v1395_v30  ;;  %v1611_v18 = vld [vmem:[#allocation20 + $0x9f0] sm:$0xff] }
 0x465   :  { %4746 = vmatpush1.bf16.msra.mxu0 %v11436_v37  ;;  %v11886_v37 = vcombine.low %v1760_v23, %v1764_v24  ;;  %v13001_v23 = vld [vmem:[#allocation23 + $0x2a4] ss:$16 sps:$4 sm:$0xff]  }
 0x466   :  { %4747 = vmatprep.subr.bf16.mxu0 %v11429_v39  ;;  %v11879_v39 = vcombine.high %v1752_v32, %v1756_v35 }
 0x467   :  { %5039 = vmatpush2.bf16.msra.mxu1 %v11926_v41  ;;  %v11516_v41 = vcombine.low %v1391_v29, %v1395_v30  ;;  %v1599_v30 = vld [vmem:[#allocation20 + $0x990] sm:$0xff] }
 0x468   :  { %5040 = vmatprep.subr.bf16.mxu1 %v11919_v45  ;;  %v11509_v45 = vcombine.high %v1383_v11, %v1387_v38 }
 0x469   :  { %4748 = vmatpush1.bf16.msra.mxu0 %v11428_v46  ;;  %v11878_v46 = vcombine.low %v1752_v32, %v1756_v35  ;;  %v13004_v35 = vld [vmem:[#allocation23 + $0x284] ss:$16 sps:$4 sm:$0xff]  }
 0x46a   :  { %4749 = vmatprep.subr.bf16.mxu0 %v11421_v54  ;;  %v11871_v54 = vcombine.high %v1744_v43, %v1748_v44  ;;  %v13002_v43 = vld [vmem:[#allocation23 + $0x280] ss:$16 sps:$4 sm:$0xff]   ;;  %v13007_v44 = vld [vmem:[#allocation23 + $0x264] ss:$16 sps:$4 sm:$0xff]  }
 0x46b   :  { %5041 = vmatpush2.bf16.msra.mxu1 %v11918_v55  ;;  %v11508_v55 = vcombine.low %v1383_v11, %v1387_v38 }
 0x46c   :  { %5042 = vmatprep.subr.bf16.mxu1 %v11911_v61  ;;  %v1367_v61 = vld [vmem:[#allocation20 + $0x250] sm:$0xff] }
 0x46d   :  { %4750 = vmatpush1.bf16.msra.mxu0 %v11420_v63  ;;  %v1371_v63 = vld [vmem:[#allocation20 + $0x270] sm:$0xff] }
 0x46e   :  { %4751 = vmatprep.subr.bf16.mxu0 %v11541_v62  ;;  %v11493_v62 = vcombine.high %v1367_v61, %v1371_v63  ;;  %v11492_v52 = vcombine.low %v1367_v61, %v1371_v63  ;;  %v13010_v61 = vld [vmem:[#allocation23 + $0x244] ss:$16 sps:$4 sm:$0xff]  }
 0x46f   :  { %5043 = vmatpush2.bf16.msra.mxu1 %v11910_v3  ;;  %v1359_v3 = vld [vmem:[#allocation20 + $0x210] sm:$0xff] }
 0x470   :  { %5044 = vmatprep.subr.bf16.mxu1 %v11903_v7  ;;  %v14763_v7 = vld [vmem:[#allocation22] sm:$0xff] }
 0x471   :  { %4752 = vmatpush2.bf16.msra.mxu0 %v11540_v51  ;;  %v12998_v51 = vld [vmem:[#allocation23 + $0x2c4] ss:$16 sps:$4 sm:$0xff]   ;;  %v1814_v24 = vrot.slane %v14763_v7, %v14668_v16 }
 0x472   :  { %4753 = vmatprep.subr.bf16.mxu0 %v11533_v9  ;;  %v11485_v9 = vcombine.high %v1359_v3, %v1363_v4 }
 0x473   :  { %5045 = vmatpush2.bf16.msra.mxu1 %v11902_v12  ;;  %v1810_v12 = vrot.slane %v14763_v7, %v14665_v15 }
 0x474   :  { %5046 = vmatprep.subr.bf16.mxu1 %v11895_v20  ;;  %v12996_v20 = vld [vmem:[#allocation23 + $0x2c0] ss:$16 sps:$4 sm:$0xff]  }
 0x475   :  { %4754 = vmatpush2.bf16.msra.mxu0 %v11532_v22  ;;  %v4442_v29 = vadd.f32 %v14757_v48, %v1810_v12  ;;  %v13011_v12 = vld [vmem:[#allocation23 + $0x220] ss:$16 sps:$4 sm:$0xff]  }
 0x476   :  { %4755 = vmatprep.subr.bf16.mxu0 %v11525_v27  ;;  %v11484_v27 = vcombine.low %v1359_v3, %v1363_v4  ;;  %v13008_v3 = vld [vmem:[#allocation23 + $0x240] ss:$16 sps:$4 sm:$0xff]   ;;  %v13013_v4 = vld [vmem:[#allocation23 + $0x224] ss:$16 sps:$4 sm:$0xff]  }
 0x477   :  { %5047 = vmatpush2.bf16.msra.mxu1 %v11894_v28  ;;  %v4483_v38 = vadd.f32 %v14724_v42, %v4442_v29 }
 0x478   :  { %5048 = vmatprep.subr.bf16.mxu1 %v11887_v34  ;;  %v1603_v34 = vld [vmem:[#allocation20 + $0x9b0] sm:$0xff] }
 0x479   :  { %4756 = vmatpush2.bf16.msra.mxu0 %v11524_v31  ;;  %v12999_v31 = vld [vmem:[#allocation23 + $0x2a0] ss:$16 sps:$4 sm:$0xff]   ;;  %v11725_v11 = vcombine.high %v1599_v30, %v1603_v34 }
 0x47a   :  { %4757 = vmatprep.subr.bf16.mxu0 %v11517_v36  ;;  %v4444_v36 = vadd.f32 %v14761_v58, %v1814_v24  ;;  %v1563_v24 = vld [vmem:[#allocation20 + $0x870] sm:$0xff] }
 0x47b   :  { %5049 = vmatpush2.bf16.msra.mxu1 %v11886_v37  ;;  %v11732_v37 = vcombine.low %v1607_v14, %v1611_v18 }
 0x47c   :  { %5050 = vmatprep.subr.bf16.mxu1 %v11879_v39  ;;  %v1591_v39 = vld [vmem:[#allocation20 + $0x950] sm:$0xff]  ;;  %v4485_v58 = vadd.f32 %v14726_v47, %v4444_v36 }
 0x47d   :  { %4758 = vmatpush2.bf16.msra.mxu0 %v11516_v41  ;;  %v1595_v41 = vld [vmem:[#allocation20 + $0x970] sm:$0xff] }
 0x47e   :  { %4759 = vmatprep.subr.bf16.mxu0 %v11509_v45  ;;  %v11717_v42 = vcombine.high %v1591_v39, %v1595_v41  ;;  %v11716_v63 = vcombine.low %v1591_v39, %v1595_v41  ;;  %v1579_v47 = vld [vmem:[#allocation20 + $0x8f0] sm:$0xff]  ;;  %v13025_v39 = vld [vmem:[#allocation23 + $0x3a4] ss:$16 sps:$4 sm:$0xff]  }
 0x47f   :  { %5051 = vmatpush2.bf16.msra.mxu1 %v11878_v46  ;;  %v11724_v46 = vcombine.low %v1599_v30, %v1603_v34  ;;  %v1551_v30 = vld [vmem:[#allocation20 + $0x810] sm:$0xff] }
 0x480   :  { %5052 = vmatprep.subr.bf16.mxu1 %v11871_v54  ;;  %v1583_v54 = vld [vmem:[#allocation20 + $0x910] sm:$0xff] }
 0x481   :  { %4760 = vmatpush2.bf16.msra.mxu0 %v11508_v55  ;;  %v1587_v55 = vld [vmem:[#allocation20 + $0x930] sm:$0xff] }
 0x482   :  { %4761 = vmatprep.subr.bf16.mxu0 %v11501_v59  ;;  %v13005_v59 = vld [vmem:[#allocation23 + $0x260] ss:$16 sps:$4 sm:$0xff]   ;;  %v1555_v34 = vld [vmem:[#allocation20 + $0x830] sm:$0xff] }
 0x483   :  { %5053 = vmatpush2.bf16.msra.mxu1 %v11870_v60  ;;  %v11677_v36 = vcombine.high %v1551_v30, %v1555_v34  ;;  %v11676_v41 = vcombine.low %v1551_v30, %v1555_v34  ;;  %v13038_v30 = vld [vmem:[#allocation23 + $0x300] ss:$16 sps:$4 sm:$0xff]  }
 0x484   :  { %6678 = vmatprep.subr.bf16.mxu1 %v12995_v1 }
 0x485   :  { %4762 = vmatpush2.bf16.msra.mxu0 %v11500_v2  ;;  %v11709_v2 = vcombine.high %v1583_v54, %v1587_v55 }
 0x486   :  { %v14765_v56 = vpop.f32.mrf.mxu1  ;;  %5055 = vmatmul.mubr.bf16.vlgmr.msra.gmra.mxu1 %v14695_v57  ;;  %4763 = vmatprep.subr.bf16.mxu0 %v11493_v62  ;;  %v11733_v57 = vcombine.high %v1607_v14, %v1611_v18  ;;  %v1575_v62 = vld [vmem:[#allocation20 + $0x8d0] sm:$0xff]  ;;  %v13016_v14 = vld [vmem:[#allocation23 + $0x204] ss:$16 sps:$4 sm:$0xff]  }
 0x487   :  { %6679 = vmatpush1.bf16.msra.mxu1 %v12993_v5  ;;  %v11708_v5 = vcombine.low %v1583_v54, %v1587_v55  ;;  %v11700_v18 = vcombine.low %v1575_v62, %v1579_v47  ;;  %v1655_v54 = vld [vmem:[#allocation20 + $0xb50] sm:$0xff] }
 0x488   :  { %v14770_v22 = vpop.f32.mrf.mxu1  ;;  %6680 = vmatprep.subr.bf16.mxu1 %v12998_v51  ;;  %v11701_v51 = vcombine.high %v1575_v62, %v1579_v47  ;;  %v1659_v55 = vld [vmem:[#allocation20 + $0xb70] sm:$0xff]  ;;  %v13029_v62 = vld [vmem:[#allocation23 + $0x360] ss:$16 sps:$4 sm:$0xff]   ;;  %v13034_v47 = vld [vmem:[#allocation23 + $0x344] ss:$16 sps:$4 sm:$0xff]  }
 0x489   :  { %4764 = vmatpush2.bf16.msra.mxu0 %v11492_v52  ;;  %v1567_v52 = vld [vmem:[#allocation20 + $0x890] sm:$0xff] }
 0x48a   :  { %v4814_v28 = vpop.f32.mrf.mxu1  ;;  %4765 = vmatprep.subr.bf16.mxu0 %v11485_v9  ;;  %v1571_v9 = vld [vmem:[#allocation20 + $0x8b0] sm:$0xff] }
 0x48b   :  { %6681 = vmatpush1.bf16.msra.mxu1 %v12996_v20  ;;  %v11693_v20 = vcombine.high %v1567_v52, %v1571_v9  ;;  %v13019_v28 = vld [vmem:[#allocation23 + $0x3e4] ss:$16 sps:$4 sm:$0xff]  }
 0x48c   :  { %v4815_v32 = vpop.f32.mrf.mxu1  ;;  %6682 = vmatprep.subr.bf16.mxu1 %v13001_v23  ;;  %v1559_v23 = vld [vmem:[#allocation20 + $0x850] sm:$0xff] }
 0x48d   :  { %4766 = vmatpush2.bf16.msra.mxu0 %v11484_v27  ;;  %v13014_v27 = vld [vmem:[#allocation23 + $0x200] ss:$16 sps:$4 sm:$0xff]   ;;  %v11685_v29 = vcombine.high %v1559_v23, %v1563_v24  ;;  %v13022_v32 = vld [vmem:[#allocation23 + $0x3c4] ss:$16 sps:$4 sm:$0xff]  }
 0x48e   :  { %4817 = vmatprep.subr.bf16.mxu0 %v11733_v57  ;;  %v11692_v57 = vcombine.low %v1567_v52, %v1571_v9  ;;  %v13032_v52 = vld [vmem:[#allocation23 + $0x340] ss:$16 sps:$4 sm:$0xff]   ;;  %v13037_v9 = vld [vmem:[#allocation23 + $0x324] ss:$16 sps:$4 sm:$0xff]  }
 0x48f   :  { %6683 = vmatpush1.bf16.msra.mxu1 %v12999_v31  ;;  %v13017_v31 = vld [vmem:[#allocation23 + $0x3e0] ss:$16 sps:$4 sm:$0xff]  }
 0x490   :  { %v4523_v48 = vpop.f32.mrf.mxu0  ;;  %4768 = vmatmul.mubr.bf16.vlgmr.msra.gmra.mxu0 %v14718_v10  ;;  %6684 = vmatprep.subr.bf16.mxu1 %v13004_v35  ;;  %v11684_v35 = vcombine.low %v1559_v23, %v1563_v24  ;;  %v13035_v23 = vld [vmem:[#allocation23 + $0x320] ss:$16 sps:$4 sm:$0xff]   ;;  %v13040_v24 = vld [vmem:[#allocation23 + $0x304] ss:$16 sps:$4 sm:$0xff]  }
 0x491   :  { %v14778_v45 = vadd.f32 %v4523_v48, %v4483_v38  ;;  %4818 = vmatpush1.bf16.msra.mxu0 %v11732_v37  ;;  %4849 = vmatprep.mubr.bf16.mxu0 %v14720_v17  ;;  %v1671_v37 = vld [vmem:[#allocation20 + $0xbd0] sm:$0xff]  ;;  %v13020_v38 = vld [vmem:[#allocation23 + $0x3c0] ss:$16 sps:$4 sm:$0xff]  }
 0x492   :  { %v4525_v50 = vpop.f32.mrf.mxu0  ;;  %4819 = vmatprep.subr.bf16.mxu0 %v11725_v11  ;;  %v1675_v11 = vld [vmem:[#allocation20 + $0xbf0] sm:$0xff] }
 0x493   :  { %v14782_v53 = vadd.f32 %v4525_v50, %v4485_v58  ;;  %6685 = vmatpush1.bf16.msra.mxu1 %v13002_v43  ;;  %v11797_v43 = vcombine.high %v1671_v37, %v1675_v11  ;;  %v1663_v48 = vld [vmem:[#allocation20 + $0xb90] sm:$0xff]  ;;  %v13023_v58 = vld [vmem:[#allocation23 + $0x3a0] ss:$16 sps:$4 sm:$0xff]   ;;  %v11796_v50 = vcombine.low %v1671_v37, %v1675_v11 }
 0x494   :  { %v4527_v60 = vpop.f32.mrf.mxu0  ;;  %6686 = vmatprep.subr.bf16.mxu1 %v13007_v44  ;;  %v1667_v44 = vld [vmem:[#allocation20 + $0xbb0] sm:$0xff] }
 0x495   :  { %4820 = vmatpush1.bf16.msra.mxu0 %v11724_v46  ;;  %v13028_v46 = vld [vmem:[#allocation23 + $0x384] ss:$16 sps:$4 sm:$0xff]  }
 0x496   :  { %v4528_v1 = vpop.f32.mrf.mxu0  ;;  %4821 = vmatprep.subr.bf16.mxu0 %v11717_v42  ;;  %v11789_v42 = vcombine.high %v1663_v48, %v1667_v44  ;;  %v13031_v60 = vld [vmem:[#allocation23 + $0x364] ss:$16 sps:$4 sm:$0xff]  }
 0x497   :  { %6687 = vmatpush1.bf16.msra.mxu1 %v13005_v59  ;;  %v13026_v59 = vld [vmem:[#allocation23 + $0x380] ss:$16 sps:$4 sm:$0xff]   ;;  %v1647_v1 = vld [vmem:[#allocation20 + $0xb10] sm:$0xff] }
 0x498   :  { %6688 = vmatprep.subr.bf16.mxu1 %v13010_v61  ;;  %v11788_v61 = vcombine.low %v1663_v48, %v1667_v44 }
 0x499   :  { %4822 = vmatpush1.bf16.msra.mxu0 %v11716_v63  ;;  %v11781_v63 = vcombine.high %v1655_v54, %v1659_v55 }
 0x49a   :  { %4823 = vmatprep.subr.bf16.mxu0 %v11709_v2  ;;  %v1651_v2 = vld [vmem:[#allocation20 + $0xb30] sm:$0xff] }
 0x49b   :  { %6689 = vmatpush1.bf16.msra.mxu1 %v13008_v3  ;;  %v11780_v3 = vcombine.low %v1655_v54, %v1659_v55  ;;  %v1336_v55 = vld [vmem:[#allocation20 + $0x158] sm:$0xff] }
 0x49c   :  { %6690 = vmatprep.subr.bf16.mxu1 %v13013_v4  ;;  %v11773_v4 = vcombine.high %v1647_v1, %v1651_v2 }
 0x49d   :  { %4824 = vmatpush1.bf16.msra.mxu0 %v11708_v5  ;;  %v1639_v5 = vld [vmem:[#allocation20 + $0xad0] sm:$0xff] }
 0x49e   :  { %4825 = vmatprep.subr.bf16.mxu0 %v11701_v51  ;;  %v1643_v51 = vld [vmem:[#allocation20 + $0xaf0] sm:$0xff] }
 0x49f   :  { %6691 = vmatpush1.bf16.msra.mxu1 %v13011_v12  ;;  %v11772_v12 = vcombine.low %v1647_v1, %v1651_v2  ;;  %v1328_v2 = vld [vmem:[#allocation20 + $0x118] sm:$0xff] }
 0x4a0   :  { %6692 = vmatprep.subr.bf16.mxu1 %v13016_v14  ;;  %v11765_v14 = vcombine.high %v1639_v5, %v1643_v51 }
 0x4a1   :  { %4826 = vmatpush1.bf16.msra.mxu0 %v11700_v18  ;;  %v1631_v18 = vld [vmem:[#allocation20 + $0xa90] sm:$0xff] }
 0x4a2   :  { %4827 = vmatprep.subr.bf16.mxu0 %v11693_v20  ;;  %v1635_v20 = vld [vmem:[#allocation20 + $0xab0] sm:$0xff] }
 0x4a3   :  { %6693 = vmatpush1.bf16.msra.mxu1 %v13014_v27  ;;  %v11764_v27 = vcombine.low %v1639_v5, %v1643_v51  ;;  %v11756_v34 = vcombine.low %v1631_v18, %v1635_v20  ;;  %v1320_v51 = vld [vmem:[#allocation20 + $0xd8] sm:$0xff] }
 0x4a4   :  { %6694 = vmatprep.subr.bf16.mxu1 %v13019_v28  ;;  %v11757_v28 = vcombine.high %v1631_v18, %v1635_v20 }
 0x4a5   :  { %4828 = vmatpush1.bf16.msra.mxu0 %v11692_v57  ;;  %v1623_v57 = vld [vmem:[#allocation20 + $0xa50] sm:$0xff] }
 0x4a6   :  { %4829 = vmatprep.subr.bf16.mxu0 %v11685_v29  ;;  %v1627_v29 = vld [vmem:[#allocation20 + $0xa70] sm:$0xff] }
 0x4a7   :  { %6695 = vmatpush2.bf16.msra.mxu1 %v13017_v31  ;;  %v11749_v31 = vcombine.high %v1623_v57, %v1627_v29 }
 0x4a8   :  { %6696 = vmatprep.subr.bf16.mxu1 %v13022_v32  ;;  %v1615_v32 = vld [vmem:[#allocation20 + $0xa10] sm:$0xff] }
 0x4a9   :  { %4830 = vmatpush1.bf16.msra.mxu0 %v11684_v35  ;;  %v1619_v35 = vld [vmem:[#allocation20 + $0xa30] sm:$0xff] }
 0x4aa   :  { %4831 = vmatprep.subr.bf16.mxu0 %v11677_v36  ;;  %v11748_v36 = vcombine.low %v1623_v57, %v1627_v29  ;;  %v11741_v11 = vcombine.high %v1615_v32, %v1619_v35  ;;  %v1296_v57 = vld [vmem:[#allocation20 + $0x18] sm:$0xff] }
 0x4ab   :  { %6697 = vmatpush2.bf16.msra.mxu1 %v13020_v38  ;;  %v1352_v38 = vld [vmem:[#allocation20 + $0x1d8] sm:$0xff] }
 0x4ac   :  { %6698 = vmatprep.subr.bf16.mxu1 %v13025_v39  ;;  %v1356_v39 = vld [vmem:[#allocation20 + $0x1f8] sm:$0xff] }
 0x4ad   :  { %4832 = vmatpush1.bf16.msra.mxu0 %v11676_v41  ;;  %v11479_v44 = vcombine.high %v1352_v38, %v1356_v39  ;;  %v1300_v29 = vld [vmem:[#allocation20 + $0x38] sm:$0xff] }
 0x4ae   :  { %4833 = vmatprep.subr.bf16.mxu0 %v11797_v43  ;;  %v11740_v43 = vcombine.low %v1615_v32, %v1619_v35  ;;  %v1420_v32 = vld [vmem:[#allocation20 + $0x3f8] sm:$0xff]  ;;  %v11422_v35 = vcombine.low %v1296_v57, %v1300_v29 }
 0x4af   :  { %6699 = vmatpush2.bf16.msra.mxu1 %v13023_v58  ;;  %v1344_v58 = vld [vmem:[#allocation20 + $0x198] sm:$0xff] }
 0x4b0   :  { %6700 = vmatprep.subr.bf16.mxu1 %v13028_v46  ;;  %v1348_v46 = vld [vmem:[#allocation20 + $0x1b8] sm:$0xff] }
 0x4b1   :  { %4834 = vmatpush2.bf16.msra.mxu0 %v11796_v50  ;;  %v11471_v54 = vcombine.high %v1344_v58, %v1348_v46 }
 0x4b2   :  { %4835 = vmatprep.subr.bf16.mxu0 %v11789_v42  ;;  %v11478_v42 = vcombine.low %v1352_v38, %v1356_v39  ;;  %v1412_v38 = vld [vmem:[#allocation20 + $0x3b8] sm:$0xff] }
 0x4b3   :  { %6701 = vmatpush2.bf16.msra.mxu1 %v13026_v59  ;;  %v1340_v59 = vld [vmem:[#allocation20 + $0x178] sm:$0xff] }
 0x4b4   :  { %6702 = vmatprep.subr.bf16.mxu1 %v13031_v60  ;;  %v11463_v1 = vcombine.high %v1336_v55, %v1340_v59 }
 0x4b5   :  { %4836 = vmatpush2.bf16.msra.mxu0 %v11788_v61  ;;  %v11470_v61 = vcombine.low %v1344_v58, %v1348_v46 }
 0x4b6   :  { %4837 = vmatprep.subr.bf16.mxu0 %v11781_v63 }
 0x4b7   :  { %6703 = vmatpush2.bf16.msra.mxu1 %v13029_v62  ;;  %v1332_v62 = vld [vmem:[#allocation20 + $0x138] sm:$0xff] }
 0x4b8   :  { %6704 = vmatprep.subr.bf16.mxu1 %v13034_v47  ;;  %v11455_v5 = vcombine.high %v1328_v2, %v1332_v62 }
 0x4b9   :  { %4838 = vmatpush2.bf16.msra.mxu0 %v11780_v3  ;;  %v11462_v3 = vcombine.low %v1336_v55, %v1340_v59  ;;  %v1384_v59 = vld [vmem:[#allocation20 + $0x2d8] sm:$0xff] }
 0x4ba   :  { %4839 = vmatprep.subr.bf16.mxu0 %v11773_v4 }
 0x4bb   :  { %6705 = vmatpush2.bf16.msra.mxu1 %v13032_v52  ;;  %v1324_v52 = vld [vmem:[#allocation20 + $0xf8] sm:$0xff] }
 0x4bc   :  { %6706 = vmatprep.subr.bf16.mxu1 %v13037_v9  ;;  %v11454_v9 = vcombine.low %v1328_v2, %v1332_v62  ;;  %v11446_v18 = vcombine.low %v1320_v51, %v1324_v52  ;;  %v1376_v62 = vld [vmem:[#allocation20 + $0x298] sm:$0xff] }
 0x4bd   :  { %4840 = vmatpush2.bf16.msra.mxu0 %v11772_v12  ;;  %v11447_v12 = vcombine.high %v1320_v51, %v1324_v52  ;;  %v1372_v51 = vld [vmem:[#allocation20 + $0x278] sm:$0xff] }
 0x4be   :  { %4841 = vmatprep.subr.bf16.mxu0 %v11765_v14  ;;  %v1316_v14 = vld [vmem:[#allocation20 + $0xb8] sm:$0xff] }
 0x4bf   :  { %6707 = vmatpush2.bf16.msra.mxu1 %v13035_v23  ;;  %v1304_v23 = vld [vmem:[#allocation20 + $0x58] sm:$0xff] }
 0x4c0   :  { %6708 = vmatprep.subr.bf16.mxu1 %v13040_v24  ;;  %v1308_v24 = vld [vmem:[#allocation20 + $0x78] sm:$0xff] }
 0x4c1   :  { %4842 = vmatpush2.bf16.msra.mxu0 %v11764_v27 }
 0x4c2   :  { %4843 = vmatprep.subr.bf16.mxu0 %v11757_v28  ;;  %v11431_v28 = vcombine.high %v1304_v23, %v1308_v24 }
 0x4c3   :  { %6709 = vmatpush2.bf16.msra.mxu1 %v13038_v30  ;;  %v11430_v30 = vcombine.low %v1304_v23, %v1308_v24 }
 0x4c5   :  { %4844 = vmatpush2.bf16.msra.mxu0 %v11756_v34  ;;  %v11423_v34 = vcombine.high %v1296_v57, %v1300_v29  ;;  %v1612_v57 = vld [vmem:[#allocation20 + $0x9f8] sm:$0xff] }
 0x4c6   :  { %v14784_v37 = vpop.f32.mrf.mxu1  ;;  %4845 = vmatprep.subr.bf16.mxu0 %v11749_v31  ;;  %v1416_v31 = vld [vmem:[#allocation20 + $0x3d8] sm:$0xff] }
 0x4c7   :  { %v11542_v39 = vcombine.low %v1416_v31, %v1420_v32 }
 0x4c8   :  { %v14786_v41 = vpop.f32.mrf.mxu1 }
 0x4c9   :  { %4846 = vmatpush2.bf16.msra.mxu0 %v11748_v36  ;;  %v11543_v36 = vcombine.high %v1416_v31, %v1420_v32 }
 0x4ca   :  { %v4896_v48 = vpop.f32.mrf.mxu1  ;;  %4847 = vmatprep.subr.bf16.mxu0 %v11741_v11  ;;  %v1408_v11 = vld [vmem:[#allocation20 + $0x398] sm:$0xff] }
 0x4cb   :  { %v1400_v48 = vld [vmem:[#allocation20 + $0x358] sm:$0xff]  ;;  %v11534_v58 = vcombine.low %v1408_v11, %v1412_v38 }
 0x4cc   :  { %v4897_v50 = vpop.f32.mrf.mxu1 }
 0x4cd   :  { %4848 = vmatpush2.bf16.msra.mxu0 %v11740_v43  ;;  %v11535_v43 = vcombine.high %v1408_v11, %v1412_v38  ;;  %v1392_v50 = vld [vmem:[#allocation20 + $0x318] sm:$0xff] }
 0x4ce   :  { %4899 = vmatprep.subr.bf16.mxu0 %v11479_v44  ;;  %v1404_v44 = vld [vmem:[#allocation20 + $0x378] sm:$0xff] }
 0x4cf   :  { %v11527_v46 = vcombine.high %v1400_v48, %v1404_v44  ;;  %v1604_v11 = vld [vmem:[#allocation20 + $0x9b8] sm:$0xff] }
 0x4d0   :  { %v14788_v60 = vpop.f32.mrf.mxu0  ;;  %4850 = vmatmul.mubr.bf16.vlgmr.msra.gmra.mxu0 %v14735_v0 }
 0x4d1   :  { %4900 = vmatpush1.bf16.msra.mxu0 %v11478_v42  ;;  %4931 = vmatprep.mubr.bf16.mxu0 %v14708_v49  ;;  %v1312_v49 = vld [vmem:[#allocation20 + $0x98] sm:$0xff] }
 0x4d2   :  { %v14792_v63 = vpop.f32.mrf.mxu0  ;;  %4901 = vmatprep.subr.bf16.mxu0 %v11471_v54  ;;  %v11439_v20 = vcombine.high %v1312_v49, %v1316_v14  ;;  %v11438_v27 = vcombine.low %v1312_v49, %v1316_v14  ;;  %v1396_v42 = vld [vmem:[#allocation20 + $0x338] sm:$0xff]  ;;  %v11526_v54 = vcombine.low %v1400_v48, %v1404_v44 }
 0x4d3   :  { %v11519_v55 = vcombine.high %v1392_v50, %v1396_v42  ;;  %v1360_v49 = vld [vmem:[#allocation20 + $0x218] sm:$0xff] }
 0x4d4   :  { %v4609_v47 = vpop.f32.mrf.mxu0  ;;  %v1364_v14 = vld [vmem:[#allocation20 + $0x238] sm:$0xff] }
 0x4d5   :  { %4902 = vmatpush1.bf16.msra.mxu0 %v11470_v61  ;;  %v1388_v61 = vld [vmem:[#allocation20 + $0x2f8] sm:$0xff]  ;;  %v11487_v24 = vcombine.high %v1360_v49, %v1364_v14 }
 0x4d6   :  { %v4610_v4 = vpop.f32.mrf.mxu0  ;;  %4903 = vmatprep.subr.bf16.mxu0 %v11463_v1  ;;  %v11518_v1 = vcombine.low %v1392_v50, %v1396_v42  ;;  %v11511_v2 = vcombine.high %v1384_v59, %v1388_v61  ;;  %v1380_v47 = vld [vmem:[#allocation20 + $0x2b8] sm:$0xff] }
 0x4d7   :  { %v11503_v4 = vcombine.high %v1376_v62, %v1380_v47  ;;  %v11502_v52 = vcombine.low %v1376_v62, %v1380_v47 }
 0x4d9   :  { %4904 = vmatpush1.bf16.msra.mxu0 %v11462_v3  ;;  %v11510_v3 = vcombine.low %v1384_v59, %v1388_v61  ;;  %v1584_v61 = vld [vmem:[#allocation20 + $0x918] sm:$0xff] }
 0x4da   :  { %4905 = vmatprep.subr.bf16.mxu0 %v11455_v5  ;;  %v1368_v5 = vld [vmem:[#allocation20 + $0x258] sm:$0xff] }
 0x4dd   :  { %4906 = vmatpush1.bf16.msra.mxu0 %v11454_v9  ;;  %v11495_v9 = vcombine.high %v1368_v5, %v1372_v51 }
 0x4de   :  { %4907 = vmatprep.subr.bf16.mxu0 %v11447_v12  ;;  %v14795_v12 = vsub.s32 2, %v14662_v13 }
 0x4e1   :  { %4908 = vmatpush1.bf16.msra.mxu0 %v11446_v18  ;;  %v14798_v18 = vsub.s32 3, %v14662_v13 }
 0x4e2   :  { %4909 = vmatprep.subr.bf16.mxu0 %v11439_v20  ;;  %v11494_v20 = vcombine.low %v1368_v5, %v1372_v51 }
 0x4e5   :  { %4910 = vmatpush1.bf16.msra.mxu0 %v11438_v27  ;;  %v1818_v27 = vrot.slane %v14763_v7, %v14795_v12 }
 0x4e6   :  { %4911 = vmatprep.subr.bf16.mxu0 %v11431_v28  ;;  %v1608_v28 = vld [vmem:[#allocation20 + $0x9d8] sm:$0xff] }
 0x4e7   :  { %v11735_v32 = vcombine.high %v1608_v28, %v1612_v57 }
 0x4e9   :  { %4912 = vmatpush1.bf16.msra.mxu0 %v11430_v30  ;;  %v1822_v30 = vrot.slane %v14763_v7, %v14798_v18  ;;  %v1596_v7 = vld [vmem:[#allocation20 + $0x978] sm:$0xff] }
 0x4ea   :  { %4913 = vmatprep.subr.bf16.mxu0 %v11423_v34  ;;  %v11486_v34 = vcombine.low %v1360_v49, %v1364_v14 }
 0x4ed   :  { %4914 = vmatpush1.bf16.msra.mxu0 %v11422_v35  ;;  %v4606_v35 = vadd.f32 %v14788_v60, %v1818_v27 }
 0x4ee   :  { %4915 = vmatprep.subr.bf16.mxu0 %v11543_v36  ;;  %v1600_v36 = vld [vmem:[#allocation20 + $0x998] sm:$0xff] }
 0x4ef   :  { %v11727_v48 = vcombine.high %v1600_v36, %v1604_v11  ;;  %v4647_v44 = vadd.f32 %v14740_v21, %v4606_v35  ;;  %v11726_v42 = vcombine.low %v1600_v36, %v1604_v11  ;;  %v1588_v21 = vld [vmem:[#allocation20 + $0x938] sm:$0xff] }
 0x4f0   :  { %v11710_v51 = vcombine.low %v1584_v61, %v1588_v21  ;;  %v1676_v35 = vld [vmem:[#allocation20 + $0xbf8] sm:$0xff] }
 0x4f1   :  { %4916 = vmatpush2.bf16.msra.mxu0 %v11542_v39  ;;  %v4608_v39 = vadd.f32 %v14792_v63, %v1822_v30  ;;  %v1556_v30 = vld [vmem:[#allocation20 + $0x838] sm:$0xff] }
 0x4f2   :  { %4917 = vmatprep.subr.bf16.mxu0 %v11535_v43  ;;  %v11734_v43 = vcombine.low %v1608_v28, %v1612_v57  ;;  %v1552_v57 = vld [vmem:[#allocation20 + $0x818] sm:$0xff] }
 0x4f3   :  { %v4649_v60 = vadd.f32 %v14743_v26, %v4608_v39  ;;  %v1576_v26 = vld [vmem:[#allocation20 + $0x8d8] sm:$0xff]  ;;  %v11678_v36 = vcombine.low %v1552_v57, %v1556_v30 }
 0x4f4   :  { %v1668_v39 = vld [vmem:[#allocation20 + $0xbb8] sm:$0xff] }
 0x4f5   :  { %4918 = vmatpush2.bf16.msra.mxu0 %v11534_v58  ;;  %v1592_v58 = vld [vmem:[#allocation20 + $0x958] sm:$0xff] }
 0x4f6   :  { %4919 = vmatprep.subr.bf16.mxu0 %v11527_v46  ;;  %v11719_v63 = vcombine.high %v1592_v58, %v1596_v7 }
 0x4f9   :  { %4920 = vmatpush2.bf16.msra.mxu0 %v11526_v54 }
 0x4fa   :  { %4921 = vmatprep.subr.bf16.mxu0 %v11519_v55 }
 0x4fd   :  { %4922 = vmatpush2.bf16.msra.mxu0 %v11518_v1 }
 0x4fe   :  { %4923 = vmatprep.subr.bf16.mxu0 %v11511_v2 }
 0x501   :  { %4924 = vmatpush2.bf16.msra.mxu0 %v11510_v3 }
 0x502   :  { %4925 = vmatprep.subr.bf16.mxu0 %v11503_v4  ;;  %v1580_v4 = vld [vmem:[#allocation20 + $0x8f8] sm:$0xff] }
 0x503   :  { %v11702_v49 = vcombine.low %v1576_v26, %v1580_v4 }
 0x505   :  { %4926 = vmatpush2.bf16.msra.mxu0 %v11502_v52  ;;  %v11703_v52 = vcombine.high %v1576_v26, %v1580_v4  ;;  %v1616_v26 = vld [vmem:[#allocation20 + $0xa18] sm:$0xff] }
 0x506   :  { %v14800_v23 = vpop.f32.mrf.mxu1  ;;  %4927 = vmatprep.subr.bf16.mxu0 %v11495_v9  ;;  %v1572_v9 = vld [vmem:[#allocation20 + $0x8b8] sm:$0xff] }
 0x507   :  { %v1620_v4 = vld [vmem:[#allocation20 + $0xa38] sm:$0xff] }
 0x508   :  { %v14804_v29 = vpop.f32.mrf.mxu1 }
 0x509   :  { %4928 = vmatpush2.bf16.msra.mxu0 %v11494_v20  ;;  %v1560_v20 = vld [vmem:[#allocation20 + $0x858] sm:$0xff] }
 0x50a   :  { %v4978_v31 = vpop.f32.mrf.mxu1  ;;  %4929 = vmatprep.subr.bf16.mxu0 %v11487_v24  ;;  %v1564_v24 = vld [vmem:[#allocation20 + $0x878] sm:$0xff] }
 0x50b   :  { %v11687_v28 = vcombine.high %v1560_v20, %v1564_v24  ;;  %v11679_v31 = vcombine.high %v1552_v57, %v1556_v30  ;;  %v13041_v57 = vld [vmem:[#allocation23 + $0xe0] ss:$16 sps:$4 sm:$0xff]   ;;  %v13046_v30 = vld [vmem:[#allocation23 + $0xc4] ss:$16 sps:$4 sm:$0xff]  }
 0x50c   :  { %v4979_v38 = vpop.f32.mrf.mxu1 }
 0x50d   :  { %4930 = vmatpush2.bf16.msra.mxu0 %v11486_v34  ;;  %v11686_v34 = vcombine.low %v1560_v20, %v1564_v24  ;;  %v1664_v38 = vld [vmem:[#allocation20 + $0xb98] sm:$0xff] }
 0x50e   :  { %4981 = vmatprep.subr.bf16.mxu0 %v11735_v32  ;;  %v1672_v32 = vld [vmem:[#allocation20 + $0xbd8] sm:$0xff] }
 0x50f   :  { %v11799_v11 = vcombine.high %v1672_v32, %v1676_v35  ;;  %v13043_v24 = vld [vmem:[#allocation23 + $0xe4] ss:$16 sps:$4 sm:$0xff]  }
 0x510   :  { %v4687_v46 = vpop.f32.mrf.mxu0  ;;  %4932 = vmatmul.mubr.bf16.vlgmr.msra.gmra.mxu0 %v14718_v10  ;;  %v11718_v10 = vcombine.low %v1592_v58, %v1596_v7  ;;  %v1660_v58 = vld [vmem:[#allocation20 + $0xb78] sm:$0xff]  ;;  %v11790_v7 = vcombine.low %v1664_v38, %v1668_v39 }
 0x511   :  { %v4688_v50 = vadd.f32 %v4687_v46, %v4647_v44  ;;  %4982 = vmatpush1.bf16.msra.mxu0 %v11734_v43  ;;  %5013 = vmatprep.mubr.bf16.mxu0 %v14720_v17  ;;  %v11711_v17 = vcombine.high %v1584_v61, %v1588_v21  ;;  %v11798_v43 = vcombine.low %v1672_v32, %v1676_v35  ;;  %v1656_v44 = vld [vmem:[#allocation20 + $0xb58] sm:$0xff] }
 0x512   :  { %v4689_v54 = vpop.f32.mrf.mxu0  ;;  %4983 = vmatprep.subr.bf16.mxu0 %v11727_v48  ;;  %v11791_v48 = vcombine.high %v1664_v38, %v1668_v39  ;;  %v11783_v46 = vcombine.high %v1656_v44, %v1660_v58  ;;  %v1632_v21 = vld [vmem:[#allocation20 + $0xa98] sm:$0xff] }
 0x513   :  { %v4729_v55 = vadd.f32 %v14752_v19, %v4688_v50  ;;  %v4690_v59 = vadd.f32 %v4689_v54, %v4649_v60  ;;  %v1648_v50 = vld [vmem:[#allocation20 + $0xb18] sm:$0xff] }
 0x514   :  { %v4691_v1 = vpop.f32.mrf.mxu0  ;;  %v1652_v60 = vld [vmem:[#allocation20 + $0xb38] sm:$0xff] }
 0x515   :  { %v4731_v2 = vadd.f32 %v14755_v25, %v4690_v59  ;;  %4984 = vmatpush1.bf16.msra.mxu0 %v11726_v42  ;;  %v5065_v62 = vmax.f32 %v4729_v55, 0.0  ;;  %v1568_v25 = vld [vmem:[#allocation20 + $0x898] sm:$0xff]  ;;  %v11782_v42 = vcombine.low %v1656_v44, %v1660_v58  ;;  %v11775_v54 = vcombine.high %v1648_v50, %v1652_v60 }
 0x516   :  { %v4692_v47 = vpop.f32.mrf.mxu0  ;;  %4985 = vmatprep.subr.bf16.mxu0 %v11719_v63  ;;  %v11695_v14 = vcombine.high %v1568_v25, %v1572_v9  ;;  %v11694_v27 = vcombine.low %v1568_v25, %v1572_v9  ;;  %v1640_v63 = vld [vmem:[#allocation20 + $0xad8] sm:$0xff]  ;;  %v11774_v59 = vcombine.low %v1648_v50, %v1652_v60  ;;  %v11743_v25 = vcombine.high %v1616_v26, %v1620_v4 }
 0x517   :  { %v5066_v3 = vmax.f32 %v4731_v2, 0.0  ;;  %v14818_v19 = vpack.c.bf16 %v5065_v62, %v5065_v62  ;;  %v1644_v55 = vld [vmem:[#allocation20 + $0xaf8] sm:$0xff]  ;;  %v4567_v9 = vadd.f32 %v14732_v40, %v14782_v53 }
 0x518   :  { %v11767_v61 = vcombine.high %v1640_v63, %v1644_v55  ;;  %v1636_v1 = vld [vmem:[#allocation20 + $0xab8] sm:$0xff]  ;;  %v11766_v2 = vcombine.low %v1640_v63, %v1644_v55 }
 0x519   :  { %v14816_v5 = vpack.c.bf16 %v5066_v3, %v5066_v3  ;;  %4986 = vmatpush1.bf16.msra.mxu0 %v11718_v10  ;;  %v11759_v10 = vcombine.high %v1632_v21, %v1636_v1  ;;  %v1624_v62 = vld [vmem:[#allocation20 + $0xa58] sm:$0xff] }
 0x51a   :  { %4987 = vmatprep.subr.bf16.mxu0 %v11711_v17  ;;  %v1628_v47 = vld [vmem:[#allocation20 + $0xa78] sm:$0xff]  ;;  %v11758_v17 = vcombine.low %v1632_v21, %v1636_v1 }
 0x51b   :  { %6710 = vmatprep.mubr.bf16.mxu1 %v14816_v5  ;;  %v11751_v3 = vcombine.high %v1624_v62, %v1628_v47  ;;  %v13044_v40 = vld [vmem:[#allocation23 + $0xc0] ss:$16 sps:$4 sm:$0xff]   ;;  %v13049_v32 = vld [vmem:[#allocation23 + $0xa4] ss:$16 sps:$4 sm:$0xff]  }
 0x51c   :  { %6711 = vmatmul.mubr.bf16.vlgmr.msra.gmra.mxu1 %v14818_v19  ;;  %v13052_v38 = vld [vmem:[#allocation23 + $0x84] ss:$16 sps:$4 sm:$0xff]   ;;  %v13050_v39 = vld [vmem:[#allocation23 + $0x80] ss:$16 sps:$4 sm:$0xff]  }
 0x51d   :  { %4988 = vmatpush1.bf16.msra.mxu0 %v11710_v51  ;;  %v11750_v51 = vcombine.low %v1624_v62, %v1628_v47  ;;  %v13053_v44 = vld [vmem:[#allocation23 + $0x60] ss:$16 sps:$4 sm:$0xff]   ;;  %v13154_v58 = vld [vmem:[#allocation23 + $0x6c4] ss:$16 sps:$4 sm:$0xff]  }
 0x51e   :  { %4989 = vmatprep.subr.bf16.mxu0 %v11703_v52  ;;  %v13056_v50 = vld [vmem:[#allocation23 + $0x40] ss:$16 sps:$4 sm:$0xff]   ;;  %v13160_v60 = vld [vmem:[#allocation23 + $0x6a4] ss:$16 sps:$4 sm:$0xff]  }
 0x51f   :  { %v13059_v63 = vld [vmem:[#allocation23 + $0x20] ss:$16 sps:$4 sm:$0xff]  }
 0x520   :  { %v13164_v55 = vld [vmem:[#allocation23 + $0x680] ss:$16 sps:$4 sm:$0xff]  }
 0x521   :  { %4990 = vmatpush1.bf16.msra.mxu0 %v11702_v49  ;;  %v13062_v21 = vld [vmem:[#allocation23] ss:$16 sps:$4 sm:$0xff]  }
 0x522   :  { %4991 = vmatprep.subr.bf16.mxu0 %v11695_v14  ;;  %v11742_v14 = vcombine.low %v1616_v26, %v1620_v4  ;;  %v13170_v1 = vld [vmem:[#allocation23 + $0x660] ss:$16 sps:$4 sm:$0xff]  }
 0x523   :  { %v13065_v62 = vld [vmem:[#allocation23 + $0x1e0] ss:$16 sps:$4 sm:$0xff]  }
 0x524   :  { %v13176_v47 = vld [vmem:[#allocation23 + $0x640] ss:$16 sps:$4 sm:$0xff]  }
 0x525   :  { %4992 = vmatpush1.bf16.msra.mxu0 %v11694_v27  ;;  %v5064_v27 = vmax.f32 %v4567_v9, 0.0  ;;  %v13068_v26 = vld [vmem:[#allocation23 + $0x1c0] ss:$16 sps:$4 sm:$0xff]  }
 0x526   :  { %4993 = vmatprep.subr.bf16.mxu0 %v11687_v28  ;;  %v13182_v4 = vld [vmem:[#allocation23 + $0x620] ss:$16 sps:$4 sm:$0xff]  }
 0x527   :  { %v13071_v9 = vld [vmem:[#allocation23 + $0x1a0] ss:$16 sps:$4 sm:$0xff]  }
 0x529   :  { %4994 = vmatpush1.bf16.msra.mxu0 %v11686_v34  ;;  %v14828_v34 = vpack.c.bf16 %v5064_v27, %v5064_v27  ;;  %v13074_v27 = vld [vmem:[#allocation23 + $0x180] ss:$16 sps:$4 sm:$0xff]  }
 0x52a   :  { %4995 = vmatprep.subr.bf16.mxu0 %v11679_v31 }
 0x52d   :  { %4996 = vmatpush1.bf16.msra.mxu0 %v11678_v36  ;;  %v13047_v36 = vld [vmem:[#allocation23 + $0xa0] ss:$16 sps:$4 sm:$0xff]  }
 0x52e   :  { %4997 = vmatprep.subr.bf16.mxu0 %v11799_v11 }
 0x531   :  { %4998 = vmatpush2.bf16.msra.mxu0 %v11798_v43  ;;  %v13146_v43 = vld [vmem:[#allocation23 + $0x6e0] ss:$16 sps:$4 sm:$0xff]  }
 0x532   :  { %4999 = vmatprep.subr.bf16.mxu0 %v11791_v48  ;;  %v13148_v48 = vld [vmem:[#allocation23 + $0x6e4] ss:$16 sps:$4 sm:$0xff]  }
 0x533   :  { %6760 = vmatprep.subr.bf16.mxu1 %v13148_v48  ;;  %v1829_v48 = vsub.s32 5, %v14662_v13 }
 0x534   :  { %6761 = vmatpush1.bf16.msra.mxu1 %v13146_v43  ;;  %v13085_v43 = vld [vmem:[#allocation23 + $0x124] ss:$16 sps:$4 sm:$0xff]  }
 0x535   :  { %5000 = vmatpush2.bf16.msra.mxu0 %v11790_v7  ;;  %v13058_v7 = vld [vmem:[#allocation23 + $0x44] ss:$16 sps:$4 sm:$0xff]   ;;  %6762 = vmatprep.subr.bf16.mxu1 %v13154_v58 }
 0x536   :  { %5001 = vmatprep.subr.bf16.mxu0 %v11783_v46  ;;  %v13152_v46 = vld [vmem:[#allocation23 + $0x6c0] ss:$16 sps:$4 sm:$0xff]   ;;  %v13214_v58 = vld [vmem:[#allocation23 + $0x784] ss:$16 sps:$4 sm:$0xff]  }
 0x538   :  { %6763 = vmatpush1.bf16.msra.mxu1 %v13152_v46  ;;  %v13088_v46 = vld [vmem:[#allocation23 + $0x104] ss:$16 sps:$4 sm:$0xff]  }
 0x539   :  { %5002 = vmatpush2.bf16.msra.mxu0 %v11782_v42  ;;  %v13061_v42 = vld [vmem:[#allocation23 + $0x24] ss:$16 sps:$4 sm:$0xff]   ;;  %6764 = vmatprep.subr.bf16.mxu1 %v13160_v60 }
 0x53a   :  { %5003 = vmatprep.subr.bf16.mxu0 %v11775_v54  ;;  %v13158_v54 = vld [vmem:[#allocation23 + $0x6a0] ss:$16 sps:$4 sm:$0xff]  }
 0x53c   :  { %6765 = vmatpush1.bf16.msra.mxu1 %v13158_v54  ;;  %v13218_v54 = vld [vmem:[#allocation23 + $0x760] ss:$16 sps:$4 sm:$0xff]  }
 0x53d   :  { %5004 = vmatpush2.bf16.msra.mxu0 %v11774_v59  ;;  %v13166_v59 = vld [vmem:[#allocation23 + $0x684] ss:$16 sps:$4 sm:$0xff]  }
 0x53e   :  { %5005 = vmatprep.subr.bf16.mxu0 %v11767_v61  ;;  %v13064_v61 = vld [vmem:[#allocation23 + $0x4] ss:$16 sps:$4 sm:$0xff]   ;;  %6766 = vmatprep.subr.bf16.mxu1 %v13166_v59 }
 0x53f   :  { %v13091_v59 = vld [vmem:[#allocation23 + $0x4e4] ss:$16 sps:$4 sm:$0xff]  }
 0x540   :  { %6767 = vmatpush1.bf16.msra.mxu1 %v13164_v55 }
 0x541   :  { %5006 = vmatpush2.bf16.msra.mxu0 %v11766_v2  ;;  %v13172_v2 = vld [vmem:[#allocation23 + $0x664] ss:$16 sps:$4 sm:$0xff]  }
 0x542   :  { %5007 = vmatprep.subr.bf16.mxu0 %v11759_v10  ;;  %v13067_v10 = vld [vmem:[#allocation23 + $0x1e4] ss:$16 sps:$4 sm:$0xff]   ;;  %6768 = vmatprep.subr.bf16.mxu1 %v13172_v2 }
 0x543   :  { %v13094_v2 = vld [vmem:[#allocation23 + $0x4c4] ss:$16 sps:$4 sm:$0xff]  }
 0x544   :  { %6769 = vmatpush1.bf16.msra.mxu1 %v13170_v1 }
 0x545   :  { %5008 = vmatpush2.bf16.msra.mxu0 %v11758_v17  ;;  %v13178_v17 = vld [vmem:[#allocation23 + $0x644] ss:$16 sps:$4 sm:$0xff]  }
 0x546   :  { %v14822_v52 = vpop.f32.mrf.mxu1  ;;  %5009 = vmatprep.subr.bf16.mxu0 %v11751_v3  ;;  %v13070_v3 = vld [vmem:[#allocation23 + $0x1c4] ss:$16 sps:$4 sm:$0xff]   ;;  %6770 = vmatprep.subr.bf16.mxu1 %v13178_v17 }
 0x547   :  { %v13232_v17 = vld [vmem:[#allocation23 + $0x724] ss:$16 sps:$4 sm:$0xff]  }
 0x548   :  { %v14826_v49 = vpop.f32.mrf.mxu1  ;;  %6771 = vmatpush1.bf16.msra.mxu1 %v13176_v47  ;;  %v13092_v47 = vld [vmem:[#allocation23 + $0x4c0] ss:$16 sps:$4 sm:$0xff]  }
 0x549   :  { %5010 = vmatpush2.bf16.msra.mxu0 %v11750_v51  ;;  %v13184_v51 = vld [vmem:[#allocation23 + $0x624] ss:$16 sps:$4 sm:$0xff]  }
 0x54a   :  { %v5060_v20 = vpop.f32.mrf.mxu1  ;;  %5011 = vmatprep.subr.bf16.mxu0 %v11743_v25  ;;  %v13073_v25 = vld [vmem:[#allocation23 + $0x1a4] ss:$16 sps:$4 sm:$0xff]   ;;  %6772 = vmatprep.subr.bf16.mxu1 %v13184_v51 }
 0x54b   :  { %v13190_v20 = vld [vmem:[#allocation23 + $0x604] ss:$16 sps:$4 sm:$0xff]  }
 0x54c   :  { %v5061_v28 = vpop.f32.mrf.mxu1  ;;  %6773 = vmatpush1.bf16.msra.mxu1 %v13182_v4 }
 0x54d   :  { %5012 = vmatpush2.bf16.msra.mxu0 %v11742_v14  ;;  %v13188_v14 = vld [vmem:[#allocation23 + $0x600] ss:$16 sps:$4 sm:$0xff]   ;;  %6774 = vmatprep.subr.bf16.mxu1 %v13190_v20 }
 0x54e   :  { %6637 = vmatprep.subr.bf16.mxu0 %v13043_v24  ;;  %v13076_v24 = vld [vmem:[#allocation23 + $0x184] ss:$16 sps:$4 sm:$0xff]   ;;  %v13194_v28 = vld [vmem:[#allocation23 + $0x7e0] ss:$16 sps:$4 sm:$0xff]  }
 0x550   :  { %v14830_v31 = vpop.f32.mrf.mxu0  ;;  %5014 = vmatmul.mubr.bf16.vlgmr.msra.gmra.mxu0 %v14735_v0  ;;  %v13055_v0 = vld [vmem:[#allocation23 + $0x64] ss:$16 sps:$4 sm:$0xff]   ;;  %6775 = vmatpush1.bf16.msra.mxu1 %v13188_v14 }
 0x551   :  { %6638 = vmatpush1.bf16.msra.mxu0 %v13041_v57  ;;  %6669 = vmatprep.mubr.bf16.mxu0 %v14828_v34  ;;  %v13196_v57 = vld [vmem:[#allocation23 + $0x7e4] ss:$16 sps:$4 sm:$0xff]  }
 0x552   :  { %v14834_v53 = vpop.f32.mrf.mxu0  ;;  %6639 = vmatprep.subr.bf16.mxu0 %v13046_v30  ;;  %v13079_v30 = vld [vmem:[#allocation23 + $0x164] ss:$16 sps:$4 sm:$0xff]   ;;  %6776 = vmatprep.subr.bf16.mxu1 %v13196_v57  ;;  %v13098_v57 = vld [vmem:[#allocation23 + $0x480] ss:$16 sps:$4 sm:$0xff]  }
 0x553   :  { %v13238_v14 = vld [vmem:[#allocation23 + $0x704] ss:$16 sps:$4 sm:$0xff]  }
 0x554   :  { %v4773_v35 = vpop.f32.mrf.mxu0  ;;  %6777 = vmatpush2.bf16.msra.mxu1 %v13194_v28 }
 0x555   :  { %6640 = vmatpush1.bf16.msra.mxu0 %v13044_v40  ;;  %v13077_v40 = vld [vmem:[#allocation23 + $0x160] ss:$16 sps:$4 sm:$0xff]   ;;  %v13202_v35 = vld [vmem:[#allocation23 + $0x7c4] ss:$16 sps:$4 sm:$0xff]  }
 0x556   :  { %v4774_v11 = vpop.f32.mrf.mxu0  ;;  %6641 = vmatprep.subr.bf16.mxu0 %v13049_v32  ;;  %v13200_v32 = vld [vmem:[#allocation23 + $0x7c0] ss:$16 sps:$4 sm:$0xff]   ;;  %6778 = vmatprep.subr.bf16.mxu1 %v13202_v35 }
 0x557   :  { %v13080_v11 = vld [vmem:[#allocation23 + $0x140] ss:$16 sps:$4 sm:$0xff]  }
 0x558   :  { %6779 = vmatpush2.bf16.msra.mxu1 %v13200_v32  ;;  %v13106_v32 = vld [vmem:[#allocation23 + $0x444] ss:$16 sps:$4 sm:$0xff]   ;;  %v13104_v35 = vld [vmem:[#allocation23 + $0x440] ss:$16 sps:$4 sm:$0xff]  }
 0x559   :  { %6642 = vmatpush1.bf16.msra.mxu0 %v13047_v36  ;;  %v13082_v36 = vld [vmem:[#allocation23 + $0x144] ss:$16 sps:$4 sm:$0xff]  }
 0x55a   :  { %6643 = vmatprep.subr.bf16.mxu0 %v13052_v38  ;;  %v13206_v38 = vld [vmem:[#allocation23 + $0x7a0] ss:$16 sps:$4 sm:$0xff]  }
 0x55d   :  { %6644 = vmatpush1.bf16.msra.mxu0 %v13050_v39  ;;  %v13208_v39 = vld [vmem:[#allocation23 + $0x7a4] ss:$16 sps:$4 sm:$0xff]  }
 0x55e   :  { %6645 = vmatprep.subr.bf16.mxu0 %v13055_v0  ;;  %6780 = vmatprep.subr.bf16.mxu1 %v13208_v39  ;;  %v13083_v0 = vld [vmem:[#allocation23 + $0x120] ss:$16 sps:$4 sm:$0xff]  }
 0x55f   :  { %6781 = vmatpush2.bf16.msra.mxu1 %v13206_v38  ;;  %v13112_v38 = vld [vmem:[#allocation23 + $0x404] ss:$16 sps:$4 sm:$0xff]   ;;  %v13110_v39 = vld [vmem:[#allocation23 + $0x400] ss:$16 sps:$4 sm:$0xff]  }
 0x560   :  { %6782 = vmatprep.subr.bf16.mxu1 %v13214_v58  ;;  %v13116_v58 = vld [vmem:[#allocation23 + $0x5c0] ss:$16 sps:$4 sm:$0xff]  }
 0x561   :  { %6646 = vmatpush1.bf16.msra.mxu0 %v13053_v44  ;;  %v13212_v44 = vld [vmem:[#allocation23 + $0x780] ss:$16 sps:$4 sm:$0xff]  }
 0x562   :  { %6647 = vmatprep.subr.bf16.mxu0 %v13058_v7  ;;  %v4565_v7 = vadd.f32 %v14729_v33, %v14778_v45  ;;  %v13089_v45 = vld [vmem:[#allocation23 + $0x4e0] ss:$16 sps:$4 sm:$0xff]  }
 0x563   :  { %6783 = vmatpush2.bf16.msra.mxu1 %v13212_v44  ;;  %v13118_v44 = vld [vmem:[#allocation23 + $0x5c4] ss:$16 sps:$4 sm:$0xff]  }
 0x564   :  { %v5063_v55 = vmax.f32 %v4565_v7, 0.0  ;;  %v13121_v7 = vld [vmem:[#allocation23 + $0x5a4] ss:$16 sps:$4 sm:$0xff]  }
 0x565   :  { %6648 = vmatpush1.bf16.msra.mxu0 %v13056_v50  ;;  %v14839_v50 = vld [vmem:[#allocation22] sm:$0xff] }
 0x566   :  { %6649 = vmatprep.subr.bf16.mxu0 %v13061_v42  ;;  %v1830_v60 = vrot.slane %v14839_v50, %v1829_v48  ;;  %v13086_v42 = vld [vmem:[#allocation23 + $0x100] ss:$16 sps:$4 sm:$0xff]   ;;  %v14845_v1 = vpack.c.bf16 %v5063_v55, %v5063_v55  ;;  %v13127_v55 = vld [vmem:[#allocation23 + $0x564] ss:$16 sps:$4 sm:$0xff]  }
 0x568   :  { %v4772_v33 = vadd.f32 %v14834_v53, %v1830_v60  ;;  %v13119_v60 = vld [vmem:[#allocation23 + $0x5a0] ss:$16 sps:$4 sm:$0xff]  }
 0x569   :  { %6650 = vmatpush1.bf16.msra.mxu0 %v13059_v63  ;;  %v13220_v63 = vld [vmem:[#allocation23 + $0x764] ss:$16 sps:$4 sm:$0xff]  }
 0x56a   :  { %6651 = vmatprep.subr.bf16.mxu0 %v13064_v61  ;;  %6784 = vmatprep.subr.bf16.mxu1 %v13220_v63  ;;  %v13224_v61 = vld [vmem:[#allocation23 + $0x740] ss:$16 sps:$4 sm:$0xff]  }
 0x56b   :  { %6785 = vmatpush2.bf16.msra.mxu1 %v13218_v54  ;;  %v13122_v63 = vld [vmem:[#allocation23 + $0x580] ss:$16 sps:$4 sm:$0xff]  }
 0x56d   :  { %6652 = vmatpush1.bf16.msra.mxu0 %v13062_v21  ;;  %v13226_v21 = vld [vmem:[#allocation23 + $0x744] ss:$16 sps:$4 sm:$0xff]  }
 0x56e   :  { %6653 = vmatprep.subr.bf16.mxu0 %v13067_v10  ;;  %6786 = vmatprep.subr.bf16.mxu1 %v13226_v21  ;;  %v13128_v21 = vld [vmem:[#allocation23 + $0x540] ss:$16 sps:$4 sm:$0xff]  }
 0x56f   :  { %6787 = vmatpush2.bf16.msra.mxu1 %v13224_v61 }
 0x570   :  { %6788 = vmatprep.subr.bf16.mxu1 %v13232_v17 }
 0x571   :  { %6654 = vmatpush2.bf16.msra.mxu0 %v13065_v62  ;;  %v4813_v62 = vadd.f32 %v14770_v22, %v4772_v33  ;;  %v13125_v33 = vld [vmem:[#allocation23 + $0x560] ss:$16 sps:$4 sm:$0xff]  }
 0x572   :  { %6655 = vmatprep.subr.bf16.mxu0 %v13070_v3  ;;  %v13097_v3 = vld [vmem:[#allocation23 + $0x4a4] ss:$16 sps:$4 sm:$0xff]  }
 0x575   :  { %6656 = vmatpush2.bf16.msra.mxu0 %v13068_v26  ;;  %v13230_v26 = vld [vmem:[#allocation23 + $0x720] ss:$16 sps:$4 sm:$0xff]  }
 0x576   :  { %6657 = vmatprep.subr.bf16.mxu0 %v13073_v25  ;;  %6789 = vmatpush2.bf16.msra.mxu1 %v13230_v26  ;;  %v13139_v26 = vld [vmem:[#allocation23 + $0xec] ss:$16 sps:$4 sm:$0xff]  }
 0x577   :  { %6790 = vmatprep.subr.bf16.mxu1 %v13238_v14 }
 0x579   :  { %6658 = vmatpush2.bf16.msra.mxu0 %v13071_v9  ;;  %v13095_v9 = vld [vmem:[#allocation23 + $0x4a0] ss:$16 sps:$4 sm:$0xff]  }
 0x57a   :  { %6659 = vmatprep.subr.bf16.mxu0 %v13076_v24  ;;  %v13100_v24 = vld [vmem:[#allocation23 + $0x484] ss:$16 sps:$4 sm:$0xff]  }
 0x57d   :  { %6660 = vmatpush2.bf16.msra.mxu0 %v13074_v27  ;;  %v13236_v27 = vld [vmem:[#allocation23 + $0x700] ss:$16 sps:$4 sm:$0xff]  }
 0x57e   :  { %6661 = vmatprep.subr.bf16.mxu0 %v13079_v30  ;;  %6791 = vmatpush2.bf16.msra.mxu1 %v13236_v27  ;;  %v13244_v30 = vld [vmem:[#allocation23 + $0x2ec] ss:$16 sps:$4 sm:$0xff]  }
 0x57f   :  { %6842 = vmatprep.subr.bf16.mxu1 %v13244_v30  ;;  %v13151_v27 = vld [vmem:[#allocation23 + $0x8c] ss:$16 sps:$4 sm:$0xff]  }
 0x581   :  { %6662 = vmatpush2.bf16.msra.mxu0 %v13077_v40  ;;  %v13103_v40 = vld [vmem:[#allocation23 + $0x464] ss:$16 sps:$4 sm:$0xff]  }
 0x582   :  { %6663 = vmatprep.subr.bf16.mxu0 %v13082_v36  ;;  %v13109_v36 = vld [vmem:[#allocation23 + $0x424] ss:$16 sps:$4 sm:$0xff]  }
 0x585   :  { %6664 = vmatpush2.bf16.msra.mxu0 %v13080_v11  ;;  %v13107_v11 = vld [vmem:[#allocation23 + $0x420] ss:$16 sps:$4 sm:$0xff]  }
 0x586   :  { %6665 = vmatprep.subr.bf16.mxu0 %v13085_v43  ;;  %v13115_v43 = vld [vmem:[#allocation23 + $0x5e4] ss:$16 sps:$4 sm:$0xff]  }
 0x589   :  { %6666 = vmatpush2.bf16.msra.mxu0 %v13083_v0  ;;  %v13113_v0 = vld [vmem:[#allocation23 + $0x5e0] ss:$16 sps:$4 sm:$0xff]  }
 0x58a   :  { %6667 = vmatprep.subr.bf16.mxu0 %v13088_v46  ;;  %v1825_v46 = vsub.s32 4, %v14662_v13 }
 0x58c   :  { %v1826_v54 = vrot.slane %v14839_v50, %v1825_v46 }
 0x58d   :  { %6668 = vmatpush2.bf16.msra.mxu0 %v13086_v42  ;;  %v13124_v42 = vld [vmem:[#allocation23 + $0x584] ss:$16 sps:$4 sm:$0xff]  }
 0x58e   :  { %6719 = vmatprep.subr.bf16.mxu0 %v13091_v59  ;;  %v4770_v59 = vadd.f32 %v14830_v31, %v1826_v54  ;;  %v13134_v31 = vld [vmem:[#allocation23 + $0x500] ss:$16 sps:$4 sm:$0xff]   ;;  %v13199_v54 = vld [vmem:[#allocation23 + $0x18c] ss:$16 sps:$4 sm:$0xff]  }
 0x590   :  { %v14847_v10 = vpop.f32.mrf.mxu0  ;;  %6670 = vmatmul.mubr.bf16.vlgmr.msra.gmra.mxu0 %v14845_v1  ;;  %v4811_v61 = vadd.f32 %v14765_v56, %v4770_v59  ;;  %v13203_v59 = vld [vmem:[#allocation23 + $0x168] ss:$16 sps:$4 sm:$0xff]  }
 0x591   :  { %6720 = vmatpush1.bf16.msra.mxu0 %v13089_v45  ;;  %v13130_v45 = vld [vmem:[#allocation23 + $0x544] ss:$16 sps:$4 sm:$0xff]  }
 0x592   :  { %v4853_v53 = vpop.f32.mrf.mxu0  ;;  %6721 = vmatprep.subr.bf16.mxu0 %v13094_v2  ;;  %v4852_v2 = vadd.f32 %v14847_v10, %v4811_v61  ;;  %v13217_v61 = vld [vmem:[#allocation23 + $0x12c] ss:$16 sps:$4 sm:$0xff]  }
 0x593   :  { %v4854_v4 = vadd.f32 %v4853_v53, %v4813_v62  ;;  %v13133_v62 = vld [vmem:[#allocation23 + $0x524] ss:$16 sps:$4 sm:$0xff]  }
 0x594   :  { %v4855_v51 = vpop.f32.mrf.mxu0  ;;  %v4893_v17 = vadd.f32 %v14784_v37, %v4852_v2  ;;  %v13136_v53 = vld [vmem:[#allocation23 + $0x504] ss:$16 sps:$4 sm:$0xff]   ;;  %v13140_v37 = vld [vmem:[#allocation23 + $0xc8] ss:$16 sps:$4 sm:$0xff]   ;;  %v1837_v2 = vsub.s32 7, %v14662_v13 }
 0x595   :  { %v4895_v25 = vadd.f32 %v14786_v41, %v4854_v4  ;;  %6722 = vmatpush1.bf16.msra.mxu0 %v13092_v47  ;;  %v13101_v41 = vld [vmem:[#allocation23 + $0x460] ss:$16 sps:$4 sm:$0xff]   ;;  %v13137_v4 = vld [vmem:[#allocation23 + $0xe8] ss:$16 sps:$4 sm:$0xff]   ;;  %v13142_v51 = vld [vmem:[#allocation23 + $0xcc] ss:$16 sps:$4 sm:$0xff]  }
 0x596   :  { %v4856_v20 = vpop.f32.mrf.mxu0  ;;  %6723 = vmatprep.subr.bf16.mxu0 %v13097_v3  ;;  %v13131_v47 = vld [vmem:[#allocation23 + $0x520] ss:$16 sps:$4 sm:$0xff]   ;;  %v5067_v3 = vmax.f32 %v4893_v17, 0.0 }
 0x597   :  { %v5068_v22 = vmax.f32 %v4895_v25, 0.0  ;;  %v13143_v20 = vld [vmem:[#allocation23 + $0xa8] ss:$16 sps:$4 sm:$0xff]  }
 0x598   :  { %v14863_v56 = vpack.c.bf16 %v5067_v3, %v5067_v3  ;;  %v13229_v3 = vld [vmem:[#allocation23 + $0x4ec] ss:$16 sps:$4 sm:$0xff]  }
 0x599   :  { %v14852_v28 = vpack.c.bf16 %v5068_v22, %v5068_v22  ;;  %6724 = vmatpush1.bf16.msra.mxu0 %v13095_v9  ;;  %v13145_v9 = vld [vmem:[#allocation23 + $0xac] ss:$16 sps:$4 sm:$0xff]   ;;  %v13149_v22 = vld [vmem:[#allocation23 + $0x88] ss:$16 sps:$4 sm:$0xff]  }
 0x59a   :  { %6725 = vmatprep.subr.bf16.mxu0 %v13100_v24 }
 0x59b   :  { %6751 = vmatprep.mubr.bf16.mxu0 %v14852_v28 }
 0x59d   :  { %6726 = vmatpush1.bf16.msra.mxu0 %v13098_v57  ;;  %v13157_v57 = vld [vmem:[#allocation23 + $0x6c] ss:$16 sps:$4 sm:$0xff]  }
 0x59e   :  { %6727 = vmatprep.subr.bf16.mxu0 %v13103_v40  ;;  %v13155_v40 = vld [vmem:[#allocation23 + $0x68] ss:$16 sps:$4 sm:$0xff]  }
 0x5a1   :  { %6728 = vmatpush1.bf16.msra.mxu0 %v13101_v41  ;;  %v13163_v41 = vld [vmem:[#allocation23 + $0x4c] ss:$16 sps:$4 sm:$0xff]  }
 0x5a2   :  { %6729 = vmatprep.subr.bf16.mxu0 %v13106_v32 }
 0x5a5   :  { %6730 = vmatpush1.bf16.msra.mxu0 %v13104_v35  ;;  %v13161_v35 = vld [vmem:[#allocation23 + $0x48] ss:$16 sps:$4 sm:$0xff]  }
 0x5a6   :  { %6731 = vmatprep.subr.bf16.mxu0 %v13109_v36 }
 0x5a9   :  { %6732 = vmatpush1.bf16.msra.mxu0 %v13107_v11  ;;  %v13169_v11 = vld [vmem:[#allocation23 + $0x2c] ss:$16 sps:$4 sm:$0xff]  }
 0x5aa   :  { %6733 = vmatprep.subr.bf16.mxu0 %v13112_v38  ;;  %v13167_v38 = vld [vmem:[#allocation23 + $0x28] ss:$16 sps:$4 sm:$0xff]  }
 0x5ad   :  { %6734 = vmatpush1.bf16.msra.mxu0 %v13110_v39  ;;  %v13175_v39 = vld [vmem:[#allocation23 + $0xc] ss:$16 sps:$4 sm:$0xff]  }
 0x5ae   :  { %6735 = vmatprep.subr.bf16.mxu0 %v13115_v43  ;;  %v13173_v43 = vld [vmem:[#allocation23 + $0x8] ss:$16 sps:$4 sm:$0xff]  }
 0x5b1   :  { %6736 = vmatpush2.bf16.msra.mxu0 %v13113_v0  ;;  %v13181_v0 = vld [vmem:[#allocation23 + $0x1ec] ss:$16 sps:$4 sm:$0xff]  }
 0x5b2   :  { %6737 = vmatprep.subr.bf16.mxu0 %v13118_v44  ;;  %v13179_v44 = vld [vmem:[#allocation23 + $0x1e8] ss:$16 sps:$4 sm:$0xff]  }
 0x5b5   :  { %6738 = vmatpush2.bf16.msra.mxu0 %v13116_v58  ;;  %v13187_v58 = vld [vmem:[#allocation23 + $0x1cc] ss:$16 sps:$4 sm:$0xff]  }
 0x5b6   :  { %6739 = vmatprep.subr.bf16.mxu0 %v13121_v7  ;;  %v13185_v7 = vld [vmem:[#allocation23 + $0x1c8] ss:$16 sps:$4 sm:$0xff]  }
 0x5b9   :  { %6740 = vmatpush2.bf16.msra.mxu0 %v13119_v60  ;;  %v13193_v60 = vld [vmem:[#allocation23 + $0x1ac] ss:$16 sps:$4 sm:$0xff]  }
 0x5ba   :  { %6741 = vmatprep.subr.bf16.mxu0 %v13124_v42  ;;  %v13191_v42 = vld [vmem:[#allocation23 + $0x1a8] ss:$16 sps:$4 sm:$0xff]  }
 0x5bd   :  { %6742 = vmatpush2.bf16.msra.mxu0 %v13122_v63  ;;  %v13197_v63 = vld [vmem:[#allocation23 + $0x188] ss:$16 sps:$4 sm:$0xff]  }
 0x5be   :  { %6743 = vmatprep.subr.bf16.mxu0 %v13127_v55  ;;  %v13205_v55 = vld [vmem:[#allocation23 + $0x16c] ss:$16 sps:$4 sm:$0xff]  }
 0x5c1   :  { %6744 = vmatpush2.bf16.msra.mxu0 %v13125_v33  ;;  %v13211_v33 = vld [vmem:[#allocation23 + $0x14c] ss:$16 sps:$4 sm:$0xff]  }
 0x5c2   :  { %6745 = vmatprep.subr.bf16.mxu0 %v13130_v45  ;;  %v13209_v45 = vld [vmem:[#allocation23 + $0x148] ss:$16 sps:$4 sm:$0xff]  }
 0x5c5   :  { %6746 = vmatpush2.bf16.msra.mxu0 %v13128_v21  ;;  %v1833_v21 = vsub.s32 6, %v14662_v13 }
 0x5c6   :  { %6747 = vmatprep.subr.bf16.mxu0 %v13133_v62  ;;  %v13215_v62 = vld [vmem:[#allocation23 + $0x128] ss:$16 sps:$4 sm:$0xff]  }
 0x5c7   :  { %v1834_v17 = vrot.slane %v14839_v50, %v1833_v21 }
 0x5c9   :  { %6748 = vmatpush2.bf16.msra.mxu0 %v13131_v47  ;;  %v13223_v47 = vld [vmem:[#allocation23 + $0x10c] ss:$16 sps:$4 sm:$0xff]  }
 0x5ca   :  { %6749 = vmatprep.subr.bf16.mxu0 %v13136_v53  ;;  %v1838_v53 = vrot.slane %v14839_v50, %v1837_v2 }
 0x5cd   :  { %6750 = vmatpush2.bf16.msra.mxu0 %v13134_v31  ;;  %v13221_v31 = vld [vmem:[#allocation23 + $0x108] ss:$16 sps:$4 sm:$0xff]  }
 0x5ce   :  { %6801 = vmatprep.subr.bf16.mxu0 %v13139_v26 }
 0x5d0   :  { %v14865_v10 = vpop.f32.mrf.mxu0  ;;  %6752 = vmatmul.mubr.bf16.vlgmr.msra.gmra.mxu0 %v14863_v56 }
 0x5d1   :  { %6802 = vmatpush1.bf16.msra.mxu0 %v13137_v4  ;;  %6833 = vmatprep.mubr.bf16.mxu0 %v14828_v34  ;;  %v4934_v26 = vadd.f32 %v14865_v10, %v1834_v17  ;;  %v13241_v10 = vld [vmem:[#allocation23 + $0x4ac] ss:$16 sps:$4 sm:$0xff]  }
 0x5d2   :  { %v14869_v25 = vpop.f32.mrf.mxu0  ;;  %6803 = vmatprep.subr.bf16.mxu0 %v13142_v51  ;;  %v13227_v51 = vld [vmem:[#allocation23 + $0x4e8] ss:$16 sps:$4 sm:$0xff]   ;;  %v13283_v17 = vld [vmem:[#allocation23 + $0x5cc] ss:$16 sps:$4 sm:$0xff]  }
 0x5d3   :  { %v4936_v4 = vadd.f32 %v14869_v25, %v1838_v53  ;;  %v13278_v53 = vld [vmem:[#allocation23 + $0x228] ss:$16 sps:$4 sm:$0xff]  }
 0x5d4   :  { %v4937_v14 = vpop.f32.mrf.mxu0 }
 0x5d5   :  { %6804 = vmatpush1.bf16.msra.mxu0 %v13140_v37  ;;  %v13235_v37 = vld [vmem:[#allocation23 + $0x4cc] ss:$16 sps:$4 sm:$0xff]   ;;  %v4977_v50 = vadd.f32 %v14804_v29, %v4936_v4  ;;  %v13242_v29 = vld [vmem:[#allocation23 + $0x2e8] ss:$16 sps:$4 sm:$0xff]  }
 0x5d6   :  { %v4938_v24 = vpop.f32.mrf.mxu0  ;;  %6805 = vmatprep.subr.bf16.mxu0 %v13145_v9  ;;  %v4975_v9 = vadd.f32 %v14800_v23, %v4934_v26  ;;  %v13239_v23 = vld [vmem:[#allocation23 + $0x4a8] ss:$16 sps:$4 sm:$0xff]   ;;  %v13289_v26 = vld [vmem:[#allocation23 + $0x5ac] ss:$16 sps:$4 sm:$0xff]  }
 0x5d7   :  { %v13233_v24 = vld [vmem:[#allocation23 + $0x4c8] ss:$16 sps:$4 sm:$0xff]  }
 0x5d8   :  { %v13284_v4 = vld [vmem:[#allocation23 + $0x208] ss:$16 sps:$4 sm:$0xff]  }
 0x5d9   :  { %6806 = vmatpush1.bf16.msra.mxu0 %v13143_v20 }
 0x5da   :  { %6807 = vmatprep.subr.bf16.mxu0 %v13151_v27 }
 0x5dc   :  { %v14871_v30 = vpop.f32.mrf.mxu1 }
 0x5dd   :  { %6808 = vmatpush1.bf16.msra.mxu0 %v13149_v22 }
 0x5de   :  { %v14873_v34 = vpop.f32.mrf.mxu1  ;;  %6809 = vmatprep.subr.bf16.mxu0 %v13157_v57 }
 0x5e0   :  { %v6716_v32 = vpop.f32.mrf.mxu1 }
 0x5e1   :  { %6810 = vmatpush1.bf16.msra.mxu0 %v13155_v40  ;;  %v13247_v32 = vld [vmem:[#allocation23 + $0x48c] ss:$16 sps:$4 sm:$0xff]  }
 0x5e2   :  { %v6717_v36 = vpop.f32.mrf.mxu1  ;;  %6811 = vmatprep.subr.bf16.mxu0 %v13163_v41 }
 0x5e5   :  { %6812 = vmatpush1.bf16.msra.mxu0 %v13161_v35 }
 0x5e6   :  { %6813 = vmatprep.subr.bf16.mxu0 %v13169_v11  ;;  %v13245_v11 = vld [vmem:[#allocation23 + $0x488] ss:$16 sps:$4 sm:$0xff]  }
 0x5e9   :  { %6814 = vmatpush1.bf16.msra.mxu0 %v13167_v38  ;;  %v13253_v38 = vld [vmem:[#allocation23 + $0x46c] ss:$16 sps:$4 sm:$0xff]  }
 0x5ea   :  { %6815 = vmatprep.subr.bf16.mxu0 %v13175_v39  ;;  %v13251_v39 = vld [vmem:[#allocation23 + $0x468] ss:$16 sps:$4 sm:$0xff]  }
 0x5ed   :  { %6816 = vmatpush1.bf16.msra.mxu0 %v13173_v43  ;;  %v13256_v43 = vld [vmem:[#allocation23 + $0x2ac] ss:$16 sps:$4 sm:$0xff]  }
 0x5ee   :  { %6817 = vmatprep.subr.bf16.mxu0 %v13181_v0  ;;  %v13259_v0 = vld [vmem:[#allocation23 + $0x44c] ss:$16 sps:$4 sm:$0xff]  }
 0x5f1   :  { %6818 = vmatpush2.bf16.msra.mxu0 %v13179_v44  ;;  %v13254_v44 = vld [vmem:[#allocation23 + $0x2a8] ss:$16 sps:$4 sm:$0xff]  }
 0x5f2   :  { %6819 = vmatprep.subr.bf16.mxu0 %v13187_v58  ;;  %v13257_v58 = vld [vmem:[#allocation23 + $0x448] ss:$16 sps:$4 sm:$0xff]  }
 0x5f5   :  { %6820 = vmatpush2.bf16.msra.mxu0 %v13185_v7  ;;  %v13262_v7 = vld [vmem:[#allocation23 + $0x28c] ss:$16 sps:$4 sm:$0xff]  }
 0x5f6   :  { %6821 = vmatprep.subr.bf16.mxu0 %v13193_v60  ;;  %v13265_v60 = vld [vmem:[#allocation23 + $0x42c] ss:$16 sps:$4 sm:$0xff]  }
 0x5f9   :  { %6822 = vmatpush2.bf16.msra.mxu0 %v13191_v42  ;;  %v13260_v42 = vld [vmem:[#allocation23 + $0x288] ss:$16 sps:$4 sm:$0xff]  }
 0x5fa   :  { %6823 = vmatprep.subr.bf16.mxu0 %v13199_v54  ;;  %v13268_v54 = vld [vmem:[#allocation23 + $0x26c] ss:$16 sps:$4 sm:$0xff]  }
 0x5fd   :  { %6824 = vmatpush2.bf16.msra.mxu0 %v13197_v63  ;;  %v13271_v63 = vld [vmem:[#allocation23 + $0x40c] ss:$16 sps:$4 sm:$0xff]  }
 0x5fe   :  { %6825 = vmatprep.subr.bf16.mxu0 %v13205_v55  ;;  %v13266_v55 = vld [vmem:[#allocation23 + $0x268] ss:$16 sps:$4 sm:$0xff]  }
 0x601   :  { %6826 = vmatpush2.bf16.msra.mxu0 %v13203_v59  ;;  %v13269_v59 = vld [vmem:[#allocation23 + $0x408] ss:$16 sps:$4 sm:$0xff]  }
 0x602   :  { %6827 = vmatprep.subr.bf16.mxu0 %v13211_v33  ;;  %v13274_v33 = vld [vmem:[#allocation23 + $0x24c] ss:$16 sps:$4 sm:$0xff]  }
 0x605   :  { %6828 = vmatpush2.bf16.msra.mxu0 %v13209_v45  ;;  %v13277_v45 = vld [vmem:[#allocation23 + $0x5ec] ss:$16 sps:$4 sm:$0xff]  }
 0x606   :  { %6829 = vmatprep.subr.bf16.mxu0 %v13217_v61  ;;  %v13272_v61 = vld [vmem:[#allocation23 + $0x248] ss:$16 sps:$4 sm:$0xff]  }
 0x609   :  { %6830 = vmatpush2.bf16.msra.mxu0 %v13215_v62  ;;  %v13275_v62 = vld [vmem:[#allocation23 + $0x5e8] ss:$16 sps:$4 sm:$0xff]  }
 0x60a   :  { %6831 = vmatprep.subr.bf16.mxu0 %v13223_v47  ;;  %v13280_v47 = vld [vmem:[#allocation23 + $0x22c] ss:$16 sps:$4 sm:$0xff]  }
 0x60d   :  { %6832 = vmatpush2.bf16.msra.mxu0 %v13221_v31  ;;  %v13281_v31 = vld [vmem:[#allocation23 + $0x5c8] ss:$16 sps:$4 sm:$0xff]  }
 0x60e   :  { %6883 = vmatprep.subr.bf16.mxu0 %v13229_v3  ;;  %v13286_v3 = vld [vmem:[#allocation23 + $0x20c] ss:$16 sps:$4 sm:$0xff]  }
 0x610   :  { %v5015_v14 = vpop.f32.mrf.mxu0  ;;  %6834 = vmatmul.mubr.bf16.vlgmr.msra.gmra.mxu0 %v14845_v1 }
 0x611   :  { %v5016_v20 = vadd.f32 %v5015_v14, %v4975_v9  ;;  %6884 = vmatpush1.bf16.msra.mxu0 %v13227_v51  ;;  %6915 = vmatprep.mubr.bf16.mxu0 %v14852_v28  ;;  %v13287_v51 = vld [vmem:[#allocation23 + $0x5a8] ss:$16 sps:$4 sm:$0xff]   ;;  %v13295_v9 = vld [vmem:[#allocation23 + $0x58c] ss:$16 sps:$4 sm:$0xff]  }
 0x612   :  { %v5017_v27 = vpop.f32.mrf.mxu0  ;;  %6885 = vmatprep.subr.bf16.mxu0 %v13235_v37  ;;  %v13292_v37 = vld [vmem:[#allocation23 + $0x3ec] ss:$16 sps:$4 sm:$0xff]   ;;  %v13290_v14 = vld [vmem:[#allocation23 + $0x3e8] ss:$16 sps:$4 sm:$0xff]  }
 0x613   :  { %v5057_v25 = vadd.f32 %v14822_v52, %v5016_v20  ;;  %v5018_v22 = vadd.f32 %v5017_v27, %v4977_v50  ;;  %v13250_v52 = vld [vmem:[#allocation23 + $0x2cc] ss:$16 sps:$4 sm:$0xff]   ;;  %v13293_v20 = vld [vmem:[#allocation23 + $0x588] ss:$16 sps:$4 sm:$0xff]  }
 0x614   :  { %v5019_v57 = vpop.f32.mrf.mxu0  ;;  %v13298_v50 = vld [vmem:[#allocation23 + $0x3cc] ss:$16 sps:$4 sm:$0xff]   ;;  %v13296_v27 = vld [vmem:[#allocation23 + $0x3c8] ss:$16 sps:$4 sm:$0xff]  }
 0x615   :  { %v5059_v40 = vadd.f32 %v14826_v49, %v5018_v22  ;;  %6886 = vmatpush1.bf16.msra.mxu0 %v13233_v24  ;;  %v5069_v41 = vmax.f32 %v5057_v25, 0.0  ;;  %v13248_v49 = vld [vmem:[#allocation23 + $0x2c8] ss:$16 sps:$4 sm:$0xff]   ;;  %v13301_v24 = vld [vmem:[#allocation23 + $0x56c] ss:$16 sps:$4 sm:$0xff]  }
 0x616   :  { %v5020_v1 = vpop.f32.mrf.mxu0  ;;  %6887 = vmatprep.subr.bf16.mxu0 %v13241_v10  ;;  %v13299_v10 = vld [vmem:[#allocation23 + $0x568] ss:$16 sps:$4 sm:$0xff]   ;;  %v13304_v25 = vld [vmem:[#allocation23 + $0x3ac] ss:$16 sps:$4 sm:$0xff]  }
 0x617   :  { %v5070_v35 = vmax.f32 %v5059_v40, 0.0  ;;  %v14893_v36 = vpack.c.bf16 %v5069_v41, %v5069_v41  ;;  %v13307_v22 = vld [vmem:[#allocation23 + $0x54c] ss:$16 sps:$4 sm:$0xff]   ;;  %v13302_v57 = vld [vmem:[#allocation23 + $0x3a8] ss:$16 sps:$4 sm:$0xff]  }
 0x618   :  { %v13305_v40 = vld [vmem:[#allocation23 + $0x548] ss:$16 sps:$4 sm:$0xff]   ;;  %v13313_v41 = vld [vmem:[#allocation23 + $0x52c] ss:$16 sps:$4 sm:$0xff]  }
 0x619   :  { %v14891_v28 = vpack.c.bf16 %v5070_v35, %v5070_v35  ;;  %6888 = vmatpush1.bf16.msra.mxu0 %v13239_v23  ;;  %v13310_v23 = vld [vmem:[#allocation23 + $0x38c] ss:$16 sps:$4 sm:$0xff]   ;;  %v13308_v1 = vld [vmem:[#allocation23 + $0x388] ss:$16 sps:$4 sm:$0xff]  }
 0x61a   :  { %6889 = vmatprep.subr.bf16.mxu0 %v13247_v32  ;;  %v13311_v32 = vld [vmem:[#allocation23 + $0x528] ss:$16 sps:$4 sm:$0xff]   ;;  %v13316_v35 = vld [vmem:[#allocation23 + $0x36c] ss:$16 sps:$4 sm:$0xff]  }
 0x61b   :  { %6792 = vmatprep.mubr.bf16.mxu1 %v14891_v28 }
 0x61c   :  { %6793 = vmatmul.mubr.bf16.vlgmr.msra.gmra.mxu1 %v14893_v36 }
 0x61d   :  { %6843 = vmatpush1.bf16.msra.mxu1 %v13242_v29  ;;  %6874 = vmatprep.mubr.bf16.mxu1 %v14816_v5  ;;  %v13263_v5 = vld [vmem:[#allocation23 + $0x428] ss:$16 sps:$4 sm:$0xff]   ;;  %v13319_v29 = vld [vmem:[#allocation23 + $0x50c] ss:$16 sps:$4 sm:$0xff]  }
 0x61e   :  { %6890 = vmatpush1.bf16.msra.mxu0 %v13245_v11  ;;  %6844 = vmatprep.subr.bf16.mxu1 %v13250_v52  ;;  %v13314_v11 = vld [vmem:[#allocation23 + $0x368] ss:$16 sps:$4 sm:$0xff]  }
 0x61f   :  { %6891 = vmatprep.subr.bf16.mxu0 %v13253_v38  ;;  %v13317_v52 = vld [vmem:[#allocation23 + $0x508] ss:$16 sps:$4 sm:$0xff]   ;;  %v13322_v38 = vld [vmem:[#allocation23 + $0x34c] ss:$16 sps:$4 sm:$0xff]  }
 0x621   :  { %6845 = vmatpush1.bf16.msra.mxu1 %v13248_v49  ;;  %v13377_v49 = vld [vmem:[#allocation26 + $0x78] sm:$0xff]  }
 0x622   :  { %6892 = vmatpush1.bf16.msra.mxu0 %v13251_v39  ;;  %6846 = vmatprep.subr.bf16.mxu1 %v13256_v43  ;;  %v13320_v39 = vld [vmem:[#allocation23 + $0x348] ss:$16 sps:$4 sm:$0xff]   ;;  %v13325_v43 = vld [vmem:[#allocation23 + $0x32c] ss:$16 sps:$4 sm:$0xff]  }
 0x623   :  { %6893 = vmatprep.subr.bf16.mxu0 %v13259_v0  ;;  %v13378_v0 = vld [vmem:[#allocation26 + $0x38] sm:$0xff]  }
 0x625   :  { %6847 = vmatpush1.bf16.msra.mxu1 %v13254_v44  ;;  %v13379_v44 = vld [vmem:[#allocation26 + $0x70] sm:$0xff]  }
 0x626   :  { %6894 = vmatpush1.bf16.msra.mxu0 %v13257_v58  ;;  %6848 = vmatprep.subr.bf16.mxu1 %v13262_v7  ;;  %v13323_v7 = vld [vmem:[#allocation23 + $0x328] ss:$16 sps:$4 sm:$0xff]  }
 0x627   :  { %6895 = vmatprep.subr.bf16.mxu0 %v13265_v60 }
 0x629   :  { %6849 = vmatpush1.bf16.msra.mxu1 %v13260_v42  ;;  %v13328_v42 = vld [vmem:[#allocation23 + $0x30c] ss:$16 sps:$4 sm:$0xff]  }
 0x62a   :  { %6896 = vmatpush1.bf16.msra.mxu0 %v13263_v5  ;;  %6850 = vmatprep.subr.bf16.mxu1 %v13268_v54  ;;  %v13380_v5 = vld [vmem:[#allocation26 + $0x30] sm:$0xff]   ;;  %v13381_v54 = vld [vmem:[#allocation26 + $0x68] sm:$0xff]  }
 0x62b   :  { %6897 = vmatprep.subr.bf16.mxu0 %v13271_v63 }
 0x62d   :  { %6851 = vmatpush1.bf16.msra.mxu1 %v13266_v55  ;;  %v13326_v55 = vld [vmem:[#allocation23 + $0x308] ss:$16 sps:$4 sm:$0xff]  }
 0x62e   :  { %6898 = vmatpush1.bf16.msra.mxu0 %v13269_v59  ;;  %6852 = vmatprep.subr.bf16.mxu1 %v13274_v33  ;;  %v13331_v33 = vld [vmem:[#allocation23 + $0x6ec] ss:$16 sps:$4 sm:$0xff]  }
 0x62f   :  { %6899 = vmatprep.subr.bf16.mxu0 %v13277_v45  ;;  %v13382_v45 = vld [vmem:[#allocation26 + $0x28] sm:$0xff]  }
 0x631   :  { %6853 = vmatpush1.bf16.msra.mxu1 %v13272_v61  ;;  %v13383_v61 = vld [vmem:[#allocation26 + $0x60] sm:$0xff]  }
 0x632   :  { %6900 = vmatpush2.bf16.msra.mxu0 %v13275_v62  ;;  %6854 = vmatprep.subr.bf16.mxu1 %v13280_v47  ;;  %v13334_v62 = vld [vmem:[#allocation23 + $0x6cc] ss:$16 sps:$4 sm:$0xff]   ;;  %v13384_v47 = vld [vmem:[#allocation26 + $0x20] sm:$0xff]  }
 0x633   :  { %6901 = vmatprep.subr.bf16.mxu0 %v13283_v17  ;;  %v13385_v17 = vld [vmem:[#allocation26 + $0x58] sm:$0xff]  }
 0x635   :  { %6855 = vmatpush1.bf16.msra.mxu1 %v13278_v53  ;;  %v13332_v53 = vld [vmem:[#allocation23 + $0x6c8] ss:$16 sps:$4 sm:$0xff]  }
 0x636   :  { %6902 = vmatpush2.bf16.msra.mxu0 %v13281_v31  ;;  %6856 = vmatprep.subr.bf16.mxu1 %v13286_v3  ;;  %v13337_v31 = vld [vmem:[#allocation23 + $0x6ac] ss:$16 sps:$4 sm:$0xff]  }
 0x637   :  { %6903 = vmatprep.subr.bf16.mxu0 %v13289_v26  ;;  %v13386_v3 = vld [vmem:[#allocation26 + $0x18] sm:$0xff]   ;;  %v13387_v26 = vld [vmem:[#allocation26 + $0x50] sm:$0xff]  }
 0x639   :  { %6857 = vmatpush1.bf16.msra.mxu1 %v13284_v4  ;;  %v13335_v4 = vld [vmem:[#allocation23 + $0x6a8] ss:$16 sps:$4 sm:$0xff]  }
 0x63a   :  { %6904 = vmatpush2.bf16.msra.mxu0 %v13287_v51  ;;  %6858 = vmatprep.subr.bf16.mxu1 %v13292_v37  ;;  %v13340_v51 = vld [vmem:[#allocation23 + $0x68c] ss:$16 sps:$4 sm:$0xff]   ;;  %v13388_v37 = vld [vmem:[#allocation26 + $0x10] sm:$0xff]  }
 0x63b   :  { %6905 = vmatprep.subr.bf16.mxu0 %v13295_v9  ;;  %v13389_v9 = vld [vmem:[#allocation26 + $0x48] sm:$0xff]  }
 0x63d   :  { %6859 = vmatpush2.bf16.msra.mxu1 %v13290_v14  ;;  %v13343_v14 = vld [vmem:[#allocation23 + $0x66c] ss:$16 sps:$4 sm:$0xff]  }
 0x63e   :  { %6906 = vmatpush2.bf16.msra.mxu0 %v13293_v20  ;;  %6860 = vmatprep.subr.bf16.mxu1 %v13298_v50  ;;  %v13391_v20 = vld [vmem:[#allocation26 + $0x40] sm:$0xff]  }
 0x63f   :  { %6907 = vmatprep.subr.bf16.mxu0 %v13301_v24  ;;  %v13341_v50 = vld [vmem:[#allocation23 + $0x668] ss:$16 sps:$4 sm:$0xff]   ;;  %v13346_v24 = vld [vmem:[#allocation23 + $0x64c] ss:$16 sps:$4 sm:$0xff]  }
 0x641   :  { %6861 = vmatpush2.bf16.msra.mxu1 %v13296_v27  ;;  %v13392_v27 = vld [vmem:[#allocation26] sm:$0xff]  }
 0x642   :  { %6908 = vmatpush2.bf16.msra.mxu0 %v13299_v10  ;;  %6862 = vmatprep.subr.bf16.mxu1 %v13304_v25  ;;  %v13344_v10 = vld [vmem:[#allocation23 + $0x648] ss:$16 sps:$4 sm:$0xff]   ;;  %v13349_v25 = vld [vmem:[#allocation23 + $0x62c] ss:$16 sps:$4 sm:$0xff]  }
 0x643   :  { %6909 = vmatprep.subr.bf16.mxu0 %v13307_v22  ;;  %v13347_v22 = vld [vmem:[#allocation23 + $0x628] ss:$16 sps:$4 sm:$0xff]  }
 0x645   :  { %6863 = vmatpush2.bf16.msra.mxu1 %v13302_v57  ;;  %v13352_v57 = vld [vmem:[#allocation23 + $0x60c] ss:$16 sps:$4 sm:$0xff]  }
 0x646   :  { %6910 = vmatpush2.bf16.msra.mxu0 %v13305_v40  ;;  %6864 = vmatprep.subr.bf16.mxu1 %v13310_v23  ;;  %v13350_v40 = vld [vmem:[#allocation23 + $0x608] ss:$16 sps:$4 sm:$0xff]   ;;  %v13355_v23 = vld [vmem:[#allocation23 + $0x7ec] ss:$16 sps:$4 sm:$0xff]  }
 0x647   :  { %6911 = vmatprep.subr.bf16.mxu0 %v13313_v41  ;;  %v13353_v41 = vld [vmem:[#allocation23 + $0x7e8] ss:$16 sps:$4 sm:$0xff]  }
 0x649   :  { %6865 = vmatpush2.bf16.msra.mxu1 %v13308_v1  ;;  %v13358_v1 = vld [vmem:[#allocation23 + $0x7cc] ss:$16 sps:$4 sm:$0xff]  }
 0x64a   :  { %6912 = vmatpush2.bf16.msra.mxu0 %v13311_v32  ;;  %6866 = vmatprep.subr.bf16.mxu1 %v13316_v35  ;;  %v13356_v32 = vld [vmem:[#allocation23 + $0x7c8] ss:$16 sps:$4 sm:$0xff]   ;;  %v13361_v35 = vld [vmem:[#allocation23 + $0x7ac] ss:$16 sps:$4 sm:$0xff]  }
 0x64b   :  { %6913 = vmatprep.subr.bf16.mxu0 %v13319_v29  ;;  %v13359_v29 = vld [vmem:[#allocation23 + $0x7a8] ss:$16 sps:$4 sm:$0xff]  }
 0x64d   :  { %6867 = vmatpush2.bf16.msra.mxu1 %v13314_v11  ;;  %v13364_v11 = vld [vmem:[#allocation23 + $0x78c] ss:$16 sps:$4 sm:$0xff]  }
 0x64e   :  { %6914 = vmatpush2.bf16.msra.mxu0 %v13317_v52  ;;  %6868 = vmatprep.subr.bf16.mxu1 %v13322_v38  ;;  %v14905_v52 = vld [vmem:[#allocation25] sm:$0xf]  ;;  %v13362_v38 = vld [vmem:[#allocation23 + $0x788] ss:$16 sps:$4 sm:$0xff]  }
 0x64f   :  { %12742 = vmatprep.subr.bf16.mxu0 %v13377_v49  ;;  %v13367_v49 = vld [vmem:[#allocation23 + $0x76c] ss:$16 sps:$4 sm:$0xff]  }
 0x650   :  { %v14898_v58 = vpop.f32.mrf.mxu0 }
 0x651   :  { %6869 = vmatpush2.bf16.msra.mxu1 %v13320_v39  ;;  %6916 = vmatmul.mubr.bf16.vlgmr.msra.gmra.mxu0 %v14863_v56  ;;  %v13329_v56 = vld [vmem:[#allocation23 + $0x6e8] ss:$16 sps:$4 sm:$0xff]   ;;  %v5340_v39 = vrot.slane %v14905_v52, %v14665_v15 }
 0x652   :  { %v14901_v60 = vpop.f32.mrf.mxu0  ;;  %6870 = vmatprep.subr.bf16.mxu1 %v13325_v43  ;;  %12743 = vmatpush3.bf16.msra.mxu0 %v13378_v0  ;;  %v5344_v43 = vrot.slane %v14905_v52, %v14668_v16  ;;  %v13365_v0 = vld [vmem:[#allocation23 + $0x768] ss:$16 sps:$4 sm:$0xff]  }
 0x653   :  { %12744 = vmatprep.subr.bf16.mxu0 %v13379_v44  ;;  %v13370_v44 = vld [vmem:[#allocation23 + $0x74c] ss:$16 sps:$4 sm:$0xff]  }
 0x654   :  { %v6675_v63 = vpop.f32.mrf.mxu0 }
 0x655   :  { %6871 = vmatpush2.bf16.msra.mxu1 %v13323_v7  ;;  %v6672_v7 = vadd.f32 %v14898_v58, %v5340_v39  ;;  %v13374_v58 = vld [vmem:[#allocation23 + $0x708] ss:$16 sps:$4 sm:$0xff]   ;;  %v5348_v39 = vrot.slane %v14905_v52, %v14795_v12 }
 0x656   :  { %v6676_v59 = vpop.f32.mrf.mxu0  ;;  %6872 = vmatprep.subr.bf16.mxu1 %v13328_v42  ;;  %12745 = vmatpush3.bf16.msra.mxu0 %v13380_v5  ;;  %v6674_v42 = vadd.f32 %v14901_v60, %v5344_v43  ;;  %v13368_v5 = vld [vmem:[#allocation23 + $0x748] ss:$16 sps:$4 sm:$0xff]  }
 0x657   :  { %12746 = vmatprep.subr.bf16.mxu0 %v13381_v54  ;;  %v13373_v54 = vld [vmem:[#allocation23 + $0x72c] ss:$16 sps:$4 sm:$0xff]   ;;  %v6713_v63 = vadd.f32 %v14871_v30, %v6672_v7 }
 0x658   :  { %v13394_v30 = vld [vmem:[#allocation26 + $0xb8] sm:$0xff]  }
 0x659   :  { %6873 = vmatpush2.bf16.msra.mxu1 %v13326_v55 }
 0x65a   :  { %6924 = vmatprep.subr.bf16.mxu1 %v13331_v33  ;;  %12747 = vmatpush3.bf16.msra.mxu0 %v13382_v45  ;;  %v6715_v33 = vadd.f32 %v14873_v34, %v6674_v42  ;;  %v13371_v45 = vld [vmem:[#allocation23 + $0x728] ss:$16 sps:$4 sm:$0xff]   ;;  %v13397_v34 = vld [vmem:[#allocation26 + $0xe8] sm:$0xff]  }
 0x65b   :  { %12748 = vmatprep.subr.bf16.mxu0 %v13383_v61 }
 0x65c   :  { %6875 = vmatmul.mubr.bf16.vlgmr.msra.gmra.mxu1 %v14818_v19  ;;  %v13338_v19 = vld [vmem:[#allocation23 + $0x688] ss:$16 sps:$4 sm:$0xff]  }
 0x65d   :  { %6925 = vmatpush1.bf16.msra.mxu1 %v13329_v56  ;;  %6956 = vmatprep.mubr.bf16.mxu1 %v14891_v28  ;;  %v13390_v28 = vld [vmem:[#allocation26 + $0x8] sm:$0xff]  }
 0x65e   :  { %6926 = vmatprep.subr.bf16.mxu1 %v13334_v62  ;;  %12749 = vmatpush3.bf16.msra.mxu0 %v13384_v47  ;;  %v13376_v56 = vld [vmem:[#allocation23 + $0x70c] ss:$16 sps:$4 sm:$0xff]  }
 0x65f   :  { %12750 = vmatprep.subr.bf16.mxu0 %v13385_v17  ;;  %v13393_v17 = vld [vmem:[#allocation26 + $0xf8] sm:$0xff]  }
 0x661   :  { %6927 = vmatpush1.bf16.msra.mxu1 %v13332_v53  ;;  %v13395_v53 = vld [vmem:[#allocation26 + $0xf0] sm:$0xff]  }
 0x662   :  { %6928 = vmatprep.subr.bf16.mxu1 %v13337_v31  ;;  %12751 = vmatpush3.bf16.msra.mxu0 %v13386_v3  ;;  %v13396_v31 = vld [vmem:[#allocation26 + $0xb0] sm:$0xff]   ;;  %v13398_v3 = vld [vmem:[#allocation26 + $0xa8] sm:$0xff]  }
 0x663   :  { %12752 = vmatprep.subr.bf16.mxu0 %v13387_v26  ;;  %v13399_v26 = vld [vmem:[#allocation26 + $0xe0] sm:$0xff]  }
 0x665   :  { %6929 = vmatpush1.bf16.msra.mxu1 %v13335_v4  ;;  %v13400_v4 = vld [vmem:[#allocation26 + $0xa0] sm:$0xff]  }
 0x666   :  { %6930 = vmatprep.subr.bf16.mxu1 %v13340_v51  ;;  %12753 = vmatpush3.bf16.msra.mxu0 %v13388_v37  ;;  %v13401_v51 = vld [vmem:[#allocation26 + $0xd8] sm:$0xff]  }
 0x667   :  { %12754 = vmatprep.subr.bf16.mxu0 %v13389_v9  ;;  %v13402_v37 = vld [vmem:[#allocation26 + $0x98] sm:$0xff]   ;;  %v13404_v9 = vld [vmem:[#allocation26 + $0x90] sm:$0xff]  }
 0x669   :  { %6931 = vmatpush1.bf16.msra.mxu1 %v13338_v19 }
 0x66a   :  { %6932 = vmatprep.subr.bf16.mxu1 %v13343_v14  ;;  %12755 = vmatpush3.bf16.msra.mxu0 %v13390_v28 }
 0x66b   :  { %12756 = vmatprep.subr.bf16.mxu0 %v13391_v20 }
 0x66d   :  { %6933 = vmatpush1.bf16.msra.mxu1 %v13341_v50 }
 0x66e   :  { %6934 = vmatprep.subr.bf16.mxu1 %v13346_v24  ;;  %12757 = vmatpush3.bf16.msra.mxu0 %v13392_v27  ;;  %v13405_v24 = vld [vmem:[#allocation26 + $0xc8] sm:$0xff]  }
 0x671   :  { %6935 = vmatpush1.bf16.msra.mxu1 %v13344_v10  ;;  %v13406_v10 = vld [vmem:[#allocation26 + $0x88] sm:$0xff]  }
 0x672   :  { %6936 = vmatprep.subr.bf16.mxu1 %v13349_v25 }
 0x675   :  { %6937 = vmatpush1.bf16.msra.mxu1 %v13347_v22 }
 0x676   :  { %6938 = vmatprep.subr.bf16.mxu1 %v13352_v57 }
 0x679   :  { %6939 = vmatpush1.bf16.msra.mxu1 %v13350_v40 }
 0x67a   :  { %6940 = vmatprep.subr.bf16.mxu1 %v13355_v23  ;;  %v13407_v23 = vld [vmem:[#allocation26 + $0xc0] sm:$0xff]  }
 0x67d   :  { %6941 = vmatpush2.bf16.msra.mxu1 %v13353_v41 }
 0x67e   :  { %6942 = vmatprep.subr.bf16.mxu1 %v13358_v1  ;;  %v13408_v1 = vld [vmem:[#allocation26 + $0x80] sm:$0xff]  }
 0x681   :  { %6943 = vmatpush2.bf16.msra.mxu1 %v13356_v32 }
 0x682   :  { %6944 = vmatprep.subr.bf16.mxu1 %v13361_v35 }
 0x685   :  { %6945 = vmatpush2.bf16.msra.mxu1 %v13359_v29 }
 0x686   :  { %6946 = vmatprep.subr.bf16.mxu1 %v13364_v11 }
 0x689   :  { %6947 = vmatpush2.bf16.msra.mxu1 %v13362_v38 }
 0x68a   :  { %6948 = vmatprep.subr.bf16.mxu1 %v13367_v49 }
 0x68d   :  { %6949 = vmatpush2.bf16.msra.mxu1 %v13365_v0  ;;  %v5352_v0 = vrot.slane %v14905_v52, %v14798_v18 }
 0x68e   :  { %6950 = vmatprep.subr.bf16.mxu1 %v13370_v44 }
 0x690   :  { %v6753_v55 = vpop.f32.mrf.mxu0 }
 0x691   :  { %v6754_v59 = vadd.f32 %v6753_v55, %v6713_v63  ;;  %6951 = vmatpush2.bf16.msra.mxu1 %v13368_v5 }
 0x692   :  { %v6755_v61 = vpop.f32.mrf.mxu0  ;;  %6952 = vmatprep.subr.bf16.mxu1 %v13373_v54 }
 0x693   :  { %v6756_v62 = vadd.f32 %v6755_v61, %v6715_v33 }
 0x694   :  { %v6757_v47 = vpop.f32.mrf.mxu0 }
 0x695   :  { %6953 = vmatpush2.bf16.msra.mxu1 %v13371_v45 }
 0x696   :  { %v6758_v60 = vpop.f32.mrf.mxu0  ;;  %6954 = vmatprep.subr.bf16.mxu1 %v13376_v56 }
 0x699   :  { %6955 = vmatpush2.bf16.msra.mxu1 %v13374_v58 }
 0x69a   :  { %12764 = vmatprep.subr.bf16.mxu1 %v13393_v17 }
 0x69c   :  { %6957 = vmatmul.mubr.bf16.vlgmr.msra.gmra.mxu1 %v14893_v36  ;;  %v13403_v36 = vld [vmem:[#allocation26 + $0xd0] sm:$0xff]  }
 0x69d   :  { %12765 = vmatpush3.bf16.msra.mxu1 %v13394_v30 }
 0x69e   :  { %12766 = vmatprep.subr.bf16.mxu1 %v13395_v53 }
 0x6a1   :  { %12767 = vmatpush3.bf16.msra.mxu1 %v13396_v31 }
 0x6a2   :  { %12768 = vmatprep.subr.bf16.mxu1 %v13397_v34 }
 0x6a5   :  { %12769 = vmatpush3.bf16.msra.mxu1 %v13398_v3 }
 0x6a6   :  { %12770 = vmatprep.subr.bf16.mxu1 %v13399_v26 }
 0x6a9   :  { %12771 = vmatpush3.bf16.msra.mxu1 %v13400_v4 }
 0x6aa   :  { %12772 = vmatprep.subr.bf16.mxu1 %v13401_v51  ;;  %v7453_v51 = vld [vmem:[#allocation31 + $0x1c0] sm:$0xff] }
 0x6ad   :  { %12773 = vmatpush3.bf16.msra.mxu1 %v13402_v37  ;;  %v7457_v37 = vld [vmem:[#allocation31 + $0x1e0] sm:$0xff] }
 0x6ae   :  { %12774 = vmatprep.subr.bf16.mxu1 %v13403_v36  ;;  %v7454_v36 = vld [vmem:[#allocation31 + $0x1c8] sm:$0xff] }
 0x6b1   :  { %12775 = vmatpush3.bf16.msra.mxu1 %v13404_v9  ;;  %v12273_v9 = vcombine.low %v7453_v51, %v7457_v37 }
 0x6b2   :  { %12776 = vmatprep.subr.bf16.mxu1 %v13405_v24 }
 0x6b5   :  { %12777 = vmatpush3.bf16.msra.mxu1 %v13406_v10  ;;  %v7446_v10 = vld [vmem:[#allocation31 + $0x188] sm:$0xff] }
 0x6b6   :  { %12778 = vmatprep.subr.bf16.mxu1 %v13407_v23  ;;  %v7438_v23 = vld [vmem:[#allocation31 + $0x148] sm:$0xff] }
 0x6b9   :  { %12779 = vmatpush3.bf16.msra.mxu1 %v13408_v1 }
 0x6d0   :  { %v6835_v19 = vpop.f32.mrf.mxu0 }
 0x6d1   :  { %v6836_v44 = vadd.f32 %v6835_v19, %v5348_v39  ;;  %v12274_v19 = vcombine.high %v7453_v51, %v7457_v37  ;;  %v7418_v51 = vld [vmem:[#allocation31 + $0xa8] sm:$0xff]  ;;  %v7405_v37 = vld [vmem:[#allocation31 + $0x40] sm:$0xff] }
 0x6d2   :  { %v6837_v14 = vpop.f32.mrf.mxu0 }
 0x6d3   :  { %v6838_v42 = vadd.f32 %v6837_v14, %v5352_v0  ;;  %v7458_v14 = vld [vmem:[#allocation31 + $0x1e8] sm:$0xff]  ;;  %7781 = vmatprep.subr.bf16.mxu0 %v12274_v19 }
 0x6d4   :  { %v6839_v28 = vpop.f32.mrf.mxu0  ;;  %v12276_v24 = vcombine.high %v7454_v36, %v7458_v14 }
 0x6d5   :  { %v7445_v28 = vld [vmem:[#allocation31 + $0x180] sm:$0xff] }
 0x6d6   :  { %v6840_v20 = vpop.f32.mrf.mxu0  ;;  %7822 = vmatprep.subr.bf16.mxu1 %v12276_v24 }
 0x6d7   :  { %v7449_v20 = vld [vmem:[#allocation31 + $0x1a0] sm:$0xff] }
 0x6d8   :  { %v12265_v1 = vcombine.low %v7445_v28, %v7449_v20 }
 0x6dc   :  { %v6794_v50 = vpop.f32.mrf.mxu1 }
 0x6dd   :  { %v6795_v27 = vadd.f32 %v6794_v50, %v6754_v59  ;;  %v12275_v50 = vcombine.low %v7454_v36, %v7458_v14  ;;  %v7409_v36 = vld [vmem:[#allocation31 + $0x60] sm:$0xff] }
 0x6de   :  { %v6796_v25 = vpop.f32.mrf.mxu1  ;;  %v12226_v24 = vcombine.high %v7405_v37, %v7409_v36 }
 0x6df   :  { %v6797_v22 = vadd.f32 %v6796_v25, %v6756_v62  ;;  %v6965_v57 = vmax.f32 %v6795_v27, 0.0  ;;  %v12266_v27 = vcombine.high %v7445_v28, %v7449_v20  ;;  %v7450_v25 = vld [vmem:[#allocation31 + $0x1a8] sm:$0xff] }
 0x6e0   :  { %v6798_v40 = vpop.f32.mrf.mxu1  ;;  %v7406_v28 = vld [vmem:[#allocation31 + $0x48] sm:$0xff] }
 0x6e1   :  { %v6966_v41 = vmax.f32 %v6797_v22, 0.0  ;;  %v6969_v29 = vpack.c.bf16 %v6965_v57, %v6965_v57  ;;  %v7437_v22 = vld [vmem:[#allocation31 + $0x140] sm:$0xff]  ;;  %v12268_v57 = vcombine.high %v7446_v10, %v7450_v25  ;;  %v7410_v20 = vld [vmem:[#allocation31 + $0x68] sm:$0xff] }
 0x6e2   :  { %v6799_v32 = vpop.f32.mrf.mxu1  ;;  %v7441_v40 = vld [vmem:[#allocation31 + $0x160] sm:$0xff] }
 0x6e3   :  { %v6970_v35 = vpack.c.bf16 %v6966_v41, %v6966_v41  ;;  %v7442_v41 = vld [vmem:[#allocation31 + $0x168] sm:$0xff]  ;;  %v12267_v32 = vcombine.low %v7446_v10, %v7450_v25  ;;  %v7401_v10 = vld [vmem:[#allocation31 + $0x20] sm:$0xff]  ;;  %v12228_v25 = vcombine.high %v7406_v28, %v7410_v20 }
 0x6e5   :  { %7268 = vmatprep.mubr.bf16.mxu0 %v6970_v35  ;;  %v12258_v35 = vcombine.high %v7437_v22, %v7441_v40 }
 0x6e6   :  { %7269 = vmatmul.mubr.bf16.vlgmr.msra.gmra.mxu0 %v6969_v29  ;;  %v12260_v29 = vcombine.high %v7438_v23, %v7442_v41 }
 0x6e7   :  { %7782 = vmatpush1.bf16.msra.mxu0 %v12273_v9  ;;  %v14419_v9 = vmov 0  }
 0x6e8   :  { %7783 = vmatprep.subr.bf16.mxu0 %v12266_v27  ;;  %7813 = vmatprep.mubr.bf16.mxu0 %v14419_v9  ;;  %v7397_v27 = vld [vmem:[#allocation31] sm:$0xff] }
 0x6eb   :  { %7784 = vmatpush1.bf16.msra.mxu0 %v12265_v1 }
 0x6ec   :  { %7785 = vmatprep.subr.bf16.mxu0 %v12258_v35  ;;  %v12225_v35 = vcombine.low %v7405_v37, %v7409_v36  ;;  %v7432_v37 = vld [vmem:[#allocation31 + $0x118] sm:$0xff] }
 0x6ed   :  { %v7436_v36 = vld [vmem:[#allocation31 + $0x138] sm:$0xff] }
 0x711   :  { %v6917_v11 = vpop.f32.mrf.mxu0 }
 0x713   :  { %v6919_v38 = vpop.f32.mrf.mxu0 }
 0x715   :  { %v6921_v49 = vpop.f32.mrf.mxu0 }
 0x716   :  { %v12184_v49 = vld [vmem:[#allocation28] ss:$0 sm:$0xff] }
 0x717   :  { %v6922_v43 = vpop.f32.mrf.mxu0 }
 0x71c   :  { %v6876_v7 = vpop.f32.mrf.mxu1 }
 0x71d   :  { %v6877_v5 = vadd.f32 %v6876_v7, %v6836_v44 }
 0x71e   :  { %v6878_v54 = vpop.f32.mrf.mxu1 }
 0x71f   :  { %v6879_v63 = vadd.f32 %v6878_v54, %v6838_v42  ;;  %v6918_v55 = vadd.f32 %v6917_v11, %v6877_v5  ;;  %v12257_v11 = vcombine.low %v7437_v22, %v7441_v40  ;;  %v7455_v22 = vld [vmem:[#allocation31 + $0x1d0] sm:$0xff]  ;;  %v7456_v40 = vld [vmem:[#allocation31 + $0x1d8] sm:$0xff] }
 0x720   :  { %v6880_v59 = vpop.f32.mrf.mxu1 }
 0x721   :  { %v6920_v33 = vadd.f32 %v6919_v38, %v6879_v63  ;;  %v12259_v38 = vcombine.low %v7438_v23, %v7442_v41  ;;  %7786 = vmatpush1.bf16.msra.mxu0 %v12257_v11  ;;  %v7429_v63 = vld [vmem:[#allocation31 + $0x100] sm:$0xff]  ;;  %v7430_v59 = vld [vmem:[#allocation31 + $0x108] sm:$0xff]  ;;  %v12227_v11 = vcombine.low %v7406_v28, %v7410_v20  ;;  %v12256_v20 = vcombine.high %v7432_v37, %v7436_v36 }
 0x722   :  { %v6881_v45 = vpop.f32.mrf.mxu1  ;;  %v7398_v23 = vld [vmem:[#allocation31 + $0x8] sm:$0xff] }
 0x723   :  { %v7434_v45 = vld [vmem:[#allocation31 + $0x128] sm:$0xff] }
 0x724   :  { %v7402_v41 = vld [vmem:[#allocation31 + $0x28] sm:$0xff] }
 0x75c   :  { %v6958_v61 = vpop.f32.mrf.mxu1 }
 0x75d   :  { %v6959_v56 = vadd.f32 %v6958_v61, %v6918_v55  ;;  %v7433_v55 = vld [vmem:[#allocation31 + $0x120] sm:$0xff] }
 0x75e   :  { %v6960_v62 = vpop.f32.mrf.mxu1  ;;  %v12249_v61 = vcombine.low %v7429_v63, %v7433_v55 }
 0x75f   :  { %v6961_v47 = vadd.f32 %v6960_v62, %v6920_v33  ;;  %v6967_v58 = vmax.f32 %v6959_v56, 0.0  ;;  %v12250_v33 = vcombine.high %v7429_v63, %v7433_v55  ;;  %v12251_v56 = vcombine.low %v7430_v59, %v7434_v45 }
 0x760   :  { %v6962_v60 = vpop.f32.mrf.mxu1  ;;  %v12252_v62 = vcombine.high %v7430_v59, %v7434_v45 }
 0x761   :  { %v6968_v17 = vmax.f32 %v6961_v47, 0.0  ;;  %v6971_v52 = vpack.c.bf16 %v6967_v58, %v6967_v58  ;;  %7787 = vmatprep.subr.bf16.mxu0 %v12250_v33  ;;  %v7421_v47 = vld [vmem:[#allocation31 + $0xc0] sm:$0xff]  ;;  %v7422_v60 = vld [vmem:[#allocation31 + $0xc8] sm:$0xff]  ;;  %v7447_v33 = vld [vmem:[#allocation31 + $0x190] sm:$0xff] }
 0x762   :  { %v6963_v30 = vpop.f32.mrf.mxu1  ;;  %7788 = vmatpush1.bf16.msra.mxu0 %v12249_v61  ;;  %v7425_v58 = vld [vmem:[#allocation31 + $0xe0] sm:$0xff]  ;;  %v7451_v61 = vld [vmem:[#allocation31 + $0x1b0] sm:$0xff] }
 0x763   :  { %v6972_v53 = vpack.c.bf16 %v6968_v17, %v6968_v17  ;;  %v12242_v17 = vcombine.high %v7421_v47, %v7425_v58  ;;  %v7426_v30 = vld [vmem:[#allocation31 + $0xe8] sm:$0xff] }
 0x765   :  { %7308 = vmatprep.mubr.bf16.mxu1 %v6972_v53  ;;  %v12241_v53 = vcombine.low %v7421_v47, %v7425_v58  ;;  %7789 = vmatprep.subr.bf16.mxu0 %v12242_v17 }
 0x766   :  { %7309 = vmatmul.mubr.bf16.vlgmr.msra.gmra.mxu1 %v6971_v52  ;;  %v12243_v52 = vcombine.low %v7422_v60, %v7426_v30 }
 0x767   :  { %7823 = vmatpush1.bf16.msra.mxu1 %v12275_v50  ;;  %7790 = vmatpush1.bf16.msra.mxu0 %v12241_v53  ;;  %v7443_v53 = vld [vmem:[#allocation31 + $0x170] sm:$0xff] }
 0x768   :  { %7824 = vmatprep.subr.bf16.mxu1 %v12268_v57  ;;  %v7459_v57 = vld [vmem:[#allocation31 + $0x1f0] sm:$0xff]  ;;  %7854 = vmatprep.mubr.bf16.mxu1 %v14419_v9 }
 0x769   :  { %v12277_v1 = vcombine.low %v7455_v22, %v7459_v57 }
 0x76b   :  { %7825 = vmatpush1.bf16.msra.mxu1 %v12267_v32  ;;  %v7460_v32 = vld [vmem:[#allocation31 + $0x1f8] sm:$0xff] }
 0x76c   :  { %7826 = vmatprep.subr.bf16.mxu1 %v12260_v29  ;;  %v12279_v29 = vcombine.low %v7456_v40, %v7460_v32 }
 0x76f   :  { %7827 = vmatpush1.bf16.msra.mxu1 %v12259_v38  ;;  %v12218_v38 = vcombine.high %v7397_v27, %v7401_v10 }
 0x770   :  { %7828 = vmatprep.subr.bf16.mxu1 %v12252_v62  ;;  %v7452_v62 = vld [vmem:[#allocation31 + $0x1b8] sm:$0xff] }
 0x773   :  { %7829 = vmatpush1.bf16.msra.mxu1 %v12251_v56  ;;  %v7448_v56 = vld [vmem:[#allocation31 + $0x198] sm:$0xff] }
 0x774   :  { %v12272_v17 = vcombine.high %v7448_v56, %v7452_v62 }
 0x7a6   :  { %v12758_v31 = vpop.f32.mrf.mxu0 }
 0x7a8   :  { %v12759_v34 = vpop.f32.mrf.mxu0 }
 0x7a9   :  { %v12760_v3 = vadd.f32 %v12759_v34, %v12758_v31  ;;  %v12244_v31 = vcombine.high %v7422_v60, %v7426_v30  ;;  %v7413_v34 = vld [vmem:[#allocation31 + $0x80] sm:$0xff]  ;;  %v12270_v60 = vcombine.high %v7447_v33, %v7451_v61  ;;  %v7439_v30 = vld [vmem:[#allocation31 + $0x150] sm:$0xff] }
 0x7aa   :  { %v12761_v26 = vpop.f32.mrf.mxu0 }
 0x7ab   :  { %v7271_v0 = vadd.f32 %v12760_v3, %v12184_v49  ;;  %v7417_v3 = vld [vmem:[#allocation31 + $0xa0] sm:$0xff]  ;;  %v7414_v26 = vld [vmem:[#allocation31 + $0x88] sm:$0xff]  ;;  %7830 = vmatprep.subr.bf16.mxu1 %v12244_v31  ;;  %v12220_v49 = vcombine.high %v7398_v23, %v7402_v41  ;;  %v7444_v31 = vld [vmem:[#allocation31 + $0x178] sm:$0xff] }
 0x7ac   :  { %v12762_v4 = vpop.f32.mrf.mxu0  ;;  %v12233_v19 = vcombine.low %v7413_v34, %v7417_v3  ;;  %v12236_v14 = vcombine.high %v7414_v26, %v7418_v51  ;;  %7831 = vmatpush1.bf16.msra.mxu1 %v12243_v52  ;;  %v12235_v50 = vcombine.low %v7414_v26, %v7418_v51  ;;  %v7440_v52 = vld [vmem:[#allocation31 + $0x158] sm:$0xff]  ;;  %v12262_v26 = vcombine.high %v7439_v30, %v7443_v53  ;;  %v7435_v51 = vld [vmem:[#allocation31 + $0x130] sm:$0xff] }
 0x7ad   :  { %v12234_v4 = vcombine.high %v7413_v34, %v7417_v3  ;;  %v12269_v34 = vcombine.low %v7447_v33, %v7451_v61  ;;  %v12271_v3 = vcombine.low %v7448_v56, %v7452_v62  ;;  %v7404_v33 = vld [vmem:[#allocation31 + $0x38] sm:$0xff] }
 0x7ae   :  { %7832 = vmatprep.subr.bf16.mxu1 %v12236_v14  ;;  %v12263_v14 = vcombine.low %v7440_v52, %v7444_v31 }
 0x7af   :  { %7791 = vmatprep.subr.bf16.mxu0 %v12234_v4  ;;  %v7431_v4 = vld [vmem:[#allocation31 + $0x110] sm:$0xff] }
 0x7b0   :  { %7792 = vmatpush1.bf16.msra.mxu0 %v12233_v19  ;;  %7833 = vmatpush1.bf16.msra.mxu1 %v12235_v50  ;;  %v12261_v19 = vcombine.low %v7439_v30, %v7443_v53  ;;  %v12254_v28 = vcombine.high %v7431_v4, %v7435_v51  ;;  %v7423_v50 = vld [vmem:[#allocation31 + $0xd0] sm:$0xff]  ;;  %v7388_v30 = vld [vmem:[#allocation29 + $0x1c8] sm:$0xff] }
 0x7b1   :  { %7793 = vmatprep.subr.bf16.mxu0 %v12226_v24  ;;  %7834 = vmatprep.subr.bf16.mxu1 %v12228_v25  ;;  %v7427_v24 = vld [vmem:[#allocation31 + $0xf0] sm:$0xff]  ;;  %v12253_v25 = vcombine.low %v7431_v4, %v7435_v51  ;;  %v7392_v53 = vld [vmem:[#allocation29 + $0x1e8] sm:$0xff] }
 0x7b2   :  { %v7380_v4 = vld [vmem:[#allocation29 + $0x188] sm:$0xff] }
 0x7b3   :  { %v7384_v51 = vld [vmem:[#allocation29 + $0x1a8] sm:$0xff] }
 0x7b4   :  { %7794 = vmatpush1.bf16.msra.mxu0 %v12225_v35  ;;  %7835 = vmatpush1.bf16.msra.mxu1 %v12227_v11  ;;  %v12245_v35 = vcombine.low %v7423_v50, %v7427_v24 }
 0x7b5   :  { %7795 = vmatprep.subr.bf16.mxu0 %v12218_v38  ;;  %7836 = vmatprep.subr.bf16.mxu1 %v12220_v49  ;;  %v7407_v49 = vld [vmem:[#allocation31 + $0x50] sm:$0xff] }
 0x826   :  { %v12780_v39 = vpop.f32.mrf.mxu1 }
 0x828   :  { %v12781_v43 = vpop.f32.mrf.mxu1 }
 0x829   :  { %v12782_v44 = vadd.f32 %v12781_v43, %v12780_v39  ;;  %v12217_v39 = vcombine.low %v7397_v27, %v7401_v10  ;;  %v12219_v43 = vcombine.low %v7398_v23, %v7402_v41  ;;  %v7424_v27 = vld [vmem:[#allocation31 + $0xd8] sm:$0xff]  ;;  %v7415_v23 = vld [vmem:[#allocation31 + $0x90] sm:$0xff] }
 0x82a   :  { %v12783_v7 = vpop.f32.mrf.mxu1  ;;  %v7428_v10 = vld [vmem:[#allocation31 + $0xf8] sm:$0xff]  ;;  %v7419_v41 = vld [vmem:[#allocation31 + $0xb0] sm:$0xff] }
 0x82b   :  { %v14920_v42 = vadd.f32 %v12782_v44, %v7271_v0  ;;  %v12278_v0 = vcombine.high %v7455_v22, %v7459_v57  ;;  %v12280_v44 = vcombine.high %v7456_v40, %v7460_v32  ;;  %7796 = vmatpush1.bf16.msra.mxu0 %v12217_v39  ;;  %7837 = vmatpush1.bf16.msra.mxu1 %v12219_v43  ;;  %v7321_v7 = vpop.xlane.xlu1 %7320  ;;  %v7420_v32 = vld [vmem:[#allocation31 + $0xb8] sm:$0xff]  ;;  %v7411_v39 = vld [vmem:[#allocation31 + $0x70] sm:$0xff] }
 0x82c   :  { %v12784_v5 = vpop.f32.mrf.mxu1  ;;  %v12255_v22 = vcombine.low %v7432_v37, %v7436_v36  ;;  %v12246_v57 = vcombine.high %v7423_v50, %v7427_v24  ;;  %v12248_v40 = vcombine.high %v7424_v27, %v7428_v10  ;;  %v12238_v11 = vcombine.high %v7415_v23, %v7419_v41  ;;  %v7408_v43 = vld [vmem:[#allocation31 + $0x58] sm:$0xff]  ;;  %v7372_v50 = vld [vmem:[#allocation29 + $0x148] sm:$0xff] }
 0x82d   :  { %v7323_v54 = vmul.f32 %v14920_v42, %v14920_v42  ;;  %7863 = vmatprep.subr.bf16.mxu0 %v12278_v0  ;;  %7904 = vmatprep.subr.bf16.mxu1 %v12280_v44  ;;  %v7318_v5 = vpop.xlane.xlu0 %7317  ;;  %v7412_v0 = vld [vmem:[#allocation31 + $0x78] sm:$0xff]  ;;  %v12237_v44 = vcombine.low %v7415_v23, %v7419_v41  ;;  %v12229_v61 = vcombine.low %v7407_v49, %v7411_v39  ;;  %v7376_v24 = vld [vmem:[#allocation29 + $0x168] sm:$0xff] }
 0x82e   :  { %v12231_v56 = vcombine.low %v7408_v43, %v7412_v0  ;;  %v12339_v36 = vcombine.low %v7388_v30, %v7392_v53  ;;  %v7364_v23 = vld [vmem:[#allocation29 + $0x108] sm:$0xff] }
 0x82f   :  { %7324 = vadd.xlane.f32.xlu1 %v7323_v54  ;;  %v7322_v54 = vadd.f32 %v7321_v7, %v7318_v5  ;;  %v12230_v5 = vcombine.high %v7407_v49, %v7411_v39  ;;  %v7368_v41 = vld [vmem:[#allocation29 + $0x128] sm:$0xff] }
 0x830   :  { %v7360_v49 = vld [vmem:[#allocation29 + $0xe8] sm:$0xff] }
 0x8b8   :  { %v7325_v63 = vpop.xlane.xlu1 %7324 }
 0x8b9   :  { %v7326_v55 = vadd.f32 %v7325_v63, %v7322_v54  ;;  %v12232_v54 = vcombine.high %v7408_v43, %v7412_v0  ;;  %v7399_v63 = vld [vmem:[#allocation31 + $0x10] sm:$0xff]  ;;  %v12315_v43 = vcombine.low %v7364_v23, %v7368_v41 }
 0x8bb   :  { %v7327_v59 = vmax.f32 %v7326_v55, 1e-24  ;;  %v7403_v55 = vld [vmem:[#allocation31 + $0x30] sm:$0xff] }
 0x8bc   :  { %v12222_v62 = vcombine.high %v7399_v63, %v7403_v55 }
 0x8bd   :  { %13827 = vrsqrt.f32 %v7327_v59  ;;  %v7400_v59 = vld [vmem:[#allocation31 + $0x18] sm:$0xff] }
 0x8ca   :  { %v14926_v45 = vpop.eup %13827 }
 0x8cb   :  { %v7395_v47 = vmul.f32 %v14926_v45, %v14747_v6  ;;  %v12264_v6 = vcombine.high %v7440_v52, %v7444_v31  ;;  %v12221_v52 = vcombine.low %v7399_v63, %v7403_v55  ;;  %v12223_v31 = vcombine.low %v7400_v59, %v7404_v33  ;;  %v7352_v63 = vld [vmem:[#allocation29 + $0xa8] sm:$0xff] }
 0x8cd   :  { %v14930_v58 = vpack.c.bf16 %v7395_v47, %v7395_v47  ;;  %v12224_v47 = vcombine.high %v7400_v59, %v7404_v33 }
 0x8cf   :  { %7814 = vmatmul.mubr.bf16.vlgmr.msra.gmra.mxu0 %v14930_v58  ;;  %7855 = vmatmul.mubr.bf16.vlgmr.msra.gmra.mxu1 %v14930_v58 }
 0x8d0   :  { %7864 = vmatpush1.bf16.msra.mxu0 %v12277_v1  ;;  %7905 = vmatpush1.bf16.msra.mxu1 %v12279_v29  ;;  %v7416_v1 = vld [vmem:[#allocation31 + $0x98] sm:$0xff]  ;;  %v12247_v29 = vcombine.low %v7424_v27, %v7428_v10  ;;  %v12331_v10 = vcombine.low %v7380_v4, %v7384_v51 }
 0x8d1   :  { %7865 = vmatprep.subr.bf16.mxu0 %v12270_v60  ;;  %7906 = vmatprep.subr.bf16.mxu1 %v12272_v17  ;;  %v12240_v38 = vcombine.high %v7416_v1, %v7420_v32  ;;  %v12239_v7 = vcombine.low %v7416_v1, %v7420_v32  ;;  %v7387_v60 = vld [vmem:[#allocation29 + $0x1c0] sm:$0xff] }
 0x8d2   :  { %7895 = vmatprep.mubr.bf16.mxu0 %v14419_v9  ;;  %7936 = vmatprep.mubr.bf16.mxu1 %v14419_v9  ;;  %v7391_v17 = vld [vmem:[#allocation29 + $0x1e0] sm:$0xff] }
 0x8d3   :  { %v12337_v37 = vcombine.low %v7387_v60, %v7391_v17 }
 0x8d4   :  { %7866 = vmatpush1.bf16.msra.mxu0 %v12269_v34  ;;  %7907 = vmatpush1.bf16.msra.mxu1 %v12271_v3  ;;  %v12338_v34 = vcombine.high %v7387_v60, %v7391_v17  ;;  %v12340_v3 = vcombine.high %v7388_v30, %v7392_v53  ;;  %v7344_v60 = vld [vmem:[#allocation29 + $0x68] sm:$0xff] }
 0x8d5   :  { %7867 = vmatprep.subr.bf16.mxu0 %v12262_v26  ;;  %7908 = vmatprep.subr.bf16.mxu1 %v12264_v6  ;;  %v7379_v26 = vld [vmem:[#allocation29 + $0x180] sm:$0xff] }
 0x8d6   :  { %v7383_v6 = vld [vmem:[#allocation29 + $0x1a0] sm:$0xff] }
 0x8d7   :  { %v12329_v27 = vcombine.low %v7379_v26, %v7383_v6 }
 0x8d8   :  { %7868 = vmatpush1.bf16.msra.mxu0 %v12261_v19  ;;  %7909 = vmatpush1.bf16.msra.mxu1 %v12263_v14  ;;  %v12330_v19 = vcombine.high %v7379_v26, %v7383_v6  ;;  %v12332_v14 = vcombine.high %v7380_v4, %v7384_v51  ;;  %v7336_v26 = vld [vmem:[#allocation29 + $0x28] sm:$0xff] }
 0x8d9   :  { %7869 = vmatprep.subr.bf16.mxu0 %v12254_v28  ;;  %7910 = vmatprep.subr.bf16.mxu1 %v12256_v20  ;;  %v7371_v28 = vld [vmem:[#allocation29 + $0x140] sm:$0xff] }
 0x8da   :  { %v7375_v20 = vld [vmem:[#allocation29 + $0x160] sm:$0xff] }
 0x8db   :  { %v12321_v1 = vcombine.low %v7371_v28, %v7375_v20 }
 0x8dc   :  { %7870 = vmatpush1.bf16.msra.mxu0 %v12253_v25  ;;  %7911 = vmatpush1.bf16.msra.mxu1 %v12255_v22  ;;  %v12322_v25 = vcombine.high %v7371_v28, %v7375_v20  ;;  %v12324_v22 = vcombine.high %v7372_v50, %v7376_v24  ;;  %v7394_v28 = vld [vmem:[#allocation29 + $0x1f8] sm:$0xff] }
 0x8dd   :  { %7871 = vmatprep.subr.bf16.mxu0 %v12246_v57  ;;  %7912 = vmatprep.subr.bf16.mxu1 %v12248_v40  ;;  %v7363_v57 = vld [vmem:[#allocation29 + $0x100] sm:$0xff] }
 0x8de   :  { %v7367_v40 = vld [vmem:[#allocation29 + $0x120] sm:$0xff] }
 0x8df   :  { %v12314_v32 = vcombine.high %v7363_v57, %v7367_v40  ;;  %v12313_v39 = vcombine.low %v7363_v57, %v7367_v40  ;;  %v7382_v57 = vld [vmem:[#allocation29 + $0x198] sm:$0xff] }
 0x8e0   :  { %7872 = vmatpush1.bf16.msra.mxu0 %v12245_v35  ;;  %7913 = vmatpush1.bf16.msra.mxu1 %v12247_v29  ;;  %v12316_v35 = vcombine.high %v7364_v23, %v7368_v41  ;;  %v7355_v29 = vld [vmem:[#allocation29 + $0xc0] sm:$0xff]  ;;  %v7386_v40 = vld [vmem:[#allocation29 + $0x1b8] sm:$0xff] }
 0x8e1   :  { %7873 = vmatprep.subr.bf16.mxu0 %v12238_v11  ;;  %7914 = vmatprep.subr.bf16.mxu1 %v12240_v38  ;;  %v7359_v11 = vld [vmem:[#allocation29 + $0xe0] sm:$0xff]  ;;  %v7356_v38 = vld [vmem:[#allocation29 + $0xc8] sm:$0xff] }
 0x8e2   :  { %v12306_v0 = vcombine.high %v7355_v29, %v7359_v11  ;;  %v12305_v55 = vcombine.low %v7355_v29, %v7359_v11  ;;  %v12307_v59 = vcombine.low %v7356_v38, %v7360_v49  ;;  %v7377_v29 = vld [vmem:[#allocation29 + $0x170] sm:$0xff]  ;;  %v7374_v11 = vld [vmem:[#allocation29 + $0x158] sm:$0xff] }
 0x8e4   :  { %7874 = vmatpush1.bf16.msra.mxu0 %v12237_v44  ;;  %7915 = vmatpush1.bf16.msra.mxu1 %v12239_v7  ;;  %v12308_v44 = vcombine.high %v7356_v38, %v7360_v49  ;;  %v7347_v7 = vld [vmem:[#allocation29 + $0x80] sm:$0xff]  ;;  %v12335_v49 = vcombine.low %v7382_v57, %v7386_v40 }
 0x8e5   :  { %7875 = vmatprep.subr.bf16.mxu0 %v12230_v5  ;;  %7916 = vmatprep.subr.bf16.mxu1 %v12232_v54  ;;  %v7351_v5 = vld [vmem:[#allocation29 + $0xa0] sm:$0xff]  ;;  %v7348_v54 = vld [vmem:[#allocation29 + $0x88] sm:$0xff] }
 0x8e6   :  { %v12298_v33 = vcombine.high %v7347_v7, %v7351_v5  ;;  %v12297_v17 = vcombine.low %v7347_v7, %v7351_v5  ;;  %v12299_v30 = vcombine.low %v7348_v54, %v7352_v63  ;;  %v7366_v7 = vld [vmem:[#allocation29 + $0x118] sm:$0xff] }
 0x8e7   :  { %v7370_v5 = vld [vmem:[#allocation29 + $0x138] sm:$0xff] }
 0x8e8   :  { %7876 = vmatpush1.bf16.msra.mxu0 %v12229_v61  ;;  %7917 = vmatpush1.bf16.msra.mxu1 %v12231_v56  ;;  %v12300_v61 = vcombine.high %v7348_v54, %v7352_v63  ;;  %v7339_v56 = vld [vmem:[#allocation29 + $0x40] sm:$0xff] }
 0x8e9   :  { %7877 = vmatprep.subr.bf16.mxu0 %v12222_v62  ;;  %7918 = vmatprep.subr.bf16.mxu1 %v12224_v47  ;;  %v7343_v62 = vld [vmem:[#allocation29 + $0x60] sm:$0xff]  ;;  %v7340_v47 = vld [vmem:[#allocation29 + $0x48] sm:$0xff] }
 0x8ea   :  { %v12290_v53 = vcombine.high %v7339_v56, %v7343_v62  ;;  %v12289_v6 = vcombine.low %v7339_v56, %v7343_v62  ;;  %v12291_v4 = vcombine.low %v7340_v47, %v7344_v60  ;;  %v7358_v56 = vld [vmem:[#allocation29 + $0xd8] sm:$0xff] }
 0x8eb   :  { %v7362_v62 = vld [vmem:[#allocation29 + $0xf8] sm:$0xff] }
 0x8ec   :  { %7878 = vmatpush1.bf16.msra.mxu0 %v12221_v52  ;;  %7919 = vmatpush1.bf16.msra.mxu1 %v12223_v31  ;;  %v12292_v52 = vcombine.high %v7340_v47, %v7344_v60  ;;  %v7331_v31 = vld [vmem:[#allocation29] sm:$0xff]  ;;  %v12319_v60 = vcombine.low %v7366_v7, %v7370_v5 }
 0x8ed   :  { %8265 = vmatprep.subr.bf16.mxu0 %v12338_v34  ;;  %8306 = vmatprep.subr.bf16.mxu1 %v12340_v3  ;;  %v7335_v34 = vld [vmem:[#allocation29 + $0x20] sm:$0xff]  ;;  %v7332_v3 = vld [vmem:[#allocation29 + $0x8] sm:$0xff] }
 0x8ee   :  { %v12282_v51 = vcombine.high %v7331_v31, %v7335_v34  ;;  %v12281_v20 = vcombine.low %v7331_v31, %v7335_v34  ;;  %v7350_v31 = vld [vmem:[#allocation29 + $0x98] sm:$0xff] }
 0x8ef   :  { %7896 = vmatmul.mubr.bf16.vlgmr.msra.gmra.mxu0 %v14930_v58  ;;  %7937 = vmatmul.mubr.bf16.vlgmr.msra.gmra.mxu1 %v14930_v58  ;;  %v12323_v58 = vcombine.low %v7372_v50, %v7376_v24  ;;  %v12283_v50 = vcombine.low %v7332_v3, %v7336_v26  ;;  %v7329_v24 = vmul.f32 %v14926_v45, %v14699_v8  ;;  %v7378_v8 = vld [vmem:[#allocation29 + $0x178] sm:$0xff] }
 0x8f0   :  { %8266 = vmatpush1.bf16.msra.mxu0 %v12337_v37  ;;  %8307 = vmatpush1.bf16.msra.mxu1 %v12339_v36  ;;  %v12284_v37 = vcombine.high %v7332_v3, %v7336_v26  ;;  %v7389_v36 = vld [vmem:[#allocation29 + $0x1d0] sm:$0xff]  ;;  %v12327_v63 = vcombine.low %v7374_v11, %v7378_v8  ;;  %v7354_v34 = vld [vmem:[#allocation29 + $0xb8] sm:$0xff]  ;;  %v12311_v26 = vcombine.low %v7358_v56, %v7362_v62 }
 0x8f1   :  { %8267 = vmatprep.subr.bf16.mxu0 %v12330_v19  ;;  %8308 = vmatprep.subr.bf16.mxu1 %v12332_v14  ;;  %v7393_v19 = vld [vmem:[#allocation29 + $0x1f0] sm:$0xff]  ;;  %v7390_v14 = vld [vmem:[#allocation29 + $0x1d8] sm:$0xff] }
 0x8f2   :  { %8297 = vmatprep.mubr.bf16.mxu0 %v14419_v9  ;;  %8338 = vmatprep.mubr.bf16.mxu1 %v14419_v9  ;;  %v12341_v23 = vcombine.low %v7389_v36, %v7393_v19  ;;  %v12343_v41 = vcombine.low %v7390_v14, %v7394_v28 }
 0x8f4   :  { %8268 = vmatpush1.bf16.msra.mxu0 %v12329_v27  ;;  %8309 = vmatpush1.bf16.msra.mxu1 %v12331_v10  ;;  %v12342_v27 = vcombine.high %v7389_v36, %v7393_v19  ;;  %v12344_v10 = vcombine.high %v7390_v14, %v7394_v28  ;;  %v7342_v36 = vld [vmem:[#allocation29 + $0x58] sm:$0xff]  ;;  %v12303_v28 = vcombine.low %v7350_v31, %v7354_v34 }
 0x8f5   :  { %8269 = vmatprep.subr.bf16.mxu0 %v12322_v25  ;;  %8310 = vmatprep.subr.bf16.mxu1 %v12324_v22  ;;  %v7381_v25 = vld [vmem:[#allocation29 + $0x190] sm:$0xff]  ;;  %v7346_v19 = vld [vmem:[#allocation29 + $0x78] sm:$0xff] }
 0x8f6   :  { %v7385_v22 = vld [vmem:[#allocation29 + $0x1b0] sm:$0xff] }
 0x8f7   :  { %v12333_v38 = vcombine.low %v7381_v25, %v7385_v22 }
 0x8f8   :  { %8270 = vmatpush1.bf16.msra.mxu0 %v12321_v1  ;;  %8311 = vmatpush1.bf16.msra.mxu1 %v12323_v58  ;;  %v14942_v1 = vpack.c.bf16 %v7329_v24, %v7329_v24  ;;  %v12334_v58 = vcombine.high %v7381_v25, %v7385_v22  ;;  %v7333_v24 = vld [vmem:[#allocation29 + $0x10] sm:$0xff]  ;;  %v7338_v25 = vld [vmem:[#allocation29 + $0x38] sm:$0xff] }
 0x8f9   :  { %8271 = vmatprep.subr.bf16.mxu0 %v12314_v32  ;;  %8312 = vmatprep.subr.bf16.mxu1 %v12316_v35  ;;  %v12336_v32 = vcombine.high %v7382_v57, %v7386_v40  ;;  %v7373_v35 = vld [vmem:[#allocation29 + $0x150] sm:$0xff]  ;;  %v12295_v57 = vcombine.low %v7342_v36, %v7346_v19 }
 0x8fa   :  { %v12325_v54 = vcombine.low %v7373_v35, %v7377_v29 }
 0x8fc   :  { %8272 = vmatpush1.bf16.msra.mxu0 %v12313_v39  ;;  %8313 = vmatpush1.bf16.msra.mxu1 %v12315_v43  ;;  %v12326_v39 = vcombine.high %v7373_v35, %v7377_v29  ;;  %v12328_v43 = vcombine.high %v7374_v11, %v7378_v8  ;;  %v8492_v35 = vld [vmem:[#allocation32 + $0x1e8] sm:$0xff] }
 0x8fd   :  { %8273 = vmatprep.subr.bf16.mxu0 %v12306_v0  ;;  %8314 = vmatprep.subr.bf16.mxu1 %v12308_v44  ;;  %v7365_v0 = vld [vmem:[#allocation29 + $0x110] sm:$0xff] }
 0x8fe   :  { %v7369_v44 = vld [vmem:[#allocation29 + $0x130] sm:$0xff] }
 0x8ff   :  { %v12317_v47 = vcombine.low %v7365_v0, %v7369_v44 }
 0x900   :  { %8274 = vmatpush1.bf16.msra.mxu0 %v12305_v55  ;;  %8315 = vmatpush1.bf16.msra.mxu1 %v12307_v59  ;;  %v12318_v55 = vcombine.high %v7365_v0, %v7369_v44  ;;  %v12320_v59 = vcombine.high %v7366_v7, %v7370_v5  ;;  %v8484_v0 = vld [vmem:[#allocation32 + $0x1a8] sm:$0xff] }
 0x901   :  { %8275 = vmatprep.subr.bf16.mxu0 %v12298_v33  ;;  %8316 = vmatprep.subr.bf16.mxu1 %v12300_v61  ;;  %v7357_v33 = vld [vmem:[#allocation29 + $0xd0] sm:$0xff] }
 0x902   :  { %v7361_v61 = vld [vmem:[#allocation29 + $0xf0] sm:$0xff] }
 0x903   :  { %v12309_v3 = vcombine.low %v7357_v33, %v7361_v61 }
 0x904   :  { %8276 = vmatpush1.bf16.msra.mxu0 %v12297_v17  ;;  %8317 = vmatpush1.bf16.msra.mxu1 %v12299_v30  ;;  %v12310_v17 = vcombine.high %v7357_v33, %v7361_v61  ;;  %v12312_v30 = vcombine.high %v7358_v56, %v7362_v62  ;;  %v8476_v33 = vld [vmem:[#allocation32 + $0x168] sm:$0xff] }
 0x905   :  { %8277 = vmatprep.subr.bf16.mxu0 %v12290_v53  ;;  %8318 = vmatprep.subr.bf16.mxu1 %v12292_v52  ;;  %v7349_v53 = vld [vmem:[#allocation29 + $0x90] sm:$0xff] }
 0x906   :  { %v7353_v52 = vld [vmem:[#allocation29 + $0xb0] sm:$0xff] }
 0x907   :  { %v12301_v14 = vcombine.low %v7349_v53, %v7353_v52 }
 0x908   :  { %8278 = vmatpush1.bf16.msra.mxu0 %v12289_v6  ;;  %8319 = vmatpush1.bf16.msra.mxu1 %v12291_v4  ;;  %v12302_v6 = vcombine.high %v7349_v53, %v7353_v52  ;;  %v12304_v4 = vcombine.high %v7350_v31, %v7354_v34  ;;  %v8468_v53 = vld [vmem:[#allocation32 + $0x128] sm:$0xff] }
 0x909   :  { %8279 = vmatprep.subr.bf16.mxu0 %v12282_v51  ;;  %8320 = vmatprep.subr.bf16.mxu1 %v12284_v37  ;;  %v7341_v51 = vld [vmem:[#allocation29 + $0x50] sm:$0xff] }
 0x90a   :  { %v7345_v37 = vld [vmem:[#allocation29 + $0x70] sm:$0xff] }
 0x90b   :  { %v12293_v22 = vcombine.low %v7341_v51, %v7345_v37 }
 0x90c   :  { %8280 = vmatpush1.bf16.msra.mxu0 %v12281_v20  ;;  %8321 = vmatpush1.bf16.msra.mxu1 %v12283_v50  ;;  %v12294_v20 = vcombine.high %v7341_v51, %v7345_v37  ;;  %v12296_v50 = vcombine.high %v7342_v36, %v7346_v19 }
 0x90d   :  { %8347 = vmatprep.subr.bf16.mxu0 %v12342_v27  ;;  %8388 = vmatprep.subr.bf16.mxu1 %v12344_v10  ;;  %v7337_v27 = vld [vmem:[#allocation29 + $0x30] sm:$0xff]  ;;  %v7334_v10 = vld [vmem:[#allocation29 + $0x18] sm:$0xff] }
 0x90e   :  { %v12286_v40 = vcombine.high %v7333_v24, %v7337_v27  ;;  %v12285_v29 = vcombine.low %v7333_v24, %v7337_v27  ;;  %v12287_v11 = vcombine.low %v7334_v10, %v7338_v25 }
 0x90f   :  { %8298 = vmatmul.mubr.bf16.vlgmr.msra.gmra.mxu0 %v14942_v1  ;;  %8339 = vmatmul.mubr.bf16.vlgmr.msra.gmra.mxu1 %v14942_v1 }
 0x910   :  { %8348 = vmatpush1.bf16.msra.mxu0 %v12341_v23  ;;  %8389 = vmatpush1.bf16.msra.mxu1 %v12343_v41  ;;  %v12288_v23 = vcombine.high %v7334_v10, %v7338_v25  ;;  %v8487_v41 = vld [vmem:[#allocation32 + $0x1c0] sm:$0xff] }
 0x911   :  { %8349 = vmatprep.subr.bf16.mxu0 %v12334_v58  ;;  %8390 = vmatprep.subr.bf16.mxu1 %v12336_v32  ;;  %v8491_v58 = vld [vmem:[#allocation32 + $0x1e0] sm:$0xff]  ;;  %v8488_v32 = vld [vmem:[#allocation32 + $0x1c8] sm:$0xff] }
 0x912   :  { %8379 = vmatprep.mubr.bf16.mxu0 %v14419_v9  ;;  %8420 = vmatprep.mubr.bf16.mxu1 %v14419_v9  ;;  %v12402_v8 = vcombine.high %v8487_v41, %v8491_v58  ;;  %v12401_v44 = vcombine.low %v8487_v41, %v8491_v58  ;;  %v12403_v7 = vcombine.low %v8488_v32, %v8492_v35 }
 0x914   :  { %8350 = vmatpush1.bf16.msra.mxu0 %v12333_v38  ;;  %8391 = vmatpush1.bf16.msra.mxu1 %v12335_v49  ;;  %v12404_v38 = vcombine.high %v8488_v32, %v8492_v35  ;;  %v8479_v49 = vld [vmem:[#allocation32 + $0x180] sm:$0xff] }
 0x915   :  { %8351 = vmatprep.subr.bf16.mxu0 %v12326_v39  ;;  %8392 = vmatprep.subr.bf16.mxu1 %v12328_v43  ;;  %v8483_v39 = vld [vmem:[#allocation32 + $0x1a0] sm:$0xff]  ;;  %v8480_v43 = vld [vmem:[#allocation32 + $0x188] sm:$0xff] }
 0x916   :  { %v12394_v5 = vcombine.high %v8479_v49, %v8483_v39  ;;  %v12393_v61 = vcombine.low %v8479_v49, %v8483_v39  ;;  %v12395_v56 = vcombine.low %v8480_v43, %v8484_v0 }
 0x918   :  { %8352 = vmatpush1.bf16.msra.mxu0 %v12325_v54  ;;  %8393 = vmatpush1.bf16.msra.mxu1 %v12327_v63  ;;  %v12396_v54 = vcombine.high %v8480_v43, %v8484_v0  ;;  %v8471_v63 = vld [vmem:[#allocation32 + $0x140] sm:$0xff] }
 0x919   :  { %8353 = vmatprep.subr.bf16.mxu0 %v12318_v55  ;;  %8394 = vmatprep.subr.bf16.mxu1 %v12320_v59  ;;  %v8475_v55 = vld [vmem:[#allocation32 + $0x160] sm:$0xff]  ;;  %v8472_v59 = vld [vmem:[#allocation32 + $0x148] sm:$0xff] }
 0x91a   :  { %v12386_v62 = vcombine.high %v8471_v63, %v8475_v55  ;;  %v12385_v52 = vcombine.low %v8471_v63, %v8475_v55 }
 0x91c   :  { %8354 = vmatpush1.bf16.msra.mxu0 %v12317_v47  ;;  %8395 = vmatpush1.bf16.msra.mxu1 %v12319_v60  ;;  %v12388_v47 = vcombine.high %v8472_v59, %v8476_v33  ;;  %v8463_v60 = vld [vmem:[#allocation32 + $0x100] sm:$0xff] }
 0x91d   :  { %8355 = vmatprep.subr.bf16.mxu0 %v12310_v17  ;;  %8396 = vmatprep.subr.bf16.mxu1 %v12312_v30  ;;  %v8467_v17 = vld [vmem:[#allocation32 + $0x120] sm:$0xff]  ;;  %v8464_v30 = vld [vmem:[#allocation32 + $0x108] sm:$0xff] }
 0x91e   :  { %v12378_v31 = vcombine.high %v8463_v60, %v8467_v17  ;;  %v12380_v34 = vcombine.high %v8464_v30, %v8468_v53  ;;  %v12377_v51 = vcombine.low %v8463_v60, %v8467_v17  ;;  %v12379_v37 = vcombine.low %v8464_v30, %v8468_v53  ;;  %v8486_v60 = vld [vmem:[#allocation32 + $0x1b8] sm:$0xff] }
 0x920   :  { %8356 = vmatpush1.bf16.msra.mxu0 %v12309_v3  ;;  %8397 = vmatpush1.bf16.msra.mxu1 %v12311_v26  ;;  %v8455_v3 = vld [vmem:[#allocation32 + $0xc0] sm:$0xff] }
 0x921   :  { %8357 = vmatprep.subr.bf16.mxu0 %v12302_v6  ;;  %8398 = vmatprep.subr.bf16.mxu1 %v12304_v4  ;;  %v8459_v26 = vld [vmem:[#allocation32 + $0xe0] sm:$0xff]  ;;  %v8456_v6 = vld [vmem:[#allocation32 + $0xc8] sm:$0xff] }
 0x922   :  { %v8460_v4 = vld [vmem:[#allocation32 + $0xe8] sm:$0xff]  ;;  %v12370_v36 = vcombine.high %v8455_v3, %v8459_v26  ;;  %v12369_v24 = vcombine.low %v8455_v3, %v8459_v26  ;;  %v8474_v3 = vld [vmem:[#allocation32 + $0x158] sm:$0xff] }
 0x923   :  { %v12372_v19 = vcombine.high %v8456_v6, %v8460_v4  ;;  %v12371_v27 = vcombine.low %v8456_v6, %v8460_v4 }
 0x924   :  { %8358 = vmatpush1.bf16.msra.mxu0 %v12301_v14  ;;  %8399 = vmatpush1.bf16.msra.mxu1 %v12303_v28  ;;  %v8447_v14 = vld [vmem:[#allocation32 + $0x80] sm:$0xff] }
 0x925   :  { %8359 = vmatprep.subr.bf16.mxu0 %v12294_v20  ;;  %8400 = vmatprep.subr.bf16.mxu1 %v12296_v50  ;;  %v8451_v28 = vld [vmem:[#allocation32 + $0xa0] sm:$0xff]  ;;  %v8448_v20 = vld [vmem:[#allocation32 + $0x88] sm:$0xff] }
 0x926   :  { %v8452_v50 = vld [vmem:[#allocation32 + $0xa8] sm:$0xff]  ;;  %v12362_v10 = vcombine.high %v8447_v14, %v8451_v28  ;;  %v12361_v41 = vcombine.low %v8447_v14, %v8451_v28 }
 0x927   :  { %v12364_v25 = vcombine.high %v8448_v20, %v8452_v50  ;;  %v12363_v58 = vcombine.low %v8448_v20, %v8452_v50 }
 0x928   :  { %8360 = vmatpush1.bf16.msra.mxu0 %v12293_v22  ;;  %8401 = vmatpush1.bf16.msra.mxu1 %v12295_v57  ;;  %v8439_v22 = vld [vmem:[#allocation32 + $0x40] sm:$0xff] }
 0x929   :  { %8361 = vmatprep.subr.bf16.mxu0 %v12286_v40  ;;  %8402 = vmatprep.subr.bf16.mxu1 %v12288_v23  ;;  %v8443_v57 = vld [vmem:[#allocation32 + $0x60] sm:$0xff]  ;;  %v8440_v40 = vld [vmem:[#allocation32 + $0x48] sm:$0xff] }
 0x92a   :  { %v8444_v23 = vld [vmem:[#allocation32 + $0x68] sm:$0xff]  ;;  %v12354_v32 = vcombine.high %v8439_v22, %v8443_v57  ;;  %v12353_v49 = vcombine.low %v8439_v22, %v8443_v57 }
 0x92b   :  { %v12356_v35 = vcombine.high %v8440_v40, %v8444_v23  ;;  %v12355_v39 = vcombine.low %v8440_v40, %v8444_v23  ;;  %v8449_v23 = vld [vmem:[#allocation32 + $0x90] sm:$0xff] }
 0x92c   :  { %8362 = vmatpush1.bf16.msra.mxu0 %v12285_v29  ;;  %8403 = vmatpush1.bf16.msra.mxu1 %v12287_v11  ;;  %v8431_v29 = vld [vmem:[#allocation32] sm:$0xff] }
 0x92d   :  { %8815 = vmatprep.subr.bf16.mxu0 %v12402_v8  ;;  %8856 = vmatprep.subr.bf16.mxu1 %v12404_v38  ;;  %v8435_v11 = vld [vmem:[#allocation32 + $0x20] sm:$0xff]  ;;  %v8432_v8 = vld [vmem:[#allocation32 + $0x8] sm:$0xff] }
 0x92e   :  { %v8436_v38 = vld [vmem:[#allocation32 + $0x28] sm:$0xff]  ;;  %v12346_v43 = vcombine.high %v8431_v29, %v8435_v11  ;;  %v12345_v63 = vcombine.low %v8431_v29, %v8435_v11 }
 0x92f   :  { %8380 = vmatmul.mubr.bf16.vlgmr.msra.gmra.mxu0 %v14942_v1  ;;  %8421 = vmatmul.mubr.bf16.vlgmr.msra.gmra.mxu1 %v14942_v1  ;;  %v12387_v1 = vcombine.low %v8472_v59, %v8476_v33  ;;  %v12348_v0 = vcombine.high %v8432_v8, %v8436_v38  ;;  %v12347_v55 = vcombine.low %v8432_v8, %v8436_v38  ;;  %v8441_v38 = vld [vmem:[#allocation32 + $0x50] sm:$0xff] }
 0x930   :  { %8816 = vmatpush1.bf16.msra.mxu0 %v12401_v44  ;;  %8857 = vmatpush1.bf16.msra.mxu1 %v12403_v7  ;;  %v8489_v44 = vld [vmem:[#allocation32 + $0x1d0] sm:$0xff]  ;;  %v8429_v59 = vmul.f32 %v14926_v45, %v14920_v42  ;;  %v8478_v42 = vld [vmem:[#allocation32 + $0x178] sm:$0xff] }
 0x931   :  { %8817 = vmatprep.subr.bf16.mxu0 %v12394_v5  ;;  %8858 = vmatprep.subr.bf16.mxu1 %v12396_v54  ;;  %v8493_v7 = vld [vmem:[#allocation32 + $0x1f0] sm:$0xff]  ;;  %v8490_v5 = vld [vmem:[#allocation32 + $0x1d8] sm:$0xff]  ;;  %v12392_v4 = vcombine.high %v8474_v3, %v8478_v42  ;;  %v12391_v28 = vcombine.low %v8474_v3, %v8478_v42 }
 0x932   :  { %8847 = vmatprep.mubr.bf16.mxu0 %v14419_v9  ;;  %8888 = vmatprep.mubr.bf16.mxu1 %v14419_v9  ;;  %v8494_v54 = vld [vmem:[#allocation32 + $0x1f8] sm:$0xff]  ;;  %v12406_v33 = vcombine.high %v8489_v44, %v8493_v7  ;;  %v12405_v17 = vcombine.low %v8489_v44, %v8493_v7  ;;  %v14954_v53 = vpack.c.bf16 %v8429_v59, %v8429_v59 }
 0x933   :  { %v12407_v30 = vcombine.low %v8490_v5, %v8494_v54  ;;  %v8438_v59 = vld [vmem:[#allocation32 + $0x38] sm:$0xff] }
 0x934   :  { %8818 = vmatpush1.bf16.msra.mxu0 %v12393_v61  ;;  %8859 = vmatpush1.bf16.msra.mxu1 %v12395_v56  ;;  %v12408_v61 = vcombine.high %v8490_v5, %v8494_v54  ;;  %v8481_v56 = vld [vmem:[#allocation32 + $0x190] sm:$0xff]  ;;  %v13415_v3 = vld [vmem:[#allocation35 + $0xc0] ss:$16 sps:$4 sm:$0xff]  }
 0x935   :  { %8819 = vmatprep.subr.bf16.mxu0 %v12386_v62  ;;  %8860 = vmatprep.subr.bf16.mxu1 %v12388_v47  ;;  %v8485_v62 = vld [vmem:[#allocation32 + $0x1b0] sm:$0xff]  ;;  %v8482_v47 = vld [vmem:[#allocation32 + $0x198] sm:$0xff] }
 0x936   :  { %v12397_v45 = vcombine.low %v8481_v56, %v8485_v62  ;;  %v12399_v26 = vcombine.low %v8482_v47, %v8486_v60  ;;  %v8433_v54 = vld [vmem:[#allocation32 + $0x10] sm:$0xff]  ;;  %v13418_v42 = vld [vmem:[#allocation35 + $0x2c0] ss:$16 sps:$4 sm:$0xff]  }
 0x938   :  { %8820 = vmatpush1.bf16.msra.mxu0 %v12385_v52  ;;  %8861 = vmatpush1.bf16.msra.mxu1 %v12387_v1  ;;  %v12398_v52 = vcombine.high %v8481_v56, %v8485_v62  ;;  %v12400_v1 = vcombine.high %v8482_v47, %v8486_v60 }
 0x939   :  { %8821 = vmatprep.subr.bf16.mxu0 %v12378_v31  ;;  %8862 = vmatprep.subr.bf16.mxu1 %v12380_v34  ;;  %v8473_v31 = vld [vmem:[#allocation32 + $0x150] sm:$0xff] }
 0x93a   :  { %v8477_v34 = vld [vmem:[#allocation32 + $0x170] sm:$0xff] }
 0x93b   :  { %v12390_v6 = vcombine.high %v8473_v31, %v8477_v34  ;;  %v12389_v14 = vcombine.low %v8473_v31, %v8477_v34  ;;  %v13417_v31 = vld [vmem:[#allocation35 + $0xc4] ss:$16 sps:$4 sm:$0xff]  }
 0x93c   :  { %8822 = vmatpush1.bf16.msra.mxu0 %v12377_v51  ;;  %8863 = vmatpush1.bf16.msra.mxu1 %v12379_v37  ;;  %v8465_v51 = vld [vmem:[#allocation32 + $0x110] sm:$0xff]  ;;  %v13420_v34 = vld [vmem:[#allocation35 + $0x2c4] ss:$16 sps:$4 sm:$0xff]  }
 0x93d   :  { %8823 = vmatprep.subr.bf16.mxu0 %v12370_v36  ;;  %8864 = vmatprep.subr.bf16.mxu1 %v12372_v19  ;;  %v8469_v37 = vld [vmem:[#allocation32 + $0x130] sm:$0xff]  ;;  %v8466_v36 = vld [vmem:[#allocation32 + $0x118] sm:$0xff] }
 0x93e   :  { %v8470_v19 = vld [vmem:[#allocation32 + $0x138] sm:$0xff]  ;;  %v12382_v20 = vcombine.high %v8465_v51, %v8469_v37  ;;  %v12381_v22 = vcombine.low %v8465_v51, %v8469_v37 }
 0x93f   :  { %v12384_v50 = vcombine.high %v8466_v36, %v8470_v19  ;;  %v12383_v57 = vcombine.low %v8466_v36, %v8470_v19  ;;  %v13429_v51 = vld [vmem:[#allocation35 + $0x84] ss:$16 sps:$4 sm:$0xff]   ;;  %v13427_v36 = vld [vmem:[#allocation35 + $0x80] ss:$16 sps:$4 sm:$0xff]  }
 0x940   :  { %8824 = vmatpush1.bf16.msra.mxu0 %v12369_v24  ;;  %8865 = vmatpush1.bf16.msra.mxu1 %v12371_v27  ;;  %v8457_v24 = vld [vmem:[#allocation32 + $0xd0] sm:$0xff]  ;;  %v13432_v37 = vld [vmem:[#allocation35 + $0x284] ss:$16 sps:$4 sm:$0xff]  }
 0x941   :  { %8825 = vmatprep.subr.bf16.mxu0 %v12362_v10  ;;  %8866 = vmatprep.subr.bf16.mxu1 %v12364_v25  ;;  %v8461_v27 = vld [vmem:[#allocation32 + $0xf0] sm:$0xff]  ;;  %v8458_v10 = vld [vmem:[#allocation32 + $0xd8] sm:$0xff] }
 0x942   :  { %v8462_v25 = vld [vmem:[#allocation32 + $0xf8] sm:$0xff]  ;;  %v12374_v40 = vcombine.high %v8457_v24, %v8461_v27 }
 0x943   :  { %v12375_v29 = vcombine.low %v8458_v10, %v8462_v25  ;;  %v13435_v19 = vld [vmem:[#allocation35 + $0x64] ss:$16 sps:$4 sm:$0xff]  }
 0x944   :  { %8826 = vmatpush1.bf16.msra.mxu0 %v12361_v41  ;;  %8867 = vmatpush1.bf16.msra.mxu1 %v12363_v58  ;;  %v8453_v41 = vld [vmem:[#allocation32 + $0xb0] sm:$0xff]  ;;  %v8450_v58 = vld [vmem:[#allocation32 + $0x98] sm:$0xff] }
 0x945   :  { %8827 = vmatprep.subr.bf16.mxu0 %v12354_v32  ;;  %8868 = vmatprep.subr.bf16.mxu1 %v12356_v35  ;;  %v8454_v32 = vld [vmem:[#allocation32 + $0xb8] sm:$0xff]  ;;  %v12373_v35 = vcombine.low %v8457_v24, %v8461_v27  ;;  %v12366_v11 = vcombine.high %v8449_v23, %v8453_v41 }
 0x946   :  { %v12368_v8 = vcombine.high %v8450_v58, %v8454_v32  ;;  %v12367_v44 = vcombine.low %v8450_v58, %v8454_v32  ;;  %v13444_v24 = vld [vmem:[#allocation35 + $0x244] ss:$16 sps:$4 sm:$0xff]   ;;  %v13439_v27 = vld [vmem:[#allocation35 + $0x40] ss:$16 sps:$4 sm:$0xff]  }
 0x947   :  { %v13454_v58 = vld [vmem:[#allocation35 + $0x200] ss:$16 sps:$4 sm:$0xff]   ;;  %v13459_v32 = vld [vmem:[#allocation35 + $0x1e4] ss:$16 sps:$4 sm:$0xff]  }
 0x948   :  { %8828 = vmatpush1.bf16.msra.mxu0 %v12353_v49  ;;  %8869 = vmatpush1.bf16.msra.mxu1 %v12355_v39  ;;  %v8445_v49 = vld [vmem:[#allocation32 + $0x70] sm:$0xff]  ;;  %v8442_v39 = vld [vmem:[#allocation32 + $0x58] sm:$0xff] }
 0x949   :  { %8829 = vmatprep.subr.bf16.mxu0 %v12346_v43  ;;  %8870 = vmatprep.subr.bf16.mxu1 %v12348_v0  ;;  %v8446_v43 = vld [vmem:[#allocation32 + $0x78] sm:$0xff]  ;;  %v12365_v0 = vcombine.low %v8449_v23, %v8453_v41  ;;  %v12358_v7 = vcombine.high %v8441_v38, %v8445_v49 }
 0x94a   :  { %v12360_v5 = vcombine.high %v8442_v39, %v8446_v43  ;;  %v13456_v23 = vld [vmem:[#allocation35 + $0x204] ss:$16 sps:$4 sm:$0xff]   ;;  %v13451_v41 = vld [vmem:[#allocation35] ss:$16 sps:$4 sm:$0xff]  }
 0x94c   :  { %8830 = vmatpush1.bf16.msra.mxu0 %v12345_v63  ;;  %8871 = vmatpush1.bf16.msra.mxu1 %v12347_v55  ;;  %v8437_v63 = vld [vmem:[#allocation32 + $0x30] sm:$0xff]  ;;  %v8434_v55 = vld [vmem:[#allocation32 + $0x18] sm:$0xff] }
 0x94d   :  { %8897 = vmatprep.subr.bf16.mxu0 %v12406_v33  ;;  %8938 = vmatprep.subr.bf16.mxu1 %v12408_v61  ;;  %v12357_v33 = vcombine.low %v8441_v38, %v8445_v49  ;;  %v12359_v61 = vcombine.low %v8442_v39, %v8446_v43  ;;  %v12350_v56 = vcombine.high %v8433_v54, %v8437_v63  ;;  %v13468_v38 = vld [vmem:[#allocation35 + $0x3c4] ss:$16 sps:$4 sm:$0xff]   ;;  %v13463_v43 = vld [vmem:[#allocation35 + $0x1c0] ss:$16 sps:$4 sm:$0xff]  }
 0x94e   :  { %v12352_v62 = vcombine.high %v8434_v55, %v8438_v59  ;;  %v12349_v47 = vcombine.low %v8433_v54, %v8437_v63  ;;  %v12351_v60 = vcombine.low %v8434_v55, %v8438_v59  ;;  %v13474_v54 = vld [vmem:[#allocation35 + $0x3a4] ss:$16 sps:$4 sm:$0xff]   ;;  %v13469_v59 = vld [vmem:[#allocation35 + $0x1a0] ss:$16 sps:$4 sm:$0xff]  }
 0x94f   :  { %8848 = vmatmul.mubr.bf16.vlgmr.msra.gmra.mxu0 %v14954_v53  ;;  %8889 = vmatmul.mubr.bf16.vlgmr.msra.gmra.mxu1 %v14954_v53 }
 0x950   :  { %8898 = vmatpush1.bf16.msra.mxu0 %v12405_v17  ;;  %8939 = vmatpush1.bf16.msra.mxu1 %v12407_v30  ;;  %v13411_v17 = vld [vmem:[#allocation35 + $0xe4] ss:$16 sps:$4 sm:$0xff]  }
 0x951   :  { %8899 = vmatprep.subr.bf16.mxu0 %v12398_v52  ;;  %8940 = vmatprep.subr.bf16.mxu1 %v12400_v1  ;;  %v13414_v30 = vld [vmem:[#allocation35 + $0x2e4] ss:$16 sps:$4 sm:$0xff]   ;;  %v13409_v52 = vld [vmem:[#allocation35 + $0xe0] ss:$16 sps:$4 sm:$0xff]  }
 0x952   :  { %8929 = vmatprep.mubr.bf16.mxu0 %v14419_v9  ;;  %8970 = vmatprep.mubr.bf16.mxu1 %v14419_v9  ;;  %v12376_v9 = vcombine.high %v8458_v10, %v8462_v25  ;;  %v13412_v1 = vld [vmem:[#allocation35 + $0x2e0] ss:$16 sps:$4 sm:$0xff]   ;;  %v13447_v25 = vld [vmem:[#allocation35 + $0x24] ss:$16 sps:$4 sm:$0xff]  }
 0x953   :  { %v13442_v10 = vld [vmem:[#allocation35 + $0x240] ss:$16 sps:$4 sm:$0xff]  }
 0x954   :  { %8900 = vmatpush1.bf16.msra.mxu0 %v12397_v45  ;;  %8941 = vmatpush1.bf16.msra.mxu1 %v12399_v26  ;;  %v13423_v45 = vld [vmem:[#allocation35 + $0xa4] ss:$16 sps:$4 sm:$0xff]  }
 0x955   :  { %8901 = vmatprep.subr.bf16.mxu0 %v12390_v6  ;;  %8942 = vmatprep.subr.bf16.mxu1 %v12392_v4  ;;  %v13426_v26 = vld [vmem:[#allocation35 + $0x2a4] ss:$16 sps:$4 sm:$0xff]   ;;  %v13421_v6 = vld [vmem:[#allocation35 + $0xa0] ss:$16 sps:$4 sm:$0xff]  }
 0x956   :  { %v13424_v4 = vld [vmem:[#allocation35 + $0x2a0] ss:$16 sps:$4 sm:$0xff]  }
 0x958   :  { %8902 = vmatpush1.bf16.msra.mxu0 %v12389_v14  ;;  %8943 = vmatpush1.bf16.msra.mxu1 %v12391_v28  ;;  %v13438_v14 = vld [vmem:[#allocation35 + $0x264] ss:$16 sps:$4 sm:$0xff]   ;;  %v13433_v28 = vld [vmem:[#allocation35 + $0x60] ss:$16 sps:$4 sm:$0xff]  }
 0x959   :  { %8903 = vmatprep.subr.bf16.mxu0 %v12382_v20  ;;  %8944 = vmatprep.subr.bf16.mxu1 %v12384_v50  ;;  %v13436_v20 = vld [vmem:[#allocation35 + $0x260] ss:$16 sps:$4 sm:$0xff]   ;;  %v13441_v50 = vld [vmem:[#allocation35 + $0x44] ss:$16 sps:$4 sm:$0xff]  }
 0x95c   :  { %8904 = vmatpush1.bf16.msra.mxu0 %v12381_v22  ;;  %8945 = vmatpush1.bf16.msra.mxu1 %v12383_v57  ;;  %v13450_v22 = vld [vmem:[#allocation35 + $0x224] ss:$16 sps:$4 sm:$0xff]   ;;  %v13445_v57 = vld [vmem:[#allocation35 + $0x20] ss:$16 sps:$4 sm:$0xff]  }
 0x95d   :  { %8905 = vmatprep.subr.bf16.mxu0 %v12374_v40  ;;  %8946 = vmatprep.subr.bf16.mxu1 %v12376_v9  ;;  %v13448_v40 = vld [vmem:[#allocation35 + $0x220] ss:$16 sps:$4 sm:$0xff]   ;;  %v13453_v9 = vld [vmem:[#allocation35 + $0x4] ss:$16 sps:$4 sm:$0xff]  }
 0x960   :  { %8906 = vmatpush1.bf16.msra.mxu0 %v12373_v35  ;;  %8947 = vmatpush1.bf16.msra.mxu1 %v12375_v29  ;;  %v13462_v35 = vld [vmem:[#allocation35 + $0x3e4] ss:$16 sps:$4 sm:$0xff]   ;;  %v13457_v29 = vld [vmem:[#allocation35 + $0x1e0] ss:$16 sps:$4 sm:$0xff]  }
 0x961   :  { %8907 = vmatprep.subr.bf16.mxu0 %v12366_v11  ;;  %8948 = vmatprep.subr.bf16.mxu1 %v12368_v8  ;;  %v13460_v11 = vld [vmem:[#allocation35 + $0x3e0] ss:$16 sps:$4 sm:$0xff]   ;;  %v13465_v8 = vld [vmem:[#allocation35 + $0x1c4] ss:$16 sps:$4 sm:$0xff]  }
 0x964   :  { %8908 = vmatpush1.bf16.msra.mxu0 %v12365_v0  ;;  %8949 = vmatpush1.bf16.msra.mxu1 %v12367_v44  ;;  %v13466_v0 = vld [vmem:[#allocation35 + $0x3c0] ss:$16 sps:$4 sm:$0xff]  }
 0x965   :  { %8909 = vmatprep.subr.bf16.mxu0 %v12358_v7  ;;  %8950 = vmatprep.subr.bf16.mxu1 %v12360_v5  ;;  %v13471_v5 = vld [vmem:[#allocation35 + $0x1a4] ss:$16 sps:$4 sm:$0xff]  }
 0x968   :  { %8910 = vmatpush1.bf16.msra.mxu0 %v12357_v33  ;;  %8951 = vmatpush1.bf16.msra.mxu1 %v12359_v61  ;;  %v13472_v33 = vld [vmem:[#allocation35 + $0x3a0] ss:$16 sps:$4 sm:$0xff]  }
 0x969   :  { %8911 = vmatprep.subr.bf16.mxu0 %v12350_v56  ;;  %8952 = vmatprep.subr.bf16.mxu1 %v12352_v62  ;;  %v13477_v62 = vld [vmem:[#allocation35 + $0x184] ss:$16 sps:$4 sm:$0xff]  }
 0x96c   :  { %8912 = vmatpush1.bf16.msra.mxu0 %v12349_v47  ;;  %8953 = vmatpush1.bf16.msra.mxu1 %v12351_v60  ;;  %v13480_v47 = vld [vmem:[#allocation35 + $0x384] ss:$16 sps:$4 sm:$0xff]   ;;  %v13475_v60 = vld [vmem:[#allocation35 + $0x180] ss:$16 sps:$4 sm:$0xff]  }
 0x96d   :  { %10611 = vmatprep.subr.bf16.mxu0 %v13411_v17  ;;  %10652 = vmatprep.subr.bf16.mxu1 %v13414_v30  ;;  %v13478_v17 = vld [vmem:[#allocation35 + $0x380] ss:$16 sps:$4 sm:$0xff]   ;;  %v13483_v30 = vld [vmem:[#allocation35 + $0x164] ss:$16 sps:$4 sm:$0xff]  }
 0x96f   :  { %8930 = vmatmul.mubr.bf16.vlgmr.msra.gmra.mxu0 %v14954_v53  ;;  %8971 = vmatmul.mubr.bf16.vlgmr.msra.gmra.mxu1 %v14954_v53  ;;  %v13430_v53 = vld [vmem:[#allocation35 + $0x280] ss:$16 sps:$4 sm:$0xff]  }
 0x970   :  { %10612 = vmatpush1.bf16.msra.mxu0 %v13409_v52  ;;  %10653 = vmatpush1.bf16.msra.mxu1 %v13412_v1  ;;  %v13486_v52 = vld [vmem:[#allocation35 + $0x364] ss:$16 sps:$4 sm:$0xff]   ;;  %v13481_v1 = vld [vmem:[#allocation35 + $0x160] ss:$16 sps:$4 sm:$0xff]  }
 0x971   :  { %10613 = vmatprep.subr.bf16.mxu0 %v13417_v31  ;;  %10654 = vmatprep.subr.bf16.mxu1 %v13420_v34  ;;  %v13484_v31 = vld [vmem:[#allocation35 + $0x360] ss:$16 sps:$4 sm:$0xff]   ;;  %v13489_v34 = vld [vmem:[#allocation35 + $0x144] ss:$16 sps:$4 sm:$0xff]  }
 0x974   :  { %10614 = vmatpush1.bf16.msra.mxu0 %v13415_v3  ;;  %10655 = vmatpush1.bf16.msra.mxu1 %v13418_v42  ;;  %v13492_v3 = vld [vmem:[#allocation35 + $0x344] ss:$16 sps:$4 sm:$0xff]   ;;  %v13487_v42 = vld [vmem:[#allocation35 + $0x140] ss:$16 sps:$4 sm:$0xff]  }
 0x975   :  { %10615 = vmatprep.subr.bf16.mxu0 %v13423_v45  ;;  %10656 = vmatprep.subr.bf16.mxu1 %v13426_v26  ;;  %v13490_v45 = vld [vmem:[#allocation35 + $0x340] ss:$16 sps:$4 sm:$0xff]   ;;  %v13495_v26 = vld [vmem:[#allocation35 + $0x124] ss:$16 sps:$4 sm:$0xff]  }
 0x978   :  { %10616 = vmatpush1.bf16.msra.mxu0 %v13421_v6  ;;  %10657 = vmatpush1.bf16.msra.mxu1 %v13424_v4  ;;  %v13498_v6 = vld [vmem:[#allocation35 + $0x324] ss:$16 sps:$4 sm:$0xff]   ;;  %v13493_v4 = vld [vmem:[#allocation35 + $0x120] ss:$16 sps:$4 sm:$0xff]  }
 0x979   :  { %10617 = vmatprep.subr.bf16.mxu0 %v13429_v51  ;;  %10658 = vmatprep.subr.bf16.mxu1 %v13432_v37  ;;  %v13496_v51 = vld [vmem:[#allocation35 + $0x320] ss:$16 sps:$4 sm:$0xff]   ;;  %v13501_v37 = vld [vmem:[#allocation35 + $0x104] ss:$16 sps:$4 sm:$0xff]  }
 0x97c   :  { %10618 = vmatpush1.bf16.msra.mxu0 %v13427_v36  ;;  %10659 = vmatpush1.bf16.msra.mxu1 %v13430_v53  ;;  %v13504_v36 = vld [vmem:[#allocation35 + $0x304] ss:$16 sps:$4 sm:$0xff]   ;;  %v13499_v53 = vld [vmem:[#allocation35 + $0x100] ss:$16 sps:$4 sm:$0xff]  }
 0x97d   :  { %10619 = vmatprep.subr.bf16.mxu0 %v13435_v19  ;;  %10660 = vmatprep.subr.bf16.mxu1 %v13438_v14  ;;  %v13502_v19 = vld [vmem:[#allocation35 + $0x300] ss:$16 sps:$4 sm:$0xff]   ;;  %v13507_v14 = vld [vmem:[#allocation35 + $0x4e4] ss:$16 sps:$4 sm:$0xff]  }
 0x980   :  { %10620 = vmatpush1.bf16.msra.mxu0 %v13433_v28  ;;  %10661 = vmatpush1.bf16.msra.mxu1 %v13436_v20  ;;  %v13510_v28 = vld [vmem:[#allocation35 + $0x6e4] ss:$16 sps:$4 sm:$0xff]  }
 0x981   :  { %10621 = vmatprep.subr.bf16.mxu0 %v13441_v50  ;;  %10662 = vmatprep.subr.bf16.mxu1 %v13444_v24 }
 0x984   :  { %10622 = vmatpush1.bf16.msra.mxu0 %v13439_v27  ;;  %10663 = vmatpush1.bf16.msra.mxu1 %v13442_v10 }
 0x985   :  { %10623 = vmatprep.subr.bf16.mxu0 %v13447_v25  ;;  %10664 = vmatprep.subr.bf16.mxu1 %v13450_v22 }
 0x988   :  { %10624 = vmatpush1.bf16.msra.mxu0 %v13445_v57  ;;  %10665 = vmatpush1.bf16.msra.mxu1 %v13448_v40 }
 0x989   :  { %10625 = vmatprep.subr.bf16.mxu0 %v13453_v9  ;;  %10666 = vmatprep.subr.bf16.mxu1 %v13456_v23 }
 0x98c   :  { %10626 = vmatpush1.bf16.msra.mxu0 %v13451_v41  ;;  %10667 = vmatpush1.bf16.msra.mxu1 %v13454_v58 }
 0x98d   :  { %10627 = vmatprep.subr.bf16.mxu0 %v13459_v32  ;;  %10668 = vmatprep.subr.bf16.mxu1 %v13462_v35 }
 0x98f   :  { %v14962_v49 = vpop.f32.mrf.mxu0  ;;  %v14964_v39 = vpop.f32.mrf.mxu1 }
 0x990   :  { %10628 = vmatpush2.bf16.msra.mxu0 %v13457_v29  ;;  %10669 = vmatpush2.bf16.msra.mxu1 %v13460_v11 }
 0x991   :  { %v14966_v44 = vpop.f32.mrf.mxu0  ;;  %v14968_v7 = vpop.f32.mrf.mxu1  ;;  %10629 = vmatprep.subr.bf16.mxu0 %v13465_v8  ;;  %10670 = vmatprep.subr.bf16.mxu1 %v13468_v38 }
 0x993   :  { %v7819_v63 = vpop.f32.mrf.mxu0  ;;  %v7860_v55 = vpop.f32.mrf.mxu1 }
 0x994   :  { %10630 = vmatpush2.bf16.msra.mxu0 %v13463_v43  ;;  %10671 = vmatpush2.bf16.msra.mxu1 %v13466_v0 }
 0x995   :  { %v7820_v61 = vpop.f32.mrf.mxu0  ;;  %v7861_v56 = vpop.f32.mrf.mxu1  ;;  %10631 = vmatprep.subr.bf16.mxu0 %v13471_v5  ;;  %10672 = vmatprep.subr.bf16.mxu1 %v13474_v54 }
 0x998   :  { %10632 = vmatpush2.bf16.msra.mxu0 %v13469_v59  ;;  %10673 = vmatpush2.bf16.msra.mxu1 %v13472_v33  ;;  %v14984_v33 = vld [vmem:[#allocation34] sm:$0xff] }
 0x999   :  { %10633 = vmatprep.subr.bf16.mxu0 %v13477_v62  ;;  %10674 = vmatprep.subr.bf16.mxu1 %v13480_v47  ;;  %v8992_v61 = vrot.slane %v14984_v33, %v14665_v15  ;;  %v9000_v56 = vrot.slane %v14984_v33, %v14795_v12 }
 0x99c   :  { %10634 = vmatpush2.bf16.msra.mxu0 %v13475_v60  ;;  %10675 = vmatpush2.bf16.msra.mxu1 %v13478_v17  ;;  %v8996_v60 = vrot.slane %v14984_v33, %v14668_v16  ;;  %v9004_v17 = vrot.slane %v14984_v33, %v14798_v18 }
 0x99d   :  { %10635 = vmatprep.subr.bf16.mxu0 %v13483_v30  ;;  %10676 = vmatprep.subr.bf16.mxu1 %v13486_v52 }
 0x9a0   :  { %10636 = vmatpush2.bf16.msra.mxu0 %v13481_v1  ;;  %10677 = vmatpush2.bf16.msra.mxu1 %v13484_v31 }
 0x9a1   :  { %10637 = vmatprep.subr.bf16.mxu0 %v13489_v34  ;;  %10678 = vmatprep.subr.bf16.mxu1 %v13492_v3 }
 0x9a4   :  { %10638 = vmatpush2.bf16.msra.mxu0 %v13487_v42  ;;  %10679 = vmatpush2.bf16.msra.mxu1 %v13490_v45 }
 0x9a5   :  { %10639 = vmatprep.subr.bf16.mxu0 %v13495_v26  ;;  %10680 = vmatprep.subr.bf16.mxu1 %v13498_v6 }
 0x9a8   :  { %10640 = vmatpush2.bf16.msra.mxu0 %v13493_v4  ;;  %10681 = vmatpush2.bf16.msra.mxu1 %v13496_v51 }
 0x9a9   :  { %10641 = vmatprep.subr.bf16.mxu0 %v13501_v37  ;;  %10682 = vmatprep.subr.bf16.mxu1 %v13504_v36 }
 0x9ac   :  { %10642 = vmatpush2.bf16.msra.mxu0 %v13499_v53  ;;  %10683 = vmatpush2.bf16.msra.mxu1 %v13502_v19 }
 0x9ad   :  { %10693 = vmatprep.subr.bf16.mxu0 %v13507_v14  ;;  %10734 = vmatprep.subr.bf16.mxu1 %v13510_v28 }
 0x9af   :  { %v7897_v20 = vpop.f32.mrf.mxu0  ;;  %v7938_v50 = vpop.f32.mrf.mxu1 }
 0x9b1   :  { %v14970_v24 = vpop.f32.mrf.mxu0  ;;  %v14972_v27 = vpop.f32.mrf.mxu1 }
 0x9b3   :  { %v7901_v10 = vpop.f32.mrf.mxu0  ;;  %v7942_v25 = vpop.f32.mrf.mxu1 }
 0x9b4   :  { %v13505_v10 = vld [vmem:[#allocation35 + $0x4e0] ss:$16 sps:$4 sm:$0xff]  }
 0x9b5   :  { %v7902_v22 = vpop.f32.mrf.mxu0  ;;  %v7943_v57 = vpop.f32.mrf.mxu1  ;;  %v13508_v25 = vld [vmem:[#allocation35 + $0x6e0] ss:$16 sps:$4 sm:$0xff]  }
 0x9cf   :  { %v8299_v40 = vpop.f32.mrf.mxu0  ;;  %v8340_v9 = vpop.f32.mrf.mxu1 }
 0x9d0   :  { %v8300_v23 = vadd.f32 %v8299_v40, %v14962_v49  ;;  %v8341_v41 = vadd.f32 %v8340_v9, %v14964_v39  ;;  %v13513_v40 = vld [vmem:[#allocation35 + $0x4c4] ss:$16 sps:$4 sm:$0xff]  }
 0x9d1   :  { %v8301_v58 = vpop.f32.mrf.mxu0  ;;  %v8342_v32 = vpop.f32.mrf.mxu1  ;;  %v13516_v9 = vld [vmem:[#allocation35 + $0x6c4] ss:$16 sps:$4 sm:$0xff]  }
 0x9d2   :  { %v8302_v30 = vadd.f32 %v8301_v58, %v14966_v44  ;;  %v8343_v52 = vadd.f32 %v8342_v32, %v14968_v7  ;;  %v13519_v58 = vld [vmem:[#allocation35 + $0x4a4] ss:$16 sps:$4 sm:$0xff]  }
 0x9d3   :  { %v8303_v35 = vpop.f32.mrf.mxu0  ;;  %v8344_v29 = vpop.f32.mrf.mxu1  ;;  %v13522_v32 = vld [vmem:[#allocation35 + $0x6a4] ss:$16 sps:$4 sm:$0xff]  }
 0x9d4   :  { %v13517_v35 = vld [vmem:[#allocation35 + $0x4a0] ss:$16 sps:$4 sm:$0xff]  }
 0x9d5   :  { %v8304_v11 = vpop.f32.mrf.mxu0  ;;  %v8345_v8 = vpop.f32.mrf.mxu1  ;;  %v13520_v29 = vld [vmem:[#allocation35 + $0x6a0] ss:$16 sps:$4 sm:$0xff]  }
 0x9d6   :  { %v13525_v11 = vld [vmem:[#allocation35 + $0x484] ss:$16 sps:$4 sm:$0xff]  }
 0x9d7   :  { %v13528_v8 = vld [vmem:[#allocation35 + $0x684] ss:$16 sps:$4 sm:$0xff]  }
 0x9ef   :  { %v8381_v38 = vpop.f32.mrf.mxu0  ;;  %v8422_v43 = vpop.f32.mrf.mxu1 }
 0x9f0   :  { %v14976_v0 = vadd.f32 %v8381_v38, %v7897_v20  ;;  %v14978_v5 = vadd.f32 %v8422_v43, %v7938_v50  ;;  %v13523_v38 = vld [vmem:[#allocation35 + $0x480] ss:$16 sps:$4 sm:$0xff]  }
 0x9f1   :  { %v14980_v54 = vpop.f32.mrf.mxu0  ;;  %v14982_v63 = vpop.f32.mrf.mxu1  ;;  %v13526_v43 = vld [vmem:[#allocation35 + $0x680] ss:$16 sps:$4 sm:$0xff]  }
 0x9f3   :  { %v8385_v55 = vpop.f32.mrf.mxu0  ;;  %v8426_v49 = vpop.f32.mrf.mxu1 }
 0x9f4   :  { %v13531_v55 = vld [vmem:[#allocation35 + $0x464] ss:$16 sps:$4 sm:$0xff]  }
 0x9f5   :  { %v8386_v59 = vpop.f32.mrf.mxu0  ;;  %v8427_v39 = vpop.f32.mrf.mxu1  ;;  %v13534_v49 = vld [vmem:[#allocation35 + $0x664] ss:$16 sps:$4 sm:$0xff]  }
 0x9f6   :  { %v13529_v59 = vld [vmem:[#allocation35 + $0x460] ss:$16 sps:$4 sm:$0xff]  }
 0x9f7   :  { %v13532_v39 = vld [vmem:[#allocation35 + $0x660] ss:$16 sps:$4 sm:$0xff]  }
 0xa0f   :  { %v8849_v62 = vpop.f32.mrf.mxu0  ;;  %v8890_v47 = vpop.f32.mrf.mxu1 }
 0xa10   :  { %v8979_v1 = vadd.f32 %v8849_v62, %v8300_v23  ;;  %v8981_v31 = vadd.f32 %v8890_v47, %v8341_v41  ;;  %v13511_v23 = vld [vmem:[#allocation35 + $0x4c0] ss:$16 sps:$4 sm:$0xff]  }
 0xa11   :  { %v8851_v34 = vpop.f32.mrf.mxu0  ;;  %v8892_v3 = vpop.f32.mrf.mxu1  ;;  %v13514_v41 = vld [vmem:[#allocation35 + $0x6c0] ss:$16 sps:$4 sm:$0xff]  }
 0xa12   :  { %v9029_v42 = vadd.f32 %v8992_v61, %v8979_v1  ;;  %v9031_v45 = vadd.f32 %v9000_v56, %v8981_v31  ;;  %v8980_v26 = vadd.f32 %v8851_v34, %v8302_v30  ;;  %v8982_v6 = vadd.f32 %v8892_v3, %v8343_v52  ;;  %v13537_v61 = vld [vmem:[#allocation35 + $0x444] ss:$16 sps:$4 sm:$0xff]   ;;  %v13535_v62 = vld [vmem:[#allocation35 + $0x440] ss:$16 sps:$4 sm:$0xff]  }
 0xa13   :  { %v8853_v4 = vpop.f32.mrf.mxu0  ;;  %v8894_v51 = vpop.f32.mrf.mxu1  ;;  %v13540_v56 = vld [vmem:[#allocation35 + $0x644] ss:$16 sps:$4 sm:$0xff]   ;;  %v13538_v47 = vld [vmem:[#allocation35 + $0x640] ss:$16 sps:$4 sm:$0xff]   ;;  %v9008_v30 = vrot.slane %v14984_v33, %v1825_v46  ;;  %v9016_v52 = vrot.slane %v14984_v33, %v1833_v21  ;;  %v8384_v1 = vadd.f32 %v14980_v54, %v14970_v24  ;;  %v9012_v3 = vrot.slane %v14984_v33, %v1829_v48 }
 0xa14   :  { %v9030_v37 = vadd.f32 %v8996_v60, %v8980_v26  ;;  %v9032_v36 = vadd.f32 %v9004_v17, %v8982_v6  ;;  %v9037_v53 = vmax.f32 %v9029_v42, 0.0  ;;  %v9039_v19 = vmax.f32 %v9031_v45, 0.0  ;;  %v13543_v60 = vld [vmem:[#allocation35 + $0x424] ss:$16 sps:$4 sm:$0xff]   ;;  %v13541_v24 = vld [vmem:[#allocation35 + $0x420] ss:$16 sps:$4 sm:$0xff]  }
 0xa15   :  { %v8854_v14 = vpop.f32.mrf.mxu0  ;;  %v8895_v28 = vpop.f32.mrf.mxu1  ;;  %v13546_v17 = vld [vmem:[#allocation35 + $0x624] ss:$16 sps:$4 sm:$0xff]   ;;  %v9020_v42 = vrot.slane %v14984_v33, %v1837_v2  ;;  %v8425_v46 = vadd.f32 %v14982_v63, %v14972_v27  ;;  %v13544_v54 = vld [vmem:[#allocation35 + $0x620] ss:$16 sps:$4 sm:$0xff]  }
 0xa16   :  { %v9038_v20 = vmax.f32 %v9030_v37, 0.0  ;;  %v9040_v44 = vmax.f32 %v9032_v36, 0.0  ;;  %v15000_v22 = vpack.c.bf16 %v9037_v53, %v9037_v53  ;;  %v15002_v57 = vpack.c.bf16 %v9039_v19, %v9039_v19  ;;  %v13549_v48 = vld [vmem:[#allocation35 + $0x404] ss:$16 sps:$4 sm:$0xff]   ;;  %v13547_v37 = vld [vmem:[#allocation35 + $0x400] ss:$16 sps:$4 sm:$0xff]  }
 0xa17   :  { %v13552_v4 = vld [vmem:[#allocation35 + $0x604] ss:$16 sps:$4 sm:$0xff]   ;;  %v13550_v36 = vld [vmem:[#allocation35 + $0x600] ss:$16 sps:$4 sm:$0xff]  }
 0xa18   :  { %v14996_v50 = vpack.c.bf16 %v9038_v20, %v9038_v20  ;;  %v14998_v7 = vpack.c.bf16 %v9040_v44, %v9040_v44  ;;  %v13555_v14 = vld [vmem:[#allocation35 + $0x5e4] ss:$16 sps:$4 sm:$0xff]  }
 0xa19   :  { %v13558_v28 = vld [vmem:[#allocation35 + $0x7e4] ss:$16 sps:$4 sm:$0xff]  }
 0xa1a   :  { %10643 = vmatprep.mubr.bf16.mxu0 %v14996_v50  ;;  %10684 = vmatprep.mubr.bf16.mxu1 %v14998_v7 }
 0xa1b   :  { %10644 = vmatmul.mubr.bf16.vlgmr.msra.gmra.mxu0 %v15000_v22  ;;  %10685 = vmatmul.mubr.bf16.vlgmr.msra.gmra.mxu1 %v15002_v57 }
 0xa1c   :  { %10694 = vmatpush1.bf16.msra.mxu0 %v13505_v10  ;;  %10735 = vmatpush1.bf16.msra.mxu1 %v13508_v25 }
 0xa1d   :  { %10695 = vmatprep.subr.bf16.mxu0 %v13513_v40  ;;  %10736 = vmatprep.subr.bf16.mxu1 %v13516_v9  ;;  %v13553_v40 = vld [vmem:[#allocation35 + $0x5e0] ss:$16 sps:$4 sm:$0xff]  }
 0xa1e   :  { %v13556_v9 = vld [vmem:[#allocation35 + $0x7e0] ss:$16 sps:$4 sm:$0xff]  }
 0xa20   :  { %10696 = vmatpush1.bf16.msra.mxu0 %v13511_v23  ;;  %10737 = vmatpush1.bf16.msra.mxu1 %v13514_v41  ;;  %v13561_v23 = vld [vmem:[#allocation35 + $0x5c4] ss:$16 sps:$4 sm:$0xff]  }
 0xa21   :  { %10697 = vmatprep.subr.bf16.mxu0 %v13519_v58  ;;  %10738 = vmatprep.subr.bf16.mxu1 %v13522_v32  ;;  %v13564_v41 = vld [vmem:[#allocation35 + $0x7c4] ss:$16 sps:$4 sm:$0xff]   ;;  %v13559_v58 = vld [vmem:[#allocation35 + $0x5c0] ss:$16 sps:$4 sm:$0xff]  }
 0xa22   :  { %v13562_v32 = vld [vmem:[#allocation35 + $0x7c0] ss:$16 sps:$4 sm:$0xff]  }
 0xa24   :  { %10698 = vmatpush1.bf16.msra.mxu0 %v13517_v35  ;;  %10739 = vmatpush1.bf16.msra.mxu1 %v13520_v29  ;;  %v13567_v35 = vld [vmem:[#allocation35 + $0x5a4] ss:$16 sps:$4 sm:$0xff]  }
 0xa25   :  { %10699 = vmatprep.subr.bf16.mxu0 %v13525_v11  ;;  %10740 = vmatprep.subr.bf16.mxu1 %v13528_v8  ;;  %v13570_v29 = vld [vmem:[#allocation35 + $0x7a4] ss:$16 sps:$4 sm:$0xff]   ;;  %v13565_v11 = vld [vmem:[#allocation35 + $0x5a0] ss:$16 sps:$4 sm:$0xff]  }
 0xa26   :  { %v13568_v8 = vld [vmem:[#allocation35 + $0x7a0] ss:$16 sps:$4 sm:$0xff]  }
 0xa28   :  { %10700 = vmatpush1.bf16.msra.mxu0 %v13523_v38  ;;  %10741 = vmatpush1.bf16.msra.mxu1 %v13526_v43  ;;  %v13573_v38 = vld [vmem:[#allocation35 + $0x584] ss:$16 sps:$4 sm:$0xff]  }
 0xa29   :  { %10701 = vmatprep.subr.bf16.mxu0 %v13531_v55  ;;  %10742 = vmatprep.subr.bf16.mxu1 %v13534_v49  ;;  %v13576_v43 = vld [vmem:[#allocation35 + $0x784] ss:$16 sps:$4 sm:$0xff]   ;;  %v13571_v55 = vld [vmem:[#allocation35 + $0x580] ss:$16 sps:$4 sm:$0xff]  }
 0xa2a   :  { %v13574_v49 = vld [vmem:[#allocation35 + $0x780] ss:$16 sps:$4 sm:$0xff]  }
 0xa2c   :  { %10702 = vmatpush1.bf16.msra.mxu0 %v13529_v59  ;;  %10743 = vmatpush1.bf16.msra.mxu1 %v13532_v39  ;;  %v13579_v59 = vld [vmem:[#allocation35 + $0x564] ss:$16 sps:$4 sm:$0xff]  }
 0xa2d   :  { %10703 = vmatprep.subr.bf16.mxu0 %v13537_v61  ;;  %10744 = vmatprep.subr.bf16.mxu1 %v13540_v56  ;;  %v13582_v39 = vld [vmem:[#allocation35 + $0x764] ss:$16 sps:$4 sm:$0xff]   ;;  %v13577_v61 = vld [vmem:[#allocation35 + $0x560] ss:$16 sps:$4 sm:$0xff]  }
 0xa2e   :  { %v13580_v56 = vld [vmem:[#allocation35 + $0x760] ss:$16 sps:$4 sm:$0xff]  }
 0xa2f   :  { %v8931_v31 = vpop.f32.mrf.mxu0  ;;  %v8972_v34 = vpop.f32.mrf.mxu1 }
 0xa30   :  { %v8983_v45 = vadd.f32 %v8931_v31, %v14976_v0  ;;  %v8985_v21 = vadd.f32 %v8972_v34, %v14978_v5  ;;  %10704 = vmatpush1.bf16.msra.mxu0 %v13535_v62  ;;  %10745 = vmatpush1.bf16.msra.mxu1 %v13538_v47  ;;  %v13585_v62 = vld [vmem:[#allocation35 + $0x544] ss:$16 sps:$4 sm:$0xff]   ;;  %v13592_v31 = vld [vmem:[#allocation35 + $0x720] ss:$16 sps:$4 sm:$0xff]  }
 0xa31   :  { %v8933_v26 = vpop.f32.mrf.mxu0  ;;  %v8974_v6 = vpop.f32.mrf.mxu1  ;;  %10705 = vmatprep.subr.bf16.mxu0 %v13543_v60  ;;  %10746 = vmatprep.subr.bf16.mxu1 %v13546_v17  ;;  %v13588_v47 = vld [vmem:[#allocation35 + $0x744] ss:$16 sps:$4 sm:$0xff]   ;;  %v13583_v60 = vld [vmem:[#allocation35 + $0x540] ss:$16 sps:$4 sm:$0xff]  }
 0xa32   :  { %v15026_v13 = vadd.f32 %v9008_v30, %v8983_v45  ;;  %v15028_v2 = vadd.f32 %v9016_v52, %v8985_v21  ;;  %v8984_v33 = vadd.f32 %v8933_v26, %v8384_v1  ;;  %v8986_v27 = vadd.f32 %v8974_v6, %v8425_v46  ;;  %v13586_v17 = vld [vmem:[#allocation35 + $0x740] ss:$16 sps:$4 sm:$0xff]   ;;  %v13591_v30 = vld [vmem:[#allocation35 + $0x524] ss:$16 sps:$4 sm:$0xff]   ;;  %v13601_v26 = vld [vmem:[#allocation35 + $0xe8] ss:$16 sps:$4 sm:$0xff]  }
 0xa33   :  { %v8935_v63 = vpop.f32.mrf.mxu0  ;;  %v8976_v0 = vpop.f32.mrf.mxu1  ;;  %v13594_v52 = vld [vmem:[#allocation35 + $0x724] ss:$16 sps:$4 sm:$0xff]   ;;  %v13589_v1 = vld [vmem:[#allocation35 + $0x520] ss:$16 sps:$4 sm:$0xff]  }
 0xa34   :  { %v9034_v51 = vadd.f32 %v9012_v3, %v8984_v33  ;;  %v9036_v5 = vadd.f32 %v9020_v42, %v8986_v27  ;;  %10706 = vmatpush1.bf16.msra.mxu0 %v13541_v24  ;;  %10747 = vmatpush1.bf16.msra.mxu1 %v13544_v54  ;;  %v13597_v34 = vld [vmem:[#allocation35 + $0x504] ss:$16 sps:$4 sm:$0xff]   ;;  %v13595_v42 = vld [vmem:[#allocation35 + $0x500] ss:$16 sps:$4 sm:$0xff]   ;;  %v9041_v45 = vmax.f32 %v15026_v13, 0.0  ;;  %v9043_v21 = vmax.f32 %v15028_v2, 0.0 }
 0xa35   :  { %v8936_v53 = vpop.f32.mrf.mxu0  ;;  %v8977_v19 = vpop.f32.mrf.mxu1  ;;  %10707 = vmatprep.subr.bf16.mxu0 %v13549_v48  ;;  %10748 = vmatprep.subr.bf16.mxu1 %v13552_v4  ;;  %v13600_v3 = vld [vmem:[#allocation35 + $0x704] ss:$16 sps:$4 sm:$0xff]   ;;  %v13598_v46 = vld [vmem:[#allocation35 + $0x700] ss:$16 sps:$4 sm:$0xff]   ;;  %v13603_v24 = vld [vmem:[#allocation35 + $0xec] ss:$16 sps:$4 sm:$0xff]  }
 0xa36   :  { %v9042_v20 = vmax.f32 %v9034_v51, 0.0  ;;  %v9044_v44 = vmax.f32 %v9036_v5, 0.0  ;;  %v13606_v54 = vld [vmem:[#allocation35 + $0x2ec] ss:$16 sps:$4 sm:$0xff]   ;;  %v15038_v6 = vpack.c.bf16 %v9041_v45, %v9041_v45  ;;  %v15040_v48 = vpack.c.bf16 %v9043_v21, %v9043_v21  ;;  %v13604_v4 = vld [vmem:[#allocation35 + $0x2e8] ss:$16 sps:$4 sm:$0xff]  }
 0xa37   :  { %v13609_v33 = vld [vmem:[#allocation35 + $0xcc] ss:$16 sps:$4 sm:$0xff]   ;;  %v13607_v13 = vld [vmem:[#allocation35 + $0xc8] ss:$16 sps:$4 sm:$0xff]  }
 0xa38   :  { %v15030_v10 = vpack.c.bf16 %v9042_v20, %v9042_v20  ;;  %v15032_v25 = vpack.c.bf16 %v9044_v44, %v9044_v44  ;;  %10708 = vmatpush1.bf16.msra.mxu0 %v13547_v37  ;;  %10749 = vmatpush1.bf16.msra.mxu1 %v13550_v36  ;;  %v13612_v27 = vld [vmem:[#allocation35 + $0x2cc] ss:$16 sps:$4 sm:$0xff]   ;;  %v13610_v2 = vld [vmem:[#allocation35 + $0x2c8] ss:$16 sps:$4 sm:$0xff]  }
 0xa39   :  { %10709 = vmatprep.subr.bf16.mxu0 %v13555_v14  ;;  %10750 = vmatprep.subr.bf16.mxu1 %v13558_v28  ;;  %v13615_v63 = vld [vmem:[#allocation35 + $0xac] ss:$16 sps:$4 sm:$0xff]   ;;  %v13613_v51 = vld [vmem:[#allocation35 + $0xa8] ss:$16 sps:$4 sm:$0xff]  }
 0xa3a   :  { %10725 = vmatprep.mubr.bf16.mxu0 %v15030_v10  ;;  %10766 = vmatprep.mubr.bf16.mxu1 %v15032_v25  ;;  %v13618_v0 = vld [vmem:[#allocation35 + $0x2ac] ss:$16 sps:$4 sm:$0xff]   ;;  %v13616_v5 = vld [vmem:[#allocation35 + $0x2a8] ss:$16 sps:$4 sm:$0xff]  }
 0xa3b   :  { %v13621_v37 = vld [vmem:[#allocation35 + $0x8c] ss:$16 sps:$4 sm:$0xff]   ;;  %v13619_v53 = vld [vmem:[#allocation35 + $0x88] ss:$16 sps:$4 sm:$0xff]  }
 0xa3c   :  { %10710 = vmatpush2.bf16.msra.mxu0 %v13553_v40  ;;  %10751 = vmatpush2.bf16.msra.mxu1 %v13556_v9  ;;  %v13624_v36 = vld [vmem:[#allocation35 + $0x28c] ss:$16 sps:$4 sm:$0xff]   ;;  %v13625_v14 = vld [vmem:[#allocation35 + $0x68] ss:$16 sps:$4 sm:$0xff]  }
 0xa3d   :  { %10711 = vmatprep.subr.bf16.mxu0 %v13561_v23  ;;  %10752 = vmatprep.subr.bf16.mxu1 %v13564_v41  ;;  %v13627_v19 = vld [vmem:[#allocation35 + $0x6c] ss:$16 sps:$4 sm:$0xff]   ;;  %v13628_v28 = vld [vmem:[#allocation35 + $0x268] ss:$16 sps:$4 sm:$0xff]  }
 0xa3e   :  { %v13633_v20 = vld [vmem:[#allocation35 + $0x4c] ss:$16 sps:$4 sm:$0xff]   ;;  %v13631_v40 = vld [vmem:[#allocation35 + $0x48] ss:$16 sps:$4 sm:$0xff]  }
 0xa3f   :  { %v13636_v44 = vld [vmem:[#allocation35 + $0x24c] ss:$16 sps:$4 sm:$0xff]   ;;  %v13634_v9 = vld [vmem:[#allocation35 + $0x248] ss:$16 sps:$4 sm:$0xff]  }
 0xa40   :  { %10712 = vmatpush2.bf16.msra.mxu0 %v13559_v58  ;;  %10753 = vmatpush2.bf16.msra.mxu1 %v13562_v32  ;;  %v13639_v23 = vld [vmem:[#allocation35 + $0x2c] ss:$16 sps:$4 sm:$0xff]   ;;  %v13637_v58 = vld [vmem:[#allocation35 + $0x28] ss:$16 sps:$4 sm:$0xff]  }
 0xa41   :  { %10713 = vmatprep.subr.bf16.mxu0 %v13567_v35  ;;  %10754 = vmatprep.subr.bf16.mxu1 %v13570_v29  ;;  %v13642_v41 = vld [vmem:[#allocation35 + $0x22c] ss:$16 sps:$4 sm:$0xff]   ;;  %v13640_v32 = vld [vmem:[#allocation35 + $0x228] ss:$16 sps:$4 sm:$0xff]  }
 0xa42   :  { %v13645_v35 = vld [vmem:[#allocation35 + $0xc] ss:$16 sps:$4 sm:$0xff]  }
 0xa43   :  { %v13648_v29 = vld [vmem:[#allocation35 + $0x20c] ss:$16 sps:$4 sm:$0xff]  }
 0xa44   :  { %10714 = vmatpush2.bf16.msra.mxu0 %v13565_v11  ;;  %10755 = vmatpush2.bf16.msra.mxu1 %v13568_v8  ;;  %v13643_v11 = vld [vmem:[#allocation35 + $0x8] ss:$16 sps:$4 sm:$0xff]   ;;  %v13681_v45 = vld [vmem:[#allocation35 + $0x14c] ss:$16 sps:$4 sm:$0xff]  }
 0xa45   :  { %10715 = vmatprep.subr.bf16.mxu0 %v13573_v38  ;;  %10756 = vmatprep.subr.bf16.mxu1 %v13576_v43  ;;  %v13646_v8 = vld [vmem:[#allocation35 + $0x208] ss:$16 sps:$4 sm:$0xff]   ;;  %v13651_v38 = vld [vmem:[#allocation35 + $0x1ec] ss:$16 sps:$4 sm:$0xff]  }
 0xa46   :  { %v13654_v43 = vld [vmem:[#allocation35 + $0x3ec] ss:$16 sps:$4 sm:$0xff]  }
 0xa47   :  { %v13684_v21 = vld [vmem:[#allocation35 + $0x34c] ss:$16 sps:$4 sm:$0xff]  }
 0xa48   :  { %10716 = vmatpush2.bf16.msra.mxu0 %v13571_v55  ;;  %10757 = vmatpush2.bf16.msra.mxu1 %v13574_v49  ;;  %v13649_v55 = vld [vmem:[#allocation35 + $0x1e8] ss:$16 sps:$4 sm:$0xff]  }
 0xa49   :  { %10717 = vmatprep.subr.bf16.mxu0 %v13579_v59  ;;  %10758 = vmatprep.subr.bf16.mxu1 %v13582_v39  ;;  %v13652_v49 = vld [vmem:[#allocation35 + $0x3e8] ss:$16 sps:$4 sm:$0xff]   ;;  %v13657_v59 = vld [vmem:[#allocation35 + $0x1cc] ss:$16 sps:$4 sm:$0xff]  }
 0xa4a   :  { %v13660_v39 = vld [vmem:[#allocation35 + $0x3cc] ss:$16 sps:$4 sm:$0xff]  }
 0xa4c   :  { %10718 = vmatpush2.bf16.msra.mxu0 %v13577_v61  ;;  %10759 = vmatpush2.bf16.msra.mxu1 %v13580_v56  ;;  %v13655_v61 = vld [vmem:[#allocation35 + $0x1c8] ss:$16 sps:$4 sm:$0xff]  }
 0xa4d   :  { %10719 = vmatprep.subr.bf16.mxu0 %v13585_v62  ;;  %10760 = vmatprep.subr.bf16.mxu1 %v13588_v47  ;;  %v13658_v56 = vld [vmem:[#allocation35 + $0x3c8] ss:$16 sps:$4 sm:$0xff]   ;;  %v13663_v62 = vld [vmem:[#allocation35 + $0x1ac] ss:$16 sps:$4 sm:$0xff]  }
 0xa4e   :  { %v13666_v47 = vld [vmem:[#allocation35 + $0x3ac] ss:$16 sps:$4 sm:$0xff]  }
 0xa50   :  { %10720 = vmatpush2.bf16.msra.mxu0 %v13583_v60  ;;  %10761 = vmatpush2.bf16.msra.mxu1 %v13586_v17  ;;  %v13661_v60 = vld [vmem:[#allocation35 + $0x1a8] ss:$16 sps:$4 sm:$0xff]  }
 0xa51   :  { %10721 = vmatprep.subr.bf16.mxu0 %v13591_v30  ;;  %10762 = vmatprep.subr.bf16.mxu1 %v13594_v52  ;;  %v13664_v17 = vld [vmem:[#allocation35 + $0x3a8] ss:$16 sps:$4 sm:$0xff]   ;;  %v13669_v30 = vld [vmem:[#allocation35 + $0x18c] ss:$16 sps:$4 sm:$0xff]  }
 0xa52   :  { %v13672_v52 = vld [vmem:[#allocation35 + $0x38c] ss:$16 sps:$4 sm:$0xff]  }
 0xa54   :  { %10722 = vmatpush2.bf16.msra.mxu0 %v13589_v1  ;;  %10763 = vmatpush2.bf16.msra.mxu1 %v13592_v31  ;;  %v13667_v1 = vld [vmem:[#allocation35 + $0x188] ss:$16 sps:$4 sm:$0xff]  }
 0xa55   :  { %10723 = vmatprep.subr.bf16.mxu0 %v13597_v34  ;;  %10764 = vmatprep.subr.bf16.mxu1 %v13600_v3  ;;  %v13670_v31 = vld [vmem:[#allocation35 + $0x388] ss:$16 sps:$4 sm:$0xff]   ;;  %v13675_v34 = vld [vmem:[#allocation35 + $0x16c] ss:$16 sps:$4 sm:$0xff]  }
 0xa56   :  { %v13678_v3 = vld [vmem:[#allocation35 + $0x36c] ss:$16 sps:$4 sm:$0xff]  }
 0xa58   :  { %10724 = vmatpush2.bf16.msra.mxu0 %v13595_v42  ;;  %10765 = vmatpush2.bf16.msra.mxu1 %v13598_v46  ;;  %v13673_v42 = vld [vmem:[#allocation35 + $0x168] ss:$16 sps:$4 sm:$0xff]  }
 0xa59   :  { %10775 = vmatprep.subr.bf16.mxu0 %v13603_v24  ;;  %10816 = vmatprep.subr.bf16.mxu1 %v13606_v54  ;;  %v13676_v46 = vld [vmem:[#allocation35 + $0x368] ss:$16 sps:$4 sm:$0xff]  }
 0xa5a   :  { %v13679_v24 = vld [vmem:[#allocation35 + $0x148] ss:$16 sps:$4 sm:$0xff]  }
 0xa5b   :  { %10726 = vmatmul.mubr.bf16.vlgmr.msra.gmra.mxu0 %v15038_v6  ;;  %10767 = vmatmul.mubr.bf16.vlgmr.msra.gmra.mxu1 %v15040_v48  ;;  %v13682_v54 = vld [vmem:[#allocation35 + $0x348] ss:$16 sps:$4 sm:$0xff]  }
 0xa5c   :  { %10776 = vmatpush1.bf16.msra.mxu0 %v13601_v26  ;;  %10807 = vmatprep.mubr.bf16.mxu0 %v14996_v50  ;;  %v13622_v50 = vld [vmem:[#allocation35 + $0x288] ss:$16 sps:$4 sm:$0xff]   ;;  %v13687_v26 = vld [vmem:[#allocation35 + $0x12c] ss:$16 sps:$4 sm:$0xff]  }
 0xa5d   :  { %10817 = vmatpush1.bf16.msra.mxu1 %v13604_v4  ;;  %10848 = vmatprep.mubr.bf16.mxu1 %v14998_v7  ;;  %v13630_v7 = vld [vmem:[#allocation35 + $0x26c] ss:$16 sps:$4 sm:$0xff]  }
 0xa5e   :  { %10777 = vmatprep.subr.bf16.mxu0 %v13609_v33  ;;  %10818 = vmatprep.subr.bf16.mxu1 %v13612_v27  ;;  %v13690_v4 = vld [vmem:[#allocation35 + $0x32c] ss:$16 sps:$4 sm:$0xff]   ;;  %v13685_v33 = vld [vmem:[#allocation35 + $0x128] ss:$16 sps:$4 sm:$0xff]  }
 0xa5f   :  { %v13688_v27 = vld [vmem:[#allocation35 + $0x328] ss:$16 sps:$4 sm:$0xff]  }
 0xa60   :  { %10778 = vmatpush1.bf16.msra.mxu0 %v13607_v13  ;;  %v13693_v13 = vld [vmem:[#allocation35 + $0x10c] ss:$16 sps:$4 sm:$0xff]  }
 0xa61   :  { %10819 = vmatpush1.bf16.msra.mxu1 %v13610_v2  ;;  %10779 = vmatprep.subr.bf16.mxu0 %v13615_v63  ;;  %v13696_v2 = vld [vmem:[#allocation35 + $0x30c] ss:$16 sps:$4 sm:$0xff]   ;;  %v13691_v63 = vld [vmem:[#allocation35 + $0x108] ss:$16 sps:$4 sm:$0xff]  }
 0xa62   :  { %10820 = vmatprep.subr.bf16.mxu1 %v13618_v0  ;;  %v13694_v0 = vld [vmem:[#allocation35 + $0x308] ss:$16 sps:$4 sm:$0xff]  }
 0xa64   :  { %10780 = vmatpush1.bf16.msra.mxu0 %v13613_v51  ;;  %v13699_v51 = vld [vmem:[#allocation35 + $0x4ec] ss:$16 sps:$4 sm:$0xff]  }
 0xa65   :  { %10821 = vmatpush1.bf16.msra.mxu1 %v13616_v5  ;;  %10781 = vmatprep.subr.bf16.mxu0 %v13621_v37  ;;  %v13702_v5 = vld [vmem:[#allocation35 + $0x6ec] ss:$16 sps:$4 sm:$0xff]   ;;  %v13697_v37 = vld [vmem:[#allocation35 + $0x4e8] ss:$16 sps:$4 sm:$0xff]  }
 0xa66   :  { %10822 = vmatprep.subr.bf16.mxu1 %v13624_v36  ;;  %v13700_v36 = vld [vmem:[#allocation35 + $0x6e8] ss:$16 sps:$4 sm:$0xff]  }
 0xa68   :  { %10782 = vmatpush1.bf16.msra.mxu0 %v13619_v53  ;;  %v13705_v53 = vld [vmem:[#allocation35 + $0x4cc] ss:$16 sps:$4 sm:$0xff]  }
 0xa69   :  { %10823 = vmatpush1.bf16.msra.mxu1 %v13622_v50  ;;  %10783 = vmatprep.subr.bf16.mxu0 %v13627_v19  ;;  %v13708_v50 = vld [vmem:[#allocation35 + $0x6cc] ss:$16 sps:$4 sm:$0xff]   ;;  %v13703_v19 = vld [vmem:[#allocation35 + $0x4c8] ss:$16 sps:$4 sm:$0xff]  }
 0xa6a   :  { %10824 = vmatprep.subr.bf16.mxu1 %v13630_v7  ;;  %v13706_v7 = vld [vmem:[#allocation35 + $0x6c8] ss:$16 sps:$4 sm:$0xff]  }
 0xa6c   :  { %10784 = vmatpush1.bf16.msra.mxu0 %v13625_v14  ;;  %v13711_v14 = vld [vmem:[#allocation35 + $0x4ac] ss:$16 sps:$4 sm:$0xff]  }
 0xa6d   :  { %10825 = vmatpush1.bf16.msra.mxu1 %v13628_v28  ;;  %10785 = vmatprep.subr.bf16.mxu0 %v13633_v20  ;;  %v13714_v28 = vld [vmem:[#allocation35 + $0x6ac] ss:$16 sps:$4 sm:$0xff]   ;;  %v13709_v20 = vld [vmem:[#allocation35 + $0x4a8] ss:$16 sps:$4 sm:$0xff]  }
 0xa6e   :  { %10826 = vmatprep.subr.bf16.mxu1 %v13636_v44  ;;  %v13717_v44 = vld [vmem:[#allocation35 + $0x48c] ss:$16 sps:$4 sm:$0xff]  }
 0xa70   :  { %10786 = vmatpush1.bf16.msra.mxu0 %v13631_v40  ;;  %v13715_v40 = vld [vmem:[#allocation35 + $0x488] ss:$16 sps:$4 sm:$0xff]  }
 0xa71   :  { %10827 = vmatpush1.bf16.msra.mxu1 %v13634_v9  ;;  %10787 = vmatprep.subr.bf16.mxu0 %v13639_v23  ;;  %v13723_v9 = vld [vmem:[#allocation35 + $0x46c] ss:$16 sps:$4 sm:$0xff]  }
 0xa72   :  { %10828 = vmatprep.subr.bf16.mxu1 %v13642_v41  ;;  %v13726_v23 = vld [vmem:[#allocation35 + $0x66c] ss:$16 sps:$4 sm:$0xff]   ;;  %v13724_v41 = vld [vmem:[#allocation35 + $0x668] ss:$16 sps:$4 sm:$0xff]  }
 0xa74   :  { %10788 = vmatpush1.bf16.msra.mxu0 %v13637_v58  ;;  %v13729_v58 = vld [vmem:[#allocation35 + $0x44c] ss:$16 sps:$4 sm:$0xff]  }
 0xa75   :  { %10829 = vmatpush1.bf16.msra.mxu1 %v13640_v32  ;;  %10789 = vmatprep.subr.bf16.mxu0 %v13645_v35  ;;  %v13732_v32 = vld [vmem:[#allocation35 + $0x64c] ss:$16 sps:$4 sm:$0xff]   ;;  %v13727_v35 = vld [vmem:[#allocation35 + $0x448] ss:$16 sps:$4 sm:$0xff]  }
 0xa76   :  { %10830 = vmatprep.subr.bf16.mxu1 %v13648_v29  ;;  %v13730_v29 = vld [vmem:[#allocation35 + $0x648] ss:$16 sps:$4 sm:$0xff]  }
 0xa78   :  { %10790 = vmatpush1.bf16.msra.mxu0 %v13643_v11  ;;  %v13735_v11 = vld [vmem:[#allocation35 + $0x42c] ss:$16 sps:$4 sm:$0xff]  }
 0xa79   :  { %10831 = vmatpush1.bf16.msra.mxu1 %v13646_v8  ;;  %10791 = vmatprep.subr.bf16.mxu0 %v13651_v38  ;;  %v13738_v8 = vld [vmem:[#allocation35 + $0x62c] ss:$16 sps:$4 sm:$0xff]   ;;  %v13733_v38 = vld [vmem:[#allocation35 + $0x428] ss:$16 sps:$4 sm:$0xff]  }
 0xa7a   :  { %10832 = vmatprep.subr.bf16.mxu1 %v13654_v43  ;;  %v13736_v43 = vld [vmem:[#allocation35 + $0x628] ss:$16 sps:$4 sm:$0xff]  }
 0xa7c   :  { %10792 = vmatpush2.bf16.msra.mxu0 %v13649_v55  ;;  %v13741_v55 = vld [vmem:[#allocation35 + $0x40c] ss:$16 sps:$4 sm:$0xff]  }
 0xa7d   :  { %10833 = vmatpush2.bf16.msra.mxu1 %v13652_v49  ;;  %10793 = vmatprep.subr.bf16.mxu0 %v13657_v59  ;;  %v13744_v49 = vld [vmem:[#allocation35 + $0x60c] ss:$16 sps:$4 sm:$0xff]   ;;  %v13739_v59 = vld [vmem:[#allocation35 + $0x408] ss:$16 sps:$4 sm:$0xff]  }
 0xa7e   :  { %10834 = vmatprep.subr.bf16.mxu1 %v13660_v39  ;;  %v13742_v39 = vld [vmem:[#allocation35 + $0x608] ss:$16 sps:$4 sm:$0xff]  }
 0xa80   :  { %10794 = vmatpush2.bf16.msra.mxu0 %v13655_v61  ;;  %v13747_v61 = vld [vmem:[#allocation35 + $0x5ec] ss:$16 sps:$4 sm:$0xff]  }
 0xa81   :  { %10835 = vmatpush2.bf16.msra.mxu1 %v13658_v56  ;;  %10795 = vmatprep.subr.bf16.mxu0 %v13663_v62  ;;  %v13750_v56 = vld [vmem:[#allocation35 + $0x7ec] ss:$16 sps:$4 sm:$0xff]   ;;  %v13745_v62 = vld [vmem:[#allocation35 + $0x5e8] ss:$16 sps:$4 sm:$0xff]  }
 0xa82   :  { %10836 = vmatprep.subr.bf16.mxu1 %v13666_v47  ;;  %v13748_v47 = vld [vmem:[#allocation35 + $0x7e8] ss:$16 sps:$4 sm:$0xff]  }
 0xa84   :  { %10796 = vmatpush2.bf16.msra.mxu0 %v13661_v60  ;;  %v13753_v60 = vld [vmem:[#allocation35 + $0x5cc] ss:$16 sps:$4 sm:$0xff]  }
 0xa85   :  { %10837 = vmatpush2.bf16.msra.mxu1 %v13664_v17  ;;  %10797 = vmatprep.subr.bf16.mxu0 %v13669_v30  ;;  %v13756_v17 = vld [vmem:[#allocation35 + $0x7cc] ss:$16 sps:$4 sm:$0xff]   ;;  %v13751_v30 = vld [vmem:[#allocation35 + $0x5c8] ss:$16 sps:$4 sm:$0xff]  }
 0xa86   :  { %10838 = vmatprep.subr.bf16.mxu1 %v13672_v52  ;;  %v13754_v52 = vld [vmem:[#allocation35 + $0x7c8] ss:$16 sps:$4 sm:$0xff]  }
 0xa88   :  { %10798 = vmatpush2.bf16.msra.mxu0 %v13667_v1  ;;  %v13759_v1 = vld [vmem:[#allocation35 + $0x5ac] ss:$16 sps:$4 sm:$0xff]  }
 0xa89   :  { %10839 = vmatpush2.bf16.msra.mxu1 %v13670_v31  ;;  %10799 = vmatprep.subr.bf16.mxu0 %v13675_v34  ;;  %v13762_v31 = vld [vmem:[#allocation35 + $0x7ac] ss:$16 sps:$4 sm:$0xff]   ;;  %v13757_v34 = vld [vmem:[#allocation35 + $0x5a8] ss:$16 sps:$4 sm:$0xff]  }
 0xa8a   :  { %10840 = vmatprep.subr.bf16.mxu1 %v13678_v3  ;;  %v13760_v3 = vld [vmem:[#allocation35 + $0x7a8] ss:$16 sps:$4 sm:$0xff]  }
 0xa8c   :  { %10800 = vmatpush2.bf16.msra.mxu0 %v13673_v42  ;;  %v13765_v42 = vld [vmem:[#allocation35 + $0x58c] ss:$16 sps:$4 sm:$0xff]  }
 0xa8d   :  { %10841 = vmatpush2.bf16.msra.mxu1 %v13676_v46  ;;  %10801 = vmatprep.subr.bf16.mxu0 %v13681_v45  ;;  %v13768_v46 = vld [vmem:[#allocation35 + $0x78c] ss:$16 sps:$4 sm:$0xff]   ;;  %v13763_v45 = vld [vmem:[#allocation35 + $0x588] ss:$16 sps:$4 sm:$0xff]  }
 0xa8e   :  { %10842 = vmatprep.subr.bf16.mxu1 %v13684_v21  ;;  %v13766_v21 = vld [vmem:[#allocation35 + $0x788] ss:$16 sps:$4 sm:$0xff]  }
 0xa90   :  { %10802 = vmatpush2.bf16.msra.mxu0 %v13679_v24  ;;  %v13771_v24 = vld [vmem:[#allocation35 + $0x56c] ss:$16 sps:$4 sm:$0xff]  }
 0xa91   :  { %10843 = vmatpush2.bf16.msra.mxu1 %v13682_v54  ;;  %10803 = vmatprep.subr.bf16.mxu0 %v13687_v26  ;;  %v13774_v54 = vld [vmem:[#allocation35 + $0x76c] ss:$16 sps:$4 sm:$0xff]   ;;  %v13769_v26 = vld [vmem:[#allocation35 + $0x568] ss:$16 sps:$4 sm:$0xff]  }
 0xa92   :  { %10844 = vmatprep.subr.bf16.mxu1 %v13690_v4  ;;  %v13772_v4 = vld [vmem:[#allocation35 + $0x768] ss:$16 sps:$4 sm:$0xff]  }
 0xa94   :  { %10804 = vmatpush2.bf16.msra.mxu0 %v13685_v33  ;;  %v13777_v33 = vld [vmem:[#allocation35 + $0x54c] ss:$16 sps:$4 sm:$0xff]  }
 0xa95   :  { %10845 = vmatpush2.bf16.msra.mxu1 %v13688_v27  ;;  %10805 = vmatprep.subr.bf16.mxu0 %v13693_v13  ;;  %v13780_v27 = vld [vmem:[#allocation35 + $0x74c] ss:$16 sps:$4 sm:$0xff]   ;;  %v13775_v13 = vld [vmem:[#allocation35 + $0x548] ss:$16 sps:$4 sm:$0xff]  }
 0xa96   :  { %10846 = vmatprep.subr.bf16.mxu1 %v13696_v2  ;;  %v13778_v2 = vld [vmem:[#allocation35 + $0x748] ss:$16 sps:$4 sm:$0xff]  }
 0xa98   :  { %10806 = vmatpush2.bf16.msra.mxu0 %v13691_v63  ;;  %v13783_v63 = vld [vmem:[#allocation35 + $0x52c] ss:$16 sps:$4 sm:$0xff]  }
 0xa99   :  { %10847 = vmatpush2.bf16.msra.mxu1 %v13694_v0  ;;  %10857 = vmatprep.subr.bf16.mxu0 %v13699_v51  ;;  %v13786_v0 = vld [vmem:[#allocation35 + $0x72c] ss:$16 sps:$4 sm:$0xff]   ;;  %v13781_v51 = vld [vmem:[#allocation35 + $0x528] ss:$16 sps:$4 sm:$0xff]  }
 0xa9a   :  { %10898 = vmatprep.subr.bf16.mxu1 %v13702_v5  ;;  %v13784_v5 = vld [vmem:[#allocation35 + $0x728] ss:$16 sps:$4 sm:$0xff]  }
 0xa9b   :  { %10808 = vmatmul.mubr.bf16.vlgmr.msra.gmra.mxu0 %v15000_v22  ;;  %v13712_v22 = vld [vmem:[#allocation35 + $0x6a8] ss:$16 sps:$4 sm:$0xff]  }
 0xa9c   :  { %10849 = vmatmul.mubr.bf16.vlgmr.msra.gmra.mxu1 %v15002_v57  ;;  %10858 = vmatpush1.bf16.msra.mxu0 %v13697_v37  ;;  %v13720_v57 = vld [vmem:[#allocation35 + $0x68c] ss:$16 sps:$4 sm:$0xff]  }
 0xa9d   :  { %10889 = vmatprep.mubr.bf16.mxu0 %v15030_v10  ;;  %10899 = vmatpush1.bf16.msra.mxu1 %v13700_v36  ;;  %v13718_v10 = vld [vmem:[#allocation35 + $0x688] ss:$16 sps:$4 sm:$0xff]   ;;  %v13789_v37 = vld [vmem:[#allocation35 + $0x50c] ss:$16 sps:$4 sm:$0xff]  }
 0xa9e   :  { %10930 = vmatprep.mubr.bf16.mxu1 %v15032_v25  ;;  %10859 = vmatprep.subr.bf16.mxu0 %v13705_v53  ;;  %v13721_v25 = vld [vmem:[#allocation35 + $0x468] ss:$16 sps:$4 sm:$0xff]   ;;  %v13792_v36 = vld [vmem:[#allocation35 + $0x70c] ss:$16 sps:$4 sm:$0xff]  }
 0xa9f   :  { %10900 = vmatprep.subr.bf16.mxu1 %v13708_v50  ;;  %v13787_v53 = vld [vmem:[#allocation35 + $0x508] ss:$16 sps:$4 sm:$0xff]  }
 0xaa0   :  { %10860 = vmatpush1.bf16.msra.mxu0 %v13703_v19  ;;  %v13790_v50 = vld [vmem:[#allocation35 + $0x708] ss:$16 sps:$4 sm:$0xff]   ;;  %v13793_v19 = vld [vmem:[#allocation38 + $0x78] sm:$0xff]  }
 0xaa1   :  { %10901 = vmatpush1.bf16.msra.mxu1 %v13706_v7  ;;  %10861 = vmatprep.subr.bf16.mxu0 %v13711_v14  ;;  %v13794_v7 = vld [vmem:[#allocation38 + $0x38] sm:$0xff]   ;;  %v13795_v14 = vld [vmem:[#allocation38 + $0x70] sm:$0xff]  }
 0xaa2   :  { %10902 = vmatprep.subr.bf16.mxu1 %v13714_v28 }
 0xaa4   :  { %10862 = vmatpush1.bf16.msra.mxu0 %v13709_v20 }
 0xaa5   :  { %10903 = vmatpush1.bf16.msra.mxu1 %v13712_v22  ;;  %10863 = vmatprep.subr.bf16.mxu0 %v13717_v44  ;;  %v13796_v22 = vld [vmem:[#allocation38 + $0x30] sm:$0xff]  }
 0xaa6   :  { %10904 = vmatprep.subr.bf16.mxu1 %v13720_v57 }
 0xaa8   :  { %10864 = vmatpush1.bf16.msra.mxu0 %v13715_v40  ;;  %v13797_v40 = vld [vmem:[#allocation38 + $0x68] sm:$0xff]  }
 0xaa9   :  { %10905 = vmatpush1.bf16.msra.mxu1 %v13718_v10  ;;  %10865 = vmatprep.subr.bf16.mxu0 %v13723_v9 }
 0xaaa   :  { %10906 = vmatprep.subr.bf16.mxu1 %v13726_v23  ;;  %v13798_v23 = vld [vmem:[#allocation38 + $0x28] sm:$0xff]  }
 0xaac   :  { %10866 = vmatpush1.bf16.msra.mxu0 %v13721_v25 }
 0xaad   :  { %10907 = vmatpush1.bf16.msra.mxu1 %v13724_v41  ;;  %10867 = vmatprep.subr.bf16.mxu0 %v13729_v58  ;;  %v13799_v58 = vld [vmem:[#allocation38 + $0x60] sm:$0xff]  }
 0xaae   :  { %10908 = vmatprep.subr.bf16.mxu1 %v13732_v32  ;;  %v13809_v32 = vld [vmem:[#allocation38 + $0xf8] sm:$0xff]  }
 0xab0   :  { %10868 = vmatpush1.bf16.msra.mxu0 %v13727_v35  ;;  %v13811_v35 = vld [vmem:[#allocation38 + $0xf0] sm:$0xff]  }
 0xab1   :  { %10909 = vmatpush1.bf16.msra.mxu1 %v13730_v29  ;;  %10869 = vmatprep.subr.bf16.mxu0 %v13735_v11  ;;  %v13800_v29 = vld [vmem:[#allocation38 + $0x20] sm:$0xff]   ;;  %v13812_v11 = vld [vmem:[#allocation38 + $0xb0] sm:$0xff]  }
 0xab2   :  { %10910 = vmatprep.subr.bf16.mxu1 %v13738_v8  ;;  %v13813_v8 = vld [vmem:[#allocation38 + $0xe8] sm:$0xff]  }
 0xab4   :  { %10870 = vmatpush1.bf16.msra.mxu0 %v13733_v38  ;;  %v13802_v38 = vld [vmem:[#allocation38 + $0x18] sm:$0xff]  }
 0xab5   :  { %10911 = vmatpush1.bf16.msra.mxu1 %v13736_v43  ;;  %10871 = vmatprep.subr.bf16.mxu0 %v13741_v55  ;;  %v13803_v43 = vld [vmem:[#allocation38 + $0x50] sm:$0xff]   ;;  %v13814_v55 = vld [vmem:[#allocation38 + $0xa8] sm:$0xff]  }
 0xab6   :  { %10912 = vmatprep.subr.bf16.mxu1 %v13744_v49  ;;  %v13815_v49 = vld [vmem:[#allocation38 + $0xe0] sm:$0xff]  }
 0xab8   :  { %10872 = vmatpush1.bf16.msra.mxu0 %v13739_v59  ;;  %v13804_v59 = vld [vmem:[#allocation38 + $0x10] sm:$0xff]  }
 0xab9   :  { %10913 = vmatpush1.bf16.msra.mxu1 %v13742_v39  ;;  %10873 = vmatprep.subr.bf16.mxu0 %v13747_v61  ;;  %v13805_v39 = vld [vmem:[#allocation38 + $0x48] sm:$0xff]   ;;  %v13816_v61 = vld [vmem:[#allocation38 + $0xa0] sm:$0xff]  }
 0xaba   :  { %10914 = vmatprep.subr.bf16.mxu1 %v13750_v56  ;;  %v13817_v56 = vld [vmem:[#allocation38 + $0xd8] sm:$0xff]  }
 0xabc   :  { %10874 = vmatpush2.bf16.msra.mxu0 %v13745_v62  ;;  %v13806_v62 = vld [vmem:[#allocation38 + $0x8] sm:$0xff]  }
 0xabd   :  { %10915 = vmatpush2.bf16.msra.mxu1 %v13748_v47  ;;  %10875 = vmatprep.subr.bf16.mxu0 %v13753_v60  ;;  %v13807_v47 = vld [vmem:[#allocation38 + $0x40] sm:$0xff]   ;;  %v13818_v60 = vld [vmem:[#allocation38 + $0x98] sm:$0xff]  }
 0xabe   :  { %10916 = vmatprep.subr.bf16.mxu1 %v13756_v17  ;;  %v13808_v17 = vld [vmem:[#allocation38] sm:$0xff]  }
 0xac0   :  { %10876 = vmatpush2.bf16.msra.mxu0 %v13751_v30  ;;  %v9309_v30 = vld [vmem:[#allocation37] sm:$0xf] }
 0xac1   :  { %10917 = vmatpush2.bf16.msra.mxu1 %v13754_v52  ;;  %10877 = vmatprep.subr.bf16.mxu0 %v13759_v1  ;;  %v9314_v52 = vrot.slane %v9309_v30, %v14665_v15  ;;  %v9318_v1 = vrot.slane %v9309_v30, %v14668_v16  ;;  %v13821_v15 = vld [vmem:[#allocation38 + $0xc8] sm:$0xff]  }
 0xac2   :  { %10918 = vmatprep.subr.bf16.mxu1 %v13762_v31  ;;  %v13822_v16 = vld [vmem:[#allocation38 + $0x88] sm:$0xff]  }
 0xac4   :  { %10878 = vmatpush2.bf16.msra.mxu0 %v13757_v34 }
 0xac5   :  { %10919 = vmatpush2.bf16.msra.mxu1 %v13760_v3  ;;  %10879 = vmatprep.subr.bf16.mxu0 %v13765_v42 }
 0xac6   :  { %10920 = vmatprep.subr.bf16.mxu1 %v13768_v46 }
 0xac8   :  { %10880 = vmatpush2.bf16.msra.mxu0 %v13763_v45  ;;  %v13819_v45 = vld [vmem:[#allocation38 + $0xd0] sm:$0xff]  }
 0xac9   :  { %10921 = vmatpush2.bf16.msra.mxu1 %v13766_v21  ;;  %10881 = vmatprep.subr.bf16.mxu0 %v13771_v24 }
 0xaca   :  { %10922 = vmatprep.subr.bf16.mxu1 %v13774_v54  ;;  %v13820_v54 = vld [vmem:[#allocation38 + $0x90] sm:$0xff]  }
 0xacc   :  { %10882 = vmatpush2.bf16.msra.mxu0 %v13769_v26 }
 0xacd   :  { %10923 = vmatpush2.bf16.msra.mxu1 %v13772_v4  ;;  %10883 = vmatprep.subr.bf16.mxu0 %v13777_v33 }
 0xace   :  { %10924 = vmatprep.subr.bf16.mxu1 %v13780_v27 }
 0xad0   :  { %10884 = vmatpush2.bf16.msra.mxu0 %v13775_v13 }
 0xad1   :  { %10925 = vmatpush2.bf16.msra.mxu1 %v13778_v2  ;;  %10885 = vmatprep.subr.bf16.mxu0 %v13783_v63 }
 0xad2   :  { %10926 = vmatprep.subr.bf16.mxu1 %v13786_v0 }
 0xad4   :  { %10886 = vmatpush2.bf16.msra.mxu0 %v13781_v51 }
 0xad5   :  { %10927 = vmatpush2.bf16.msra.mxu1 %v13784_v5  ;;  %10887 = vmatprep.subr.bf16.mxu0 %v13789_v37 }
 0xad6   :  { %10928 = vmatprep.subr.bf16.mxu1 %v13792_v36  ;;  %v13823_v36 = vld [vmem:[#allocation38 + $0xc0] sm:$0xff]  }
 0xad8   :  { %10888 = vmatpush2.bf16.msra.mxu0 %v13787_v53 }
 0xad9   :  { %10929 = vmatpush2.bf16.msra.mxu1 %v13790_v50  ;;  %12786 = vmatprep.subr.bf16.mxu0 %v13793_v19  ;;  %v13824_v50 = vld [vmem:[#allocation38 + $0x80] sm:$0xff]  }
 0xada   :  { %12808 = vmatprep.subr.bf16.mxu1 %v13809_v32 }
 0xadb   :  { %10890 = vmatmul.mubr.bf16.vlgmr.msra.gmra.mxu0 %v15038_v6  ;;  %v10645_v28 = vpop.f32.mrf.mxu0  ;;  %v10686_v20 = vpop.f32.mrf.mxu1  ;;  %v13810_v6 = vld [vmem:[#allocation38 + $0xb8] sm:$0xff]  }
 0xadc   :  { %10931 = vmatmul.mubr.bf16.vlgmr.msra.gmra.mxu1 %v15040_v48  ;;  %12787 = vmatpush3.bf16.msra.mxu0 %v13794_v7  ;;  %v13801_v48 = vld [vmem:[#allocation38 + $0x58] sm:$0xff]   ;;  %v10646_v31 = vadd.f32 %v10645_v28, %v9314_v52 }
 0xadd   :  { %v10647_v44 = vpop.f32.mrf.mxu0  ;;  %v10688_v57 = vpop.f32.mrf.mxu1  ;;  %12788 = vmatprep.subr.bf16.mxu0 %v13795_v14  ;;  %12809 = vmatpush3.bf16.msra.mxu1 %v13810_v6 }
 0xade   :  { %12810 = vmatprep.subr.bf16.mxu1 %v13811_v35  ;;  %v10648_v34 = vadd.f32 %v10647_v44, %v9318_v1  ;;  %v10687_v3 = vadd.f32 %v10686_v20, %v10646_v31 }
 0xadf   :  { %v10649_v10 = vpop.f32.mrf.mxu0  ;;  %v10690_v9 = vpop.f32.mrf.mxu1 }
 0xae0   :  { %12789 = vmatpush3.bf16.msra.mxu0 %v13796_v22  ;;  %v10689_v21 = vadd.f32 %v10688_v57, %v10648_v34  ;;  %v9322_v10 = vrot.slane %v9309_v30, %v14795_v12  ;;  %v9326_v9 = vrot.slane %v9309_v30, %v14798_v18  ;;  %v12665_v30 = vld [vmem:[#allocation40] ss:$0 sm:$0xff] }
 0xae1   :  { %v10650_v25 = vpop.f32.mrf.mxu0  ;;  %v10691_v41 = vpop.f32.mrf.mxu1  ;;  %12790 = vmatprep.subr.bf16.mxu0 %v13797_v40  ;;  %12811 = vmatpush3.bf16.msra.mxu1 %v13812_v11 }
 0xae2   :  { %12812 = vmatprep.subr.bf16.mxu1 %v13813_v8 }
 0xae4   :  { %12791 = vmatpush3.bf16.msra.mxu0 %v13798_v23 }
 0xae5   :  { %12792 = vmatprep.subr.bf16.mxu0 %v13799_v58  ;;  %12813 = vmatpush3.bf16.msra.mxu1 %v13814_v55 }
 0xae6   :  { %12814 = vmatprep.subr.bf16.mxu1 %v13815_v49 }
 0xae8   :  { %12793 = vmatpush3.bf16.msra.mxu0 %v13800_v29 }
 0xae9   :  { %12794 = vmatprep.subr.bf16.mxu0 %v13801_v48  ;;  %12815 = vmatpush3.bf16.msra.mxu1 %v13816_v61 }
 0xaea   :  { %12816 = vmatprep.subr.bf16.mxu1 %v13817_v56 }
 0xaec   :  { %12795 = vmatpush3.bf16.msra.mxu0 %v13802_v38 }
 0xaed   :  { %12796 = vmatprep.subr.bf16.mxu0 %v13803_v43  ;;  %12817 = vmatpush3.bf16.msra.mxu1 %v13818_v60 }
 0xaee   :  { %12818 = vmatprep.subr.bf16.mxu1 %v13819_v45 }
 0xaf0   :  { %12797 = vmatpush3.bf16.msra.mxu0 %v13804_v59 }
 0xaf1   :  { %12798 = vmatprep.subr.bf16.mxu0 %v13805_v39  ;;  %12819 = vmatpush3.bf16.msra.mxu1 %v13820_v54 }
 0xaf2   :  { %12820 = vmatprep.subr.bf16.mxu1 %v13821_v15 }
 0xaf4   :  { %12799 = vmatpush3.bf16.msra.mxu0 %v13806_v62 }
 0xaf5   :  { %12800 = vmatprep.subr.bf16.mxu0 %v13807_v47  ;;  %12821 = vmatpush3.bf16.msra.mxu1 %v13822_v16 }
 0xaf6   :  { %12822 = vmatprep.subr.bf16.mxu1 %v13823_v36 }
 0xaf8   :  { %12801 = vmatpush3.bf16.msra.mxu0 %v13808_v17 }
 0xaf9   :  { %12823 = vmatpush3.bf16.msra.mxu1 %v13824_v50 }
 0xb1b   :  { %v10727_v42 = vpop.f32.mrf.mxu0  ;;  %v10768_v46 = vpop.f32.mrf.mxu1 }
 0xb1c   :  { %v10728_v24 = vadd.f32 %v10727_v42, %v10687_v3 }
 0xb1d   :  { %v10729_v26 = vpop.f32.mrf.mxu0  ;;  %v10770_v4 = vpop.f32.mrf.mxu1 }
 0xb1e   :  { %v10769_v33 = vadd.f32 %v10768_v46, %v10728_v24  ;;  %v10730_v27 = vadd.f32 %v10729_v26, %v10689_v21 }
 0xb1f   :  { %v10731_v13 = vpop.f32.mrf.mxu0  ;;  %v10772_v2 = vpop.f32.mrf.mxu1 }
 0xb20   :  { %v10771_v63 = vadd.f32 %v10770_v4, %v10730_v27  ;;  %v10939_v0 = vmax.f32 %v10769_v33, 0.0 }
 0xb21   :  { %v10732_v51 = vpop.f32.mrf.mxu0  ;;  %v10773_v5 = vpop.f32.mrf.mxu1 }
 0xb22   :  { %v10940_v37 = vmax.f32 %v10771_v63, 0.0  ;;  %v10943_v19 = vpack.c.bf16 %v10939_v0, %v10939_v0 }
 0xb24   :  { %v10944_v53 = vpack.c.bf16 %v10940_v37, %v10940_v37 }
 0xb26   :  { %11242 = vmatprep.mubr.bf16.mxu0 %v10944_v53 }
 0xb27   :  { %11243 = vmatmul.mubr.bf16.vlgmr.msra.gmra.mxu0 %v10943_v19 }
 0xb5b   :  { %v10809_v7 = vpop.f32.mrf.mxu0 }
 0xb5c   :  { %v10850_v14 = vpop.f32.mrf.mxu1  ;;  %v10810_v23 = vadd.f32 %v10809_v7, %v9322_v10 }
 0xb5d   :  { %v10811_v28 = vpop.f32.mrf.mxu0 }
 0xb5e   :  { %v10852_v20 = vpop.f32.mrf.mxu1  ;;  %v10812_v25 = vadd.f32 %v10811_v28, %v9326_v9  ;;  %v10851_v41 = vadd.f32 %v10850_v14, %v10810_v23 }
 0xb5f   :  { %v10813_v22 = vpop.f32.mrf.mxu0 }
 0xb60   :  { %v10854_v44 = vpop.f32.mrf.mxu1  ;;  %v10853_v32 = vadd.f32 %v10852_v20, %v10812_v25 }
 0xb61   :  { %v10814_v57 = vpop.f32.mrf.mxu0 }
 0xb62   :  { %v10855_v40 = vpop.f32.mrf.mxu1 }
 0xb9b   :  { %v10891_v58 = vpop.f32.mrf.mxu0 }
 0xb9c   :  { %v10892_v6 = vadd.f32 %v10891_v58, %v10851_v41  ;;  %v10932_v35 = vpop.f32.mrf.mxu1 }
 0xb9d   :  { %v10893_v29 = vpop.f32.mrf.mxu0 }
 0xb9e   :  { %v10933_v48 = vadd.f32 %v10932_v35, %v10892_v6  ;;  %v10894_v11 = vadd.f32 %v10893_v29, %v10853_v32  ;;  %v10934_v8 = vpop.f32.mrf.mxu1 }
 0xb9f   :  { %v10895_v38 = vpop.f32.mrf.mxu0 }
 0xba0   :  { %v10935_v43 = vadd.f32 %v10934_v8, %v10894_v11  ;;  %v10936_v55 = vpop.f32.mrf.mxu1  ;;  %v10941_v49 = vmax.f32 %v10933_v48, 0.0 }
 0xba1   :  { %v10896_v59 = vpop.f32.mrf.mxu0 }
 0xba2   :  { %v10942_v39 = vmax.f32 %v10935_v43, 0.0  ;;  %v10937_v12 = vpop.f32.mrf.mxu1  ;;  %v10945_v18 = vpack.c.bf16 %v10941_v49, %v10941_v49 }
 0xba4   :  { %v10946_v61 = vpack.c.bf16 %v10942_v39, %v10942_v39 }
 0xba6   :  { %11282 = vmatprep.mubr.bf16.mxu1 %v10946_v61 }
 0xba7   :  { %11283 = vmatmul.mubr.bf16.vlgmr.msra.gmra.mxu1 %v10945_v18 }
 0xbe7   :  { %v12802_v56 = vpop.f32.mrf.mxu0 }
 0xbe9   :  { %v12803_v62 = vpop.f32.mrf.mxu0 }
 0xbea   :  { %v12804_v47 = vadd.f32 %v12803_v62, %v12802_v56 }
 0xbeb   :  { %v12805_v60 = vpop.f32.mrf.mxu0 }
 0xbec   :  { %v11245_v31 = vadd.f32 %v12804_v47, %v12665_v30 }
 0xbed   :  { %v12806_v17 = vpop.f32.mrf.mxu0 }
 0xc67   :  { %v12824_v52 = vpop.f32.mrf.mxu1 }
 0xc69   :  { %v12825_v1 = vpop.f32.mrf.mxu1 }
 0xc6a   :  { %v12826_v34 = vadd.f32 %v12825_v1, %v12824_v52 }
 0xc6b   :  { %v12827_v3 = vpop.f32.mrf.mxu1 }
 0xc6c   :  { %v11285_v42 = vadd.f32 %v12826_v34, %v11245_v31 }
 0xc6d   :  { %v12828_v46 = vpop.f32.mrf.mxu1 }
 0xc6e   :  { %11290 = vst [vmem:[#allocation41] sm:$0xff] %v11285_v42 }
 0xc6f   :  { %14349 = shalt.err (!%p14346_p3)
}
 0xc70   :  { %s15106_s11 = sld [smem:[#allocation66_spill]] }
 0xc76   :  { %11300 = dma.vmem_to_hbm [thread:$0]  %s11298_s24, 128, %s15106_s11, [#allocation4]  }
 0xc77   :  { %14384 = dma.done.wait [#allocation4], 128  }
 0xc78   :  { %14385 = vsyncadd [#allocation4], 4294967168 }
 0xc79   :  { %11304 = vsyncpa [#allocation3], 1 }
 0xc7a   :  { %11305 = vsyncpa [#allocation6], 1 }
 0xc7b   :  { %11306 = vsyncpa [#allocation9], 1 }
 0xc7c   :  { %11307 = vsyncpa [#allocation12], 1 }
 0xc7d   :  { %11308 = vsyncpa [#allocation15], 1 }
 0xc7e   :  { %11309 = vsyncpa [#allocation18], 1 }
 0xc7f   :  { %11310 = vsyncpa [#allocation21], 1 }
 0xc80   :  { %11311 = vsyncpa [#allocation24], 1 }
 0xc81   :  { %11312 = vsyncpa [#allocation27], 1 }
 0xc82   :  { %11313 = vsyncpa [#allocation30], 1 }
 0xc83   :  { %11314 = vsyncpa [#allocation33], 1 }
 0xc84   :  { %11315 = vsyncpa [#allocation36], 1 }
 0xc85   :  { %11316 = vsyncpa [#allocation39], 1 }
 0xc86   :  { %11317 = vsyncpa [#allocation4], 1 }

</bundles_post_ra>
